<compile_context>
chip_gen: v6e
topology: v6e:2x2x1
jax: 0.10.0
libtpu: 0.0.40
codegen_flags: <defaults>
</compile_context>

<pallas_src>
import jax
import jax.numpy as jnp
from jax import lax
from jax.experimental import pallas as pl
from jax.experimental.pallas import tpu as pltpu


# ----------------------------------------------------------------------------
# In-kernel helpers (pure jnp/lax, traced inside the fused kernel)
# ----------------------------------------------------------------------------

def _layer_norm(x, g, b, eps=1e-5):
    """LayerNorm over the last dim. x: (M, D); g, b: (1, D)."""
    mu = jnp.mean(x, axis=-1, keepdims=True)
    xc = x - mu
    var = jnp.mean(xc * xc, axis=-1, keepdims=True)
    return xc * lax.rsqrt(var + eps) * g + b


def _split_heads(x2, batch, length, num_heads, dh):
    """(B*L, D) -> (H*B, L, dh), head-major on the leading (batch) axis."""
    x3 = x2.reshape(batch, length, num_heads * dh)
    return jnp.concatenate(
        [x3[:, :, h * dh:(h + 1) * dh] for h in range(num_heads)], axis=0)


def _attention(qh, kh, vh, wo, bo, batch, lq, lk, num_heads, dh, need_weights):
    """Head-batched scaled dot-product attention.

    qh: (H*B, Lq, dh), kh/vh: (H*B, Lk, dh).  Returns ((B*Lq, D) output,
    optional (B, Lq, Lk) head-averaged weights).
    """
    scale = 1.0 / float(dh) ** 0.5
    s = jnp.einsum('bqd,bkd->bqk', qh, kh,
                   preferred_element_type=jnp.float32) * scale
    s = s - jnp.max(s, axis=-1, keepdims=True)
    p = jnp.exp(s)
    denom = jnp.sum(p, axis=-1, keepdims=True)
    p = p * pl.reciprocal(denom, approx=True)          # EUP, off the VALU path
    o = jnp.einsum('bqk,bkd->bqd', p, vh,
                   preferred_element_type=jnp.float32)  # (H*B, Lq, dh)

    # Fold heads back through the output projection without a concatenate:
    #   concat_h(o_h) @ Wo == sum_h o_h @ Wo[h*dh:(h+1)*dh, :]
    out = None
    for h in range(num_heads):
        oh = o[h * batch:(h + 1) * batch].reshape(batch * lq, dh)
        contrib = jnp.dot(oh, wo[h * dh:(h + 1) * dh, :],
                          preferred_element_type=jnp.float32)
        out = contrib if out is None else out + contrib
    out = out + bo

    attn = None
    if need_weights:
        # nn.MultiheadAttention default: average over heads.
        attn = p[0:batch]
        for h in range(1, num_heads):
            attn = attn + p[h * batch:(h + 1) * batch]
        attn = attn * (1.0 / num_heads)
    return out, attn


# ----------------------------------------------------------------------------
# Single fused kernel: BOTH towers, all layers, per-layer output LayerNorms
# ----------------------------------------------------------------------------

_N_LAYER_PARAMS = 24            # per decoder-layer clone
_N_TOWER_PARAMS = _N_LAYER_PARAMS + 2   # + tower output LayerNorm (g, b)
_N_DATA_INPUTS = 5


def _make_twin_kernel(num_heads, num_layers):
    def kernel(*refs):
        n_in = _N_DATA_INPUTS + 2 * _N_TOWER_PARAMS
        video_ref, vpe_ref, pq_ref, df_ref, dpe_ref = refs[:5]
        pos_prefs = refs[5:5 + _N_TOWER_PARAMS]
        cont_prefs = refs[5 + _N_TOWER_PARAMS:n_in]
        out_ref, ca_ref, sa_ref, cout_ref = refs[n_in:n_in + 4]

        f32 = jnp.float32
        memory = video_ref[...].astype(f32)      # (B, Lv, D)
        mem_pos = vpe_ref[...].astype(f32)

        B, Lv, D = memory.shape
        dh = D // num_heads

        # Shared (both towers) flattened video memory views.
        mem_f = memory.reshape(B * Lv, D)
        memk_f = (memory + mem_pos).reshape(B * Lv, D)

        def run_tower(tgt3, qpos3, prefs, collect, o_ref, caw_ref, saw_ref):
            (sa_wqk_r, sa_bqk_r, sa_wv_r, sa_bv_r, sa_wo_r, sa_bo_r,
             ca_wq_r, ca_bq_r, ca_wk_r, ca_bk_r, ca_wv_r, ca_bv_r,
             ca_wo_r, ca_bo_r,
             w1_r, b1_r, w2_r, b2_r,
             n1g_r, n1b_r, n2g_r, n2b_r, n3g_r, n3b_r,
             ong_r, onb_r) = prefs

            Lq = tgt3.shape[1]
            tgt = tgt3.reshape(B * Lq, D)        # batch folded into M
            qpos = qpos3.reshape(B * Lq, D)

            # Load all shared-clone parameters once (VMEM resident).
            sa_wqk = sa_wqk_r[...]; sa_bqk = sa_bqk_r[...]
            sa_wv = sa_wv_r[...];   sa_bv = sa_bv_r[...]
            sa_wo = sa_wo_r[...];   sa_bo = sa_bo_r[...]
            ca_wq = ca_wq_r[...];   ca_bq = ca_bq_r[...]
            ca_wk = ca_wk_r[...];   ca_bk = ca_bk_r[...]
            ca_wv = ca_wv_r[...];   ca_bv = ca_bv_r[...]
            ca_wo = ca_wo_r[...];   ca_bo = ca_bo_r[...]
            w1 = w1_r[...]; b1 = b1_r[...]; w2 = w2_r[...]; b2 = b2_r[...]
            n1g = n1g_r[...]; n1b = n1b_r[...]
            n2g = n2g_r[...]; n2b = n2b_r[...]
            n3g = n3g_r[...]; n3b = n3b_r[...]
            ong = ong_r[...]; onb = onb_r[...]

            # Cross-attention K/V depend only on the fixed memory and the
            # shared clone weights -> hoisted out of the layer loop.
            ca_k = jnp.dot(memk_f, ca_wk, preferred_element_type=f32) + ca_bk
            ca_v = jnp.dot(mem_f, ca_wv, preferred_element_type=f32) + ca_bv
            ca_kh = _split_heads(ca_k, B, Lv, num_heads, dh)   # (H*B, Lv, dh)
            ca_vh = _split_heads(ca_v, B, Lv, num_heads, dh)

            for l in range(num_layers):          # clones share params; unrolled
                # --- self-attention: q = k = tgt + qpos, v = tgt (fused Wq|Wk)
                qk_in = tgt + qpos
                qk = jnp.dot(qk_in, sa_wqk, preferred_element_type=f32) + sa_bqk
                q = qk[:, :D]
                k = qk[:, D:]
                v = jnp.dot(tgt, sa_wv, preferred_element_type=f32) + sa_bv
                qh = _split_heads(q, B, Lq, num_heads, dh)
                kh = _split_heads(k, B, Lq, num_heads, dh)
                vh = _split_heads(v, B, Lq, num_heads, dh)
                sa_out, sa_w = _attention(qh, kh, vh, sa_wo, sa_bo,
                                          B, Lq, Lq, num_heads, dh, collect)
                tgt = _layer_norm(tgt + sa_out, n1g, n1b)

                # --- cross-attention: q = tgt + qpos, K/V hoisted above ---
                q = jnp.dot(tgt + qpos, ca_wq, preferred_element_type=f32) + ca_bq
                qh = _split_heads(q, B, Lq, num_heads, dh)
                ca_out, ca_w = _attention(qh, ca_kh, ca_vh, ca_wo, ca_bo,
                                          B, Lq, Lv, num_heads, dh, collect)
                tgt = _layer_norm(tgt + ca_out, n2g, n2b)

                # --- FFN ---
                hdn = jnp.maximum(
                    jnp.dot(tgt, w1, preferred_element_type=f32) + b1, 0.0)
                ff = jnp.dot(hdn, w2, preferred_element_type=f32) + b2
                tgt = _layer_norm(tgt + ff, n3g, n3b)

                # --- per-layer tower output LayerNorm (decoder.norm) ---
                out_l = _layer_norm(tgt, ong, onb)
                o_ref[l] = out_l.reshape(B, Lq, D).astype(o_ref.dtype)
                if collect:
                    caw_ref[l] = ca_w.astype(caw_ref.dtype)
                    saw_ref[l] = sa_w.astype(saw_ref.dtype)

        # Positional tower: needs head-averaged attention weights.
        run_tower(pq_ref[...].astype(f32), dpe_ref[...].astype(f32),
                  pos_prefs, True, out_ref, ca_ref, sa_ref)
        # Content tower: attention weights are discarded -> never computed.
        run_tower(df_ref[...].astype(f32), pq_ref[...].astype(f32),
                  cont_prefs, False, cout_ref, None, None)

    return kernel


# ----------------------------------------------------------------------------
# Host-side wrapper
# ----------------------------------------------------------------------------

def _flatten_layer_params(lp):
    return [
        lp["sa"]["wqk"], lp["sa"]["bqk"], lp["sa"]["wv"], lp["sa"]["bv"],
        lp["sa"]["wo"], lp["sa"]["bo"],
        lp["ca"]["wq"], lp["ca"]["bq"], lp["ca"]["wk"], lp["ca"]["bk"],
        lp["ca"]["wv"], lp["ca"]["bv"], lp["ca"]["wo"], lp["ca"]["bo"],
        lp["ffn"]["w1"], lp["ffn"]["b1"], lp["ffn"]["w2"], lp["ffn"]["b2"],
        lp["norm1"]["g"], lp["norm1"]["b"],
        lp["norm2"]["g"], lp["norm2"]["b"],
        lp["norm3"]["g"], lp["norm3"]["b"],
    ]


_VMEM = pl.BlockSpec(memory_space=pltpu.MemorySpace.VMEM)


def twin_tower_forward(video_features, diagram_features, positional_query,
                       video_pe, diagram_pe, params, num_heads):
    nl = params["num_layers"]
    B, Lq, D = positional_query.shape
    Lv = video_features.shape[1]

    inputs = ([video_features, video_pe, positional_query, diagram_features,
               diagram_pe]
              + _flatten_layer_params(params["layer"])
              + [params["norm"]["g"], params["norm"]["b"]]
              + _flatten_layer_params(params["content_layer"])
              + [params["content_norm"]["g"], params["content_norm"]["b"]])

    outputs, ca_w, sa_w, content_outputs = pl.pallas_call(
        _make_twin_kernel(num_heads, nl),
        out_shape=(
            jax.ShapeDtypeStruct((nl, B, Lq, D), positional_query.dtype),
            jax.ShapeDtypeStruct((nl, B, Lq, Lv), jnp.float32),
            jax.ShapeDtypeStruct((nl, B, Lq, Lq), jnp.float32),
            jax.ShapeDtypeStruct((nl, B, Lq, D), diagram_features.dtype),
        ),
        in_specs=[_VMEM] * len(inputs),
        out_specs=(_VMEM, _VMEM, _VMEM, _VMEM),
        compiler_params=pltpu.CompilerParams(vmem_limit_bytes=64 << 20),
    )(*inputs)

    return outputs, ca_w, sa_w, content_outputs


# ----------------------------------------------------------------------------
# Deterministic parameter initialization
# ----------------------------------------------------------------------------

def _init_self_attn(key, d):
    ks = jax.random.split(key, 4)
    s = 1.0 / d ** 0.5
    wq = jax.random.normal(ks[0], (d, d), jnp.float32) * s
    wk = jax.random.normal(ks[1], (d, d), jnp.float32) * s
    return dict(
        wqk=jnp.concatenate([wq, wk], axis=1),          # fused Q|K projection
        bqk=jnp.zeros((1, 2 * d), jnp.float32),
        wv=jax.random.normal(ks[2], (d, d), jnp.float32) * s,
        bv=jnp.zeros((1, d), jnp.float32),
        wo=jax.random.normal(ks[3], (d, d), jnp.float32) * s,
        bo=jnp.zeros((1, d), jnp.float32),
    )


def _init_cross_attn(key, d):
    ks = jax.random.split(key, 4)
    s = 1.0 / d ** 0.5
    z = jnp.zeros((1, d), jnp.float32)
    return dict(
        wq=jax.random.normal(ks[0], (d, d), jnp.float32) * s, bq=z,
        wk=jax.random.normal(ks[1], (d, d), jnp.float32) * s, bk=z,
        wv=jax.random.normal(ks[2], (d, d), jnp.float32) * s, bv=z,
        wo=jax.random.normal(ks[3], (d, d), jnp.float32) * s, bo=z,
    )


def _init_ln(d):
    return dict(g=jnp.ones((1, d), jnp.float32), b=jnp.zeros((1, d), jnp.float32))


def _init_layer(key, d, dff):
    ks = jax.random.split(key, 4)
    return dict(
        sa=_init_self_attn(ks[0], d),
        ca=_init_cross_attn(ks[1], d),
        ffn=dict(
            w1=jax.random.normal(ks[2], (d, dff), jnp.float32) * (1.0 / d ** 0.5),
            b1=jnp.zeros((1, dff), jnp.float32),
            w2=jax.random.normal(ks[3], (dff, d), jnp.float32) * (1.0 / dff ** 0.5),
            b2=jnp.zeros((1, d), jnp.float32),
        ),
        norm1=_init_ln(d), norm2=_init_ln(d), norm3=_init_ln(d),
    )


def init_params(key, d_model, dff, n_layers):
    k1, k2 = jax.random.split(key, 2)
    return dict(
        num_layers=n_layers,
        layer=_init_layer(k1, d_model, dff),           # positional-tower clone params
        content_layer=_init_layer(k2, d_model, dff),   # content-tower clone params
        norm=_init_ln(d_model),
        content_norm=_init_ln(d_model),
    )


# ----------------------------------------------------------------------------
# Main
# ----------------------------------------------------------------------------

if __name__ == "__main__":
    B, Lq, Lv, D, H, DFF, NL = 2, 8, 16, 32, 4, 64, 2

    key = jax.random.PRNGKey(0)
    ks = jax.random.split(key, 6)
    video_features = jax.random.normal(ks[0], (B, Lv, D), jnp.float32)
    diagram_features = jax.random.normal(ks[1], (B, Lq, D), jnp.float32)
    positional_query = jax.random.normal(ks[2], (B, Lq, D), jnp.float32)
    video_pe = jax.random.normal(ks[3], (B, Lv, D), jnp.float32)
    diagram_pe = jax.random.normal(ks[4], (B, Lq, D), jnp.float32)
    params = init_params(ks[5], D, DFF, NL)

    outputs, ca_weights, sa_weights, content_outputs = twin_tower_forward(
        video_features, diagram_features, positional_query,
        video_pe, diagram_pe, params, num_heads=H)

    jax.block_until_ready(outputs)
    jax.block_until_ready(ca_weights)
    jax.block_until_ready(sa_weights)
    jax.block_until_ready(content_outputs)

    assert outputs.shape == (NL, B, Lq, D)
    assert ca_weights.shape == (NL, B, Lq, Lv)
    assert sa_weights.shape == (NL, B, Lq, Lq)
    assert content_outputs.shape == (NL, B, Lq, D)
    assert bool(jnp.all(jnp.isfinite(outputs)))
    assert bool(jnp.all(jnp.isfinite(content_outputs)))
    # Attention rows are softmax-normalized.
    assert bool(jnp.allclose(jnp.sum(ca_weights, axis=-1), 1.0, atol=1e-2))
    assert bool(jnp.allclose(jnp.sum(sa_weights, axis=-1), 1.0, atol=1e-2))

    print("KERNEL_OK")
</pallas_src>

<mosaic_0001>
module attributes {stable_mosaic.version = 11 : i64} {
  func.func @kernel(%arg0: memref<2x16x32xf32, #tpu.memory_space<vmem>>, %arg1: memref<2x16x32xf32, #tpu.memory_space<vmem>>, %arg2: memref<2x8x32xf32, #tpu.memory_space<vmem>>, %arg3: memref<2x8x32xf32, #tpu.memory_space<vmem>>, %arg4: memref<2x8x32xf32, #tpu.memory_space<vmem>>, %arg5: memref<32x64xf32, #tpu.memory_space<vmem>>, %arg6: memref<1x64xf32, #tpu.memory_space<vmem>>, %arg7: memref<32x32xf32, #tpu.memory_space<vmem>>, %arg8: memref<1x32xf32, #tpu.memory_space<vmem>>, %arg9: memref<32x32xf32, #tpu.memory_space<vmem>>, %arg10: memref<1x32xf32, #tpu.memory_space<vmem>>, %arg11: memref<32x32xf32, #tpu.memory_space<vmem>>, %arg12: memref<1x32xf32, #tpu.memory_space<vmem>>, %arg13: memref<32x32xf32, #tpu.memory_space<vmem>>, %arg14: memref<1x32xf32, #tpu.memory_space<vmem>>, %arg15: memref<32x32xf32, #tpu.memory_space<vmem>>, %arg16: memref<1x32xf32, #tpu.memory_space<vmem>>, %arg17: memref<32x32xf32, #tpu.memory_space<vmem>>, %arg18: memref<1x32xf32, #tpu.memory_space<vmem>>, %arg19: memref<32x64xf32, #tpu.memory_space<vmem>>, %arg20: memref<1x64xf32, #tpu.memory_space<vmem>>, %arg21: memref<64x32xf32, #tpu.memory_space<vmem>>, %arg22: memref<1x32xf32, #tpu.memory_space<vmem>>, %arg23: memref<1x32xf32, #tpu.memory_space<vmem>>, %arg24: memref<1x32xf32, #tpu.memory_space<vmem>>, %arg25: memref<1x32xf32, #tpu.memory_space<vmem>>, %arg26: memref<1x32xf32, #tpu.memory_space<vmem>>, %arg27: memref<1x32xf32, #tpu.memory_space<vmem>>, %arg28: memref<1x32xf32, #tpu.memory_space<vmem>>, %arg29: memref<1x32xf32, #tpu.memory_space<vmem>>, %arg30: memref<1x32xf32, #tpu.memory_space<vmem>>, %arg31: memref<32x64xf32, #tpu.memory_space<vmem>>, %arg32: memref<1x64xf32, #tpu.memory_space<vmem>>, %arg33: memref<32x32xf32, #tpu.memory_space<vmem>>, %arg34: memref<1x32xf32, #tpu.memory_space<vmem>>, %arg35: memref<32x32xf32, #tpu.memory_space<vmem>>, %arg36: memref<1x32xf32, #tpu.memory_space<vmem>>, %arg37: memref<32x32xf32, #tpu.memory_space<vmem>>, %arg38: memref<1x32xf32, #tpu.memory_space<vmem>>, %arg39: memref<32x32xf32, #tpu.memory_space<vmem>>, %arg40: memref<1x32xf32, #tpu.memory_space<vmem>>, %arg41: memref<32x32xf32, #tpu.memory_space<vmem>>, %arg42: memref<1x32xf32, #tpu.memory_space<vmem>>, %arg43: memref<32x32xf32, #tpu.memory_space<vmem>>, %arg44: memref<1x32xf32, #tpu.memory_space<vmem>>, %arg45: memref<32x64xf32, #tpu.memory_space<vmem>>, %arg46: memref<1x64xf32, #tpu.memory_space<vmem>>, %arg47: memref<64x32xf32, #tpu.memory_space<vmem>>, %arg48: memref<1x32xf32, #tpu.memory_space<vmem>>, %arg49: memref<1x32xf32, #tpu.memory_space<vmem>>, %arg50: memref<1x32xf32, #tpu.memory_space<vmem>>, %arg51: memref<1x32xf32, #tpu.memory_space<vmem>>, %arg52: memref<1x32xf32, #tpu.memory_space<vmem>>, %arg53: memref<1x32xf32, #tpu.memory_space<vmem>>, %arg54: memref<1x32xf32, #tpu.memory_space<vmem>>, %arg55: memref<1x32xf32, #tpu.memory_space<vmem>>, %arg56: memref<1x32xf32, #tpu.memory_space<vmem>>, %arg57: memref<2x2x8x32xf32, #tpu.memory_space<vmem>>, %arg58: memref<2x2x8x16xf32, #tpu.memory_space<vmem>>, %arg59: memref<2x2x8x8xf32, #tpu.memory_space<vmem>>, %arg60: memref<2x2x8x32xf32, #tpu.memory_space<vmem>>) attributes {dimension_semantics = [], scalar_prefetch = 0 : i64, scratch_operands = 0 : i64, tpu.core_type = #tpu.core_type<tc>} {
    %c0 = arith.constant 0 : index
    %c0_0 = arith.constant 0 : index
    %c0_1 = arith.constant 0 : index
    %0 = vector.load %arg0[%c0, %c0_0, %c0_1] : memref<2x16x32xf32, #tpu.memory_space<vmem>>, vector<2x16x32xf32>
    %c0_2 = arith.constant 0 : index
    %c0_3 = arith.constant 0 : index
    %c0_4 = arith.constant 0 : index
    %1 = vector.load %arg1[%c0_2, %c0_3, %c0_4] : memref<2x16x32xf32, #tpu.memory_space<vmem>>, vector<2x16x32xf32>
    %2 = vector.shape_cast %0 : vector<2x16x32xf32> to vector<32x32xf32>
    %3 = arith.addf %0, %1 : vector<2x16x32xf32>
    %4 = vector.shape_cast %3 : vector<2x16x32xf32> to vector<32x32xf32>
    %c0_5 = arith.constant 0 : index
    %c0_6 = arith.constant 0 : index
    %c0_7 = arith.constant 0 : index
    %5 = vector.load %arg2[%c0_5, %c0_6, %c0_7] : memref<2x8x32xf32, #tpu.memory_space<vmem>>, vector<2x8x32xf32>
    %c0_8 = arith.constant 0 : index
    %c0_9 = arith.constant 0 : index
    %c0_10 = arith.constant 0 : index
    %6 = vector.load %arg4[%c0_8, %c0_9, %c0_10] : memref<2x8x32xf32, #tpu.memory_space<vmem>>, vector<2x8x32xf32>
    %7 = vector.shape_cast %5 : vector<2x8x32xf32> to vector<16x32xf32>
    %8 = vector.shape_cast %6 : vector<2x8x32xf32> to vector<16x32xf32>
    %c0_11 = arith.constant 0 : index
    %c0_12 = arith.constant 0 : index
    %9 = vector.load %arg5[%c0_11, %c0_12] : memref<32x64xf32, #tpu.memory_space<vmem>>, vector<32x64xf32>
    %c0_13 = arith.constant 0 : index
    %c0_14 = arith.constant 0 : index
    %10 = vector.load %arg6[%c0_13, %c0_14] : memref<1x64xf32, #tpu.memory_space<vmem>>, vector<1x64xf32>
    %c0_15 = arith.constant 0 : index
    %c0_16 = arith.constant 0 : index
    %11 = vector.load %arg7[%c0_15, %c0_16] : memref<32x32xf32, #tpu.memory_space<vmem>>, vector<32x32xf32>
    %c0_17 = arith.constant 0 : index
    %c0_18 = arith.constant 0 : index
    %12 = vector.load %arg8[%c0_17, %c0_18] : memref<1x32xf32, #tpu.memory_space<vmem>>, vector<1x32xf32>
    %c0_19 = arith.constant 0 : index
    %c0_20 = arith.constant 0 : index
    %13 = vector.load %arg9[%c0_19, %c0_20] : memref<32x32xf32, #tpu.memory_space<vmem>>, vector<32x32xf32>
    %c0_21 = arith.constant 0 : index
    %c0_22 = arith.constant 0 : index
    %14 = vector.load %arg10[%c0_21, %c0_22] : memref<1x32xf32, #tpu.memory_space<vmem>>, vector<1x32xf32>
    %c0_23 = arith.constant 0 : index
    %c0_24 = arith.constant 0 : index
    %15 = vector.load %arg11[%c0_23, %c0_24] : memref<32x32xf32, #tpu.memory_space<vmem>>, vector<32x32xf32>
    %c0_25 = arith.constant 0 : index
    %c0_26 = arith.constant 0 : index
    %16 = vector.load %arg12[%c0_25, %c0_26] : memref<1x32xf32, #tpu.memory_space<vmem>>, vector<1x32xf32>
    %c0_27 = arith.constant 0 : index
    %c0_28 = arith.constant 0 : index
    %17 = vector.load %arg13[%c0_27, %c0_28] : memref<32x32xf32, #tpu.memory_space<vmem>>, vector<32x32xf32>
    %c0_29 = arith.constant 0 : index
    %c0_30 = arith.constant 0 : index
    %18 = vector.load %arg14[%c0_29, %c0_30] : memref<1x32xf32, #tpu.memory_space<vmem>>, vector<1x32xf32>
    %c0_31 = arith.constant 0 : index
    %c0_32 = arith.constant 0 : index
    %19 = vector.load %arg15[%c0_31, %c0_32] : memref<32x32xf32, #tpu.memory_space<vmem>>, vector<32x32xf32>
    %c0_33 = arith.constant 0 : index
    %c0_34 = arith.constant 0 : index
    %20 = vector.load %arg16[%c0_33, %c0_34] : memref<1x32xf32, #tpu.memory_space<vmem>>, vector<1x32xf32>
    %c0_35 = arith.constant 0 : index
    %c0_36 = arith.constant 0 : index
    %21 = vector.load %arg17[%c0_35, %c0_36] : memref<32x32xf32, #tpu.memory_space<vmem>>, vector<32x32xf32>
    %c0_37 = arith.constant 0 : index
    %c0_38 = arith.constant 0 : index
    %22 = vector.load %arg18[%c0_37, %c0_38] : memref<1x32xf32, #tpu.memory_space<vmem>>, vector<1x32xf32>
    %c0_39 = arith.constant 0 : index
    %c0_40 = arith.constant 0 : index
    %23 = vector.load %arg19[%c0_39, %c0_40] : memref<32x64xf32, #tpu.memory_space<vmem>>, vector<32x64xf32>
    %c0_41 = arith.constant 0 : index
    %c0_42 = arith.constant 0 : index
    %24 = vector.load %arg20[%c0_41, %c0_42] : memref<1x64xf32, #tpu.memory_space<vmem>>, vector<1x64xf32>
    %c0_43 = arith.constant 0 : index
    %c0_44 = arith.constant 0 : index
    %25 = vector.load %arg21[%c0_43, %c0_44] : memref<64x32xf32, #tpu.memory_space<vmem>>, vector<64x32xf32>
    %c0_45 = arith.constant 0 : index
    %c0_46 = arith.constant 0 : index
    %26 = vector.load %arg22[%c0_45, %c0_46] : memref<1x32xf32, #tpu.memory_space<vmem>>, vector<1x32xf32>
    %c0_47 = arith.constant 0 : index
    %c0_48 = arith.constant 0 : index
    %27 = vector.load %arg23[%c0_47, %c0_48] : memref<1x32xf32, #tpu.memory_space<vmem>>, vector<1x32xf32>
    %c0_49 = arith.constant 0 : index
    %c0_50 = arith.constant 0 : index
    %28 = vector.load %arg24[%c0_49, %c0_50] : memref<1x32xf32, #tpu.memory_space<vmem>>, vector<1x32xf32>
    %c0_51 = arith.constant 0 : index
    %c0_52 = arith.constant 0 : index
    %29 = vector.load %arg25[%c0_51, %c0_52] : memref<1x32xf32, #tpu.memory_space<vmem>>, vector<1x32xf32>
    %c0_53 = arith.constant 0 : index
    %c0_54 = arith.constant 0 : index
    %30 = vector.load %arg26[%c0_53, %c0_54] : memref<1x32xf32, #tpu.memory_space<vmem>>, vector<1x32xf32>
    %c0_55 = arith.constant 0 : index
    %c0_56 = arith.constant 0 : index
    %31 = vector.load %arg27[%c0_55, %c0_56] : memref<1x32xf32, #tpu.memory_space<vmem>>, vector<1x32xf32>
    %c0_57 = arith.constant 0 : index
    %c0_58 = arith.constant 0 : index
    %32 = vector.load %arg28[%c0_57, %c0_58] : memref<1x32xf32, #tpu.memory_space<vmem>>, vector<1x32xf32>
    %c0_59 = arith.constant 0 : index
    %c0_60 = arith.constant 0 : index
    %33 = vector.load %arg29[%c0_59, %c0_60] : memref<1x32xf32, #tpu.memory_space<vmem>>, vector<1x32xf32>
    %c0_61 = arith.constant 0 : index
    %c0_62 = arith.constant 0 : index
    %34 = vector.load %arg30[%c0_61, %c0_62] : memref<1x32xf32, #tpu.memory_space<vmem>>, vector<1x32xf32>
    %cst = arith.constant dense<0.000000e+00> : vector<32x32xf32>
    %35 = tpu.matmul %4, %17, %cst {dimension_numbers = #tpu.dot_dimension_numbers<[1], [0], [0], [1], [0, 0, 1, 1], [], []>} : vector<32x32xf32>, vector<32x32xf32>, vector<32x32xf32> -> vector<32x32xf32>
    %36 = vector.broadcast %18 : vector<1x32xf32> to vector<32x32xf32>
    %37 = arith.addf %35, %36 : vector<32x32xf32>
    %cst_63 = arith.constant dense<0.000000e+00> : vector<32x32xf32>
    %38 = tpu.matmul %2, %19, %cst_63 {dimension_numbers = #tpu.dot_dimension_numbers<[1], [0], [0], [1], [0, 0, 1, 1], [], []>} : vector<32x32xf32>, vector<32x32xf32>, vector<32x32xf32> -> vector<32x32xf32>
    %39 = vector.broadcast %20 : vector<1x32xf32> to vector<32x32xf32>
    %40 = arith.addf %38, %39 : vector<32x32xf32>
    %41 = vector.shape_cast %37 : vector<32x32xf32> to vector<2x16x32xf32>
    %42 = vector.extract_strided_slice %41 {offsets = [0, 0, 0], sizes = [2, 16, 8], strides = [1, 1, 1]} : vector<2x16x32xf32> to vector<2x16x8xf32>
    %43 = vector.extract_strided_slice %41 {offsets = [0, 0, 8], sizes = [2, 16, 8], strides = [1, 1, 1]} : vector<2x16x32xf32> to vector<2x16x8xf32>
    %44 = vector.extract_strided_slice %41 {offsets = [0, 0, 16], sizes = [2, 16, 8], strides = [1, 1, 1]} : vector<2x16x32xf32> to vector<2x16x8xf32>
    %45 = vector.extract_strided_slice %41 {offsets = [0, 0, 24], sizes = [2, 16, 8], strides = [1, 1, 1]} : vector<2x16x32xf32> to vector<2x16x8xf32>
    %46 = tpu.concatenate %42, %43, %44, %45 in 0 : vector<2x16x8xf32>, vector<2x16x8xf32>, vector<2x16x8xf32>, vector<2x16x8xf32> -> vector<8x16x8xf32>
    %47 = vector.shape_cast %40 : vector<32x32xf32> to vector<2x16x32xf32>
    %48 = vector.extract_strided_slice %47 {offsets = [0, 0, 0], sizes = [2, 16, 8], strides = [1, 1, 1]} : vector<2x16x32xf32> to vector<2x16x8xf32>
    %49 = vector.extract_strided_slice %47 {offsets = [0, 0, 8], sizes = [2, 16, 8], strides = [1, 1, 1]} : vector<2x16x32xf32> to vector<2x16x8xf32>
    %50 = vector.extract_strided_slice %47 {offsets = [0, 0, 16], sizes = [2, 16, 8], strides = [1, 1, 1]} : vector<2x16x32xf32> to vector<2x16x8xf32>
    %51 = vector.extract_strided_slice %47 {offsets = [0, 0, 24], sizes = [2, 16, 8], strides = [1, 1, 1]} : vector<2x16x32xf32> to vector<2x16x8xf32>
    %52 = tpu.concatenate %48, %49, %50, %51 in 0 : vector<2x16x8xf32>, vector<2x16x8xf32>, vector<2x16x8xf32>, vector<2x16x8xf32> -> vector<8x16x8xf32>
    %53 = arith.addf %7, %8 : vector<16x32xf32>
    %cst_64 = arith.constant dense<0.000000e+00> : vector<16x64xf32>
    %54 = tpu.matmul %53, %9, %cst_64 {dimension_numbers = #tpu.dot_dimension_numbers<[1], [0], [0], [1], [0, 0, 1, 1], [], []>} : vector<16x32xf32>, vector<32x64xf32>, vector<16x64xf32> -> vector<16x64xf32>
    %55 = vector.broadcast %10 : vector<1x64xf32> to vector<16x64xf32>
    %56 = arith.addf %54, %55 : vector<16x64xf32>
    %57 = vector.extract_strided_slice %56 {offsets = [0, 0], sizes = [16, 32], strides = [1, 1]} : vector<16x64xf32> to vector<16x32xf32>
    %58 = vector.extract_strided_slice %56 {offsets = [0, 32], sizes = [16, 32], strides = [1, 1]} : vector<16x64xf32> to vector<16x32xf32>
    %cst_65 = arith.constant dense<0.000000e+00> : vector<16x32xf32>
    %59 = tpu.matmul %7, %11, %cst_65 {dimension_numbers = #tpu.dot_dimension_numbers<[1], [0], [0], [1], [0, 0, 1, 1], [], []>} : vector<16x32xf32>, vector<32x32xf32>, vector<16x32xf32> -> vector<16x32xf32>
    %60 = vector.broadcast %12 : vector<1x32xf32> to vector<16x32xf32>
    %61 = arith.addf %59, %60 : vector<16x32xf32>
    %62 = vector.shape_cast %57 : vector<16x32xf32> to vector<2x8x32xf32>
    %63 = vector.extract_strided_slice %62 {offsets = [0, 0, 0], sizes = [2, 8, 8], strides = [1, 1, 1]} : vector<2x8x32xf32> to vector<2x8x8xf32>
    %64 = vector.extract_strided_slice %62 {offsets = [0, 0, 8], sizes = [2, 8, 8], strides = [1, 1, 1]} : vector<2x8x32xf32> to vector<2x8x8xf32>
    %65 = vector.extract_strided_slice %62 {offsets = [0, 0, 16], sizes = [2, 8, 8], strides = [1, 1, 1]} : vector<2x8x32xf32> to vector<2x8x8xf32>
    %66 = vector.extract_strided_slice %62 {offsets = [0, 0, 24], sizes = [2, 8, 8], strides = [1, 1, 1]} : vector<2x8x32xf32> to vector<2x8x8xf32>
    %67 = tpu.concatenate %63, %64, %65, %66 in 0 : vector<2x8x8xf32>, vector<2x8x8xf32>, vector<2x8x8xf32>, vector<2x8x8xf32> -> vector<8x8x8xf32>
    %68 = vector.shape_cast %58 : vector<16x32xf32> to vector<2x8x32xf32>
    %69 = vector.extract_strided_slice %68 {offsets = [0, 0, 0], sizes = [2, 8, 8], strides = [1, 1, 1]} : vector<2x8x32xf32> to vector<2x8x8xf32>
    %70 = vector.extract_strided_slice %68 {offsets = [0, 0, 8], sizes = [2, 8, 8], strides = [1, 1, 1]} : vector<2x8x32xf32> to vector<2x8x8xf32>
    %71 = vector.extract_strided_slice %68 {offsets = [0, 0, 16], sizes = [2, 8, 8], strides = [1, 1, 1]} : vector<2x8x32xf32> to vector<2x8x8xf32>
    %72 = vector.extract_strided_slice %68 {offsets = [0, 0, 24], sizes = [2, 8, 8], strides = [1, 1, 1]} : vector<2x8x32xf32> to vector<2x8x8xf32>
    %73 = tpu.concatenate %69, %70, %71, %72 in 0 : vector<2x8x8xf32>, vector<2x8x8xf32>, vector<2x8x8xf32>, vector<2x8x8xf32> -> vector<8x8x8xf32>
    %74 = vector.shape_cast %61 : vector<16x32xf32> to vector<2x8x32xf32>
    %75 = vector.extract_strided_slice %74 {offsets = [0, 0, 0], sizes = [2, 8, 8], strides = [1, 1, 1]} : vector<2x8x32xf32> to vector<2x8x8xf32>
    %76 = vector.extract_strided_slice %74 {offsets = [0, 0, 8], sizes = [2, 8, 8], strides = [1, 1, 1]} : vector<2x8x32xf32> to vector<2x8x8xf32>
    %77 = vector.extract_strided_slice %74 {offsets = [0, 0, 16], sizes = [2, 8, 8], strides = [1, 1, 1]} : vector<2x8x32xf32> to vector<2x8x8xf32>
    %78 = vector.extract_strided_slice %74 {offsets = [0, 0, 24], sizes = [2, 8, 8], strides = [1, 1, 1]} : vector<2x8x32xf32> to vector<2x8x8xf32>
    %79 = tpu.concatenate %75, %76, %77, %78 in 0 : vector<2x8x8xf32>, vector<2x8x8xf32>, vector<2x8x8xf32>, vector<2x8x8xf32> -> vector<8x8x8xf32>
    "tpu.trace_start"() <{level = 10 : i32, message = "bqd,bkd->bqk"}> : () -> ()
    %cst_66 = arith.constant dense<0.000000e+00> : vector<8x8x8xf32>
    %80 = tpu.matmul %67, %73, %cst_66 {dimension_numbers = #tpu.dot_dimension_numbers<[2], [2], [1], [1], [0, 0, 0, 1, 1, 1], [0], [0]>} : vector<8x8x8xf32>, vector<8x8x8xf32>, vector<8x8x8xf32> -> vector<8x8x8xf32>
    "tpu.trace_stop"() : () -> ()
    %cst_67 = arith.constant 0.353553385 : f32
    %81 = vector.broadcast %cst_67 : f32 to vector<8x8x8xf32>
    %82 = arith.mulf %80, %81 : vector<8x8x8xf32>
    %cst_68 = arith.constant dense<0xFF800000> : vector<8x8xf32>
    %83 = vector.multi_reduction <maximumf>, %82, %cst_68 [2] : vector<8x8x8xf32> to vector<8x8xf32>
    %84 = vector.shape_cast %83 : vector<8x8xf32> to vector<8x8x1xf32>
    %85 = vector.broadcast %84 : vector<8x8x1xf32> to vector<8x8x8xf32>
    %86 = arith.subf %82, %85 : vector<8x8x8xf32>
    %87 = math.exp %86 : vector<8x8x8xf32>
    %cst_69 = arith.constant dense<0.000000e+00> : vector<8x8xf32>
    %88 = vector.multi_reduction <add>, %87, %cst_69 [2] : vector<8x8x8xf32> to vector<8x8xf32>
    %89 = vector.shape_cast %88 : vector<8x8xf32> to vector<8x8x1xf32>
    %90 = tpu.reciprocal %89 {approx = true} : vector<8x8x1xf32> -> vector<8x8x1xf32>
    %91 = vector.broadcast %90 : vector<8x8x1xf32> to vector<8x8x8xf32>
    %92 = arith.mulf %87, %91 : vector<8x8x8xf32>
    "tpu.trace_start"() <{level = 10 : i32, message = "bqk,bkd->bqd"}> : () -> ()
    %cst_70 = arith.constant dense<0.000000e+00> : vector<8x8x8xf32>
    %93 = tpu.matmul %92, %79, %cst_70 {dimension_numbers = #tpu.dot_dimension_numbers<[2], [1], [1], [2], [0, 0, 0, 1, 1, 2], [0], [0]>} : vector<8x8x8xf32>, vector<8x8x8xf32>, vector<8x8x8xf32> -> vector<8x8x8xf32>
    "tpu.trace_stop"() : () -> ()
    %94 = vector.extract_strided_slice %93 {offsets = [0, 0, 0], sizes = [2, 8, 8], strides = [1, 1, 1]} : vector<8x8x8xf32> to vector<2x8x8xf32>
    %95 = vector.shape_cast %94 : vector<2x8x8xf32> to vector<16x8xf32>
    %96 = vector.extract_strided_slice %13 {offsets = [0, 0], sizes = [8, 32], strides = [1, 1]} : vector<32x32xf32> to vector<8x32xf32>
    %cst_71 = arith.constant dense<0.000000e+00> : vector<16x32xf32>
    %97 = tpu.matmul %95, %96, %cst_71 {dimension_numbers = #tpu.dot_dimension_numbers<[1], [0], [0], [1], [0, 0, 1, 1], [], []>} : vector<16x8xf32>, vector<8x32xf32>, vector<16x32xf32> -> vector<16x32xf32>
    %98 = vector.extract_strided_slice %93 {offsets = [2, 0, 0], sizes = [2, 8, 8], strides = [1, 1, 1]} : vector<8x8x8xf32> to vector<2x8x8xf32>
    %99 = vector.shape_cast %98 : vector<2x8x8xf32> to vector<16x8xf32>
    %100 = vector.extract_strided_slice %13 {offsets = [8, 0], sizes = [8, 32], strides = [1, 1]} : vector<32x32xf32> to vector<8x32xf32>
    %cst_72 = arith.constant dense<0.000000e+00> : vector<16x32xf32>
    %101 = tpu.matmul %99, %100, %cst_72 {dimension_numbers = #tpu.dot_dimension_numbers<[1], [0], [0], [1], [0, 0, 1, 1], [], []>} : vector<16x8xf32>, vector<8x32xf32>, vector<16x32xf32> -> vector<16x32xf32>
    %102 = arith.addf %97, %101 : vector<16x32xf32>
    %103 = vector.extract_strided_slice %93 {offsets = [4, 0, 0], sizes = [2, 8, 8], strides = [1, 1, 1]} : vector<8x8x8xf32> to vector<2x8x8xf32>
    %104 = vector.shape_cast %103 : vector<2x8x8xf32> to vector<16x8xf32>
    %105 = vector.extract_strided_slice %13 {offsets = [16, 0], sizes = [8, 32], strides = [1, 1]} : vector<32x32xf32> to vector<8x32xf32>
    %cst_73 = arith.constant dense<0.000000e+00> : vector<16x32xf32>
    %106 = tpu.matmul %104, %105, %cst_73 {dimension_numbers = #tpu.dot_dimension_numbers<[1], [0], [0], [1], [0, 0, 1, 1], [], []>} : vector<16x8xf32>, vector<8x32xf32>, vector<16x32xf32> -> vector<16x32xf32>
    %107 = arith.addf %102, %106 : vector<16x32xf32>
    %108 = vector.extract_strided_slice %93 {offsets = [6, 0, 0], sizes = [2, 8, 8], strides = [1, 1, 1]} : vector<8x8x8xf32> to vector<2x8x8xf32>
    %109 = vector.shape_cast %108 : vector<2x8x8xf32> to vector<16x8xf32>
    %110 = vector.extract_strided_slice %13 {offsets = [24, 0], sizes = [8, 32], strides = [1, 1]} : vector<32x32xf32> to vector<8x32xf32>
    %cst_74 = arith.constant dense<0.000000e+00> : vector<16x32xf32>
    %111 = tpu.matmul %109, %110, %cst_74 {dimension_numbers = #tpu.dot_dimension_numbers<[1], [0], [0], [1], [0, 0, 1, 1], [], []>} : vector<16x8xf32>, vector<8x32xf32>, vector<16x32xf32> -> vector<16x32xf32>
    %112 = arith.addf %107, %111 : vector<16x32xf32>
    %113 = vector.broadcast %14 : vector<1x32xf32> to vector<16x32xf32>
    %114 = arith.addf %112, %113 : vector<16x32xf32>
    %115 = vector.extract_strided_slice %92 {offsets = [0, 0, 0], sizes = [2, 8, 8], strides = [1, 1, 1]} : vector<8x8x8xf32> to vector<2x8x8xf32>
    %116 = vector.extract_strided_slice %92 {offsets = [2, 0, 0], sizes = [2, 8, 8], strides = [1, 1, 1]} : vector<8x8x8xf32> to vector<2x8x8xf32>
    %117 = arith.addf %115, %116 : vector<2x8x8xf32>
    %118 = vector.extract_strided_slice %92 {offsets = [4, 0, 0], sizes = [2, 8, 8], strides = [1, 1, 1]} : vector<8x8x8xf32> to vector<2x8x8xf32>
    %119 = arith.addf %117, %118 : vector<2x8x8xf32>
    %120 = vector.extract_strided_slice %92 {offsets = [6, 0, 0], sizes = [2, 8, 8], strides = [1, 1, 1]} : vector<8x8x8xf32> to vector<2x8x8xf32>
    %121 = arith.addf %119, %120 : vector<2x8x8xf32>
    %cst_75 = arith.constant 2.500000e-01 : f32
    %122 = vector.broadcast %cst_75 : f32 to vector<2x8x8xf32>
    %123 = arith.mulf %121, %122 : vector<2x8x8xf32>
    %124 = arith.addf %7, %114 : vector<16x32xf32>
    %cst_76 = arith.constant dense<0.000000e+00> : vector<16xf32>
    %125 = vector.multi_reduction <add>, %124, %cst_76 [1] : vector<16x32xf32> to vector<16xf32>
    %126 = vector.shape_cast %125 : vector<16xf32> to vector<16x1xf32>
    %cst_77 = arith.constant 3.200000e+01 : f32
    %127 = vector.broadcast %cst_77 : f32 to vector<16x1xf32>
    %128 = arith.divf %126, %127 : vector<16x1xf32>
    %129 = vector.broadcast %128 : vector<16x1xf32> to vector<16x32xf32>
    %130 = arith.subf %124, %129 : vector<16x32xf32>
    %131 = arith.mulf %130, %130 : vector<16x32xf32>
    %cst_78 = arith.constant dense<0.000000e+00> : vector<16xf32>
    %132 = vector.multi_reduction <add>, %131, %cst_78 [1] : vector<16x32xf32> to vector<16xf32>
    %133 = vector.shape_cast %132 : vector<16xf32> to vector<16x1xf32>
    %cst_79 = arith.constant 3.200000e+01 : f32
    %134 = vector.broadcast %cst_79 : f32 to vector<16x1xf32>
    %135 = arith.divf %133, %134 : vector<16x1xf32>
    %cst_80 = arith.constant 9.99999974E-6 : f32
    %136 = vector.broadcast %cst_80 : f32 to vector<16x1xf32>
    %137 = arith.addf %135, %136 : vector<16x1xf32>
    %138 = math.rsqrt %137 : vector<16x1xf32>
    %139 = vector.broadcast %138 : vector<16x1xf32> to vector<16x32xf32>
    %140 = arith.mulf %130, %139 : vector<16x32xf32>
    %141 = vector.broadcast %27 : vector<1x32xf32> to vector<16x32xf32>
    %142 = arith.mulf %140, %141 : vector<16x32xf32>
    %143 = vector.broadcast %28 : vector<1x32xf32> to vector<16x32xf32>
    %144 = arith.addf %142, %143 : vector<16x32xf32>
    %145 = arith.addf %144, %8 : vector<16x32xf32>
    %cst_81 = arith.constant dense<0.000000e+00> : vector<16x32xf32>
    %146 = tpu.matmul %145, %15, %cst_81 {dimension_numbers = #tpu.dot_dimension_numbers<[1], [0], [0], [1], [0, 0, 1, 1], [], []>} : vector<16x32xf32>, vector<32x32xf32>, vector<16x32xf32> -> vector<16x32xf32>
    %147 = vector.broadcast %16 : vector<1x32xf32> to vector<16x32xf32>
    %148 = arith.addf %146, %147 : vector<16x32xf32>
    %149 = vector.shape_cast %148 : vector<16x32xf32> to vector<2x8x32xf32>
    %150 = vector.extract_strided_slice %149 {offsets = [0, 0, 0], sizes = [2, 8, 8], strides = [1, 1, 1]} : vector<2x8x32xf32> to vector<2x8x8xf32>
    %151 = vector.extract_strided_slice %149 {offsets = [0, 0, 8], sizes = [2, 8, 8], strides = [1, 1, 1]} : vector<2x8x32xf32> to vector<2x8x8xf32>
    %152 = vector.extract_strided_slice %149 {offsets = [0, 0, 16], sizes = [2, 8, 8], strides = [1, 1, 1]} : vector<2x8x32xf32> to vector<2x8x8xf32>
    %153 = vector.extract_strided_slice %149 {offsets = [0, 0, 24], sizes = [2, 8, 8], strides = [1, 1, 1]} : vector<2x8x32xf32> to vector<2x8x8xf32>
    %154 = tpu.concatenate %150, %151, %152, %153 in 0 : vector<2x8x8xf32>, vector<2x8x8xf32>, vector<2x8x8xf32>, vector<2x8x8xf32> -> vector<8x8x8xf32>
    "tpu.trace_start"() <{level = 10 : i32, message = "bqd,bkd->bqk"}> : () -> ()
    %cst_82 = arith.constant dense<0.000000e+00> : vector<8x8x16xf32>
    %155 = tpu.matmul %154, %46, %cst_82 {dimension_numbers = #tpu.dot_dimension_numbers<[2], [2], [1], [1], [0, 0, 0, 1, 1, 1], [0], [0]>} : vector<8x8x8xf32>, vector<8x16x8xf32>, vector<8x8x16xf32> -> vector<8x8x16xf32>
    "tpu.trace_stop"() : () -> ()
    %cst_83 = arith.constant 0.353553385 : f32
    %156 = vector.broadcast %cst_83 : f32 to vector<8x8x16xf32>
    %157 = arith.mulf %155, %156 : vector<8x8x16xf32>
    %cst_84 = arith.constant dense<0xFF800000> : vector<8x8xf32>
    %158 = vector.multi_reduction <maximumf>, %157, %cst_84 [2] : vector<8x8x16xf32> to vector<8x8xf32>
    %159 = vector.shape_cast %158 : vector<8x8xf32> to vector<8x8x1xf32>
    %160 = vector.broadcast %159 : vector<8x8x1xf32> to vector<8x8x16xf32>
    %161 = arith.subf %157, %160 : vector<8x8x16xf32>
    %162 = math.exp %161 : vector<8x8x16xf32>
    %cst_85 = arith.constant dense<0.000000e+00> : vector<8x8xf32>
    %163 = vector.multi_reduction <add>, %162, %cst_85 [2] : vector<8x8x16xf32> to vector<8x8xf32>
    %164 = vector.shape_cast %163 : vector<8x8xf32> to vector<8x8x1xf32>
    %165 = tpu.reciprocal %164 {approx = true} : vector<8x8x1xf32> -> vector<8x8x1xf32>
    %166 = vector.broadcast %165 : vector<8x8x1xf32> to vector<8x8x16xf32>
    %167 = arith.mulf %162, %166 : vector<8x8x16xf32>
    "tpu.trace_start"() <{level = 10 : i32, message = "bqk,bkd->bqd"}> : () -> ()
    %cst_86 = arith.constant dense<0.000000e+00> : vector<8x8x8xf32>
    %168 = tpu.matmul %167, %52, %cst_86 {dimension_numbers = #tpu.dot_dimension_numbers<[2], [1], [1], [2], [0, 0, 0, 1, 1, 2], [0], [0]>} : vector<8x8x16xf32>, vector<8x16x8xf32>, vector<8x8x8xf32> -> vector<8x8x8xf32>
    "tpu.trace_stop"() : () -> ()
    %169 = vector.extract_strided_slice %168 {offsets = [0, 0, 0], sizes = [2, 8, 8], strides = [1, 1, 1]} : vector<8x8x8xf32> to vector<2x8x8xf32>
    %170 = vector.shape_cast %169 : vector<2x8x8xf32> to vector<16x8xf32>
    %171 = vector.extract_strided_slice %21 {offsets = [0, 0], sizes = [8, 32], strides = [1, 1]} : vector<32x32xf32> to vector<8x32xf32>
    %cst_87 = arith.constant dense<0.000000e+00> : vector<16x32xf32>
    %172 = tpu.matmul %170, %171, %cst_87 {dimension_numbers = #tpu.dot_dimension_numbers<[1], [0], [0], [1], [0, 0, 1, 1], [], []>} : vector<16x8xf32>, vector<8x32xf32>, vector<16x32xf32> -> vector<16x32xf32>
    %173 = vector.extract_strided_slice %168 {offsets = [2, 0, 0], sizes = [2, 8, 8], strides = [1, 1, 1]} : vector<8x8x8xf32> to vector<2x8x8xf32>
    %174 = vector.shape_cast %173 : vector<2x8x8xf32> to vector<16x8xf32>
    %175 = vector.extract_strided_slice %21 {offsets = [8, 0], sizes = [8, 32], strides = [1, 1]} : vector<32x32xf32> to vector<8x32xf32>
    %cst_88 = arith.constant dense<0.000000e+00> : vector<16x32xf32>
    %176 = tpu.matmul %174, %175, %cst_88 {dimension_numbers = #tpu.dot_dimension_numbers<[1], [0], [0], [1], [0, 0, 1, 1], [], []>} : vector<16x8xf32>, vector<8x32xf32>, vector<16x32xf32> -> vector<16x32xf32>
    %177 = arith.addf %172, %176 : vector<16x32xf32>
    %178 = vector.extract_strided_slice %168 {offsets = [4, 0, 0], sizes = [2, 8, 8], strides = [1, 1, 1]} : vector<8x8x8xf32> to vector<2x8x8xf32>
    %179 = vector.shape_cast %178 : vector<2x8x8xf32> to vector<16x8xf32>
    %180 = vector.extract_strided_slice %21 {offsets = [16, 0], sizes = [8, 32], strides = [1, 1]} : vector<32x32xf32> to vector<8x32xf32>
    %cst_89 = arith.constant dense<0.000000e+00> : vector<16x32xf32>
    %181 = tpu.matmul %179, %180, %cst_89 {dimension_numbers = #tpu.dot_dimension_numbers<[1], [0], [0], [1], [0, 0, 1, 1], [], []>} : vector<16x8xf32>, vector<8x32xf32>, vector<16x32xf32> -> vector<16x32xf32>
    %182 = arith.addf %177, %181 : vector<16x32xf32>
    %183 = vector.extract_strided_slice %168 {offsets = [6, 0, 0], sizes = [2, 8, 8], strides = [1, 1, 1]} : vector<8x8x8xf32> to vector<2x8x8xf32>
    %184 = vector.shape_cast %183 : vector<2x8x8xf32> to vector<16x8xf32>
    %185 = vector.extract_strided_slice %21 {offsets = [24, 0], sizes = [8, 32], strides = [1, 1]} : vector<32x32xf32> to vector<8x32xf32>
    %cst_90 = arith.constant dense<0.000000e+00> : vector<16x32xf32>
    %186 = tpu.matmul %184, %185, %cst_90 {dimension_numbers = #tpu.dot_dimension_numbers<[1], [0], [0], [1], [0, 0, 1, 1], [], []>} : vector<16x8xf32>, vector<8x32xf32>, vector<16x32xf32> -> vector<16x32xf32>
    %187 = arith.addf %182, %186 : vector<16x32xf32>
    %188 = vector.broadcast %22 : vector<1x32xf32> to vector<16x32xf32>
    %189 = arith.addf %187, %188 : vector<16x32xf32>
    %190 = vector.extract_strided_slice %167 {offsets = [0, 0, 0], sizes = [2, 8, 16], strides = [1, 1, 1]} : vector<8x8x16xf32> to vector<2x8x16xf32>
    %191 = vector.extract_strided_slice %167 {offsets = [2, 0, 0], sizes = [2, 8, 16], strides = [1, 1, 1]} : vector<8x8x16xf32> to vector<2x8x16xf32>
    %192 = arith.addf %190, %191 : vector<2x8x16xf32>
    %193 = vector.extract_strided_slice %167 {offsets = [4, 0, 0], sizes = [2, 8, 16], strides = [1, 1, 1]} : vector<8x8x16xf32> to vector<2x8x16xf32>
    %194 = arith.addf %192, %193 : vector<2x8x16xf32>
    %195 = vector.extract_strided_slice %167 {offsets = [6, 0, 0], sizes = [2, 8, 16], strides = [1, 1, 1]} : vector<8x8x16xf32> to vector<2x8x16xf32>
    %196 = arith.addf %194, %195 : vector<2x8x16xf32>
    %cst_91 = arith.constant 2.500000e-01 : f32
    %197 = vector.broadcast %cst_91 : f32 to vector<2x8x16xf32>
    %198 = arith.mulf %196, %197 : vector<2x8x16xf32>
    %199 = arith.addf %144, %189 : vector<16x32xf32>
    %cst_92 = arith.constant dense<0.000000e+00> : vector<16xf32>
    %200 = vector.multi_reduction <add>, %199, %cst_92 [1] : vector<16x32xf32> to vector<16xf32>
    %201 = vector.shape_cast %200 : vector<16xf32> to vector<16x1xf32>
    %cst_93 = arith.constant 3.200000e+01 : f32
    %202 = vector.broadcast %cst_93 : f32 to vector<16x1xf32>
    %203 = arith.divf %201, %202 : vector<16x1xf32>
    %204 = vector.broadcast %203 : vector<16x1xf32> to vector<16x32xf32>
    %205 = arith.subf %199, %204 : vector<16x32xf32>
    %206 = arith.mulf %205, %205 : vector<16x32xf32>
    %cst_94 = arith.constant dense<0.000000e+00> : vector<16xf32>
    %207 = vector.multi_reduction <add>, %206, %cst_94 [1] : vector<16x32xf32> to vector<16xf32>
    %208 = vector.shape_cast %207 : vector<16xf32> to vector<16x1xf32>
    %cst_95 = arith.constant 3.200000e+01 : f32
    %209 = vector.broadcast %cst_95 : f32 to vector<16x1xf32>
    %210 = arith.divf %208, %209 : vector<16x1xf32>
    %cst_96 = arith.constant 9.99999974E-6 : f32
    %211 = vector.broadcast %cst_96 : f32 to vector<16x1xf32>
    %212 = arith.addf %210, %211 : vector<16x1xf32>
    %213 = math.rsqrt %212 : vector<16x1xf32>
    %214 = vector.broadcast %213 : vector<16x1xf32> to vector<16x32xf32>
    %215 = arith.mulf %205, %214 : vector<16x32xf32>
    %216 = vector.broadcast %29 : vector<1x32xf32> to vector<16x32xf32>
    %217 = arith.mulf %215, %216 : vector<16x32xf32>
    %218 = vector.broadcast %30 : vector<1x32xf32> to vector<16x32xf32>
    %219 = arith.addf %217, %218 : vector<16x32xf32>
    %cst_97 = arith.constant dense<0.000000e+00> : vector<16x64xf32>
    %220 = tpu.matmul %219, %23, %cst_97 {dimension_numbers = #tpu.dot_dimension_numbers<[1], [0], [0], [1], [0, 0, 1, 1], [], []>} : vector<16x32xf32>, vector<32x64xf32>, vector<16x64xf32> -> vector<16x64xf32>
    %221 = vector.broadcast %24 : vector<1x64xf32> to vector<16x64xf32>
    %222 = arith.addf %220, %221 : vector<16x64xf32>
    %cst_98 = arith.constant 0.000000e+00 : f32
    %223 = vector.broadcast %cst_98 : f32 to vector<16x64xf32>
    %224 = arith.maximumf %222, %223 : vector<16x64xf32>
    %cst_99 = arith.constant dense<0.000000e+00> : vector<16x32xf32>
    %225 = tpu.matmul %224, %25, %cst_99 {dimension_numbers = #tpu.dot_dimension_numbers<[1], [0], [0], [1], [0, 0, 1, 1], [], []>} : vector<16x64xf32>, vector<64x32xf32>, vector<16x32xf32> -> vector<16x32xf32>
    %226 = vector.broadcast %26 : vector<1x32xf32> to vector<16x32xf32>
    %227 = arith.addf %225, %226 : vector<16x32xf32>
    %228 = arith.addf %219, %227 : vector<16x32xf32>
    %cst_100 = arith.constant dense<0.000000e+00> : vector<16xf32>
    %229 = vector.multi_reduction <add>, %228, %cst_100 [1] : vector<16x32xf32> to vector<16xf32>
    %230 = vector.shape_cast %229 : vector<16xf32> to vector<16x1xf32>
    %cst_101 = arith.constant 3.200000e+01 : f32
    %231 = vector.broadcast %cst_101 : f32 to vector<16x1xf32>
    %232 = arith.divf %230, %231 : vector<16x1xf32>
    %233 = vector.broadcast %232 : vector<16x1xf32> to vector<16x32xf32>
    %234 = arith.subf %228, %233 : vector<16x32xf32>
    %235 = arith.mulf %234, %234 : vector<16x32xf32>
    %cst_102 = arith.constant dense<0.000000e+00> : vector<16xf32>
    %236 = vector.multi_reduction <add>, %235, %cst_102 [1] : vector<16x32xf32> to vector<16xf32>
    %237 = vector.shape_cast %236 : vector<16xf32> to vector<16x1xf32>
    %cst_103 = arith.constant 3.200000e+01 : f32
    %238 = vector.broadcast %cst_103 : f32 to vector<16x1xf32>
    %239 = arith.divf %237, %238 : vector<16x1xf32>
    %cst_104 = arith.constant 9.99999974E-6 : f32
    %240 = vector.broadcast %cst_104 : f32 to vector<16x1xf32>
    %241 = arith.addf %239, %240 : vector<16x1xf32>
    %242 = math.rsqrt %241 : vector<16x1xf32>
    %243 = vector.broadcast %242 : vector<16x1xf32> to vector<16x32xf32>
    %244 = arith.mulf %234, %243 : vector<16x32xf32>
    %245 = vector.broadcast %31 : vector<1x32xf32> to vector<16x32xf32>
    %246 = arith.mulf %244, %245 : vector<16x32xf32>
    %247 = vector.broadcast %32 : vector<1x32xf32> to vector<16x32xf32>
    %248 = arith.addf %246, %247 : vector<16x32xf32>
    %cst_105 = arith.constant dense<0.000000e+00> : vector<16xf32>
    %249 = vector.multi_reduction <add>, %248, %cst_105 [1] : vector<16x32xf32> to vector<16xf32>
    %250 = vector.shape_cast %249 : vector<16xf32> to vector<16x1xf32>
    %cst_106 = arith.constant 3.200000e+01 : f32
    %251 = vector.broadcast %cst_106 : f32 to vector<16x1xf32>
    %252 = arith.divf %250, %251 : vector<16x1xf32>
    %253 = vector.broadcast %252 : vector<16x1xf32> to vector<16x32xf32>
    %254 = arith.subf %248, %253 : vector<16x32xf32>
    %255 = arith.mulf %254, %254 : vector<16x32xf32>
    %cst_107 = arith.constant dense<0.000000e+00> : vector<16xf32>
    %256 = vector.multi_reduction <add>, %255, %cst_107 [1] : vector<16x32xf32> to vector<16xf32>
    %257 = vector.shape_cast %256 : vector<16xf32> to vector<16x1xf32>
    %cst_108 = arith.constant 3.200000e+01 : f32
    %258 = vector.broadcast %cst_108 : f32 to vector<16x1xf32>
    %259 = arith.divf %257, %258 : vector<16x1xf32>
    %cst_109 = arith.constant 9.99999974E-6 : f32
    %260 = vector.broadcast %cst_109 : f32 to vector<16x1xf32>
    %261 = arith.addf %259, %260 : vector<16x1xf32>
    %262 = math.rsqrt %261 : vector<16x1xf32>
    %263 = vector.broadcast %262 : vector<16x1xf32> to vector<16x32xf32>
    %264 = arith.mulf %254, %263 : vector<16x32xf32>
    %265 = vector.broadcast %33 : vector<1x32xf32> to vector<16x32xf32>
    %266 = arith.mulf %264, %265 : vector<16x32xf32>
    %267 = vector.broadcast %34 : vector<1x32xf32> to vector<16x32xf32>
    %268 = arith.addf %266, %267 : vector<16x32xf32>
    %269 = vector.shape_cast %268 : vector<16x32xf32> to vector<2x8x32xf32>
    %c0_110 = arith.constant 0 : index
    %c0_111 = arith.constant 0 : index
    %c0_112 = arith.constant 0 : index
    %c0_113 = arith.constant 0 : index
    %270 = vector.load %arg57[%c0_110, %c0_111, %c0_112, %c0_113] : memref<2x2x8x32xf32, #tpu.memory_space<vmem>>, vector<1x2x8x32xf32>
    %271 = vector.shape_cast %270 : vector<1x2x8x32xf32> to vector<2x8x32xf32>
    %272 = vector.shape_cast %269 : vector<2x8x32xf32> to vector<1x2x8x32xf32>
    tpu.vector_store %arg57[%c0_110, %c0_111, %c0_112, %c0_113], %272 {strides = array<i32>} : memref<2x2x8x32xf32, #tpu.memory_space<vmem>>, vector<1x2x8x32xf32>,
    %c0_114 = arith.constant 0 : index
    %c0_115 = arith.constant 0 : index
    %c0_116 = arith.constant 0 : index
    %c0_117 = arith.constant 0 : index
    %273 = vector.load %arg58[%c0_114, %c0_115, %c0_116, %c0_117] : memref<2x2x8x16xf32, #tpu.memory_space<vmem>>, vector<1x2x8x16xf32>
    %274 = vector.shape_cast %273 : vector<1x2x8x16xf32> to vector<2x8x16xf32>
    %275 = vector.shape_cast %198 : vector<2x8x16xf32> to vector<1x2x8x16xf32>
    tpu.vector_store %arg58[%c0_114, %c0_115, %c0_116, %c0_117], %275 {strides = array<i32>} : memref<2x2x8x16xf32, #tpu.memory_space<vmem>>, vector<1x2x8x16xf32>,
    %c0_118 = arith.constant 0 : index
    %c0_119 = arith.constant 0 : index
    %c0_120 = arith.constant 0 : index
    %c0_121 = arith.constant 0 : index
    %276 = vector.load %arg59[%c0_118, %c0_119, %c0_120, %c0_121] : memref<2x2x8x8xf32, #tpu.memory_space<vmem>>, vector<1x2x8x8xf32>
    %277 = vector.shape_cast %276 : vector<1x2x8x8xf32> to vector<2x8x8xf32>
    %278 = vector.shape_cast %123 : vector<2x8x8xf32> to vector<1x2x8x8xf32>
    tpu.vector_store %arg59[%c0_118, %c0_119, %c0_120, %c0_121], %278 {strides = array<i32>} : memref<2x2x8x8xf32, #tpu.memory_space<vmem>>, vector<1x2x8x8xf32>,
    %279 = arith.addf %248, %8 : vector<16x32xf32>
    %cst_122 = arith.constant dense<0.000000e+00> : vector<16x64xf32>
    %280 = tpu.matmul %279, %9, %cst_122 {dimension_numbers = #tpu.dot_dimension_numbers<[1], [0], [0], [1], [0, 0, 1, 1], [], []>} : vector<16x32xf32>, vector<32x64xf32>, vector<16x64xf32> -> vector<16x64xf32>
    %281 = vector.broadcast %10 : vector<1x64xf32> to vector<16x64xf32>
    %282 = arith.addf %280, %281 : vector<16x64xf32>
    %283 = vector.extract_strided_slice %282 {offsets = [0, 0], sizes = [16, 32], strides = [1, 1]} : vector<16x64xf32> to vector<16x32xf32>
    %284 = vector.extract_strided_slice %282 {offsets = [0, 32], sizes = [16, 32], strides = [1, 1]} : vector<16x64xf32> to vector<16x32xf32>
    %cst_123 = arith.constant dense<0.000000e+00> : vector<16x32xf32>
    %285 = tpu.matmul %248, %11, %cst_123 {dimension_numbers = #tpu.dot_dimension_numbers<[1], [0], [0], [1], [0, 0, 1, 1], [], []>} : vector<16x32xf32>, vector<32x32xf32>, vector<16x32xf32> -> vector<16x32xf32>
    %286 = vector.broadcast %12 : vector<1x32xf32> to vector<16x32xf32>
    %287 = arith.addf %285, %286 : vector<16x32xf32>
    %288 = vector.shape_cast %283 : vector<16x32xf32> to vector<2x8x32xf32>
    %289 = vector.extract_strided_slice %288 {offsets = [0, 0, 0], sizes = [2, 8, 8], strides = [1, 1, 1]} : vector<2x8x32xf32> to vector<2x8x8xf32>
    %290 = vector.extract_strided_slice %288 {offsets = [0, 0, 8], sizes = [2, 8, 8], strides = [1, 1, 1]} : vector<2x8x32xf32> to vector<2x8x8xf32>
    %291 = vector.extract_strided_slice %288 {offsets = [0, 0, 16], sizes = [2, 8, 8], strides = [1, 1, 1]} : vector<2x8x32xf32> to vector<2x8x8xf32>
    %292 = vector.extract_strided_slice %288 {offsets = [0, 0, 24], sizes = [2, 8, 8], strides = [1, 1, 1]} : vector<2x8x32xf32> to vector<2x8x8xf32>
    %293 = tpu.concatenate %289, %290, %291, %292 in 0 : vector<2x8x8xf32>, vector<2x8x8xf32>, vector<2x8x8xf32>, vector<2x8x8xf32> -> vector<8x8x8xf32>
    %294 = vector.shape_cast %284 : vector<16x32xf32> to vector<2x8x32xf32>
    %295 = vector.extract_strided_slice %294 {offsets = [0, 0, 0], sizes = [2, 8, 8], strides = [1, 1, 1]} : vector<2x8x32xf32> to vector<2x8x8xf32>
    %296 = vector.extract_strided_slice %294 {offsets = [0, 0, 8], sizes = [2, 8, 8], strides = [1, 1, 1]} : vector<2x8x32xf32> to vector<2x8x8xf32>
    %297 = vector.extract_strided_slice %294 {offsets = [0, 0, 16], sizes = [2, 8, 8], strides = [1, 1, 1]} : vector<2x8x32xf32> to vector<2x8x8xf32>
    %298 = vector.extract_strided_slice %294 {offsets = [0, 0, 24], sizes = [2, 8, 8], strides = [1, 1, 1]} : vector<2x8x32xf32> to vector<2x8x8xf32>
    %299 = tpu.concatenate %295, %296, %297, %298 in 0 : vector<2x8x8xf32>, vector<2x8x8xf32>, vector<2x8x8xf32>, vector<2x8x8xf32> -> vector<8x8x8xf32>
    %300 = vector.shape_cast %287 : vector<16x32xf32> to vector<2x8x32xf32>
    %301 = vector.extract_strided_slice %300 {offsets = [0, 0, 0], sizes = [2, 8, 8], strides = [1, 1, 1]} : vector<2x8x32xf32> to vector<2x8x8xf32>
    %302 = vector.extract_strided_slice %300 {offsets = [0, 0, 8], sizes = [2, 8, 8], strides = [1, 1, 1]} : vector<2x8x32xf32> to vector<2x8x8xf32>
    %303 = vector.extract_strided_slice %300 {offsets = [0, 0, 16], sizes = [2, 8, 8], strides = [1, 1, 1]} : vector<2x8x32xf32> to vector<2x8x8xf32>
    %304 = vector.extract_strided_slice %300 {offsets = [0, 0, 24], sizes = [2, 8, 8], strides = [1, 1, 1]} : vector<2x8x32xf32> to vector<2x8x8xf32>
    %305 = tpu.concatenate %301, %302, %303, %304 in 0 : vector<2x8x8xf32>, vector<2x8x8xf32>, vector<2x8x8xf32>, vector<2x8x8xf32> -> vector<8x8x8xf32>
    "tpu.trace_start"() <{level = 10 : i32, message = "bqd,bkd->bqk"}> : () -> ()
    %cst_124 = arith.constant dense<0.000000e+00> : vector<8x8x8xf32>
    %306 = tpu.matmul %293, %299, %cst_124 {dimension_numbers = #tpu.dot_dimension_numbers<[2], [2], [1], [1], [0, 0, 0, 1, 1, 1], [0], [0]>} : vector<8x8x8xf32>, vector<8x8x8xf32>, vector<8x8x8xf32> -> vector<8x8x8xf32>
    "tpu.trace_stop"() : () -> ()
    %cst_125 = arith.constant 0.353553385 : f32
    %307 = vector.broadcast %cst_125 : f32 to vector<8x8x8xf32>
    %308 = arith.mulf %306, %307 : vector<8x8x8xf32>
    %cst_126 = arith.constant dense<0xFF800000> : vector<8x8xf32>
    %309 = vector.multi_reduction <maximumf>, %308, %cst_126 [2] : vector<8x8x8xf32> to vector<8x8xf32>
    %310 = vector.shape_cast %309 : vector<8x8xf32> to vector<8x8x1xf32>
    %311 = vector.broadcast %310 : vector<8x8x1xf32> to vector<8x8x8xf32>
    %312 = arith.subf %308, %311 : vector<8x8x8xf32>
    %313 = math.exp %312 : vector<8x8x8xf32>
    %cst_127 = arith.constant dense<0.000000e+00> : vector<8x8xf32>
    %314 = vector.multi_reduction <add>, %313, %cst_127 [2] : vector<8x8x8xf32> to vector<8x8xf32>
    %315 = vector.shape_cast %314 : vector<8x8xf32> to vector<8x8x1xf32>
    %316 = tpu.reciprocal %315 {approx = true} : vector<8x8x1xf32> -> vector<8x8x1xf32>
    %317 = vector.broadcast %316 : vector<8x8x1xf32> to vector<8x8x8xf32>
    %318 = arith.mulf %313, %317 : vector<8x8x8xf32>
    "tpu.trace_start"() <{level = 10 : i32, message = "bqk,bkd->bqd"}> : () -> ()
    %cst_128 = arith.constant dense<0.000000e+00> : vector<8x8x8xf32>
    %319 = tpu.matmul %318, %305, %cst_128 {dimension_numbers = #tpu.dot_dimension_numbers<[2], [1], [1], [2], [0, 0, 0, 1, 1, 2], [0], [0]>} : vector<8x8x8xf32>, vector<8x8x8xf32>, vector<8x8x8xf32> -> vector<8x8x8xf32>
    "tpu.trace_stop"() : () -> ()
    %320 = vector.extract_strided_slice %319 {offsets = [0, 0, 0], sizes = [2, 8, 8], strides = [1, 1, 1]} : vector<8x8x8xf32> to vector<2x8x8xf32>
    %321 = vector.shape_cast %320 : vector<2x8x8xf32> to vector<16x8xf32>
    %322 = vector.extract_strided_slice %13 {offsets = [0, 0], sizes = [8, 32], strides = [1, 1]} : vector<32x32xf32> to vector<8x32xf32>
    %cst_129 = arith.constant dense<0.000000e+00> : vector<16x32xf32>
    %323 = tpu.matmul %321, %322, %cst_129 {dimension_numbers = #tpu.dot_dimension_numbers<[1], [0], [0], [1], [0, 0, 1, 1], [], []>} : vector<16x8xf32>, vector<8x32xf32>, vector<16x32xf32> -> vector<16x32xf32>
    %324 = vector.extract_strided_slice %319 {offsets = [2, 0, 0], sizes = [2, 8, 8], strides = [1, 1, 1]} : vector<8x8x8xf32> to vector<2x8x8xf32>
    %325 = vector.shape_cast %324 : vector<2x8x8xf32> to vector<16x8xf32>
    %326 = vector.extract_strided_slice %13 {offsets = [8, 0], sizes = [8, 32], strides = [1, 1]} : vector<32x32xf32> to vector<8x32xf32>
    %cst_130 = arith.constant dense<0.000000e+00> : vector<16x32xf32>
    %327 = tpu.matmul %325, %326, %cst_130 {dimension_numbers = #tpu.dot_dimension_numbers<[1], [0], [0], [1], [0, 0, 1, 1], [], []>} : vector<16x8xf32>, vector<8x32xf32>, vector<16x32xf32> -> vector<16x32xf32>
    %328 = arith.addf %323, %327 : vector<16x32xf32>
    %329 = vector.extract_strided_slice %319 {offsets = [4, 0, 0], sizes = [2, 8, 8], strides = [1, 1, 1]} : vector<8x8x8xf32> to vector<2x8x8xf32>
    %330 = vector.shape_cast %329 : vector<2x8x8xf32> to vector<16x8xf32>
    %331 = vector.extract_strided_slice %13 {offsets = [16, 0], sizes = [8, 32], strides = [1, 1]} : vector<32x32xf32> to vector<8x32xf32>
    %cst_131 = arith.constant dense<0.000000e+00> : vector<16x32xf32>
    %332 = tpu.matmul %330, %331, %cst_131 {dimension_numbers = #tpu.dot_dimension_numbers<[1], [0], [0], [1], [0, 0, 1, 1], [], []>} : vector<16x8xf32>, vector<8x32xf32>, vector<16x32xf32> -> vector<16x32xf32>
    %333 = arith.addf %328, %332 : vector<16x32xf32>
    %334 = vector.extract_strided_slice %319 {offsets = [6, 0, 0], sizes = [2, 8, 8], strides = [1, 1, 1]} : vector<8x8x8xf32> to vector<2x8x8xf32>
    %335 = vector.shape_cast %334 : vector<2x8x8xf32> to vector<16x8xf32>
    %336 = vector.extract_strided_slice %13 {offsets = [24, 0], sizes = [8, 32], strides = [1, 1]} : vector<32x32xf32> to vector<8x32xf32>
    %cst_132 = arith.constant dense<0.000000e+00> : vector<16x32xf32>
    %337 = tpu.matmul %335, %336, %cst_132 {dimension_numbers = #tpu.dot_dimension_numbers<[1], [0], [0], [1], [0, 0, 1, 1], [], []>} : vector<16x8xf32>, vector<8x32xf32>, vector<16x32xf32> -> vector<16x32xf32>
    %338 = arith.addf %333, %337 : vector<16x32xf32>
    %339 = vector.broadcast %14 : vector<1x32xf32> to vector<16x32xf32>
    %340 = arith.addf %338, %339 : vector<16x32xf32>
    %341 = vector.extract_strided_slice %318 {offsets = [0, 0, 0], sizes = [2, 8, 8], strides = [1, 1, 1]} : vector<8x8x8xf32> to vector<2x8x8xf32>
    %342 = vector.extract_strided_slice %318 {offsets = [2, 0, 0], sizes = [2, 8, 8], strides = [1, 1, 1]} : vector<8x8x8xf32> to vector<2x8x8xf32>
    %343 = arith.addf %341, %342 : vector<2x8x8xf32>
    %344 = vector.extract_strided_slice %318 {offsets = [4, 0, 0], sizes = [2, 8, 8], strides = [1, 1, 1]} : vector<8x8x8xf32> to vector<2x8x8xf32>
    %345 = arith.addf %343, %344 : vector<2x8x8xf32>
    %346 = vector.extract_strided_slice %318 {offsets = [6, 0, 0], sizes = [2, 8, 8], strides = [1, 1, 1]} : vector<8x8x8xf32> to vector<2x8x8xf32>
    %347 = arith.addf %345, %346 : vector<2x8x8xf32>
    %cst_133 = arith.constant 2.500000e-01 : f32
    %348 = vector.broadcast %cst_133 : f32 to vector<2x8x8xf32>
    %349 = arith.mulf %347, %348 : vector<2x8x8xf32>
    %350 = arith.addf %248, %340 : vector<16x32xf32>
    %cst_134 = arith.constant dense<0.000000e+00> : vector<16xf32>
    %351 = vector.multi_reduction <add>, %350, %cst_134 [1] : vector<16x32xf32> to vector<16xf32>
    %352 = vector.shape_cast %351 : vector<16xf32> to vector<16x1xf32>
    %cst_135 = arith.constant 3.200000e+01 : f32
    %353 = vector.broadcast %cst_135 : f32 to vector<16x1xf32>
    %354 = arith.divf %352, %353 : vector<16x1xf32>
    %355 = vector.broadcast %354 : vector<16x1xf32> to vector<16x32xf32>
    %356 = arith.subf %350, %355 : vector<16x32xf32>
    %357 = arith.mulf %356, %356 : vector<16x32xf32>
    %cst_136 = arith.constant dense<0.000000e+00> : vector<16xf32>
    %358 = vector.multi_reduction <add>, %357, %cst_136 [1] : vector<16x32xf32> to vector<16xf32>
    %359 = vector.shape_cast %358 : vector<16xf32> to vector<16x1xf32>
    %cst_137 = arith.constant 3.200000e+01 : f32
    %360 = vector.broadcast %cst_137 : f32 to vector<16x1xf32>
    %361 = arith.divf %359, %360 : vector<16x1xf32>
    %cst_138 = arith.constant 9.99999974E-6 : f32
    %362 = vector.broadcast %cst_138 : f32 to vector<16x1xf32>
    %363 = arith.addf %361, %362 : vector<16x1xf32>
    %364 = math.rsqrt %363 : vector<16x1xf32>
    %365 = vector.broadcast %364 : vector<16x1xf32> to vector<16x32xf32>
    %366 = arith.mulf %356, %365 : vector<16x32xf32>
    %367 = vector.broadcast %27 : vector<1x32xf32> to vector<16x32xf32>
    %368 = arith.mulf %366, %367 : vector<16x32xf32>
    %369 = vector.broadcast %28 : vector<1x32xf32> to vector<16x32xf32>
    %370 = arith.addf %368, %369 : vector<16x32xf32>
    %371 = arith.addf %370, %8 : vector<16x32xf32>
    %cst_139 = arith.constant dense<0.000000e+00> : vector<16x32xf32>
    %372 = tpu.matmul %371, %15, %cst_139 {dimension_numbers = #tpu.dot_dimension_numbers<[1], [0], [0], [1], [0, 0, 1, 1], [], []>} : vector<16x32xf32>, vector<32x32xf32>, vector<16x32xf32> -> vector<16x32xf32>
    %373 = vector.broadcast %16 : vector<1x32xf32> to vector<16x32xf32>
    %374 = arith.addf %372, %373 : vector<16x32xf32>
    %375 = vector.shape_cast %374 : vector<16x32xf32> to vector<2x8x32xf32>
    %376 = vector.extract_strided_slice %375 {offsets = [0, 0, 0], sizes = [2, 8, 8], strides = [1, 1, 1]} : vector<2x8x32xf32> to vector<2x8x8xf32>
    %377 = vector.extract_strided_slice %375 {offsets = [0, 0, 8], sizes = [2, 8, 8], strides = [1, 1, 1]} : vector<2x8x32xf32> to vector<2x8x8xf32>
    %378 = vector.extract_strided_slice %375 {offsets = [0, 0, 16], sizes = [2, 8, 8], strides = [1, 1, 1]} : vector<2x8x32xf32> to vector<2x8x8xf32>
    %379 = vector.extract_strided_slice %375 {offsets = [0, 0, 24], sizes = [2, 8, 8], strides = [1, 1, 1]} : vector<2x8x32xf32> to vector<2x8x8xf32>
    %380 = tpu.concatenate %376, %377, %378, %379 in 0 : vector<2x8x8xf32>, vector<2x8x8xf32>, vector<2x8x8xf32>, vector<2x8x8xf32> -> vector<8x8x8xf32>
    "tpu.trace_start"() <{level = 10 : i32, message = "bqd,bkd->bqk"}> : () -> ()
    %cst_140 = arith.constant dense<0.000000e+00> : vector<8x8x16xf32>
    %381 = tpu.matmul %380, %46, %cst_140 {dimension_numbers = #tpu.dot_dimension_numbers<[2], [2], [1], [1], [0, 0, 0, 1, 1, 1], [0], [0]>} : vector<8x8x8xf32>, vector<8x16x8xf32>, vector<8x8x16xf32> -> vector<8x8x16xf32>
    "tpu.trace_stop"() : () -> ()
    %cst_141 = arith.constant 0.353553385 : f32
    %382 = vector.broadcast %cst_141 : f32 to vector<8x8x16xf32>
    %383 = arith.mulf %381, %382 : vector<8x8x16xf32>
    %cst_142 = arith.constant dense<0xFF800000> : vector<8x8xf32>
    %384 = vector.multi_reduction <maximumf>, %383, %cst_142 [2] : vector<8x8x16xf32> to vector<8x8xf32>
    %385 = vector.shape_cast %384 : vector<8x8xf32> to vector<8x8x1xf32>
    %386 = vector.broadcast %385 : vector<8x8x1xf32> to vector<8x8x16xf32>
    %387 = arith.subf %383, %386 : vector<8x8x16xf32>
    %388 = math.exp %387 : vector<8x8x16xf32>
    %cst_143 = arith.constant dense<0.000000e+00> : vector<8x8xf32>
    %389 = vector.multi_reduction <add>, %388, %cst_143 [2] : vector<8x8x16xf32> to vector<8x8xf32>
    %390 = vector.shape_cast %389 : vector<8x8xf32> to vector<8x8x1xf32>
    %391 = tpu.reciprocal %390 {approx = true} : vector<8x8x1xf32> -> vector<8x8x1xf32>
    %392 = vector.broadcast %391 : vector<8x8x1xf32> to vector<8x8x16xf32>
    %393 = arith.mulf %388, %392 : vector<8x8x16xf32>
    "tpu.trace_start"() <{level = 10 : i32, message = "bqk,bkd->bqd"}> : () -> ()
    %cst_144 = arith.constant dense<0.000000e+00> : vector<8x8x8xf32>
    %394 = tpu.matmul %393, %52, %cst_144 {dimension_numbers = #tpu.dot_dimension_numbers<[2], [1], [1], [2], [0, 0, 0, 1, 1, 2], [0], [0]>} : vector<8x8x16xf32>, vector<8x16x8xf32>, vector<8x8x8xf32> -> vector<8x8x8xf32>
    "tpu.trace_stop"() : () -> ()
    %395 = vector.extract_strided_slice %394 {offsets = [0, 0, 0], sizes = [2, 8, 8], strides = [1, 1, 1]} : vector<8x8x8xf32> to vector<2x8x8xf32>
    %396 = vector.shape_cast %395 : vector<2x8x8xf32> to vector<16x8xf32>
    %397 = vector.extract_strided_slice %21 {offsets = [0, 0], sizes = [8, 32], strides = [1, 1]} : vector<32x32xf32> to vector<8x32xf32>
    %cst_145 = arith.constant dense<0.000000e+00> : vector<16x32xf32>
    %398 = tpu.matmul %396, %397, %cst_145 {dimension_numbers = #tpu.dot_dimension_numbers<[1], [0], [0], [1], [0, 0, 1, 1], [], []>} : vector<16x8xf32>, vector<8x32xf32>, vector<16x32xf32> -> vector<16x32xf32>
    %399 = vector.extract_strided_slice %394 {offsets = [2, 0, 0], sizes = [2, 8, 8], strides = [1, 1, 1]} : vector<8x8x8xf32> to vector<2x8x8xf32>
    %400 = vector.shape_cast %399 : vector<2x8x8xf32> to vector<16x8xf32>
    %401 = vector.extract_strided_slice %21 {offsets = [8, 0], sizes = [8, 32], strides = [1, 1]} : vector<32x32xf32> to vector<8x32xf32>
    %cst_146 = arith.constant dense<0.000000e+00> : vector<16x32xf32>
    %402 = tpu.matmul %400, %401, %cst_146 {dimension_numbers = #tpu.dot_dimension_numbers<[1], [0], [0], [1], [0, 0, 1, 1], [], []>} : vector<16x8xf32>, vector<8x32xf32>, vector<16x32xf32> -> vector<16x32xf32>
    %403 = arith.addf %398, %402 : vector<16x32xf32>
    %404 = vector.extract_strided_slice %394 {offsets = [4, 0, 0], sizes = [2, 8, 8], strides = [1, 1, 1]} : vector<8x8x8xf32> to vector<2x8x8xf32>
    %405 = vector.shape_cast %404 : vector<2x8x8xf32> to vector<16x8xf32>
    %406 = vector.extract_strided_slice %21 {offsets = [16, 0], sizes = [8, 32], strides = [1, 1]} : vector<32x32xf32> to vector<8x32xf32>
    %cst_147 = arith.constant dense<0.000000e+00> : vector<16x32xf32>
    %407 = tpu.matmul %405, %406, %cst_147 {dimension_numbers = #tpu.dot_dimension_numbers<[1], [0], [0], [1], [0, 0, 1, 1], [], []>} : vector<16x8xf32>, vector<8x32xf32>, vector<16x32xf32> -> vector<16x32xf32>
    %408 = arith.addf %403, %407 : vector<16x32xf32>
    %409 = vector.extract_strided_slice %394 {offsets = [6, 0, 0], sizes = [2, 8, 8], strides = [1, 1, 1]} : vector<8x8x8xf32> to vector<2x8x8xf32>
    %410 = vector.shape_cast %409 : vector<2x8x8xf32> to vector<16x8xf32>
    %411 = vector.extract_strided_slice %21 {offsets = [24, 0], sizes = [8, 32], strides = [1, 1]} : vector<32x32xf32> to vector<8x32xf32>
    %cst_148 = arith.constant dense<0.000000e+00> : vector<16x32xf32>
    %412 = tpu.matmul %410, %411, %cst_148 {dimension_numbers = #tpu.dot_dimension_numbers<[1], [0], [0], [1], [0, 0, 1, 1], [], []>} : vector<16x8xf32>, vector<8x32xf32>, vector<16x32xf32> -> vector<16x32xf32>
    %413 = arith.addf %408, %412 : vector<16x32xf32>
    %414 = vector.broadcast %22 : vector<1x32xf32> to vector<16x32xf32>
    %415 = arith.addf %413, %414 : vector<16x32xf32>
    %416 = vector.extract_strided_slice %393 {offsets = [0, 0, 0], sizes = [2, 8, 16], strides = [1, 1, 1]} : vector<8x8x16xf32> to vector<2x8x16xf32>
    %417 = vector.extract_strided_slice %393 {offsets = [2, 0, 0], sizes = [2, 8, 16], strides = [1, 1, 1]} : vector<8x8x16xf32> to vector<2x8x16xf32>
    %418 = arith.addf %416, %417 : vector<2x8x16xf32>
    %419 = vector.extract_strided_slice %393 {offsets = [4, 0, 0], sizes = [2, 8, 16], strides = [1, 1, 1]} : vector<8x8x16xf32> to vector<2x8x16xf32>
    %420 = arith.addf %418, %419 : vector<2x8x16xf32>
    %421 = vector.extract_strided_slice %393 {offsets = [6, 0, 0], sizes = [2, 8, 16], strides = [1, 1, 1]} : vector<8x8x16xf32> to vector<2x8x16xf32>
    %422 = arith.addf %420, %421 : vector<2x8x16xf32>
    %cst_149 = arith.constant 2.500000e-01 : f32
    %423 = vector.broadcast %cst_149 : f32 to vector<2x8x16xf32>
    %424 = arith.mulf %422, %423 : vector<2x8x16xf32>
    %425 = arith.addf %370, %415 : vector<16x32xf32>
    %cst_150 = arith.constant dense<0.000000e+00> : vector<16xf32>
    %426 = vector.multi_reduction <add>, %425, %cst_150 [1] : vector<16x32xf32> to vector<16xf32>
    %427 = vector.shape_cast %426 : vector<16xf32> to vector<16x1xf32>
    %cst_151 = arith.constant 3.200000e+01 : f32
    %428 = vector.broadcast %cst_151 : f32 to vector<16x1xf32>
    %429 = arith.divf %427, %428 : vector<16x1xf32>
    %430 = vector.broadcast %429 : vector<16x1xf32> to vector<16x32xf32>
    %431 = arith.subf %425, %430 : vector<16x32xf32>
    %432 = arith.mulf %431, %431 : vector<16x32xf32>
    %cst_152 = arith.constant dense<0.000000e+00> : vector<16xf32>
    %433 = vector.multi_reduction <add>, %432, %cst_152 [1] : vector<16x32xf32> to vector<16xf32>
    %434 = vector.shape_cast %433 : vector<16xf32> to vector<16x1xf32>
    %cst_153 = arith.constant 3.200000e+01 : f32
    %435 = vector.broadcast %cst_153 : f32 to vector<16x1xf32>
    %436 = arith.divf %434, %435 : vector<16x1xf32>
    %cst_154 = arith.constant 9.99999974E-6 : f32
    %437 = vector.broadcast %cst_154 : f32 to vector<16x1xf32>
    %438 = arith.addf %436, %437 : vector<16x1xf32>
    %439 = math.rsqrt %438 : vector<16x1xf32>
    %440 = vector.broadcast %439 : vector<16x1xf32> to vector<16x32xf32>
    %441 = arith.mulf %431, %440 : vector<16x32xf32>
    %442 = vector.broadcast %29 : vector<1x32xf32> to vector<16x32xf32>
    %443 = arith.mulf %441, %442 : vector<16x32xf32>
    %444 = vector.broadcast %30 : vector<1x32xf32> to vector<16x32xf32>
    %445 = arith.addf %443, %444 : vector<16x32xf32>
    %cst_155 = arith.constant dense<0.000000e+00> : vector<16x64xf32>
    %446 = tpu.matmul %445, %23, %cst_155 {dimension_numbers = #tpu.dot_dimension_numbers<[1], [0], [0], [1], [0, 0, 1, 1], [], []>} : vector<16x32xf32>, vector<32x64xf32>, vector<16x64xf32> -> vector<16x64xf32>
    %447 = vector.broadcast %24 : vector<1x64xf32> to vector<16x64xf32>
    %448 = arith.addf %446, %447 : vector<16x64xf32>
    %cst_156 = arith.constant 0.000000e+00 : f32
    %449 = vector.broadcast %cst_156 : f32 to vector<16x64xf32>
    %450 = arith.maximumf %448, %449 : vector<16x64xf32>
    %cst_157 = arith.constant dense<0.000000e+00> : vector<16x32xf32>
    %451 = tpu.matmul %450, %25, %cst_157 {dimension_numbers = #tpu.dot_dimension_numbers<[1], [0], [0], [1], [0, 0, 1, 1], [], []>} : vector<16x64xf32>, vector<64x32xf32>, vector<16x32xf32> -> vector<16x32xf32>
    %452 = vector.broadcast %26 : vector<1x32xf32> to vector<16x32xf32>
    %453 = arith.addf %451, %452 : vector<16x32xf32>
    %454 = arith.addf %445, %453 : vector<16x32xf32>
    %cst_158 = arith.constant dense<0.000000e+00> : vector<16xf32>
    %455 = vector.multi_reduction <add>, %454, %cst_158 [1] : vector<16x32xf32> to vector<16xf32>
    %456 = vector.shape_cast %455 : vector<16xf32> to vector<16x1xf32>
    %cst_159 = arith.constant 3.200000e+01 : f32
    %457 = vector.broadcast %cst_159 : f32 to vector<16x1xf32>
    %458 = arith.divf %456, %457 : vector<16x1xf32>
    %459 = vector.broadcast %458 : vector<16x1xf32> to vector<16x32xf32>
    %460 = arith.subf %454, %459 : vector<16x32xf32>
    %461 = arith.mulf %460, %460 : vector<16x32xf32>
    %cst_160 = arith.constant dense<0.000000e+00> : vector<16xf32>
    %462 = vector.multi_reduction <add>, %461, %cst_160 [1] : vector<16x32xf32> to vector<16xf32>
    %463 = vector.shape_cast %462 : vector<16xf32> to vector<16x1xf32>
    %cst_161 = arith.constant 3.200000e+01 : f32
    %464 = vector.broadcast %cst_161 : f32 to vector<16x1xf32>
    %465 = arith.divf %463, %464 : vector<16x1xf32>
    %cst_162 = arith.constant 9.99999974E-6 : f32
    %466 = vector.broadcast %cst_162 : f32 to vector<16x1xf32>
    %467 = arith.addf %465, %466 : vector<16x1xf32>
    %468 = math.rsqrt %467 : vector<16x1xf32>
    %469 = vector.broadcast %468 : vector<16x1xf32> to vector<16x32xf32>
    %470 = arith.mulf %460, %469 : vector<16x32xf32>
    %471 = vector.broadcast %31 : vector<1x32xf32> to vector<16x32xf32>
    %472 = arith.mulf %470, %471 : vector<16x32xf32>
    %473 = vector.broadcast %32 : vector<1x32xf32> to vector<16x32xf32>
    %474 = arith.addf %472, %473 : vector<16x32xf32>
    %cst_163 = arith.constant dense<0.000000e+00> : vector<16xf32>
    %475 = vector.multi_reduction <add>, %474, %cst_163 [1] : vector<16x32xf32> to vector<16xf32>
    %476 = vector.shape_cast %475 : vector<16xf32> to vector<16x1xf32>
    %cst_164 = arith.constant 3.200000e+01 : f32
    %477 = vector.broadcast %cst_164 : f32 to vector<16x1xf32>
    %478 = arith.divf %476, %477 : vector<16x1xf32>
    %479 = vector.broadcast %478 : vector<16x1xf32> to vector<16x32xf32>
    %480 = arith.subf %474, %479 : vector<16x32xf32>
    %481 = arith.mulf %480, %480 : vector<16x32xf32>
    %cst_165 = arith.constant dense<0.000000e+00> : vector<16xf32>
    %482 = vector.multi_reduction <add>, %481, %cst_165 [1] : vector<16x32xf32> to vector<16xf32>
    %483 = vector.shape_cast %482 : vector<16xf32> to vector<16x1xf32>
    %cst_166 = arith.constant 3.200000e+01 : f32
    %484 = vector.broadcast %cst_166 : f32 to vector<16x1xf32>
    %485 = arith.divf %483, %484 : vector<16x1xf32>
    %cst_167 = arith.constant 9.99999974E-6 : f32
    %486 = vector.broadcast %cst_167 : f32 to vector<16x1xf32>
    %487 = arith.addf %485, %486 : vector<16x1xf32>
    %488 = math.rsqrt %487 : vector<16x1xf32>
    %489 = vector.broadcast %488 : vector<16x1xf32> to vector<16x32xf32>
    %490 = arith.mulf %480, %489 : vector<16x32xf32>
    %491 = vector.broadcast %33 : vector<1x32xf32> to vector<16x32xf32>
    %492 = arith.mulf %490, %491 : vector<16x32xf32>
    %493 = vector.broadcast %34 : vector<1x32xf32> to vector<16x32xf32>
    %494 = arith.addf %492, %493 : vector<16x32xf32>
    %495 = vector.shape_cast %494 : vector<16x32xf32> to vector<2x8x32xf32>
    %c1 = arith.constant 1 : index
    %c0_168 = arith.constant 0 : index
    %c0_169 = arith.constant 0 : index
    %c0_170 = arith.constant 0 : index
    %496 = vector.load %arg57[%c1, %c0_168, %c0_169, %c0_170] : memref<2x2x8x32xf32, #tpu.memory_space<vmem>>, vector<1x2x8x32xf32>
    %497 = vector.shape_cast %496 : vector<1x2x8x32xf32> to vector<2x8x32xf32>
    %498 = vector.shape_cast %495 : vector<2x8x32xf32> to vector<1x2x8x32xf32>
    tpu.vector_store %arg57[%c1, %c0_168, %c0_169, %c0_170], %498 {strides = array<i32>} : memref<2x2x8x32xf32, #tpu.memory_space<vmem>>, vector<1x2x8x32xf32>,
    %c1_171 = arith.constant 1 : index
    %c0_172 = arith.constant 0 : index
    %c0_173 = arith.constant 0 : index
    %c0_174 = arith.constant 0 : index
    %499 = vector.load %arg58[%c1_171, %c0_172, %c0_173, %c0_174] : memref<2x2x8x16xf32, #tpu.memory_space<vmem>>, vector<1x2x8x16xf32>
    %500 = vector.shape_cast %499 : vector<1x2x8x16xf32> to vector<2x8x16xf32>
    %501 = vector.shape_cast %424 : vector<2x8x16xf32> to vector<1x2x8x16xf32>
    tpu.vector_store %arg58[%c1_171, %c0_172, %c0_173, %c0_174], %501 {strides = array<i32>} : memref<2x2x8x16xf32, #tpu.memory_space<vmem>>, vector<1x2x8x16xf32>,
    %c1_175 = arith.constant 1 : index
    %c0_176 = arith.constant 0 : index
    %c0_177 = arith.constant 0 : index
    %c0_178 = arith.constant 0 : index
    %502 = vector.load %arg59[%c1_175, %c0_176, %c0_177, %c0_178] : memref<2x2x8x8xf32, #tpu.memory_space<vmem>>, vector<1x2x8x8xf32>
    %503 = vector.shape_cast %502 : vector<1x2x8x8xf32> to vector<2x8x8xf32>
    %504 = vector.shape_cast %349 : vector<2x8x8xf32> to vector<1x2x8x8xf32>
    tpu.vector_store %arg59[%c1_175, %c0_176, %c0_177, %c0_178], %504 {strides = array<i32>} : memref<2x2x8x8xf32, #tpu.memory_space<vmem>>, vector<1x2x8x8xf32>,
    %c0_179 = arith.constant 0 : index
    %c0_180 = arith.constant 0 : index
    %c0_181 = arith.constant 0 : index
    %505 = vector.load %arg3[%c0_179, %c0_180, %c0_181] : memref<2x8x32xf32, #tpu.memory_space<vmem>>, vector<2x8x32xf32>
    %c0_182 = arith.constant 0 : index
    %c0_183 = arith.constant 0 : index
    %c0_184 = arith.constant 0 : index
    %506 = vector.load %arg2[%c0_182, %c0_183, %c0_184] : memref<2x8x32xf32, #tpu.memory_space<vmem>>, vector<2x8x32xf32>
    %507 = vector.shape_cast %505 : vector<2x8x32xf32> to vector<16x32xf32>
    %508 = vector.shape_cast %506 : vector<2x8x32xf32> to vector<16x32xf32>
    %c0_185 = arith.constant 0 : index
    %c0_186 = arith.constant 0 : index
    %509 = vector.load %arg31[%c0_185, %c0_186] : memref<32x64xf32, #tpu.memory_space<vmem>>, vector<32x64xf32>
    %c0_187 = arith.constant 0 : index
    %c0_188 = arith.constant 0 : index
    %510 = vector.load %arg32[%c0_187, %c0_188] : memref<1x64xf32, #tpu.memory_space<vmem>>, vector<1x64xf32>
    %c0_189 = arith.constant 0 : index
    %c0_190 = arith.constant 0 : index
    %511 = vector.load %arg33[%c0_189, %c0_190] : memref<32x32xf32, #tpu.memory_space<vmem>>, vector<32x32xf32>
    %c0_191 = arith.constant 0 : index
    %c0_192 = arith.constant 0 : index
    %512 = vector.load %arg34[%c0_191, %c0_192] : memref<1x32xf32, #tpu.memory_space<vmem>>, vector<1x32xf32>
    %c0_193 = arith.constant 0 : index
    %c0_194 = arith.constant 0 : index
    %513 = vector.load %arg35[%c0_193, %c0_194] : memref<32x32xf32, #tpu.memory_space<vmem>>, vector<32x32xf32>
    %c0_195 = arith.constant 0 : index
    %c0_196 = arith.constant 0 : index
    %514 = vector.load %arg36[%c0_195, %c0_196] : memref<1x32xf32, #tpu.memory_space<vmem>>, vector<1x32xf32>
    %c0_197 = arith.constant 0 : index
    %c0_198 = arith.constant 0 : index
    %515 = vector.load %arg37[%c0_197, %c0_198] : memref<32x32xf32, #tpu.memory_space<vmem>>, vector<32x32xf32>
    %c0_199 = arith.constant 0 : index
    %c0_200 = arith.constant 0 : index
    %516 = vector.load %arg38[%c0_199, %c0_200] : memref<1x32xf32, #tpu.memory_space<vmem>>, vector<1x32xf32>
    %c0_201 = arith.constant 0 : index
    %c0_202 = arith.constant 0 : index
    %517 = vector.load %arg39[%c0_201, %c0_202] : memref<32x32xf32, #tpu.memory_space<vmem>>, vector<32x32xf32>
    %c0_203 = arith.constant 0 : index
    %c0_204 = arith.constant 0 : index
    %518 = vector.load %arg40[%c0_203, %c0_204] : memref<1x32xf32, #tpu.memory_space<vmem>>, vector<1x32xf32>
    %c0_205 = arith.constant 0 : index
    %c0_206 = arith.constant 0 : index
    %519 = vector.load %arg41[%c0_205, %c0_206] : memref<32x32xf32, #tpu.memory_space<vmem>>, vector<32x32xf32>
    %c0_207 = arith.constant 0 : index
    %c0_208 = arith.constant 0 : index
    %520 = vector.load %arg42[%c0_207, %c0_208] : memref<1x32xf32, #tpu.memory_space<vmem>>, vector<1x32xf32>
    %c0_209 = arith.constant 0 : index
    %c0_210 = arith.constant 0 : index
    %521 = vector.load %arg43[%c0_209, %c0_210] : memref<32x32xf32, #tpu.memory_space<vmem>>, vector<32x32xf32>
    %c0_211 = arith.constant 0 : index
    %c0_212 = arith.constant 0 : index
    %522 = vector.load %arg44[%c0_211, %c0_212] : memref<1x32xf32, #tpu.memory_space<vmem>>, vector<1x32xf32>
    %c0_213 = arith.constant 0 : index
    %c0_214 = arith.constant 0 : index
    %523 = vector.load %arg45[%c0_213, %c0_214] : memref<32x64xf32, #tpu.memory_space<vmem>>, vector<32x64xf32>
    %c0_215 = arith.constant 0 : index
    %c0_216 = arith.constant 0 : index
    %524 = vector.load %arg46[%c0_215, %c0_216] : memref<1x64xf32, #tpu.memory_space<vmem>>, vector<1x64xf32>
    %c0_217 = arith.constant 0 : index
    %c0_218 = arith.constant 0 : index
    %525 = vector.load %arg47[%c0_217, %c0_218] : memref<64x32xf32, #tpu.memory_space<vmem>>, vector<64x32xf32>
    %c0_219 = arith.constant 0 : index
    %c0_220 = arith.constant 0 : index
    %526 = vector.load %arg48[%c0_219, %c0_220] : memref<1x32xf32, #tpu.memory_space<vmem>>, vector<1x32xf32>
    %c0_221 = arith.constant 0 : index
    %c0_222 = arith.constant 0 : index
    %527 = vector.load %arg49[%c0_221, %c0_222] : memref<1x32xf32, #tpu.memory_space<vmem>>, vector<1x32xf32>
    %c0_223 = arith.constant 0 : index
    %c0_224 = arith.constant 0 : index
    %528 = vector.load %arg50[%c0_223, %c0_224] : memref<1x32xf32, #tpu.memory_space<vmem>>, vector<1x32xf32>
    %c0_225 = arith.constant 0 : index
    %c0_226 = arith.constant 0 : index
    %529 = vector.load %arg51[%c0_225, %c0_226] : memref<1x32xf32, #tpu.memory_space<vmem>>, vector<1x32xf32>
    %c0_227 = arith.constant 0 : index
    %c0_228 = arith.constant 0 : index
    %530 = vector.load %arg52[%c0_227, %c0_228] : memref<1x32xf32, #tpu.memory_space<vmem>>, vector<1x32xf32>
    %c0_229 = arith.constant 0 : index
    %c0_230 = arith.constant 0 : index
    %531 = vector.load %arg53[%c0_229, %c0_230] : memref<1x32xf32, #tpu.memory_space<vmem>>, vector<1x32xf32>
    %c0_231 = arith.constant 0 : index
    %c0_232 = arith.constant 0 : index
    %532 = vector.load %arg54[%c0_231, %c0_232] : memref<1x32xf32, #tpu.memory_space<vmem>>, vector<1x32xf32>
    %c0_233 = arith.constant 0 : index
    %c0_234 = arith.constant 0 : index
    %533 = vector.load %arg55[%c0_233, %c0_234] : memref<1x32xf32, #tpu.memory_space<vmem>>, vector<1x32xf32>
    %c0_235 = arith.constant 0 : index
    %c0_236 = arith.constant 0 : index
    %534 = vector.load %arg56[%c0_235, %c0_236] : memref<1x32xf32, #tpu.memory_space<vmem>>, vector<1x32xf32>
    %cst_237 = arith.constant dense<0.000000e+00> : vector<32x32xf32>
    %535 = tpu.matmul %4, %517, %cst_237 {dimension_numbers = #tpu.dot_dimension_numbers<[1], [0], [0], [1], [0, 0, 1, 1], [], []>} : vector<32x32xf32>, vector<32x32xf32>, vector<32x32xf32> -> vector<32x32xf32>
    %536 = vector.broadcast %518 : vector<1x32xf32> to vector<32x32xf32>
    %537 = arith.addf %535, %536 : vector<32x32xf32>
    %cst_238 = arith.constant dense<0.000000e+00> : vector<32x32xf32>
    %538 = tpu.matmul %2, %519, %cst_238 {dimension_numbers = #tpu.dot_dimension_numbers<[1], [0], [0], [1], [0, 0, 1, 1], [], []>} : vector<32x32xf32>, vector<32x32xf32>, vector<32x32xf32> -> vector<32x32xf32>
    %539 = vector.broadcast %520 : vector<1x32xf32> to vector<32x32xf32>
    %540 = arith.addf %538, %539 : vector<32x32xf32>
    %541 = vector.shape_cast %537 : vector<32x32xf32> to vector<2x16x32xf32>
    %542 = vector.extract_strided_slice %541 {offsets = [0, 0, 0], sizes = [2, 16, 8], strides = [1, 1, 1]} : vector<2x16x32xf32> to vector<2x16x8xf32>
    %543 = vector.extract_strided_slice %541 {offsets = [0, 0, 8], sizes = [2, 16, 8], strides = [1, 1, 1]} : vector<2x16x32xf32> to vector<2x16x8xf32>
    %544 = vector.extract_strided_slice %541 {offsets = [0, 0, 16], sizes = [2, 16, 8], strides = [1, 1, 1]} : vector<2x16x32xf32> to vector<2x16x8xf32>
    %545 = vector.extract_strided_slice %541 {offsets = [0, 0, 24], sizes = [2, 16, 8], strides = [1, 1, 1]} : vector<2x16x32xf32> to vector<2x16x8xf32>
    %546 = tpu.concatenate %542, %543, %544, %545 in 0 : vector<2x16x8xf32>, vector<2x16x8xf32>, vector<2x16x8xf32>, vector<2x16x8xf32> -> vector<8x16x8xf32>
    %547 = vector.shape_cast %540 : vector<32x32xf32> to vector<2x16x32xf32>
    %548 = vector.extract_strided_slice %547 {offsets = [0, 0, 0], sizes = [2, 16, 8], strides = [1, 1, 1]} : vector<2x16x32xf32> to vector<2x16x8xf32>
    %549 = vector.extract_strided_slice %547 {offsets = [0, 0, 8], sizes = [2, 16, 8], strides = [1, 1, 1]} : vector<2x16x32xf32> to vector<2x16x8xf32>
    %550 = vector.extract_strided_slice %547 {offsets = [0, 0, 16], sizes = [2, 16, 8], strides = [1, 1, 1]} : vector<2x16x32xf32> to vector<2x16x8xf32>
    %551 = vector.extract_strided_slice %547 {offsets = [0, 0, 24], sizes = [2, 16, 8], strides = [1, 1, 1]} : vector<2x16x32xf32> to vector<2x16x8xf32>
    %552 = tpu.concatenate %548, %549, %550, %551 in 0 : vector<2x16x8xf32>, vector<2x16x8xf32>, vector<2x16x8xf32>, vector<2x16x8xf32> -> vector<8x16x8xf32>
    %553 = arith.addf %507, %508 : vector<16x32xf32>
    %cst_239 = arith.constant dense<0.000000e+00> : vector<16x64xf32>
    %554 = tpu.matmul %553, %509, %cst_239 {dimension_numbers = #tpu.dot_dimension_numbers<[1], [0], [0], [1], [0, 0, 1, 1], [], []>} : vector<16x32xf32>, vector<32x64xf32>, vector<16x64xf32> -> vector<16x64xf32>
    %555 = vector.broadcast %510 : vector<1x64xf32> to vector<16x64xf32>
    %556 = arith.addf %554, %555 : vector<16x64xf32>
    %557 = vector.extract_strided_slice %556 {offsets = [0, 0], sizes = [16, 32], strides = [1, 1]} : vector<16x64xf32> to vector<16x32xf32>
    %558 = vector.extract_strided_slice %556 {offsets = [0, 32], sizes = [16, 32], strides = [1, 1]} : vector<16x64xf32> to vector<16x32xf32>
    %cst_240 = arith.constant dense<0.000000e+00> : vector<16x32xf32>
    %559 = tpu.matmul %507, %511, %cst_240 {dimension_numbers = #tpu.dot_dimension_numbers<[1], [0], [0], [1], [0, 0, 1, 1], [], []>} : vector<16x32xf32>, vector<32x32xf32>, vector<16x32xf32> -> vector<16x32xf32>
    %560 = vector.broadcast %512 : vector<1x32xf32> to vector<16x32xf32>
    %561 = arith.addf %559, %560 : vector<16x32xf32>
    %562 = vector.shape_cast %557 : vector<16x32xf32> to vector<2x8x32xf32>
    %563 = vector.extract_strided_slice %562 {offsets = [0, 0, 0], sizes = [2, 8, 8], strides = [1, 1, 1]} : vector<2x8x32xf32> to vector<2x8x8xf32>
    %564 = vector.extract_strided_slice %562 {offsets = [0, 0, 8], sizes = [2, 8, 8], strides = [1, 1, 1]} : vector<2x8x32xf32> to vector<2x8x8xf32>
    %565 = vector.extract_strided_slice %562 {offsets = [0, 0, 16], sizes = [2, 8, 8], strides = [1, 1, 1]} : vector<2x8x32xf32> to vector<2x8x8xf32>
    %566 = vector.extract_strided_slice %562 {offsets = [0, 0, 24], sizes = [2, 8, 8], strides = [1, 1, 1]} : vector<2x8x32xf32> to vector<2x8x8xf32>
    %567 = tpu.concatenate %563, %564, %565, %566 in 0 : vector<2x8x8xf32>, vector<2x8x8xf32>, vector<2x8x8xf32>, vector<2x8x8xf32> -> vector<8x8x8xf32>
    %568 = vector.shape_cast %558 : vector<16x32xf32> to vector<2x8x32xf32>
    %569 = vector.extract_strided_slice %568 {offsets = [0, 0, 0], sizes = [2, 8, 8], strides = [1, 1, 1]} : vector<2x8x32xf32> to vector<2x8x8xf32>
    %570 = vector.extract_strided_slice %568 {offsets = [0, 0, 8], sizes = [2, 8, 8], strides = [1, 1, 1]} : vector<2x8x32xf32> to vector<2x8x8xf32>
    %571 = vector.extract_strided_slice %568 {offsets = [0, 0, 16], sizes = [2, 8, 8], strides = [1, 1, 1]} : vector<2x8x32xf32> to vector<2x8x8xf32>
    %572 = vector.extract_strided_slice %568 {offsets = [0, 0, 24], sizes = [2, 8, 8], strides = [1, 1, 1]} : vector<2x8x32xf32> to vector<2x8x8xf32>
    %573 = tpu.concatenate %569, %570, %571, %572 in 0 : vector<2x8x8xf32>, vector<2x8x8xf32>, vector<2x8x8xf32>, vector<2x8x8xf32> -> vector<8x8x8xf32>
    %574 = vector.shape_cast %561 : vector<16x32xf32> to vector<2x8x32xf32>
    %575 = vector.extract_strided_slice %574 {offsets = [0, 0, 0], sizes = [2, 8, 8], strides = [1, 1, 1]} : vector<2x8x32xf32> to vector<2x8x8xf32>
    %576 = vector.extract_strided_slice %574 {offsets = [0, 0, 8], sizes = [2, 8, 8], strides = [1, 1, 1]} : vector<2x8x32xf32> to vector<2x8x8xf32>
    %577 = vector.extract_strided_slice %574 {offsets = [0, 0, 16], sizes = [2, 8, 8], strides = [1, 1, 1]} : vector<2x8x32xf32> to vector<2x8x8xf32>
    %578 = vector.extract_strided_slice %574 {offsets = [0, 0, 24], sizes = [2, 8, 8], strides = [1, 1, 1]} : vector<2x8x32xf32> to vector<2x8x8xf32>
    %579 = tpu.concatenate %575, %576, %577, %578 in 0 : vector<2x8x8xf32>, vector<2x8x8xf32>, vector<2x8x8xf32>, vector<2x8x8xf32> -> vector<8x8x8xf32>
    "tpu.trace_start"() <{level = 10 : i32, message = "bqd,bkd->bqk"}> : () -> ()
    %cst_241 = arith.constant dense<0.000000e+00> : vector<8x8x8xf32>
    %580 = tpu.matmul %567, %573, %cst_241 {dimension_numbers = #tpu.dot_dimension_numbers<[2], [2], [1], [1], [0, 0, 0, 1, 1, 1], [0], [0]>} : vector<8x8x8xf32>, vector<8x8x8xf32>, vector<8x8x8xf32> -> vector<8x8x8xf32>
    "tpu.trace_stop"() : () -> ()
    %cst_242 = arith.constant 0.353553385 : f32
    %581 = vector.broadcast %cst_242 : f32 to vector<8x8x8xf32>
    %582 = arith.mulf %580, %581 : vector<8x8x8xf32>
    %cst_243 = arith.constant dense<0xFF800000> : vector<8x8xf32>
    %583 = vector.multi_reduction <maximumf>, %582, %cst_243 [2] : vector<8x8x8xf32> to vector<8x8xf32>
    %584 = vector.shape_cast %583 : vector<8x8xf32> to vector<8x8x1xf32>
    %585 = vector.broadcast %584 : vector<8x8x1xf32> to vector<8x8x8xf32>
    %586 = arith.subf %582, %585 : vector<8x8x8xf32>
    %587 = math.exp %586 : vector<8x8x8xf32>
    %cst_244 = arith.constant dense<0.000000e+00> : vector<8x8xf32>
    %588 = vector.multi_reduction <add>, %587, %cst_244 [2] : vector<8x8x8xf32> to vector<8x8xf32>
    %589 = vector.shape_cast %588 : vector<8x8xf32> to vector<8x8x1xf32>
    %590 = tpu.reciprocal %589 {approx = true} : vector<8x8x1xf32> -> vector<8x8x1xf32>
    %591 = vector.broadcast %590 : vector<8x8x1xf32> to vector<8x8x8xf32>
    %592 = arith.mulf %587, %591 : vector<8x8x8xf32>
    "tpu.trace_start"() <{level = 10 : i32, message = "bqk,bkd->bqd"}> : () -> ()
    %cst_245 = arith.constant dense<0.000000e+00> : vector<8x8x8xf32>
    %593 = tpu.matmul %592, %579, %cst_245 {dimension_numbers = #tpu.dot_dimension_numbers<[2], [1], [1], [2], [0, 0, 0, 1, 1, 2], [0], [0]>} : vector<8x8x8xf32>, vector<8x8x8xf32>, vector<8x8x8xf32> -> vector<8x8x8xf32>
    "tpu.trace_stop"() : () -> ()
    %594 = vector.extract_strided_slice %593 {offsets = [0, 0, 0], sizes = [2, 8, 8], strides = [1, 1, 1]} : vector<8x8x8xf32> to vector<2x8x8xf32>
    %595 = vector.shape_cast %594 : vector<2x8x8xf32> to vector<16x8xf32>
    %596 = vector.extract_strided_slice %513 {offsets = [0, 0], sizes = [8, 32], strides = [1, 1]} : vector<32x32xf32> to vector<8x32xf32>
    %cst_246 = arith.constant dense<0.000000e+00> : vector<16x32xf32>
    %597 = tpu.matmul %595, %596, %cst_246 {dimension_numbers = #tpu.dot_dimension_numbers<[1], [0], [0], [1], [0, 0, 1, 1], [], []>} : vector<16x8xf32>, vector<8x32xf32>, vector<16x32xf32> -> vector<16x32xf32>
    %598 = vector.extract_strided_slice %593 {offsets = [2, 0, 0], sizes = [2, 8, 8], strides = [1, 1, 1]} : vector<8x8x8xf32> to vector<2x8x8xf32>
    %599 = vector.shape_cast %598 : vector<2x8x8xf32> to vector<16x8xf32>
    %600 = vector.extract_strided_slice %513 {offsets = [8, 0], sizes = [8, 32], strides = [1, 1]} : vector<32x32xf32> to vector<8x32xf32>
    %cst_247 = arith.constant dense<0.000000e+00> : vector<16x32xf32>
    %601 = tpu.matmul %599, %600, %cst_247 {dimension_numbers = #tpu.dot_dimension_numbers<[1], [0], [0], [1], [0, 0, 1, 1], [], []>} : vector<16x8xf32>, vector<8x32xf32>, vector<16x32xf32> -> vector<16x32xf32>
    %602 = arith.addf %597, %601 : vector<16x32xf32>
    %603 = vector.extract_strided_slice %593 {offsets = [4, 0, 0], sizes = [2, 8, 8], strides = [1, 1, 1]} : vector<8x8x8xf32> to vector<2x8x8xf32>
    %604 = vector.shape_cast %603 : vector<2x8x8xf32> to vector<16x8xf32>
    %605 = vector.extract_strided_slice %513 {offsets = [16, 0], sizes = [8, 32], strides = [1, 1]} : vector<32x32xf32> to vector<8x32xf32>
    %cst_248 = arith.constant dense<0.000000e+00> : vector<16x32xf32>
    %606 = tpu.matmul %604, %605, %cst_248 {dimension_numbers = #tpu.dot_dimension_numbers<[1], [0], [0], [1], [0, 0, 1, 1], [], []>} : vector<16x8xf32>, vector<8x32xf32>, vector<16x32xf32> -> vector<16x32xf32>
    %607 = arith.addf %602, %606 : vector<16x32xf32>
    %608 = vector.extract_strided_slice %593 {offsets = [6, 0, 0], sizes = [2, 8, 8], strides = [1, 1, 1]} : vector<8x8x8xf32> to vector<2x8x8xf32>
    %609 = vector.shape_cast %608 : vector<2x8x8xf32> to vector<16x8xf32>
    %610 = vector.extract_strided_slice %513 {offsets = [24, 0], sizes = [8, 32], strides = [1, 1]} : vector<32x32xf32> to vector<8x32xf32>
    %cst_249 = arith.constant dense<0.000000e+00> : vector<16x32xf32>
    %611 = tpu.matmul %609, %610, %cst_249 {dimension_numbers = #tpu.dot_dimension_numbers<[1], [0], [0], [1], [0, 0, 1, 1], [], []>} : vector<16x8xf32>, vector<8x32xf32>, vector<16x32xf32> -> vector<16x32xf32>
    %612 = arith.addf %607, %611 : vector<16x32xf32>
    %613 = vector.broadcast %514 : vector<1x32xf32> to vector<16x32xf32>
    %614 = arith.addf %612, %613 : vector<16x32xf32>
    %615 = arith.addf %507, %614 : vector<16x32xf32>
    %cst_250 = arith.constant dense<0.000000e+00> : vector<16xf32>
    %616 = vector.multi_reduction <add>, %615, %cst_250 [1] : vector<16x32xf32> to vector<16xf32>
    %617 = vector.shape_cast %616 : vector<16xf32> to vector<16x1xf32>
    %cst_251 = arith.constant 3.200000e+01 : f32
    %618 = vector.broadcast %cst_251 : f32 to vector<16x1xf32>
    %619 = arith.divf %617, %618 : vector<16x1xf32>
    %620 = vector.broadcast %619 : vector<16x1xf32> to vector<16x32xf32>
    %621 = arith.subf %615, %620 : vector<16x32xf32>
    %622 = arith.mulf %621, %621 : vector<16x32xf32>
    %cst_252 = arith.constant dense<0.000000e+00> : vector<16xf32>
    %623 = vector.multi_reduction <add>, %622, %cst_252 [1] : vector<16x32xf32> to vector<16xf32>
    %624 = vector.shape_cast %623 : vector<16xf32> to vector<16x1xf32>
    %cst_253 = arith.constant 3.200000e+01 : f32
    %625 = vector.broadcast %cst_253 : f32 to vector<16x1xf32>
    %626 = arith.divf %624, %625 : vector<16x1xf32>
    %cst_254 = arith.constant 9.99999974E-6 : f32
    %627 = vector.broadcast %cst_254 : f32 to vector<16x1xf32>
    %628 = arith.addf %626, %627 : vector<16x1xf32>
    %629 = math.rsqrt %628 : vector<16x1xf32>
    %630 = vector.broadcast %629 : vector<16x1xf32> to vector<16x32xf32>
    %631 = arith.mulf %621, %630 : vector<16x32xf32>
    %632 = vector.broadcast %527 : vector<1x32xf32> to vector<16x32xf32>
    %633 = arith.mulf %631, %632 : vector<16x32xf32>
    %634 = vector.broadcast %528 : vector<1x32xf32> to vector<16x32xf32>
    %635 = arith.addf %633, %634 : vector<16x32xf32>
    %636 = arith.addf %635, %508 : vector<16x32xf32>
    %cst_255 = arith.constant dense<0.000000e+00> : vector<16x32xf32>
    %637 = tpu.matmul %636, %515, %cst_255 {dimension_numbers = #tpu.dot_dimension_numbers<[1], [0], [0], [1], [0, 0, 1, 1], [], []>} : vector<16x32xf32>, vector<32x32xf32>, vector<16x32xf32> -> vector<16x32xf32>
    %638 = vector.broadcast %516 : vector<1x32xf32> to vector<16x32xf32>
    %639 = arith.addf %637, %638 : vector<16x32xf32>
    %640 = vector.shape_cast %639 : vector<16x32xf32> to vector<2x8x32xf32>
    %641 = vector.extract_strided_slice %640 {offsets = [0, 0, 0], sizes = [2, 8, 8], strides = [1, 1, 1]} : vector<2x8x32xf32> to vector<2x8x8xf32>
    %642 = vector.extract_strided_slice %640 {offsets = [0, 0, 8], sizes = [2, 8, 8], strides = [1, 1, 1]} : vector<2x8x32xf32> to vector<2x8x8xf32>
    %643 = vector.extract_strided_slice %640 {offsets = [0, 0, 16], sizes = [2, 8, 8], strides = [1, 1, 1]} : vector<2x8x32xf32> to vector<2x8x8xf32>
    %644 = vector.extract_strided_slice %640 {offsets = [0, 0, 24], sizes = [2, 8, 8], strides = [1, 1, 1]} : vector<2x8x32xf32> to vector<2x8x8xf32>
    %645 = tpu.concatenate %641, %642, %643, %644 in 0 : vector<2x8x8xf32>, vector<2x8x8xf32>, vector<2x8x8xf32>, vector<2x8x8xf32> -> vector<8x8x8xf32>
    "tpu.trace_start"() <{level = 10 : i32, message = "bqd,bkd->bqk"}> : () -> ()
    %cst_256 = arith.constant dense<0.000000e+00> : vector<8x8x16xf32>
    %646 = tpu.matmul %645, %546, %cst_256 {dimension_numbers = #tpu.dot_dimension_numbers<[2], [2], [1], [1], [0, 0, 0, 1, 1, 1], [0], [0]>} : vector<8x8x8xf32>, vector<8x16x8xf32>, vector<8x8x16xf32> -> vector<8x8x16xf32>
    "tpu.trace_stop"() : () -> ()
    %cst_257 = arith.constant 0.353553385 : f32
    %647 = vector.broadcast %cst_257 : f32 to vector<8x8x16xf32>
    %648 = arith.mulf %646, %647 : vector<8x8x16xf32>
    %cst_258 = arith.constant dense<0xFF800000> : vector<8x8xf32>
    %649 = vector.multi_reduction <maximumf>, %648, %cst_258 [2] : vector<8x8x16xf32> to vector<8x8xf32>
    %650 = vector.shape_cast %649 : vector<8x8xf32> to vector<8x8x1xf32>
    %651 = vector.broadcast %650 : vector<8x8x1xf32> to vector<8x8x16xf32>
    %652 = arith.subf %648, %651 : vector<8x8x16xf32>
    %653 = math.exp %652 : vector<8x8x16xf32>
    %cst_259 = arith.constant dense<0.000000e+00> : vector<8x8xf32>
    %654 = vector.multi_reduction <add>, %653, %cst_259 [2] : vector<8x8x16xf32> to vector<8x8xf32>
    %655 = vector.shape_cast %654 : vector<8x8xf32> to vector<8x8x1xf32>
    %656 = tpu.reciprocal %655 {approx = true} : vector<8x8x1xf32> -> vector<8x8x1xf32>
    %657 = vector.broadcast %656 : vector<8x8x1xf32> to vector<8x8x16xf32>
    %658 = arith.mulf %653, %657 : vector<8x8x16xf32>
    "tpu.trace_start"() <{level = 10 : i32, message = "bqk,bkd->bqd"}> : () -> ()
    %cst_260 = arith.constant dense<0.000000e+00> : vector<8x8x8xf32>
    %659 = tpu.matmul %658, %552, %cst_260 {dimension_numbers = #tpu.dot_dimension_numbers<[2], [1], [1], [2], [0, 0, 0, 1, 1, 2], [0], [0]>} : vector<8x8x16xf32>, vector<8x16x8xf32>, vector<8x8x8xf32> -> vector<8x8x8xf32>
    "tpu.trace_stop"() : () -> ()
    %660 = vector.extract_strided_slice %659 {offsets = [0, 0, 0], sizes = [2, 8, 8], strides = [1, 1, 1]} : vector<8x8x8xf32> to vector<2x8x8xf32>
    %661 = vector.shape_cast %660 : vector<2x8x8xf32> to vector<16x8xf32>
    %662 = vector.extract_strided_slice %521 {offsets = [0, 0], sizes = [8, 32], strides = [1, 1]} : vector<32x32xf32> to vector<8x32xf32>
    %cst_261 = arith.constant dense<0.000000e+00> : vector<16x32xf32>
    %663 = tpu.matmul %661, %662, %cst_261 {dimension_numbers = #tpu.dot_dimension_numbers<[1], [0], [0], [1], [0, 0, 1, 1], [], []>} : vector<16x8xf32>, vector<8x32xf32>, vector<16x32xf32> -> vector<16x32xf32>
    %664 = vector.extract_strided_slice %659 {offsets = [2, 0, 0], sizes = [2, 8, 8], strides = [1, 1, 1]} : vector<8x8x8xf32> to vector<2x8x8xf32>
    %665 = vector.shape_cast %664 : vector<2x8x8xf32> to vector<16x8xf32>
    %666 = vector.extract_strided_slice %521 {offsets = [8, 0], sizes = [8, 32], strides = [1, 1]} : vector<32x32xf32> to vector<8x32xf32>
    %cst_262 = arith.constant dense<0.000000e+00> : vector<16x32xf32>
    %667 = tpu.matmul %665, %666, %cst_262 {dimension_numbers = #tpu.dot_dimension_numbers<[1], [0], [0], [1], [0, 0, 1, 1], [], []>} : vector<16x8xf32>, vector<8x32xf32>, vector<16x32xf32> -> vector<16x32xf32>
    %668 = arith.addf %663, %667 : vector<16x32xf32>
    %669 = vector.extract_strided_slice %659 {offsets = [4, 0, 0], sizes = [2, 8, 8], strides = [1, 1, 1]} : vector<8x8x8xf32> to vector<2x8x8xf32>
    %670 = vector.shape_cast %669 : vector<2x8x8xf32> to vector<16x8xf32>
    %671 = vector.extract_strided_slice %521 {offsets = [16, 0], sizes = [8, 32], strides = [1, 1]} : vector<32x32xf32> to vector<8x32xf32>
    %cst_263 = arith.constant dense<0.000000e+00> : vector<16x32xf32>
    %672 = tpu.matmul %670, %671, %cst_263 {dimension_numbers = #tpu.dot_dimension_numbers<[1], [0], [0], [1], [0, 0, 1, 1], [], []>} : vector<16x8xf32>, vector<8x32xf32>, vector<16x32xf32> -> vector<16x32xf32>
    %673 = arith.addf %668, %672 : vector<16x32xf32>
    %674 = vector.extract_strided_slice %659 {offsets = [6, 0, 0], sizes = [2, 8, 8], strides = [1, 1, 1]} : vector<8x8x8xf32> to vector<2x8x8xf32>
    %675 = vector.shape_cast %674 : vector<2x8x8xf32> to vector<16x8xf32>
    %676 = vector.extract_strided_slice %521 {offsets = [24, 0], sizes = [8, 32], strides = [1, 1]} : vector<32x32xf32> to vector<8x32xf32>
    %cst_264 = arith.constant dense<0.000000e+00> : vector<16x32xf32>
    %677 = tpu.matmul %675, %676, %cst_264 {dimension_numbers = #tpu.dot_dimension_numbers<[1], [0], [0], [1], [0, 0, 1, 1], [], []>} : vector<16x8xf32>, vector<8x32xf32>, vector<16x32xf32> -> vector<16x32xf32>
    %678 = arith.addf %673, %677 : vector<16x32xf32>
    %679 = vector.broadcast %522 : vector<1x32xf32> to vector<16x32xf32>
    %680 = arith.addf %678, %679 : vector<16x32xf32>
    %681 = arith.addf %635, %680 : vector<16x32xf32>
    %cst_265 = arith.constant dense<0.000000e+00> : vector<16xf32>
    %682 = vector.multi_reduction <add>, %681, %cst_265 [1] : vector<16x32xf32> to vector<16xf32>
    %683 = vector.shape_cast %682 : vector<16xf32> to vector<16x1xf32>
    %cst_266 = arith.constant 3.200000e+01 : f32
    %684 = vector.broadcast %cst_266 : f32 to vector<16x1xf32>
    %685 = arith.divf %683, %684 : vector<16x1xf32>
    %686 = vector.broadcast %685 : vector<16x1xf32> to vector<16x32xf32>
    %687 = arith.subf %681, %686 : vector<16x32xf32>
    %688 = arith.mulf %687, %687 : vector<16x32xf32>
    %cst_267 = arith.constant dense<0.000000e+00> : vector<16xf32>
    %689 = vector.multi_reduction <add>, %688, %cst_267 [1] : vector<16x32xf32> to vector<16xf32>
    %690 = vector.shape_cast %689 : vector<16xf32> to vector<16x1xf32>
    %cst_268 = arith.constant 3.200000e+01 : f32
    %691 = vector.broadcast %cst_268 : f32 to vector<16x1xf32>
    %692 = arith.divf %690, %691 : vector<16x1xf32>
    %cst_269 = arith.constant 9.99999974E-6 : f32
    %693 = vector.broadcast %cst_269 : f32 to vector<16x1xf32>
    %694 = arith.addf %692, %693 : vector<16x1xf32>
    %695 = math.rsqrt %694 : vector<16x1xf32>
    %696 = vector.broadcast %695 : vector<16x1xf32> to vector<16x32xf32>
    %697 = arith.mulf %687, %696 : vector<16x32xf32>
    %698 = vector.broadcast %529 : vector<1x32xf32> to vector<16x32xf32>
    %699 = arith.mulf %697, %698 : vector<16x32xf32>
    %700 = vector.broadcast %530 : vector<1x32xf32> to vector<16x32xf32>
    %701 = arith.addf %699, %700 : vector<16x32xf32>
    %cst_270 = arith.constant dense<0.000000e+00> : vector<16x64xf32>
    %702 = tpu.matmul %701, %523, %cst_270 {dimension_numbers = #tpu.dot_dimension_numbers<[1], [0], [0], [1], [0, 0, 1, 1], [], []>} : vector<16x32xf32>, vector<32x64xf32>, vector<16x64xf32> -> vector<16x64xf32>
    %703 = vector.broadcast %524 : vector<1x64xf32> to vector<16x64xf32>
    %704 = arith.addf %702, %703 : vector<16x64xf32>
    %cst_271 = arith.constant 0.000000e+00 : f32
    %705 = vector.broadcast %cst_271 : f32 to vector<16x64xf32>
    %706 = arith.maximumf %704, %705 : vector<16x64xf32>
    %cst_272 = arith.constant dense<0.000000e+00> : vector<16x32xf32>
    %707 = tpu.matmul %706, %525, %cst_272 {dimension_numbers = #tpu.dot_dimension_numbers<[1], [0], [0], [1], [0, 0, 1, 1], [], []>} : vector<16x64xf32>, vector<64x32xf32>, vector<16x32xf32> -> vector<16x32xf32>
    %708 = vector.broadcast %526 : vector<1x32xf32> to vector<16x32xf32>
    %709 = arith.addf %707, %708 : vector<16x32xf32>
    %710 = arith.addf %701, %709 : vector<16x32xf32>
    %cst_273 = arith.constant dense<0.000000e+00> : vector<16xf32>
    %711 = vector.multi_reduction <add>, %710, %cst_273 [1] : vector<16x32xf32> to vector<16xf32>
    %712 = vector.shape_cast %711 : vector<16xf32> to vector<16x1xf32>
    %cst_274 = arith.constant 3.200000e+01 : f32
    %713 = vector.broadcast %cst_274 : f32 to vector<16x1xf32>
    %714 = arith.divf %712, %713 : vector<16x1xf32>
    %715 = vector.broadcast %714 : vector<16x1xf32> to vector<16x32xf32>
    %716 = arith.subf %710, %715 : vector<16x32xf32>
    %717 = arith.mulf %716, %716 : vector<16x32xf32>
    %cst_275 = arith.constant dense<0.000000e+00> : vector<16xf32>
    %718 = vector.multi_reduction <add>, %717, %cst_275 [1] : vector<16x32xf32> to vector<16xf32>
    %719 = vector.shape_cast %718 : vector<16xf32> to vector<16x1xf32>
    %cst_276 = arith.constant 3.200000e+01 : f32
    %720 = vector.broadcast %cst_276 : f32 to vector<16x1xf32>
    %721 = arith.divf %719, %720 : vector<16x1xf32>
    %cst_277 = arith.constant 9.99999974E-6 : f32
    %722 = vector.broadcast %cst_277 : f32 to vector<16x1xf32>
    %723 = arith.addf %721, %722 : vector<16x1xf32>
    %724 = math.rsqrt %723 : vector<16x1xf32>
    %725 = vector.broadcast %724 : vector<16x1xf32> to vector<16x32xf32>
    %726 = arith.mulf %716, %725 : vector<16x32xf32>
    %727 = vector.broadcast %531 : vector<1x32xf32> to vector<16x32xf32>
    %728 = arith.mulf %726, %727 : vector<16x32xf32>
    %729 = vector.broadcast %532 : vector<1x32xf32> to vector<16x32xf32>
    %730 = arith.addf %728, %729 : vector<16x32xf32>
    %cst_278 = arith.constant dense<0.000000e+00> : vector<16xf32>
    %731 = vector.multi_reduction <add>, %730, %cst_278 [1] : vector<16x32xf32> to vector<16xf32>
    %732 = vector.shape_cast %731 : vector<16xf32> to vector<16x1xf32>
    %cst_279 = arith.constant 3.200000e+01 : f32
    %733 = vector.broadcast %cst_279 : f32 to vector<16x1xf32>
    %734 = arith.divf %732, %733 : vector<16x1xf32>
    %735 = vector.broadcast %734 : vector<16x1xf32> to vector<16x32xf32>
    %736 = arith.subf %730, %735 : vector<16x32xf32>
    %737 = arith.mulf %736, %736 : vector<16x32xf32>
    %cst_280 = arith.constant dense<0.000000e+00> : vector<16xf32>
    %738 = vector.multi_reduction <add>, %737, %cst_280 [1] : vector<16x32xf32> to vector<16xf32>
    %739 = vector.shape_cast %738 : vector<16xf32> to vector<16x1xf32>
    %cst_281 = arith.constant 3.200000e+01 : f32
    %740 = vector.broadcast %cst_281 : f32 to vector<16x1xf32>
    %741 = arith.divf %739, %740 : vector<16x1xf32>
    %cst_282 = arith.constant 9.99999974E-6 : f32
    %742 = vector.broadcast %cst_282 : f32 to vector<16x1xf32>
    %743 = arith.addf %741, %742 : vector<16x1xf32>
    %744 = math.rsqrt %743 : vector<16x1xf32>
    %745 = vector.broadcast %744 : vector<16x1xf32> to vector<16x32xf32>
    %746 = arith.mulf %736, %745 : vector<16x32xf32>
    %747 = vector.broadcast %533 : vector<1x32xf32> to vector<16x32xf32>
    %748 = arith.mulf %746, %747 : vector<16x32xf32>
    %749 = vector.broadcast %534 : vector<1x32xf32> to vector<16x32xf32>
    %750 = arith.addf %748, %749 : vector<16x32xf32>
    %751 = vector.shape_cast %750 : vector<16x32xf32> to vector<2x8x32xf32>
    %c0_283 = arith.constant 0 : index
    %c0_284 = arith.constant 0 : index
    %c0_285 = arith.constant 0 : index
    %c0_286 = arith.constant 0 : index
    %752 = vector.load %arg60[%c0_283, %c0_284, %c0_285, %c0_286] : memref<2x2x8x32xf32, #tpu.memory_space<vmem>>, vector<1x2x8x32xf32>
    %753 = vector.shape_cast %752 : vector<1x2x8x32xf32> to vector<2x8x32xf32>
    %754 = vector.shape_cast %751 : vector<2x8x32xf32> to vector<1x2x8x32xf32>
    tpu.vector_store %arg60[%c0_283, %c0_284, %c0_285, %c0_286], %754 {strides = array<i32>} : memref<2x2x8x32xf32, #tpu.memory_space<vmem>>, vector<1x2x8x32xf32>,
    %755 = arith.addf %730, %508 : vector<16x32xf32>
    %cst_287 = arith.constant dense<0.000000e+00> : vector<16x64xf32>
    %756 = tpu.matmul %755, %509, %cst_287 {dimension_numbers = #tpu.dot_dimension_numbers<[1], [0], [0], [1], [0, 0, 1, 1], [], []>} : vector<16x32xf32>, vector<32x64xf32>, vector<16x64xf32> -> vector<16x64xf32>
    %757 = vector.broadcast %510 : vector<1x64xf32> to vector<16x64xf32>
    %758 = arith.addf %756, %757 : vector<16x64xf32>
    %759 = vector.extract_strided_slice %758 {offsets = [0, 0], sizes = [16, 32], strides = [1, 1]} : vector<16x64xf32> to vector<16x32xf32>
    %760 = vector.extract_strided_slice %758 {offsets = [0, 32], sizes = [16, 32], strides = [1, 1]} : vector<16x64xf32> to vector<16x32xf32>
    %cst_288 = arith.constant dense<0.000000e+00> : vector<16x32xf32>
    %761 = tpu.matmul %730, %511, %cst_288 {dimension_numbers = #tpu.dot_dimension_numbers<[1], [0], [0], [1], [0, 0, 1, 1], [], []>} : vector<16x32xf32>, vector<32x32xf32>, vector<16x32xf32> -> vector<16x32xf32>
    %762 = vector.broadcast %512 : vector<1x32xf32> to vector<16x32xf32>
    %763 = arith.addf %761, %762 : vector<16x32xf32>
    %764 = vector.shape_cast %759 : vector<16x32xf32> to vector<2x8x32xf32>
    %765 = vector.extract_strided_slice %764 {offsets = [0, 0, 0], sizes = [2, 8, 8], strides = [1, 1, 1]} : vector<2x8x32xf32> to vector<2x8x8xf32>
    %766 = vector.extract_strided_slice %764 {offsets = [0, 0, 8], sizes = [2, 8, 8], strides = [1, 1, 1]} : vector<2x8x32xf32> to vector<2x8x8xf32>
    %767 = vector.extract_strided_slice %764 {offsets = [0, 0, 16], sizes = [2, 8, 8], strides = [1, 1, 1]} : vector<2x8x32xf32> to vector<2x8x8xf32>
    %768 = vector.extract_strided_slice %764 {offsets = [0, 0, 24], sizes = [2, 8, 8], strides = [1, 1, 1]} : vector<2x8x32xf32> to vector<2x8x8xf32>
    %769 = tpu.concatenate %765, %766, %767, %768 in 0 : vector<2x8x8xf32>, vector<2x8x8xf32>, vector<2x8x8xf32>, vector<2x8x8xf32> -> vector<8x8x8xf32>
    %770 = vector.shape_cast %760 : vector<16x32xf32> to vector<2x8x32xf32>
    %771 = vector.extract_strided_slice %770 {offsets = [0, 0, 0], sizes = [2, 8, 8], strides = [1, 1, 1]} : vector<2x8x32xf32> to vector<2x8x8xf32>
    %772 = vector.extract_strided_slice %770 {offsets = [0, 0, 8], sizes = [2, 8, 8], strides = [1, 1, 1]} : vector<2x8x32xf32> to vector<2x8x8xf32>
    %773 = vector.extract_strided_slice %770 {offsets = [0, 0, 16], sizes = [2, 8, 8], strides = [1, 1, 1]} : vector<2x8x32xf32> to vector<2x8x8xf32>
    %774 = vector.extract_strided_slice %770 {offsets = [0, 0, 24], sizes = [2, 8, 8], strides = [1, 1, 1]} : vector<2x8x32xf32> to vector<2x8x8xf32>
    %775 = tpu.concatenate %771, %772, %773, %774 in 0 : vector<2x8x8xf32>, vector<2x8x8xf32>, vector<2x8x8xf32>, vector<2x8x8xf32> -> vector<8x8x8xf32>
    %776 = vector.shape_cast %763 : vector<16x32xf32> to vector<2x8x32xf32>
    %777 = vector.extract_strided_slice %776 {offsets = [0, 0, 0], sizes = [2, 8, 8], strides = [1, 1, 1]} : vector<2x8x32xf32> to vector<2x8x8xf32>
    %778 = vector.extract_strided_slice %776 {offsets = [0, 0, 8], sizes = [2, 8, 8], strides = [1, 1, 1]} : vector<2x8x32xf32> to vector<2x8x8xf32>
    %779 = vector.extract_strided_slice %776 {offsets = [0, 0, 16], sizes = [2, 8, 8], strides = [1, 1, 1]} : vector<2x8x32xf32> to vector<2x8x8xf32>
    %780 = vector.extract_strided_slice %776 {offsets = [0, 0, 24], sizes = [2, 8, 8], strides = [1, 1, 1]} : vector<2x8x32xf32> to vector<2x8x8xf32>
    %781 = tpu.concatenate %777, %778, %779, %780 in 0 : vector<2x8x8xf32>, vector<2x8x8xf32>, vector<2x8x8xf32>, vector<2x8x8xf32> -> vector<8x8x8xf32>
    "tpu.trace_start"() <{level = 10 : i32, message = "bqd,bkd->bqk"}> : () -> ()
    %cst_289 = arith.constant dense<0.000000e+00> : vector<8x8x8xf32>
    %782 = tpu.matmul %769, %775, %cst_289 {dimension_numbers = #tpu.dot_dimension_numbers<[2], [2], [1], [1], [0, 0, 0, 1, 1, 1], [0], [0]>} : vector<8x8x8xf32>, vector<8x8x8xf32>, vector<8x8x8xf32> -> vector<8x8x8xf32>
    "tpu.trace_stop"() : () -> ()
    %cst_290 = arith.constant 0.353553385 : f32
    %783 = vector.broadcast %cst_290 : f32 to vector<8x8x8xf32>
    %784 = arith.mulf %782, %783 : vector<8x8x8xf32>
    %cst_291 = arith.constant dense<0xFF800000> : vector<8x8xf32>
    %785 = vector.multi_reduction <maximumf>, %784, %cst_291 [2] : vector<8x8x8xf32> to vector<8x8xf32>
    %786 = vector.shape_cast %785 : vector<8x8xf32> to vector<8x8x1xf32>
    %787 = vector.broadcast %786 : vector<8x8x1xf32> to vector<8x8x8xf32>
    %788 = arith.subf %784, %787 : vector<8x8x8xf32>
    %789 = math.exp %788 : vector<8x8x8xf32>
    %cst_292 = arith.constant dense<0.000000e+00> : vector<8x8xf32>
    %790 = vector.multi_reduction <add>, %789, %cst_292 [2] : vector<8x8x8xf32> to vector<8x8xf32>
    %791 = vector.shape_cast %790 : vector<8x8xf32> to vector<8x8x1xf32>
    %792 = tpu.reciprocal %791 {approx = true} : vector<8x8x1xf32> -> vector<8x8x1xf32>
    %793 = vector.broadcast %792 : vector<8x8x1xf32> to vector<8x8x8xf32>
    %794 = arith.mulf %789, %793 : vector<8x8x8xf32>
    "tpu.trace_start"() <{level = 10 : i32, message = "bqk,bkd->bqd"}> : () -> ()
    %cst_293 = arith.constant dense<0.000000e+00> : vector<8x8x8xf32>
    %795 = tpu.matmul %794, %781, %cst_293 {dimension_numbers = #tpu.dot_dimension_numbers<[2], [1], [1], [2], [0, 0, 0, 1, 1, 2], [0], [0]>} : vector<8x8x8xf32>, vector<8x8x8xf32>, vector<8x8x8xf32> -> vector<8x8x8xf32>
    "tpu.trace_stop"() : () -> ()
    %796 = vector.extract_strided_slice %795 {offsets = [0, 0, 0], sizes = [2, 8, 8], strides = [1, 1, 1]} : vector<8x8x8xf32> to vector<2x8x8xf32>
    %797 = vector.shape_cast %796 : vector<2x8x8xf32> to vector<16x8xf32>
    %798 = vector.extract_strided_slice %513 {offsets = [0, 0], sizes = [8, 32], strides = [1, 1]} : vector<32x32xf32> to vector<8x32xf32>
    %cst_294 = arith.constant dense<0.000000e+00> : vector<16x32xf32>
    %799 = tpu.matmul %797, %798, %cst_294 {dimension_numbers = #tpu.dot_dimension_numbers<[1], [0], [0], [1], [0, 0, 1, 1], [], []>} : vector<16x8xf32>, vector<8x32xf32>, vector<16x32xf32> -> vector<16x32xf32>
    %800 = vector.extract_strided_slice %795 {offsets = [2, 0, 0], sizes = [2, 8, 8], strides = [1, 1, 1]} : vector<8x8x8xf32> to vector<2x8x8xf32>
    %801 = vector.shape_cast %800 : vector<2x8x8xf32> to vector<16x8xf32>
    %802 = vector.extract_strided_slice %513 {offsets = [8, 0], sizes = [8, 32], strides = [1, 1]} : vector<32x32xf32> to vector<8x32xf32>
    %cst_295 = arith.constant dense<0.000000e+00> : vector<16x32xf32>
    %803 = tpu.matmul %801, %802, %cst_295 {dimension_numbers = #tpu.dot_dimension_numbers<[1], [0], [0], [1], [0, 0, 1, 1], [], []>} : vector<16x8xf32>, vector<8x32xf32>, vector<16x32xf32> -> vector<16x32xf32>
    %804 = arith.addf %799, %803 : vector<16x32xf32>
    %805 = vector.extract_strided_slice %795 {offsets = [4, 0, 0], sizes = [2, 8, 8], strides = [1, 1, 1]} : vector<8x8x8xf32> to vector<2x8x8xf32>
    %806 = vector.shape_cast %805 : vector<2x8x8xf32> to vector<16x8xf32>
    %807 = vector.extract_strided_slice %513 {offsets = [16, 0], sizes = [8, 32], strides = [1, 1]} : vector<32x32xf32> to vector<8x32xf32>
    %cst_296 = arith.constant dense<0.000000e+00> : vector<16x32xf32>
    %808 = tpu.matmul %806, %807, %cst_296 {dimension_numbers = #tpu.dot_dimension_numbers<[1], [0], [0], [1], [0, 0, 1, 1], [], []>} : vector<16x8xf32>, vector<8x32xf32>, vector<16x32xf32> -> vector<16x32xf32>
    %809 = arith.addf %804, %808 : vector<16x32xf32>
    %810 = vector.extract_strided_slice %795 {offsets = [6, 0, 0], sizes = [2, 8, 8], strides = [1, 1, 1]} : vector<8x8x8xf32> to vector<2x8x8xf32>
    %811 = vector.shape_cast %810 : vector<2x8x8xf32> to vector<16x8xf32>
    %812 = vector.extract_strided_slice %513 {offsets = [24, 0], sizes = [8, 32], strides = [1, 1]} : vector<32x32xf32> to vector<8x32xf32>
    %cst_297 = arith.constant dense<0.000000e+00> : vector<16x32xf32>
    %813 = tpu.matmul %811, %812, %cst_297 {dimension_numbers = #tpu.dot_dimension_numbers<[1], [0], [0], [1], [0, 0, 1, 1], [], []>} : vector<16x8xf32>, vector<8x32xf32>, vector<16x32xf32> -> vector<16x32xf32>
    %814 = arith.addf %809, %813 : vector<16x32xf32>
    %815 = vector.broadcast %514 : vector<1x32xf32> to vector<16x32xf32>
    %816 = arith.addf %814, %815 : vector<16x32xf32>
    %817 = arith.addf %730, %816 : vector<16x32xf32>
    %cst_298 = arith.constant dense<0.000000e+00> : vector<16xf32>
    %818 = vector.multi_reduction <add>, %817, %cst_298 [1] : vector<16x32xf32> to vector<16xf32>
    %819 = vector.shape_cast %818 : vector<16xf32> to vector<16x1xf32>
    %cst_299 = arith.constant 3.200000e+01 : f32
    %820 = vector.broadcast %cst_299 : f32 to vector<16x1xf32>
    %821 = arith.divf %819, %820 : vector<16x1xf32>
    %822 = vector.broadcast %821 : vector<16x1xf32> to vector<16x32xf32>
    %823 = arith.subf %817, %822 : vector<16x32xf32>
    %824 = arith.mulf %823, %823 : vector<16x32xf32>
    %cst_300 = arith.constant dense<0.000000e+00> : vector<16xf32>
    %825 = vector.multi_reduction <add>, %824, %cst_300 [1] : vector<16x32xf32> to vector<16xf32>
    %826 = vector.shape_cast %825 : vector<16xf32> to vector<16x1xf32>
    %cst_301 = arith.constant 3.200000e+01 : f32
    %827 = vector.broadcast %cst_301 : f32 to vector<16x1xf32>
    %828 = arith.divf %826, %827 : vector<16x1xf32>
    %cst_302 = arith.constant 9.99999974E-6 : f32
    %829 = vector.broadcast %cst_302 : f32 to vector<16x1xf32>
    %830 = arith.addf %828, %829 : vector<16x1xf32>
    %831 = math.rsqrt %830 : vector<16x1xf32>
    %832 = vector.broadcast %831 : vector<16x1xf32> to vector<16x32xf32>
    %833 = arith.mulf %823, %832 : vector<16x32xf32>
    %834 = vector.broadcast %527 : vector<1x32xf32> to vector<16x32xf32>
    %835 = arith.mulf %833, %834 : vector<16x32xf32>
    %836 = vector.broadcast %528 : vector<1x32xf32> to vector<16x32xf32>
    %837 = arith.addf %835, %836 : vector<16x32xf32>
    %838 = arith.addf %837, %508 : vector<16x32xf32>
    %cst_303 = arith.constant dense<0.000000e+00> : vector<16x32xf32>
    %839 = tpu.matmul %838, %515, %cst_303 {dimension_numbers = #tpu.dot_dimension_numbers<[1], [0], [0], [1], [0, 0, 1, 1], [], []>} : vector<16x32xf32>, vector<32x32xf32>, vector<16x32xf32> -> vector<16x32xf32>
    %840 = vector.broadcast %516 : vector<1x32xf32> to vector<16x32xf32>
    %841 = arith.addf %839, %840 : vector<16x32xf32>
    %842 = vector.shape_cast %841 : vector<16x32xf32> to vector<2x8x32xf32>
    %843 = vector.extract_strided_slice %842 {offsets = [0, 0, 0], sizes = [2, 8, 8], strides = [1, 1, 1]} : vector<2x8x32xf32> to vector<2x8x8xf32>
    %844 = vector.extract_strided_slice %842 {offsets = [0, 0, 8], sizes = [2, 8, 8], strides = [1, 1, 1]} : vector<2x8x32xf32> to vector<2x8x8xf32>
    %845 = vector.extract_strided_slice %842 {offsets = [0, 0, 16], sizes = [2, 8, 8], strides = [1, 1, 1]} : vector<2x8x32xf32> to vector<2x8x8xf32>
    %846 = vector.extract_strided_slice %842 {offsets = [0, 0, 24], sizes = [2, 8, 8], strides = [1, 1, 1]} : vector<2x8x32xf32> to vector<2x8x8xf32>
    %847 = tpu.concatenate %843, %844, %845, %846 in 0 : vector<2x8x8xf32>, vector<2x8x8xf32>, vector<2x8x8xf32>, vector<2x8x8xf32> -> vector<8x8x8xf32>
    "tpu.trace_start"() <{level = 10 : i32, message = "bqd,bkd->bqk"}> : () -> ()
    %cst_304 = arith.constant dense<0.000000e+00> : vector<8x8x16xf32>
    %848 = tpu.matmul %847, %546, %cst_304 {dimension_numbers = #tpu.dot_dimension_numbers<[2], [2], [1], [1], [0, 0, 0, 1, 1, 1], [0], [0]>} : vector<8x8x8xf32>, vector<8x16x8xf32>, vector<8x8x16xf32> -> vector<8x8x16xf32>
    "tpu.trace_stop"() : () -> ()
    %cst_305 = arith.constant 0.353553385 : f32
    %849 = vector.broadcast %cst_305 : f32 to vector<8x8x16xf32>
    %850 = arith.mulf %848, %849 : vector<8x8x16xf32>
    %cst_306 = arith.constant dense<0xFF800000> : vector<8x8xf32>
    %851 = vector.multi_reduction <maximumf>, %850, %cst_306 [2] : vector<8x8x16xf32> to vector<8x8xf32>
    %852 = vector.shape_cast %851 : vector<8x8xf32> to vector<8x8x1xf32>
    %853 = vector.broadcast %852 : vector<8x8x1xf32> to vector<8x8x16xf32>
    %854 = arith.subf %850, %853 : vector<8x8x16xf32>
    %855 = math.exp %854 : vector<8x8x16xf32>
    %cst_307 = arith.constant dense<0.000000e+00> : vector<8x8xf32>
    %856 = vector.multi_reduction <add>, %855, %cst_307 [2] : vector<8x8x16xf32> to vector<8x8xf32>
    %857 = vector.shape_cast %856 : vector<8x8xf32> to vector<8x8x1xf32>
    %858 = tpu.reciprocal %857 {approx = true} : vector<8x8x1xf32> -> vector<8x8x1xf32>
    %859 = vector.broadcast %858 : vector<8x8x1xf32> to vector<8x8x16xf32>
    %860 = arith.mulf %855, %859 : vector<8x8x16xf32>
    "tpu.trace_start"() <{level = 10 : i32, message = "bqk,bkd->bqd"}> : () -> ()
    %cst_308 = arith.constant dense<0.000000e+00> : vector<8x8x8xf32>
    %861 = tpu.matmul %860, %552, %cst_308 {dimension_numbers = #tpu.dot_dimension_numbers<[2], [1], [1], [2], [0, 0, 0, 1, 1, 2], [0], [0]>} : vector<8x8x16xf32>, vector<8x16x8xf32>, vector<8x8x8xf32> -> vector<8x8x8xf32>
    "tpu.trace_stop"() : () -> ()
    %862 = vector.extract_strided_slice %861 {offsets = [0, 0, 0], sizes = [2, 8, 8], strides = [1, 1, 1]} : vector<8x8x8xf32> to vector<2x8x8xf32>
    %863 = vector.shape_cast %862 : vector<2x8x8xf32> to vector<16x8xf32>
    %864 = vector.extract_strided_slice %521 {offsets = [0, 0], sizes = [8, 32], strides = [1, 1]} : vector<32x32xf32> to vector<8x32xf32>
    %cst_309 = arith.constant dense<0.000000e+00> : vector<16x32xf32>
    %865 = tpu.matmul %863, %864, %cst_309 {dimension_numbers = #tpu.dot_dimension_numbers<[1], [0], [0], [1], [0, 0, 1, 1], [], []>} : vector<16x8xf32>, vector<8x32xf32>, vector<16x32xf32> -> vector<16x32xf32>
    %866 = vector.extract_strided_slice %861 {offsets = [2, 0, 0], sizes = [2, 8, 8], strides = [1, 1, 1]} : vector<8x8x8xf32> to vector<2x8x8xf32>
    %867 = vector.shape_cast %866 : vector<2x8x8xf32> to vector<16x8xf32>
    %868 = vector.extract_strided_slice %521 {offsets = [8, 0], sizes = [8, 32], strides = [1, 1]} : vector<32x32xf32> to vector<8x32xf32>
    %cst_310 = arith.constant dense<0.000000e+00> : vector<16x32xf32>
    %869 = tpu.matmul %867, %868, %cst_310 {dimension_numbers = #tpu.dot_dimension_numbers<[1], [0], [0], [1], [0, 0, 1, 1], [], []>} : vector<16x8xf32>, vector<8x32xf32>, vector<16x32xf32> -> vector<16x32xf32>
    %870 = arith.addf %865, %869 : vector<16x32xf32>
    %871 = vector.extract_strided_slice %861 {offsets = [4, 0, 0], sizes = [2, 8, 8], strides = [1, 1, 1]} : vector<8x8x8xf32> to vector<2x8x8xf32>
    %872 = vector.shape_cast %871 : vector<2x8x8xf32> to vector<16x8xf32>
    %873 = vector.extract_strided_slice %521 {offsets = [16, 0], sizes = [8, 32], strides = [1, 1]} : vector<32x32xf32> to vector<8x32xf32>
    %cst_311 = arith.constant dense<0.000000e+00> : vector<16x32xf32>
    %874 = tpu.matmul %872, %873, %cst_311 {dimension_numbers = #tpu.dot_dimension_numbers<[1], [0], [0], [1], [0, 0, 1, 1], [], []>} : vector<16x8xf32>, vector<8x32xf32>, vector<16x32xf32> -> vector<16x32xf32>
    %875 = arith.addf %870, %874 : vector<16x32xf32>
    %876 = vector.extract_strided_slice %861 {offsets = [6, 0, 0], sizes = [2, 8, 8], strides = [1, 1, 1]} : vector<8x8x8xf32> to vector<2x8x8xf32>
    %877 = vector.shape_cast %876 : vector<2x8x8xf32> to vector<16x8xf32>
    %878 = vector.extract_strided_slice %521 {offsets = [24, 0], sizes = [8, 32], strides = [1, 1]} : vector<32x32xf32> to vector<8x32xf32>
    %cst_312 = arith.constant dense<0.000000e+00> : vector<16x32xf32>
    %879 = tpu.matmul %877, %878, %cst_312 {dimension_numbers = #tpu.dot_dimension_numbers<[1], [0], [0], [1], [0, 0, 1, 1], [], []>} : vector<16x8xf32>, vector<8x32xf32>, vector<16x32xf32> -> vector<16x32xf32>
    %880 = arith.addf %875, %879 : vector<16x32xf32>
    %881 = vector.broadcast %522 : vector<1x32xf32> to vector<16x32xf32>
    %882 = arith.addf %880, %881 : vector<16x32xf32>
    %883 = arith.addf %837, %882 : vector<16x32xf32>
    %cst_313 = arith.constant dense<0.000000e+00> : vector<16xf32>
    %884 = vector.multi_reduction <add>, %883, %cst_313 [1] : vector<16x32xf32> to vector<16xf32>
    %885 = vector.shape_cast %884 : vector<16xf32> to vector<16x1xf32>
    %cst_314 = arith.constant 3.200000e+01 : f32
    %886 = vector.broadcast %cst_314 : f32 to vector<16x1xf32>
    %887 = arith.divf %885, %886 : vector<16x1xf32>
    %888 = vector.broadcast %887 : vector<16x1xf32> to vector<16x32xf32>
    %889 = arith.subf %883, %888 : vector<16x32xf32>
    %890 = arith.mulf %889, %889 : vector<16x32xf32>
    %cst_315 = arith.constant dense<0.000000e+00> : vector<16xf32>
    %891 = vector.multi_reduction <add>, %890, %cst_315 [1] : vector<16x32xf32> to vector<16xf32>
    %892 = vector.shape_cast %891 : vector<16xf32> to vector<16x1xf32>
    %cst_316 = arith.constant 3.200000e+01 : f32
    %893 = vector.broadcast %cst_316 : f32 to vector<16x1xf32>
    %894 = arith.divf %892, %893 : vector<16x1xf32>
    %cst_317 = arith.constant 9.99999974E-6 : f32
    %895 = vector.broadcast %cst_317 : f32 to vector<16x1xf32>
    %896 = arith.addf %894, %895 : vector<16x1xf32>
    %897 = math.rsqrt %896 : vector<16x1xf32>
    %898 = vector.broadcast %897 : vector<16x1xf32> to vector<16x32xf32>
    %899 = arith.mulf %889, %898 : vector<16x32xf32>
    %900 = vector.broadcast %529 : vector<1x32xf32> to vector<16x32xf32>
    %901 = arith.mulf %899, %900 : vector<16x32xf32>
    %902 = vector.broadcast %530 : vector<1x32xf32> to vector<16x32xf32>
    %903 = arith.addf %901, %902 : vector<16x32xf32>
    %cst_318 = arith.constant dense<0.000000e+00> : vector<16x64xf32>
    %904 = tpu.matmul %903, %523, %cst_318 {dimension_numbers = #tpu.dot_dimension_numbers<[1], [0], [0], [1], [0, 0, 1, 1], [], []>} : vector<16x32xf32>, vector<32x64xf32>, vector<16x64xf32> -> vector<16x64xf32>
    %905 = vector.broadcast %524 : vector<1x64xf32> to vector<16x64xf32>
    %906 = arith.addf %904, %905 : vector<16x64xf32>
    %cst_319 = arith.constant 0.000000e+00 : f32
    %907 = vector.broadcast %cst_319 : f32 to vector<16x64xf32>
    %908 = arith.maximumf %906, %907 : vector<16x64xf32>
    %cst_320 = arith.constant dense<0.000000e+00> : vector<16x32xf32>
    %909 = tpu.matmul %908, %525, %cst_320 {dimension_numbers = #tpu.dot_dimension_numbers<[1], [0], [0], [1], [0, 0, 1, 1], [], []>} : vector<16x64xf32>, vector<64x32xf32>, vector<16x32xf32> -> vector<16x32xf32>
    %910 = vector.broadcast %526 : vector<1x32xf32> to vector<16x32xf32>
    %911 = arith.addf %909, %910 : vector<16x32xf32>
    %912 = arith.addf %903, %911 : vector<16x32xf32>
    %cst_321 = arith.constant dense<0.000000e+00> : vector<16xf32>
    %913 = vector.multi_reduction <add>, %912, %cst_321 [1] : vector<16x32xf32> to vector<16xf32>
    %914 = vector.shape_cast %913 : vector<16xf32> to vector<16x1xf32>
    %cst_322 = arith.constant 3.200000e+01 : f32
    %915 = vector.broadcast %cst_322 : f32 to vector<16x1xf32>
    %916 = arith.divf %914, %915 : vector<16x1xf32>
    %917 = vector.broadcast %916 : vector<16x1xf32> to vector<16x32xf32>
    %918 = arith.subf %912, %917 : vector<16x32xf32>
    %919 = arith.mulf %918, %918 : vector<16x32xf32>
    %cst_323 = arith.constant dense<0.000000e+00> : vector<16xf32>
    %920 = vector.multi_reduction <add>, %919, %cst_323 [1] : vector<16x32xf32> to vector<16xf32>
    %921 = vector.shape_cast %920 : vector<16xf32> to vector<16x1xf32>
    %cst_324 = arith.constant 3.200000e+01 : f32
    %922 = vector.broadcast %cst_324 : f32 to vector<16x1xf32>
    %923 = arith.divf %921, %922 : vector<16x1xf32>
    %cst_325 = arith.constant 9.99999974E-6 : f32
    %924 = vector.broadcast %cst_325 : f32 to vector<16x1xf32>
    %925 = arith.addf %923, %924 : vector<16x1xf32>
    %926 = math.rsqrt %925 : vector<16x1xf32>
    %927 = vector.broadcast %926 : vector<16x1xf32> to vector<16x32xf32>
    %928 = arith.mulf %918, %927 : vector<16x32xf32>
    %929 = vector.broadcast %531 : vector<1x32xf32> to vector<16x32xf32>
    %930 = arith.mulf %928, %929 : vector<16x32xf32>
    %931 = vector.broadcast %532 : vector<1x32xf32> to vector<16x32xf32>
    %932 = arith.addf %930, %931 : vector<16x32xf32>
    %cst_326 = arith.constant dense<0.000000e+00> : vector<16xf32>
    %933 = vector.multi_reduction <add>, %932, %cst_326 [1] : vector<16x32xf32> to vector<16xf32>
    %934 = vector.shape_cast %933 : vector<16xf32> to vector<16x1xf32>
    %cst_327 = arith.constant 3.200000e+01 : f32
    %935 = vector.broadcast %cst_327 : f32 to vector<16x1xf32>
    %936 = arith.divf %934, %935 : vector<16x1xf32>
    %937 = vector.broadcast %936 : vector<16x1xf32> to vector<16x32xf32>
    %938 = arith.subf %932, %937 : vector<16x32xf32>
    %939 = arith.mulf %938, %938 : vector<16x32xf32>
    %cst_328 = arith.constant dense<0.000000e+00> : vector<16xf32>
    %940 = vector.multi_reduction <add>, %939, %cst_328 [1] : vector<16x32xf32> to vector<16xf32>
    %941 = vector.shape_cast %940 : vector<16xf32> to vector<16x1xf32>
    %cst_329 = arith.constant 3.200000e+01 : f32
    %942 = vector.broadcast %cst_329 : f32 to vector<16x1xf32>
    %943 = arith.divf %941, %942 : vector<16x1xf32>
    %cst_330 = arith.constant 9.99999974E-6 : f32
    %944 = vector.broadcast %cst_330 : f32 to vector<16x1xf32>
    %945 = arith.addf %943, %944 : vector<16x1xf32>
    %946 = math.rsqrt %945 : vector<16x1xf32>
    %947 = vector.broadcast %946 : vector<16x1xf32> to vector<16x32xf32>
    %948 = arith.mulf %938, %947 : vector<16x32xf32>
    %949 = vector.broadcast %533 : vector<1x32xf32> to vector<16x32xf32>
    %950 = arith.mulf %948, %949 : vector<16x32xf32>
    %951 = vector.broadcast %534 : vector<1x32xf32> to vector<16x32xf32>
    %952 = arith.addf %950, %951 : vector<16x32xf32>
    %953 = vector.shape_cast %952 : vector<16x32xf32> to vector<2x8x32xf32>
    %c1_331 = arith.constant 1 : index
    %c0_332 = arith.constant 0 : index
    %c0_333 = arith.constant 0 : index
    %c0_334 = arith.constant 0 : index
    %954 = vector.load %arg60[%c1_331, %c0_332, %c0_333, %c0_334] : memref<2x2x8x32xf32, #tpu.memory_space<vmem>>, vector<1x2x8x32xf32>
    %955 = vector.shape_cast %954 : vector<1x2x8x32xf32> to vector<2x8x32xf32>
    %956 = vector.shape_cast %953 : vector<2x8x32xf32> to vector<1x2x8x32xf32>
    tpu.vector_store %arg60[%c1_331, %c0_332, %c0_333, %c0_334], %956 {strides = array<i32>} : memref<2x2x8x32xf32, #tpu.memory_space<vmem>>, vector<1x2x8x32xf32>,
    return
  }
}

</mosaic_0001>

<bundles_post_ra>
// kernel: tpu_custom_call.1
= control target key start
LH: loop header
LB: loop body
LE: loop exit
PB: predicated region body
PF: predicated region fallthrough
CT: control target
= control target key end

     0   :  { %s20374_s6 = smov 1   ;;  %s20375_s10 = smov 2   ;;  %s22896_s0 = inlined_call_operand.smem [shape: u32[61], index: -1, kind: input, shape index: {}] }
   0x1   :  { %s20486_s5 = sld [smem:[%s22896_s0]]   ;;  %s20376_s14 = smov 3  }
   0x2   :  { %s20491_s9 = sld [smem:[%s22896_s0 + %s20374_s6]]   ;;  %s20377_s18 = smov 4  }
   0x3   :  { %s20496_s13 = sld [smem:[%s22896_s0 + %s20375_s10]]   ;;  %s20378_s22 = smov 5  }
   0x4   :  { %s20501_s17 = sld [smem:[%s22896_s0 + %s20376_s14]]   ;;  %s20379_s26 = smov 6  }
   0x5   :  { %s20506_s21 = sld [smem:[%s22896_s0 + %s20377_s18]]   ;;  %s20380_s30 = smov 7  }
   0x6   :  { %s20511_s25 = sld [smem:[%s22896_s0 + %s20378_s22]]   ;;  %s20381_s4 = smov 8  }
   0x7   :  { %22929 = sst [smem:[#allocation78_spill]] %s20486_s5  ;;  %s20382_s10 = smov 9  }
   0x8   :  { %22930 = sst [smem:[#allocation79_spill]] %s20491_s9  ;;  %s20383_s15 = smov 10  }
   0x9   :  { %22931 = sst [smem:[#allocation80_spill]] %s20496_s13  ;;  %s20384_s20 = smov 11  }
   0xa   :  { %s20516_s29 = sld [smem:[%s22896_s0 + %s20379_s26]]   ;;  %s20385_s26 = smov 12  }
   0xb   :  { %22932 = sst [smem:[#allocation81_spill]] %s20506_s21  ;;  %s20386_s1 = smov 13  }
   0xc   :  { %22933 = sst [smem:[#allocation82_spill]] %s20511_s25  ;;  %s20387_s7 = smov 14  }
   0xd   :  { %s20521_s3 = sld [smem:[%s22896_s0 + %s20380_s30]]   ;;  %s20389_s22 = smov 16  }
   0xe   :  { %s20526_s8 = sld [smem:[%s22896_s0 + %s20381_s4]]   ;;  %s20390_s28 = smov 17  }
   0xf   :  { %s20531_s14 = sld [smem:[%s22896_s0 + %s20382_s10]]  }
  0x10   :  { %s20536_s19 = sld [smem:[%s22896_s0 + %s20383_s15]]   ;;  %s20388_s15 = smov 15  }
  0x11   :  { %s20541_s24 = sld [smem:[%s22896_s0 + %s20384_s20]]  }
  0x12   :  { %s20546_s30 = sld [smem:[%s22896_s0 + %s20385_s26]]  }
  0x13   :  { %22934 = sst [smem:[#allocation83_spill]] %s20521_s3 }
  0x14   :  { %22935 = sst [smem:[#allocation84_spill]] %s20526_s8 }
  0x15   :  { %22936 = sst [smem:[#allocation85_spill]] %s20531_s14 }
  0x16   :  { %s20551_s6 = sld [smem:[%s22896_s0 + %s20386_s1]]  }
  0x17   :  { %22937 = sst [smem:[#allocation86_spill]] %s20541_s24 }
  0x18   :  { %22938 = sst [smem:[#allocation87_spill]] %s20546_s30 }
  0x19   :  { %s20556_s12 = sld [smem:[%s22896_s0 + %s20387_s7]]   ;;  %s20391_s7 = smov 18  }
  0x1a   :  { %s20561_s20 = sld [smem:[%s22896_s0 + %s20388_s15]]   ;;  %s20392_s15 = smov 19  }
  0x1b   :  { %s20566_s27 = sld [smem:[%s22896_s0 + %s20389_s22]]   ;;  %s20393_s22 = smov 20  }
  0x1c   :  { %s20571_s4 = sld [smem:[%s22896_s0 + %s20390_s28]]   ;;  %s20394_s28 = smov 21  }
  0x1d   :  { %s20576_s24 = sld [smem:[%s22896_s0 + %s20391_s7]]   ;;  %s20395_s7 = smov 22  }
  0x1e   :  { %s20581_s14 = sld [smem:[%s22896_s0 + %s20392_s15]]   ;;  %s20396_s15 = smov 23  }
  0x1f   :  { %22939 = sst [smem:[#allocation88_spill]] %s20556_s12 }
  0x20   :  { %s20586_s3 = sld [smem:[%s22896_s0 + %s20393_s22]]   ;;  %s20397_s22 = smov 24  }
  0x21   :  { %22940 = sst [smem:[#allocation89_spill]] %s20566_s27 }
  0x22   :  { %s20591_s25 = sld [smem:[%s22896_s0 + %s20394_s28]]   ;;  %s20398_s28 = smov 25  }
  0x23   :  { %22941 = sst [smem:[#allocation90_spill]] %s20576_s24 }
  0x24   :  { %22942 = sst [smem:[#allocation91_spill]] %s20581_s14 }
  0x25   :  { %s20596_s9 = sld [smem:[%s22896_s0 + %s20395_s7]]   ;;  %s20399_s7 = smov 26  }
  0x26   :  { %22943 = sst [smem:[#allocation92_spill]] %s20586_s3 }
  0x27   :  { %s20601_s14 = sld [smem:[%s22896_s0 + %s20396_s15]]   ;;  %s20400_s15 = smov 27  }
  0x28   :  { %22944 = sst [smem:[#allocation93_spill]] %s20591_s25 }
  0x29   :  { %s20606_s3 = sld [smem:[%s22896_s0 + %s20397_s22]]   ;;  %s20401_s22 = smov 28  }
  0x2a   :  { %s20611_s25 = sld [smem:[%s22896_s0 + %s20398_s28]]   ;;  %s20402_s28 = smov 29  }
  0x2b   :  { %s20616_s5 = sld [smem:[%s22896_s0 + %s20399_s7]]   ;;  %s20403_s7 = smov 30  }
  0x2c   :  { %s20626_s24 = sld [smem:[%s22896_s0 + %s20401_s22]]   ;;  %s20405_s22 = smov 32  }
  0x2d   :  { %22945 = sst [smem:[#allocation94_spill]] %s20601_s14 }
  0x2e   :  { %s20621_s14 = sld [smem:[%s22896_s0 + %s20400_s15]]   ;;  %s20404_s15 = smov 31  }
  0x2f   :  { %s20636_s27 = sld [smem:[%s22896_s0 + %s20403_s7]]   ;;  %s20407_s7 = smov 34  }
  0x30   :  { %22946 = sst [smem:[#allocation95_spill]] %s20611_s25 }
  0x31   :  { %s20631_s25 = sld [smem:[%s22896_s0 + %s20402_s28]]   ;;  %s20406_s28 = smov 33  }
  0x32   :  { %s20646_s12 = sld [smem:[%s22896_s0 + %s20405_s22]]   ;;  %s20409_s22 = smov 36  }
  0x33   :  { %s20656_s30 = sld [smem:[%s22896_s0 + %s20407_s7]]   ;;  %s20411_s7 = smov 38  }
  0x34   :  { %22947 = sst [smem:[#allocation96_spill]] %s20621_s14 }
  0x35   :  { %s20641_s14 = sld [smem:[%s22896_s0 + %s20404_s15]]   ;;  %s20408_s15 = smov 35  }
  0x36   :  { %s20666_s8 = sld [smem:[%s22896_s0 + %s20409_s22]]   ;;  %s20413_s22 = smov 40  }
  0x37   :  { %22948 = sst [smem:[#allocation97_spill]] %s20631_s25 }
  0x38   :  { %s20651_s25 = sld [smem:[%s22896_s0 + %s20406_s28]]   ;;  %s20410_s28 = smov 37  }
  0x39   :  { %s20676_s21 = sld [smem:[%s22896_s0 + %s20411_s7]]   ;;  %s20415_s7 = smov 42  }
  0x3a   :  { %s20686_s13 = sld [smem:[%s22896_s0 + %s20413_s22]]   ;;  %s20417_s22 = smov 44  }
  0x3b   :  { %22949 = sst [smem:[#allocation98_spill]] %s20641_s14 }
  0x3c   :  { %s20661_s14 = sld [smem:[%s22896_s0 + %s20408_s15]]   ;;  %s20412_s15 = smov 39  }
  0x3e   :  { %22950 = sst [smem:[#allocation99_spill]] %s20651_s25 }
  0x3f   :  { %s20671_s25 = sld [smem:[%s22896_s0 + %s20410_s28]]   ;;  %s20414_s28 = smov 41  }
  0x40   :  { %22953 = sst [smem:[#allocation102_spill]] %s20676_s21 }
  0x41   :  { %22955 = sst [smem:[#allocation104_spill]] %s20686_s13 }
  0x42   :  { %22951 = sst [smem:[#allocation100_spill]] %s20661_s14 }
  0x43   :  { %s20681_s14 = sld [smem:[%s22896_s0 + %s20412_s15]]   ;;  %s20416_s15 = smov 43  }
  0x44   :  { %s20696_s21 = sld [smem:[%s22896_s0 + %s20415_s7]]   ;;  %s20419_s7 = smov 46  }
  0x45   :  { %22952 = sst [smem:[#allocation101_spill]] %s20671_s25 }
  0x46   :  { %s20691_s25 = sld [smem:[%s22896_s0 + %s20414_s28]]   ;;  %s20418_s28 = smov 45  }
  0x47   :  { %s20706_s13 = sld [smem:[%s22896_s0 + %s20417_s22]]   ;;  %s20421_s22 = smov 48  }
  0x49   :  { %22954 = sst [smem:[#allocation103_spill]] %s20681_s14 }
  0x4a   :  { %22957 = sst [smem:[#allocation106_spill]] %s20696_s21 }
  0x4b   :  { %s20701_s14 = sld [smem:[%s22896_s0 + %s20416_s15]]   ;;  %s20420_s15 = smov 47  }
  0x4c   :  { %22956 = sst [smem:[#allocation105_spill]] %s20691_s25 }
  0x4d   :  { %22959 = sst [smem:[#allocation108_spill]] %s20706_s13 }
  0x4e   :  { %s20711_s25 = sld [smem:[%s22896_s0 + %s20418_s28]]   ;;  %s20422_s28 = smov 49  }
  0x4f   :  { %s20716_s21 = sld [smem:[%s22896_s0 + %s20419_s7]]   ;;  %s20423_s7 = smov 50  }
  0x50   :  { %s20726_s13 = sld [smem:[%s22896_s0 + %s20421_s22]]   ;;  %s20425_s22 = smov 52  }
  0x51   :  { %22958 = sst [smem:[#allocation107_spill]] %s20701_s14 }
  0x52   :  { %s20721_s14 = sld [smem:[%s22896_s0 + %s20420_s15]]   ;;  %s20424_s15 = smov 51  }
  0x54   :  { %22960 = sst [smem:[#allocation109_spill]] %s20711_s25 }
  0x55   :  { %22961 = sst [smem:[#allocation110_spill]] %s20716_s21 }
  0x56   :  { %22963 = sst [smem:[#allocation112_spill]] %s20726_s13 }
  0x57   :  { %s20731_s25 = sld [smem:[%s22896_s0 + %s20422_s28]]   ;;  %s20426_s28 = smov 53  }
  0x58   :  { %22962 = sst [smem:[#allocation111_spill]] %s20721_s14 }
  0x59   :  { %s20736_s21 = sld [smem:[%s22896_s0 + %s20423_s7]]   ;;  %s20427_s7 = smov 54  }
  0x5a   :  { %s20741_s14 = sld [smem:[%s22896_s0 + %s20424_s15]]   ;;  %s20428_s15 = smov 55  }
  0x5b   :  { %s20746_s13 = sld [smem:[%s22896_s0 + %s20425_s22]]   ;;  %s20429_s22 = smov 56  }
  0x5d   :  { %22964 = sst [smem:[#allocation113_spill]] %s20731_s25 }
  0x5e   :  { %s20751_s25 = sld [smem:[%s22896_s0 + %s20426_s28]]   ;;  %s20430_s28 = smov 57  }
  0x5f   :  { %22965 = sst [smem:[#allocation114_spill]] %s20736_s21 }
  0x60   :  { %22966 = sst [smem:[#allocation115_spill]] %s20741_s14 }
  0x61   :  { %22967 = sst [smem:[#allocation116_spill]] %s20746_s13 }
  0x62   :  { %s20756_s21 = sld [smem:[%s22896_s0 + %s20427_s7]]   ;;  %s20431_s7 = smov 58  }
  0x63   :  { %s20761_s14 = sld [smem:[%s22896_s0 + %s20428_s15]]   ;;  %s20432_s15 = smov 59  }
  0x64   :  { %22968 = sst [smem:[#allocation117_spill]] %s20751_s25 }
  0x65   :  { %s20766_s13 = sld [smem:[%s22896_s0 + %s20429_s22]]   ;;  %s20433_s22 = smov 60  }
  0x66   :  { %s20771_s25 = sld [smem:[%s22896_s0 + %s20430_s28]]  }
  0x68   :  { %22969 = sst [smem:[#allocation118_spill]] %s20756_s21 }
  0x69   :  { %22970 = sst [smem:[#allocation119_spill]] %s20761_s14 }
  0x6a   :  { %s20776_s21 = sld [smem:[%s22896_s0 + %s20431_s7]]  }
  0x6b   :  { %22971 = sst [smem:[#allocation120_spill]] %s20766_s13 }
  0x6c   :  { %s20781_s14 = sld [smem:[%s22896_s0 + %s20432_s15]]  }
  0x6d   :  { %s20786_s13 = sld [smem:[%s22896_s0 + %s20433_s22]]  }
  0x6e   :  { %127 = vsyncpa [#allocation3], 0 }
  0x6f   :  { %128 = vsyncpa [#allocation6], 0 }
  0x70   :  { %129 = vsyncpa [#allocation9], 0 }
  0x71   :  { %130 = vsyncpa [#allocation12], 0 }
  0x72   :  { %131 = vsyncpa [#allocation15], 0 }
  0x73   :  { %132 = vsyncpa [#allocation18], 0 }
  0x74   :  { %133 = vsyncpa [#allocation21], 0 }
  0x75   :  { %134 = vsyncpa [#allocation24], 0 }
  0x76   :  { %135 = vsyncpa [#allocation27], 0 }
  0x77   :  { %136 = vsyncpa [#allocation30], 0 }
  0x78   :  { %137 = vsyncpa [#allocation33], 0 }
  0x79   :  { %138 = vsyncpa [#allocation36], 0 }
  0x7a   :  { %139 = vsyncpa [#allocation39], 0 }
  0x7b   :  { %140 = vsyncpa [#allocation42], 0 }
  0x7c   :  { %141 = vsyncpa [#allocation45], 0 }
  0x7d   :  { %142 = vsyncpa [#allocation48], 0 }
  0x7e   :  { %143 = vsyncpa [#allocation51], 0 }
  0x7f   :  { %144 = vsyncpa [#allocation4], 0 }
  0x80   :  { %145 = vsyncpa [#allocation54], 0 }
  0x81   :  { %146 = vsyncpa [#allocation57], 0  ;;  %s20434_s0 = smov [#allocation5]   ;;  %s20435_s1 = smov [#allocation8]  }
  0x82   :  { %s168_s28 = sshll.u32 %s20434_s0, 4  ;;  %s195_s2 = sshll.u32 %s20435_s1, 4  ;;  %s169_s28 = int_to_ptr.vmem [resolvable:$true] %s168_s28  ;;  %s196_s2 = int_to_ptr.vmem [resolvable:$true] %s195_s2 }
  0x83   :  { %s19622_s7 = scalar_lea.vmem %s169_s28, 256  ;;  %p19627_p1 = scmp.lt.s32.totalorder %s169_s28, %s169_s28 }
  0x84   :  { %p19623_p0 = scmp.ne.s32.totalorder %s169_s28, %s19622_s7  ;;  %p19628_p2 = scmp.lt.s32.totalorder %s19622_s7, %s19622_s7 }
  0x86   :  { %p19629_p3 = por %p19628_p2, %p19627_p1 }
  0x88   :  { %p19630_p4 = pnand %p19629_p3, %p19623_p0 }
  0x8a   :  { %19633 = shalt.err (!%p19630_p4)
}
  0x8b   :  { %s20436_s10 = smov 128   ;;  %s20437_s11 = smov 8  }
  0x8c   :  { %174 = dma.hbm_to_vmem [thread:$0]  %s20501_s17, 256, %s169_s28, [#allocation6], %s20436_s10, %s20436_s10, %s20437_s11  }
  0x8d   :  { %s19642_s15 = scalar_lea.vmem %s196_s2, 16  ;;  %s19646_s16 = scalar_lea.vmem %s196_s2, 32 }
  0x8e   :  { %p19643_p5 = scmp.ne.s32.totalorder %s196_s2, %s19642_s15  ;;  %p19647_p6 = scmp.lt.s32.totalorder %s196_s2, %s196_s2 }
  0x8f   :  { %p19648_p7 = scmp.lt.s32.totalorder %s19646_s16, %s19642_s15 }
  0x91   :  { %p19649_p8 = por %p19648_p7, %p19647_p6 }
  0x93   :  { %p19650_p9 = pnand %p19649_p8, %p19643_p5 }
  0x95   :  { %19653 = shalt.err (!%p19650_p9)
}
  0x96   :  { %198 = dma.hbm_to_vmem [thread:$0]  %s20516_s29, 16, %s196_s2, [#allocation9]  }
  0x97   :  { %s20438_s18 = smov [#allocation11]   ;;  %s20439_s23 = smov [#allocation14]  }
  0x98   :  { %s219_s22 = sshll.u32 %s20438_s18, 4  ;;  %s240_s26 = sshll.u32 %s20439_s23, 4  ;;  %s220_s22 = int_to_ptr.vmem [resolvable:$true] %s219_s22  ;;  %s241_s26 = int_to_ptr.vmem [resolvable:$true] %s240_s26 }
  0x99   :  { %s19662_s0 = scalar_lea.vmem %s220_s22, 16  ;;  %s19666_s1 = scalar_lea.vmem %s220_s22, 32 }
  0x9a   :  { %p19663_p10 = scmp.ne.s32.totalorder %s220_s22, %s19662_s0  ;;  %p19667_p11 = scmp.lt.s32.totalorder %s220_s22, %s220_s22 }
  0x9b   :  { %p19668_p12 = scmp.lt.s32.totalorder %s19666_s1, %s19662_s0 }
  0x9d   :  { %p19669_p13 = por %p19668_p12, %p19667_p11 }
  0x9f   :  { %p19670_p0 = pnand %p19669_p13, %p19663_p10 }
  0xa1   :  { %19673 = shalt.err (!%p19670_p0)
}
  0xa2   :  { %222 = dma.hbm_to_vmem [thread:$0]  %s20536_s19, 16, %s220_s22, [#allocation12]  }
  0xa3   :  { %s19682_s17 = scalar_lea.vmem %s241_s26, 512  ;;  %p19687_p2 = scmp.lt.s32.totalorder %s241_s26, %s241_s26 }
  0xa4   :  { %p19683_p1 = scmp.ne.s32.totalorder %s241_s26, %s19682_s17  ;;  %p19688_p3 = scmp.lt.s32.totalorder %s19682_s17, %s19682_s17 }
  0xa6   :  { %p19689_p4 = por %p19688_p3, %p19687_p2 }
  0xa8   :  { %p19690_p5 = pnand %p19689_p4, %p19683_p1 }
  0xaa   :  { %19693 = shalt.err (!%p19690_p5)
}
  0xab   :  { %246 = dma.hbm_to_vmem [thread:$0]  %s20551_s6, 512, %s241_s26, [#allocation15], %s20436_s10, %s20436_s10, %s20437_s11  }
  0xac   :  { %s20440_s29 = smov [#allocation17]   ;;  %s20441_s2 = smov [#allocation20]  }
  0xad   :  { %s262_s28 = sshll.u32 %s20440_s29, 4  ;;  %s284_s7 = sshll.u32 %s20441_s2, 4  ;;  %s263_s28 = int_to_ptr.vmem [resolvable:$true] %s262_s28  ;;  %s285_s7 = int_to_ptr.vmem [resolvable:$true] %s284_s7 }
  0xae   :  { %s19702_s15 = scalar_lea.vmem %s263_s28, 512  ;;  %p19707_p7 = scmp.lt.s32.totalorder %s263_s28, %s263_s28 }
  0xaf   :  { %p19703_p6 = scmp.ne.s32.totalorder %s263_s28, %s19702_s15  ;;  %p19708_p8 = scmp.lt.s32.totalorder %s19702_s15, %s19702_s15 }
  0xb1   :  { %p19709_p9 = por %p19708_p8, %p19707_p7 }
  0xb3   :  { %p19710_p10 = pnand %p19709_p9, %p19703_p6 }
  0xb5   :  { %19713 = shalt.err (!%p19710_p10)
}
  0xb6   :  { %268 = dma.hbm_to_vmem [thread:$0]  %s20561_s20, 512, %s263_s28, [#allocation18], %s20436_s10, %s20436_s10, %s20437_s11  }
  0xb7   :  { %s19722_s19 = scalar_lea.vmem %s285_s7, 512  ;;  %p19727_p12 = scmp.lt.s32.totalorder %s285_s7, %s285_s7 }
  0xb8   :  { %p19723_p11 = scmp.ne.s32.totalorder %s285_s7, %s19722_s19  ;;  %p19728_p13 = scmp.lt.s32.totalorder %s19722_s19, %s19722_s19 }
  0xba   :  { %p19729_p0 = por %p19728_p13, %p19727_p12 }
  0xbc   :  { %p19730_p1 = pnand %p19729_p0, %p19723_p11 }
  0xbe   :  { %19733 = shalt.err (!%p19730_p1)
}
  0xbf   :  { %290 = dma.hbm_to_vmem [thread:$0]  %s20571_s4, 512, %s285_s7, [#allocation21], %s20436_s10, %s20436_s10, %s20437_s11  }
  0xc0   :  { %s20442_s6 = smov [#allocation23]   ;;  %s20443_s18 = smov [#allocation26]  }
  0xc1   :  { %s313_s16 = sshll.u32 %s20442_s6, 4  ;;  %s333_s22 = sshll.u32 %s20443_s18, 4  ;;  %s314_s16 = int_to_ptr.vmem [resolvable:$true] %s313_s16  ;;  %s334_s22 = int_to_ptr.vmem [resolvable:$true] %s333_s22 }
  0xc2   :  { %s19742_s23 = scalar_lea.vmem %s314_s16, 16  ;;  %s19746_s20 = scalar_lea.vmem %s314_s16, 32 }
  0xc3   :  { %p19743_p2 = scmp.ne.s32.totalorder %s314_s16, %s19742_s23  ;;  %p19747_p3 = scmp.lt.s32.totalorder %s314_s16, %s314_s16 }
  0xc4   :  { %p19748_p4 = scmp.lt.s32.totalorder %s19746_s20, %s19742_s23 }
  0xc6   :  { %p19749_p5 = por %p19748_p4, %p19747_p3 }
  0xc8   :  { %p19750_p6 = pnand %p19749_p5, %p19743_p2 }
  0xca   :  { %19753 = shalt.err (!%p19750_p6)
}
  0xcb   :  { %316 = dma.hbm_to_vmem [thread:$0]  %s20596_s9, 16, %s314_s16, [#allocation24]  }
  0xcc   :  { %s19762_s26 = scalar_lea.vmem %s334_s22, 16  ;;  %s19766_s0 = scalar_lea.vmem %s334_s22, 32 }
  0xcd   :  { %p19763_p7 = scmp.ne.s32.totalorder %s334_s22, %s19762_s26  ;;  %p19767_p8 = scmp.lt.s32.totalorder %s334_s22, %s334_s22 }
  0xce   :  { %p19768_p9 = scmp.lt.s32.totalorder %s19766_s0, %s19762_s26 }
  0xd0   :  { %p19769_p10 = por %p19768_p9, %p19767_p8 }
  0xd2   :  { %p19770_p11 = pnand %p19769_p10, %p19763_p7 }
  0xd4   :  { %19773 = shalt.err (!%p19770_p11)
}
  0xd5   :  { %336 = dma.hbm_to_vmem [thread:$0]  %s20606_s3, 16, %s334_s22, [#allocation27]  }
  0xd6   :  { %s20444_s4 = smov [#allocation29]   ;;  %s20445_s17 = smov [#allocation32]  }
  0xd7   :  { %s353_s1 = sshll.u32 %s20444_s4, 4  ;;  %s373_s29 = sshll.u32 %s20445_s17, 4  ;;  %s354_s1 = int_to_ptr.vmem [resolvable:$true] %s353_s1  ;;  %s374_s29 = int_to_ptr.vmem [resolvable:$true] %s373_s29 }
  0xd8   :  { %s19782_s28 = scalar_lea.vmem %s354_s1, 16  ;;  %s19786_s2 = scalar_lea.vmem %s354_s1, 32 }
  0xd9   :  { %p19783_p12 = scmp.ne.s32.totalorder %s354_s1, %s19782_s28  ;;  %p19787_p13 = scmp.lt.s32.totalorder %s354_s1, %s354_s1 }
  0xda   :  { %p19788_p0 = scmp.lt.s32.totalorder %s19786_s2, %s19782_s28 }
  0xdc   :  { %p19789_p1 = por %p19788_p0, %p19787_p13 }
  0xde   :  { %p19790_p2 = pnand %p19789_p1, %p19783_p12 }
  0xe0   :  { %19793 = shalt.err (!%p19790_p2)
}
  0xe1   :  { %356 = dma.hbm_to_vmem [thread:$0]  %s20616_s5, 16, %s354_s1, [#allocation30]  }
  0xe2   :  { %s19802_s9 = scalar_lea.vmem %s374_s29, 16  ;;  %s19806_s7 = scalar_lea.vmem %s374_s29, 32 }
  0xe3   :  { %p19803_p3 = scmp.ne.s32.totalorder %s374_s29, %s19802_s9  ;;  %p19807_p4 = scmp.lt.s32.totalorder %s374_s29, %s374_s29 }
  0xe4   :  { %p19808_p5 = scmp.lt.s32.totalorder %s19806_s7, %s19802_s9 }
  0xe6   :  { %p19809_p6 = por %p19808_p5, %p19807_p4 }
  0xe8   :  { %p19810_p7 = pnand %p19809_p6, %p19803_p3 }
  0xea   :  { %19813 = shalt.err (!%p19810_p7)
}
  0xeb   :  { %376 = dma.hbm_to_vmem [thread:$0]  %s20626_s24, 16, %s374_s29, [#allocation33]  }
  0xec   :  { %s20446_s3 = smov [#allocation35]   ;;  %s20447_s19 = smov [#allocation38]  }
  0xed   :  { %s393_s15 = sshll.u32 %s20446_s3, 4  ;;  %s415_s6 = sshll.u32 %s20447_s19, 4  ;;  %s394_s15 = int_to_ptr.vmem [resolvable:$true] %s393_s15  ;;  %s416_s6 = int_to_ptr.vmem [resolvable:$true] %s415_s6 }
  0xee   :  { %s19822_s16 = scalar_lea.vmem %s394_s15, 16  ;;  %s19826_s18 = scalar_lea.vmem %s394_s15, 32 }
  0xef   :  { %p19823_p8 = scmp.ne.s32.totalorder %s394_s15, %s19822_s16  ;;  %p19827_p9 = scmp.lt.s32.totalorder %s394_s15, %s394_s15 }
  0xf0   :  { %p19828_p10 = scmp.lt.s32.totalorder %s19826_s18, %s19822_s16 }
  0xf2   :  { %p19829_p11 = por %p19828_p10, %p19827_p9 }
  0xf4   :  { %p19830_p12 = pnand %p19829_p11, %p19823_p8 }
  0xf6   :  { %19833 = shalt.err (!%p19830_p12)
}
  0xf7   :  { %396 = dma.hbm_to_vmem [thread:$0]  %s20636_s27, 16, %s394_s15, [#allocation36]  }
  0xf8   :  { %s19842_s5 = scalar_lea.vmem %s416_s6, 16  ;;  %s19846_s22 = scalar_lea.vmem %s416_s6, 32 }
  0xf9   :  { %p19843_p13 = scmp.ne.s32.totalorder %s416_s6, %s19842_s5  ;;  %p19847_p0 = scmp.lt.s32.totalorder %s416_s6, %s416_s6 }
  0xfa   :  { %p19848_p1 = scmp.lt.s32.totalorder %s19846_s22, %s19842_s5 }
  0xfc   :  { %p19849_p2 = por %p19848_p1, %p19847_p0 }
  0xfe   :  { %p19850_p3 = pnand %p19849_p2, %p19843_p13 }
 0x100   :  { %19853 = shalt.err (!%p19850_p3)
}
 0x101   :  { %418 = dma.hbm_to_vmem [thread:$0]  %s20646_s12, 16, %s416_s6, [#allocation39]  }
 0x102   :  { %s20448_s24 = smov [#allocation41]   ;;  %s20449_s20 = smov [#allocation44]  }
 0x103   :  { %s437_s23 = sshll.u32 %s20448_s24, 4  ;;  %s459_s26 = sshll.u32 %s20449_s20, 4  ;;  %s438_s23 = int_to_ptr.vmem [resolvable:$true] %s437_s23  ;;  %s460_s26 = int_to_ptr.vmem [resolvable:$true] %s459_s26 }
 0x104   :  { %s19862_s0 = scalar_lea.vmem %s438_s23, 16  ;;  %s19866_s4 = scalar_lea.vmem %s438_s23, 32 }
 0x105   :  { %p19863_p4 = scmp.ne.s32.totalorder %s438_s23, %s19862_s0  ;;  %p19867_p5 = scmp.lt.s32.totalorder %s438_s23, %s438_s23 }
 0x106   :  { %p19868_p6 = scmp.lt.s32.totalorder %s19866_s4, %s19862_s0 }
 0x108   :  { %p19869_p7 = por %p19868_p6, %p19867_p5 }
 0x10a   :  { %p19870_p8 = pnand %p19869_p7, %p19863_p4 }
 0x10c   :  { %19873 = shalt.err (!%p19870_p8)
}
 0x10d   :  { %440 = dma.hbm_to_vmem [thread:$0]  %s20656_s30, 16, %s438_s23, [#allocation42]  }
 0x10e   :  { %s19882_s27 = scalar_lea.vmem %s460_s26, 16  ;;  %s19886_s1 = scalar_lea.vmem %s460_s26, 32 }
 0x10f   :  { %p19883_p9 = scmp.ne.s32.totalorder %s460_s26, %s19882_s27  ;;  %p19887_p10 = scmp.lt.s32.totalorder %s460_s26, %s460_s26 }
 0x110   :  { %p19888_p11 = scmp.lt.s32.totalorder %s19886_s1, %s19882_s27 }
 0x112   :  { %p19889_p12 = por %p19888_p11, %p19887_p10 }
 0x114   :  { %p19890_p13 = pnand %p19889_p12, %p19883_p9 }
 0x116   :  { %19893 = shalt.err (!%p19890_p13)
}
 0x117   :  { %462 = dma.hbm_to_vmem [thread:$0]  %s20666_s8, 16, %s460_s26, [#allocation45]  }
 0x118   :  { %s20450_s12 = smov [#allocation47]   ;;  %s20451_s29 = smov [#allocation2]  }
 0x119   :  { %s486_s17 = sshll.u32 %s20450_s12, 4  ;;  %s156_s28 = sshll.u32 %s20451_s29, 4  ;;  %s487_s17 = int_to_ptr.vmem [resolvable:$true] %s486_s17  ;;  %s157_s28 = int_to_ptr.vmem [resolvable:$true] %s156_s28 }
 0x11a   :  { %s19902_s2 = scalar_lea.vmem %s487_s17, 512  ;;  %p19907_p1 = scmp.lt.s32.totalorder %s487_s17, %s487_s17 }
 0x11b   :  { %p19903_p0 = scmp.ne.s32.totalorder %s487_s17, %s19902_s2  ;;  %p19908_p2 = scmp.lt.s32.totalorder %s19902_s2, %s19902_s2 }
 0x11d   :  { %p19909_p3 = por %p19908_p2, %p19907_p1 }
 0x11f   :  { %p19910_p4 = pnand %p19909_p3, %p19903_p0 }
 0x121   :  { %19913 = shalt.err (!%p19910_p4)
}
 0x122   :  { %s22972_s30 = sld [smem:[#allocation105_spill]]  ;;  %s19922_s9 = scalar_lea.vmem %s157_s28, 256 }
 0x123   :  { %p19923_p5 = scmp.ne.s32.totalorder %s157_s28, %s19922_s9  ;;  %p19927_p6 = scmp.lt.s32.totalorder %s157_s28, %s157_s28 }
 0x124   :  { %p19928_p7 = scmp.lt.s32.totalorder %s19922_s9, %s19922_s9 }
 0x126   :  { %p19929_p8 = por %p19928_p7, %p19927_p6 }
 0x128   :  { %492 = dma.hbm_to_vmem [thread:$0]  %s22972_s30, 512, %s487_s17, [#allocation48], %s20436_s10, %s20436_s10, %s20437_s11  }
 0x129   :  { %p19930_p9 = pnand %p19929_p8, %p19923_p5 }
 0x12b   :  { %19933 = shalt.err (!%p19930_p9)
}
 0x12c   :  { %s22973_s8 = sld [smem:[#allocation80_spill]]  ;;  %s20452_s7 = smov [#allocation7]  }
 0x12d   :  { %s180_s3 = sshll.u32 %s20452_s7, 4  ;;  %s20453_s15 = smov [#allocation10]   ;;  %s181_s3 = int_to_ptr.vmem [resolvable:$true] %s180_s3 }
 0x12e   :  { %s207_s19 = sshll.u32 %s20453_s15, 4  ;;  %s19942_s6 = scalar_lea.vmem %s181_s3, 256  ;;  %s208_s19 = int_to_ptr.vmem [resolvable:$true] %s207_s19 }
 0x12f   :  { %p19943_p10 = scmp.ne.s32.totalorder %s181_s3, %s19942_s6  ;;  %p19947_p11 = scmp.lt.s32.totalorder %s181_s3, %s181_s3 }
 0x130   :  { %p19948_p12 = scmp.lt.s32.totalorder %s19942_s6, %s19942_s6 }
 0x132   :  { %162 = dma.hbm_to_vmem [thread:$0]  %s22973_s8, 256, %s157_s28, [#allocation3], %s20436_s10, %s20436_s10, %s20437_s11  }
 0x133   :  { %p19949_p13 = por %p19948_p12, %p19947_p11 }
 0x135   :  { %p19950_p0 = pnand %p19949_p13, %p19943_p10 }
 0x137   :  { %19953 = shalt.err (!%p19950_p0)
}
 0x138   :  { %s22974_s16 = sld [smem:[#allocation81_spill]]  ;;  %s19962_s18 = scalar_lea.vmem %s208_s19, 16 }
 0x139   :  { %p19963_p1 = scmp.ne.s32.totalorder %s208_s19, %s19962_s18  ;;  %s19966_s5 = scalar_lea.vmem %s208_s19, 32 }
 0x13a   :  { %p19967_p2 = scmp.lt.s32.totalorder %s208_s19, %s208_s19  ;;  %p19968_p3 = scmp.lt.s32.totalorder %s19966_s5, %s19962_s18 }
 0x13c   :  { %p19969_p4 = por %p19968_p3, %p19967_p2 }
 0x13e   :  { %186 = dma.hbm_to_vmem [thread:$0]  %s22974_s16, 256, %s181_s3, [#allocation6], %s20436_s10, %s20436_s10, %s20437_s11  }
 0x13f   :  { %p19970_p5 = pnand %p19969_p4, %p19963_p1 }
 0x141   :  { %19973 = shalt.err (!%p19970_p5)
}
 0x142   :  { %s22975_s22 = sld [smem:[#allocation84_spill]]  ;;  %s20454_s24 = smov [#allocation13]  }
 0x143   :  { %s231_s23 = sshll.u32 %s20454_s24, 4  ;;  %s20455_s20 = smov [#allocation16]   ;;  %s232_s23 = int_to_ptr.vmem [resolvable:$true] %s231_s23 }
 0x144   :  { %s253_s26 = sshll.u32 %s20455_s20, 4  ;;  %s19982_s0 = scalar_lea.vmem %s232_s23, 16  ;;  %s254_s26 = int_to_ptr.vmem [resolvable:$true] %s253_s26 }
 0x145   :  { %p19983_p6 = scmp.ne.s32.totalorder %s232_s23, %s19982_s0  ;;  %s19986_s4 = scalar_lea.vmem %s232_s23, 32 }
 0x146   :  { %p19987_p7 = scmp.lt.s32.totalorder %s232_s23, %s232_s23  ;;  %p19988_p8 = scmp.lt.s32.totalorder %s19986_s4, %s19982_s0 }
 0x148   :  { %210 = dma.hbm_to_vmem [thread:$0]  %s22975_s22, 16, %s208_s19, [#allocation9]  }
 0x149   :  { %p19989_p9 = por %p19988_p8, %p19987_p7 }
 0x14b   :  { %p19990_p10 = pnand %p19989_p9, %p19983_p6 }
 0x14d   :  { %19993 = shalt.err (!%p19990_p10)
}
 0x14e   :  { %s22976_s27 = sld [smem:[#allocation87_spill]]  ;;  %s20002_s1 = scalar_lea.vmem %s254_s26, 16 }
 0x14f   :  { %p20003_p11 = scmp.ne.s32.totalorder %s254_s26, %s20002_s1  ;;  %s20006_s12 = scalar_lea.vmem %s254_s26, 32 }
 0x150   :  { %p20007_p12 = scmp.lt.s32.totalorder %s254_s26, %s254_s26  ;;  %p20008_p13 = scmp.lt.s32.totalorder %s20006_s12, %s20002_s1 }
 0x152   :  { %p20009_p0 = por %p20008_p13, %p20007_p12 }
 0x154   :  { %234 = dma.hbm_to_vmem [thread:$0]  %s22976_s27, 16, %s232_s23, [#allocation12]  }
 0x155   :  { %p20010_p1 = pnand %p20009_p0, %p20003_p11 }
 0x157   :  { %20013 = shalt.err (!%p20010_p1)
}
 0x158   :  { %s22977_s17 = sld [smem:[#allocation88_spill]]  ;;  %s20456_s29 = smov [#allocation19]  }
 0x159   :  { %s275_s28 = sshll.u32 %s20456_s29, 4  ;;  %s20457_s2 = smov [#allocation22]   ;;  %s276_s28 = int_to_ptr.vmem [resolvable:$true] %s275_s28 }
 0x15a   :  { %s297_s30 = sshll.u32 %s20457_s2, 4  ;;  %s20022_s9 = scalar_lea.vmem %s276_s28, 16  ;;  %s298_s30 = int_to_ptr.vmem [resolvable:$true] %s297_s30 }
 0x15b   :  { %p20023_p2 = scmp.ne.s32.totalorder %s276_s28, %s20022_s9  ;;  %s20026_s8 = scalar_lea.vmem %s276_s28, 32 }
 0x15c   :  { %p20027_p3 = scmp.lt.s32.totalorder %s276_s28, %s276_s28  ;;  %p20028_p4 = scmp.lt.s32.totalorder %s20026_s8, %s20022_s9 }
 0x15e   :  { %256 = dma.hbm_to_vmem [thread:$0]  %s22977_s17, 16, %s254_s26, [#allocation15]  }
 0x15f   :  { %p20029_p5 = por %p20028_p4, %p20027_p3 }
 0x161   :  { %p20030_p6 = pnand %p20029_p5, %p20023_p2 }
 0x163   :  { %20033 = shalt.err (!%p20030_p6)
}
 0x164   :  { %s22978_s7 = sld [smem:[#allocation89_spill]]  ;;  %s20042_s3 = scalar_lea.vmem %s298_s30, 16 }
 0x165   :  { %p20043_p7 = scmp.ne.s32.totalorder %s298_s30, %s20042_s3  ;;  %s20046_s15 = scalar_lea.vmem %s298_s30, 32 }
 0x166   :  { %p20047_p8 = scmp.lt.s32.totalorder %s298_s30, %s298_s30  ;;  %p20048_p9 = scmp.lt.s32.totalorder %s20046_s15, %s20042_s3 }
 0x168   :  { %p20049_p10 = por %p20048_p9, %p20047_p8 }
 0x16a   :  { %278 = dma.hbm_to_vmem [thread:$0]  %s22978_s7, 16, %s276_s28, [#allocation18]  }
 0x16b   :  { %p20050_p11 = pnand %p20049_p10, %p20043_p7 }
 0x16d   :  { %20053 = shalt.err (!%p20050_p11)
}
 0x16e   :  { %s22979_s19 = sld [smem:[#allocation90_spill]]  ;;  %s20458_s6 = smov [#allocation25]  }
 0x16f   :  { %s323_s16 = sshll.u32 %s20458_s6, 4  ;;  %s20459_s18 = smov [#allocation28]   ;;  %s324_s16 = int_to_ptr.vmem [resolvable:$true] %s323_s16 }
 0x170   :  { %s343_s5 = sshll.u32 %s20459_s18, 4  ;;  %s20062_s22 = scalar_lea.vmem %s324_s16, 16  ;;  %s344_s5 = int_to_ptr.vmem [resolvable:$true] %s343_s5 }
 0x171   :  { %p20063_p12 = scmp.ne.s32.totalorder %s324_s16, %s20062_s22  ;;  %s20066_s24 = scalar_lea.vmem %s324_s16, 32 }
 0x172   :  { %p20067_p13 = scmp.lt.s32.totalorder %s324_s16, %s324_s16  ;;  %p20068_p0 = scmp.lt.s32.totalorder %s20066_s24, %s20062_s22 }
 0x174   :  { %300 = dma.hbm_to_vmem [thread:$0]  %s22979_s19, 16, %s298_s30, [#allocation21]  }
 0x175   :  { %p20069_p1 = por %p20068_p0, %p20067_p13 }
 0x177   :  { %p20070_p2 = pnand %p20069_p1, %p20063_p12 }
 0x179   :  { %20073 = shalt.err (!%p20070_p2)
}
 0x17a   :  { %s22980_s23 = sld [smem:[#allocation94_spill]]  ;;  %s20082_s20 = scalar_lea.vmem %s344_s5, 16 }
 0x17b   :  { %p20083_p3 = scmp.ne.s32.totalorder %s344_s5, %s20082_s20  ;;  %s20086_s26 = scalar_lea.vmem %s344_s5, 32 }
 0x17c   :  { %p20087_p4 = scmp.lt.s32.totalorder %s344_s5, %s344_s5  ;;  %p20088_p5 = scmp.lt.s32.totalorder %s20086_s26, %s20082_s20 }
 0x17e   :  { %p20089_p6 = por %p20088_p5, %p20087_p4 }
 0x180   :  { %326 = dma.hbm_to_vmem [thread:$0]  %s22980_s23, 16, %s324_s16, [#allocation24]  }
 0x181   :  { %p20090_p7 = pnand %p20089_p6, %p20083_p3 }
 0x183   :  { %20093 = shalt.err (!%p20090_p7)
}
 0x184   :  { %s22981_s0 = sld [smem:[#allocation95_spill]]  ;;  %s20460_s4 = smov [#allocation31]  }
 0x185   :  { %s363_s27 = sshll.u32 %s20460_s4, 4  ;;  %s20461_s1 = smov [#allocation34]   ;;  %s364_s27 = int_to_ptr.vmem [resolvable:$true] %s363_s27 }
 0x186   :  { %s383_s12 = sshll.u32 %s20461_s1, 4  ;;  %s20102_s17 = scalar_lea.vmem %s364_s27, 16  ;;  %s384_s12 = int_to_ptr.vmem [resolvable:$true] %s383_s12 }
 0x187   :  { %p20103_p8 = scmp.ne.s32.totalorder %s364_s27, %s20102_s17  ;;  %s20106_s29 = scalar_lea.vmem %s364_s27, 32 }
 0x188   :  { %p20107_p9 = scmp.lt.s32.totalorder %s364_s27, %s364_s27  ;;  %p20108_p10 = scmp.lt.s32.totalorder %s20106_s29, %s20102_s17 }
 0x18a   :  { %346 = dma.hbm_to_vmem [thread:$0]  %s22981_s0, 16, %s344_s5, [#allocation27]  }
 0x18b   :  { %p20109_p11 = por %p20108_p10, %p20107_p9 }
 0x18d   :  { %p20110_p12 = pnand %p20109_p11, %p20103_p8 }
 0x18f   :  { %20113 = shalt.err (!%p20110_p12)
}
 0x190   :  { %s22982_s28 = sld [smem:[#allocation96_spill]]  ;;  %s20122_s2 = scalar_lea.vmem %s384_s12, 16 }
 0x191   :  { %p20123_p13 = scmp.ne.s32.totalorder %s384_s12, %s20122_s2  ;;  %s20126_s30 = scalar_lea.vmem %s384_s12, 32 }
 0x192   :  { %p20127_p0 = scmp.lt.s32.totalorder %s384_s12, %s384_s12  ;;  %p20128_p1 = scmp.lt.s32.totalorder %s20126_s30, %s20122_s2 }
 0x194   :  { %p20129_p2 = por %p20128_p1, %p20127_p0 }
 0x196   :  { %366 = dma.hbm_to_vmem [thread:$0]  %s22982_s28, 16, %s364_s27, [#allocation30]  }
 0x197   :  { %p20130_p3 = pnand %p20129_p2, %p20123_p13 }
 0x199   :  { %20133 = shalt.err (!%p20130_p3)
}
 0x19a   :  { %s22983_s9 = sld [smem:[#allocation97_spill]]  ;;  %s20462_s8 = smov [#allocation37]  }
 0x19b   :  { %s402_s7 = sshll.u32 %s20462_s8, 4  ;;  %s20463_s3 = smov [#allocation40]   ;;  %s403_s7 = int_to_ptr.vmem [resolvable:$true] %s402_s7 }
 0x19c   :  { %s424_s15 = sshll.u32 %s20463_s3, 4  ;;  %s20142_s19 = scalar_lea.vmem %s403_s7, 512  ;;  %s425_s15 = int_to_ptr.vmem [resolvable:$true] %s424_s15 }
 0x19d   :  { %p20143_p4 = scmp.ne.s32.totalorder %s403_s7, %s20142_s19  ;;  %p20147_p5 = scmp.lt.s32.totalorder %s403_s7, %s403_s7 }
 0x19e   :  { %p20148_p6 = scmp.lt.s32.totalorder %s20142_s19, %s20142_s19 }
 0x1a0   :  { %386 = dma.hbm_to_vmem [thread:$0]  %s22983_s9, 16, %s384_s12, [#allocation33]  }
 0x1a1   :  { %p20149_p7 = por %p20148_p6, %p20147_p5 }
 0x1a3   :  { %p20150_p8 = pnand %p20149_p7, %p20143_p4 }
 0x1a5   :  { %20153 = shalt.err (!%p20150_p8)
}
 0x1a6   :  { %s22984_s6 = sld [smem:[#allocation98_spill]]  ;;  %s20162_s16 = scalar_lea.vmem %s425_s15, 512 }
 0x1a7   :  { %p20163_p9 = scmp.ne.s32.totalorder %s425_s15, %s20162_s16  ;;  %p20167_p10 = scmp.lt.s32.totalorder %s425_s15, %s425_s15 }
 0x1a8   :  { %p20168_p11 = scmp.lt.s32.totalorder %s20162_s16, %s20162_s16 }
 0x1aa   :  { %p20169_p12 = por %p20168_p11, %p20167_p10 }
 0x1ac   :  { %408 = dma.hbm_to_vmem [thread:$0]  %s22984_s6, 512, %s403_s7, [#allocation36], %s20436_s10, %s20436_s10, %s20437_s11  }
 0x1ad   :  { %p20170_p13 = pnand %p20169_p12, %p20163_p9 }
 0x1af   :  { %20173 = shalt.err (!%p20170_p13)
}
 0x1b0   :  { %s22985_s18 = sld [smem:[#allocation99_spill]]  ;;  %s20464_s5 = smov [#allocation43]  }
 0x1b1   :  { %s446_s22 = sshll.u32 %s20464_s5, 4  ;;  %s20465_s24 = smov [#allocation46]   ;;  %s447_s22 = int_to_ptr.vmem [resolvable:$true] %s446_s22 }
 0x1b2   :  { %s472_s23 = sshll.u32 %s20465_s24, 4  ;;  %s20182_s20 = scalar_lea.vmem %s447_s22, 512  ;;  %s473_s23 = int_to_ptr.vmem [resolvable:$true] %s472_s23 }
 0x1b3   :  { %p20183_p0 = scmp.ne.s32.totalorder %s447_s22, %s20182_s20  ;;  %p20187_p1 = scmp.lt.s32.totalorder %s447_s22, %s447_s22 }
 0x1b4   :  { %p20188_p2 = scmp.lt.s32.totalorder %s20182_s20, %s20182_s20 }
 0x1b6   :  { %430 = dma.hbm_to_vmem [thread:$0]  %s22985_s18, 512, %s425_s15, [#allocation39], %s20436_s10, %s20436_s10, %s20437_s11  }
 0x1b7   :  { %p20189_p3 = por %p20188_p2, %p20187_p1 }
 0x1b9   :  { %p20190_p4 = pnand %p20189_p3, %p20183_p0 }
 0x1bb   :  { %20193 = shalt.err (!%p20190_p4)
}
 0x1bc   :  { %s22986_s26 = sld [smem:[#allocation100_spill]]  ;;  %s20202_s0 = scalar_lea.vmem %s473_s23, 512 }
 0x1bd   :  { %p20203_p5 = scmp.ne.s32.totalorder %s473_s23, %s20202_s0  ;;  %p20207_p6 = scmp.lt.s32.totalorder %s473_s23, %s473_s23 }
 0x1be   :  { %p20208_p7 = scmp.lt.s32.totalorder %s20202_s0, %s20202_s0 }
 0x1c0   :  { %p20209_p8 = por %p20208_p7, %p20207_p6 }
 0x1c2   :  { %452 = dma.hbm_to_vmem [thread:$0]  %s22986_s26, 512, %s447_s22, [#allocation42], %s20436_s10, %s20436_s10, %s20437_s11  }
 0x1c3   :  { %p20210_p9 = pnand %p20209_p8, %p20203_p5 }
 0x1c5   :  { %20213 = shalt.err (!%p20210_p9)
}
 0x1c6   :  { %s22987_s4 = sld [smem:[#allocation103_spill]]  ;;  %s20466_s27 = smov [#allocation49]  }
 0x1c7   :  { %s500_s1 = sshll.u32 %s20466_s27, 4  ;;  %s20467_s12 = smov [#allocation50]   ;;  %s501_s1 = int_to_ptr.vmem [resolvable:$true] %s500_s1 }
 0x1c8   :  { %s514_s17 = sshll.u32 %s20467_s12, 4  ;;  %s20222_s29 = scalar_lea.vmem %s501_s1, 512  ;;  %s515_s17 = int_to_ptr.vmem [resolvable:$true] %s514_s17 }
 0x1c9   :  { %p20223_p10 = scmp.ne.s32.totalorder %s501_s1, %s20222_s29  ;;  %p20227_p11 = scmp.lt.s32.totalorder %s501_s1, %s501_s1 }
 0x1ca   :  { %p20228_p12 = scmp.lt.s32.totalorder %s20222_s29, %s20222_s29 }
 0x1cc   :  { %478 = dma.hbm_to_vmem [thread:$0]  %s22987_s4, 512, %s473_s23, [#allocation45], %s20436_s10, %s20436_s10, %s20437_s11  }
 0x1cd   :  { %p20229_p13 = por %p20228_p12, %p20227_p11 }
 0x1cf   :  { %p20230_p0 = pnand %p20229_p13, %p20223_p10 }
 0x1d1   :  { %20233 = shalt.err (!%p20230_p0)
}
 0x1d2   :  { %s22988_s28 = sld [smem:[#allocation107_spill]]  ;;  %s20242_s2 = scalar_lea.vmem %s515_s17, 512 }
 0x1d3   :  { %p20243_p1 = scmp.ne.s32.totalorder %s515_s17, %s20242_s2  ;;  %p20247_p2 = scmp.lt.s32.totalorder %s515_s17, %s515_s17 }
 0x1d4   :  { %p20248_p3 = scmp.lt.s32.totalorder %s20242_s2, %s20242_s2 }
 0x1d6   :  { %p20249_p4 = por %p20248_p3, %p20247_p2 }
 0x1d8   :  { %506 = dma.hbm_to_vmem [thread:$0]  %s22988_s28, 512, %s501_s1, [#allocation48], %s20436_s10, %s20436_s10, %s20437_s11  }
 0x1d9   :  { %p20250_p5 = pnand %p20249_p4, %p20243_p1 }
 0x1db   :  { %20253 = shalt.err (!%p20250_p5)
}
 0x1dc   :  { %s22989_s30 = sld [smem:[#allocation109_spill]] }
 0x1e2   :  { %520 = dma.hbm_to_vmem [thread:$0]  %s22989_s30, 512, %s515_s17, [#allocation51], %s20436_s10, %s20436_s10, %s20437_s11  }
 0x1e3   :  { %20334 = dma.done.wait [#allocation3], 256  }
 0x1e4   :  { %20335 = vsyncadd [#allocation3], 4294967040 }
 0x1e5   :  { %20336 = dma.done.wait [#allocation6], 512  }
 0x1e6   :  { %20337 = vsyncadd [#allocation6], 4294966784 }
 0x1e7   :  { %20338 = dma.done.wait [#allocation9], 32  }
 0x1e8   :  { %20339 = vsyncadd [#allocation9], 4294967264 }
 0x1e9   :  { %20340 = dma.done.wait [#allocation12], 32  }
 0x1ea   :  { %20341 = vsyncadd [#allocation12], 4294967264 }
 0x1eb   :  { %20342 = dma.done.wait [#allocation15], 528  }
 0x1ec   :  { %20343 = vsyncadd [#allocation15], 4294966768 }
 0x1ed   :  { %20344 = dma.done.wait [#allocation18], 528  }
 0x1ee   :  { %20345 = vsyncadd [#allocation18], 4294966768 }
 0x1ef   :  { %20346 = dma.done.wait [#allocation21], 528  }
 0x1f0   :  { %20347 = vsyncadd [#allocation21], 4294966768 }
 0x1f1   :  { %20348 = dma.done.wait [#allocation24], 32  }
 0x1f2   :  { %20349 = vsyncadd [#allocation24], 4294967264 }
 0x1f3   :  { %20350 = dma.done.wait [#allocation27], 32  }
 0x1f4   :  { %20351 = vsyncadd [#allocation27], 4294967264 }
 0x1f5   :  { %20352 = dma.done.wait [#allocation30], 32  }
 0x1f6   :  { %20353 = vsyncadd [#allocation30], 4294967264 }
 0x1f7   :  { %20354 = dma.done.wait [#allocation33], 32  }
 0x1f8   :  { %20355 = vsyncadd [#allocation33], 4294967264 }
 0x1f9   :  { %20356 = dma.done.wait [#allocation36], 528  }
 0x1fa   :  { %20357 = vsyncadd [#allocation36], 4294966768 }
 0x1fb   :  { %20358 = dma.done.wait [#allocation39], 528  }
 0x1fc   :  { %20359 = vsyncadd [#allocation39], 4294966768 }
 0x1fd   :  { %20360 = dma.done.wait [#allocation42], 528  }
 0x1fe   :  { %20361 = vsyncadd [#allocation42], 4294966768 }
 0x1ff   :  { %20362 = dma.done.wait [#allocation45], 528  }
 0x200   :  { %20363 = vsyncadd [#allocation45], 4294966768 }
 0x201   :  { %20364 = dma.done.wait [#allocation48], 1024  }
 0x202   :  { %20365 = vsyncadd [#allocation48], 4294966272 }
 0x203   :  { %20366 = dma.done.wait [#allocation51], 512  }
 0x204   :  { %20367 = vsyncadd [#allocation51], 4294966784  ;;  %s22990_s9 = sld [smem:[#allocation78_spill]]  ;;  %v678_v0 = vld [vmem:[#allocation14 + $0x18] sm:$0xff]  ;;  %v677_v1 = vld [vmem:[#allocation14 + $0x10] sm:$0xff]  ;;  %vm718_vm0 = vcmask 261120  }
 0x205   :  { %s22991_s8 = sld [smem:[#allocation79_spill]]  ;;  %17856 = vmatprep.subr.mxu0 %v678_v0  ;;  %v676_v4 = vld [vmem:[#allocation14 + $0x8] sm:$0xff]  ;;  %v675_v10 = vld [vmem:[#allocation14] sm:$0xff]  ;;  %v20900_v22 = vld [vmem:[#allocation2 + $0x8] sm:$0xff]  ;;  %v22918_v33 = vmov 0.0   ;;  %s20469_s3 = smov 112  }
 0x206   :  { %s22992_s7 = sld [smem:[#allocation82_spill]]  ;;  %17857 = vmatpush3.msra.mxu0 %v678_v0  ;;  %v20885_v16 = vld [vmem:[#allocation2] sm:$0xff]  ;;  %v20902_v23 = vld [vmem:[#allocation7 + $0x8] sm:$0xff]  ;;  %v20915_v28 = vld [vmem:[#allocation16] ss:$0 sm:$0xff]  ;;  %s20470_s15 = smov 120  }
 0x207   :  { %17858 = vmatprep.subr.mxu0 %v677_v1  ;;  %v20887_v17 = vld [vmem:[#allocation7] sm:$0xff]  ;;  %v988_v25 = vadd.f32 %v20902_v23, %v20900_v22  ;;  %v16904_v34 = vld [vmem:[#allocation8] ss:$0 sm:$0xff]  ;;  %vm20471_vm1 = vmmov 0   ;;  %v683_v38 = vld [vmem:[#allocation17 + $0x18] sm:$0xff]  ;;  %s22996_s19 = sld [smem:[#allocation83_spill]] }
 0x208   :  { %17859 = vmatpush3.msra.mxu0 %v677_v1  ;;  %v987_v21 = vadd.f32 %v20887_v17, %v20885_v16  ;;  %17870 = vmatprep.subr.mxu1 %v683_v38  ;;  %v682_v39 = vld [vmem:[#allocation17 + $0x10] sm:$0xff]  ;;  %s20472_s6 = smov 104   ;;  %v681_v40 = vld [vmem:[#allocation17 + $0x8] sm:$0xff]  ;;  %s20473_s16 = smov 96   ;;  %v680_v41 = vld [vmem:[#allocation17] sm:$0xff]  ;;  %vm1199_vm2 = vcmask 64512  }
 0x209   :  { %17860 = vmatprep.subr.mxu0 %v676_v4  ;;  %17871 = vmatpush3.msra.mxu1 %v683_v38  ;;  %v20977_v56 = vld [vmem:[#allocation19] ss:$0 sm:$0xff]  ;;  %v16907_v0 = vld [vmem:[#allocation10] ss:$0 sm:$0xff]  ;;  %s22997_s18 = sld [smem:[#allocation85_spill]]  ;;  %vm3594_vm3 = vcmask 130048  }
 0x20a   :  { %v639_v2 = vld [vmem:[%s22990_s9] sm:$0xff]  ;;  %v20864_v6 = vld [vmem:[%s22990_s9 + $0x8] sm:$0xff]  ;;  %v20869_v8 = vld [vmem:[%s22990_s9 + $0x10] sm:$0xff]  ;;  %17861 = vmatpush3.msra.mxu0 %v676_v4  ;;  %17872 = vmatprep.subr.mxu1 %v682_v39  ;;  %s22998_s5 = sld [smem:[#allocation86_spill]]  ;;  %vm4750_vm4 = vcmask 523264  }
 0x20b   :  { %v643_v3 = vld [vmem:[%s22991_s8] sm:$0xff]  ;;  %v644_v7 = vld [vmem:[%s22991_s8 + $0x8] sm:$0xff]  ;;  %17878 = vmatprep.mubr.msk.f32.mxu1 %vm718_vm0, %v639_v2  ;;  %v645_v9 = vld [vmem:[%s22991_s8 + $0x10] sm:$0xff]  ;;  %17862 = vmatprep.subr.mxu0 %v675_v10  ;;  %s22999_s22 = sld [smem:[#allocation91_spill]] }
 0x20c   :  { %v20861_v5 = vadd.f32 %v643_v3, %v639_v2  ;;  %v20875_v11 = vadd.f32 %v644_v7, %v20864_v6  ;;  %v658_v12 = vld [vmem:[%s22992_s7 + $0x18] sm:$0xff]  ;;  %v20879_v13 = vadd.f32 %v645_v9, %v20869_v8  ;;  %17863 = vmatpush3.msra.mxu0 %v675_v10  ;;  %v657_v18 = vld [vmem:[%s22992_s7 + $0x10] sm:$0xff]  ;;  %v656_v20 = vld [vmem:[%s22992_s7 + $0x8] sm:$0xff]  ;;  %17873 = vmatpush3.msra.mxu1 %v682_v39  ;;  %s23000_s24 = sld [smem:[#allocation93_spill]] }
 0x20d   :  { %v20882_v14 = vld [vmem:[%s22990_s9 + $0x18] sm:$0xff]  ;;  %17884 = vmatprep.subr.mxu0 %v658_v12  ;;  %v655_v24 = vld [vmem:[%s22992_s7] sm:$0xff]  ;;  %17874 = vmatprep.subr.mxu1 %v681_v40  ;;  %v662_v43 = vld [vmem:[%s22996_s19 + $0x10] sm:$0xff]  ;;  %s23001_s23 = sld [smem:[#allocation92_spill]] }
 0x20e   :  { %17864 = vmatprep.mubr.msk.f32.mxu0 %vm718_vm0, %v20861_v5  ;;  %22993 = vst [vmem:[#allocation121_spill] sm:$0xff] %v20875_v11  ;;  %22994 = vst [vmem:[#allocation122_spill] sm:$0xff] %v20879_v13  ;;  %v646_v15 = vld [vmem:[%s22991_s8 + $0x18] sm:$0xff]  ;;  %17875 = vmatpush3.msra.mxu1 %v681_v40  ;;  %v661_v44 = vld [vmem:[%s22996_s19 + $0x8] sm:$0xff]  ;;  %s23012_s20 = sld [smem:[#allocation104_spill]] }
 0x20f   :  { %17865 = vmatmul.mubr.msk.f32.vlgmr.msra.gmra.mxu0 %vm718_vm0, %v20875_v11  ;;  %v20893_v19 = vadd.f32 %v646_v15, %v20882_v14  ;;  %v663_v42 = vld [vmem:[%s22996_s19 + $0x18] sm:$0xff]  ;;  %17876 = vmatprep.subr.mxu1 %v680_v41  ;;  %v660_v45 = vld [vmem:[%s22996_s19] sm:$0xff]  ;;  %s23013_s26 = sld [smem:[#allocation106_spill]] }
 0x210   :  { %17885 = vmatpush3.msra.mxu0 %v658_v12  ;;  %17867 = vmatprep.mubr.msk.f32.mxu0 %vm718_vm0, %v20879_v13  ;;  %s23014_s0 = sld [smem:[#allocation101_spill]] }
 0x211   :  { %22995 = vst [vmem:[#allocation123_spill] sm:$0xff] %v20893_v19  ;;  %17886 = vmatprep.subr.mxu0 %v657_v18  ;;  %17877 = vmatpush3.msra.mxu1 %v680_v41  ;;  %s23015_s4 = sld [smem:[#allocation113_spill]] }
 0x212   :  { %17887 = vmatpush3.msra.mxu0 %v657_v18  ;;  %17879 = vmatmul.mubr.msk.f32.vlgmr.msra.gmra.mxu1 %vm718_vm0, %v20864_v6  ;;  %s23016_s27 = sld [smem:[#allocation114_spill]] }
 0x213   :  { %17868 = vmatmul.mubr.msk.f32.gmra.mxu0 %vm718_vm0, %v20893_v19  ;;  %17888 = vmatprep.subr.mxu0 %v656_v20  ;;  %s23017_s1 = sld [smem:[#allocation102_spill]] }
 0x214   :  { %17889 = vmatpush3.msra.mxu0 %v656_v20  ;;  %17892 = vmatprep.mubr.msk.f32.mxu0 %vm718_vm0, %v987_v21  ;;  %s23018_s12 = sld [smem:[#allocation108_spill]] }
 0x215   :  { %17890 = vmatprep.subr.mxu0 %v655_v24  ;;  %17895 = vmatprep.subr.mxu1 %v663_v42  ;;  %s23019_s17 = sld [smem:[#allocation111_spill]] }
 0x216   :  { %17891 = vmatpush3.msra.mxu0 %v655_v24  ;;  %17896 = vmatpush3.msra.mxu1 %v663_v42  ;;  %s23020_s29 = sld [smem:[#allocation115_spill]] }
 0x217   :  { %17893 = vmatmul.mubr.msk.f32.vlgmr.msra.gmra.mxu0 %vm718_vm0, %v988_v25  ;;  %17906 = vmatprep.subr.mxu0 %v22918_v33  ;;  %s23021_s28 = sld [smem:[#allocation116_spill]] }
 0x218   :  { %17908 = vmatprep.mubr.msk.f32.mxu0 %vm20471_vm1, %v22918_v33  ;;  %17881 = vmatprep.mubr.msk.f32.mxu1 %vm718_vm0, %v20869_v8  ;;  %s23022_s2 = sld [smem:[#allocation110_spill]] }
 0x219   :  { %17897 = vmatprep.subr.mxu1 %v662_v43  ;;  %17882 = vmatmul.mubr.msk.f32.gmra.mxu1 %vm718_vm0, %v20882_v14  ;;  %s23023_s30 = sld [smem:[#allocation112_spill]] }
 0x21a   :  { %17898 = vmatpush3.msra.mxu1 %v662_v43  ;;  %17903 = vmatprep.mubr.msk.f32.mxu1 %vm718_vm0, %v20885_v16  ;;  %s23025_s8 = sld [smem:[#allocation118_spill]] }
 0x21b   :  { %17899 = vmatprep.subr.mxu1 %v661_v44 }
 0x21c   :  { %17900 = vmatpush3.msra.mxu1 %v661_v44 }
 0x21d   :  { %17901 = vmatprep.subr.mxu1 %v660_v45 }
 0x21e   :  { %17902 = vmatpush3.msra.mxu1 %v660_v45 }
 0x21f   :  { %17904 = vmatmul.mubr.msk.f32.vlgmr.msra.gmra.mxu1 %vm718_vm0, %v20900_v22  ;;  %17921 = vmatprep.subr.mxu1 %v22918_v33 }
 0x220   :  { %17923 = vmatprep.mubr.msk.f32.mxu1 %vm20471_vm1, %v22918_v33 }
 0x2cf   :  { %v20911_v26 = vpop.f32.mrf.mxu0 }
 0x2d1   :  { %v20913_v27 = vpop.f32.mrf.mxu0 }
 0x2d2   :  { %v20973_v54 = vpop.f32.mrf.mxu1 }
 0x2d3   :  { %v17869_v29 = vpop.f32.mrf.mxu0 }
 0x2d4   :  { %v20918_v30 = vadd.f32 %v17869_v29, %v20915_v28  ;;  %v20975_v55 = vpop.f32.mrf.mxu1 }
 0x2d5   :  { %v20920_v31 = vpop.f32.mrf.mxu0 }
 0x2d7   :  { %v17894_v32 = vpop.f32.mrf.mxu0 }
 0x2d8   :  { %v1073_v37 = vadd.f32 %v17894_v32, %v16904_v34 }
 0x2d9   :  { %v1067_v35 = vpop.f32.mrf.mxu0  ;;  %v17883_v57 = vpop.f32.mrf.mxu1 }
 0x2da   :  { %v20923_v36 = vadd.f32 %v16904_v34, %v1067_v35  ;;  %v20980_v58 = vadd.f32 %v17883_v57, %v20977_v56 }
 0x2db   :  { %v20982_v59 = vpop.f32.mrf.mxu1 }
 0x2dc   :  { %1169 = vrot.lane.b32.xlu1 %v20923_v36, %s20469_s3  ;;  %1165 = vrot.lane.b32.xlu0 %v20923_v36, %s20470_s15 }
 0x2df   :  { %v17905_v61 = vpop.f32.mrf.mxu1 }
 0x2e0   :  { %1171 = vrot.lane.b32.xlu1 %v1073_v37, %s20469_s3  ;;  %1167 = vrot.lane.b32.xlu0 %v1073_v37, %s20470_s15  ;;  %v21010_v7 = vadd.f32 %v17905_v61, %v16907_v0 }
 0x2e1   :  { %v1154_v1 = vpop.f32.mrf.mxu1 }
 0x2e2   :  { %v21001_v4 = vadd.f32 %v16907_v0, %v1154_v1 }
 0x2e4   :  { %1175 = vrot.lane.b32.xlu1 %v1073_v37, %s20472_s6  ;;  %1173 = vrot.lane.b32.xlu0 %v20923_v36, %s20472_s6 }
 0x2e8   :  { %1274 = vrot.lane.b32.xlu1 %v1073_v37, %s20473_s16  ;;  %1197 = vrot.lane.b32.xlu0 %v20923_v36, %s20473_s16 }
 0x34e   :  { %v1170_v46 = vpop.permute.xlu1 %1169  ;;  %v1166_v47 = vpop.permute.xlu0 %1165 }
 0x34f   :  { %1350 = vrot.lane.b32.xlu0 %v1166_v47, %s20473_s16 }
 0x352   :  { %v1172_v48 = vpop.permute.xlu1 %1171  ;;  %v1168_v49 = vpop.permute.xlu0 %1167 }
 0x353   :  { %1502 = vrot.lane.b32.xlu0 %v1170_v46, %s20473_s16  ;;  %1426 = vrot.lane.b32.xlu1 %v1168_v49, %s20473_s16 }
 0x356   :  { %v1174_v50 = vpop.permute.xlu0 %1173  ;;  %v1176_v51 = vpop.permute.xlu1 %1175 }
 0x357   :  { %1578 = vrot.lane.b32.xlu1 %v1172_v48, %s20473_s16  ;;  %1654 = vrot.lane.b32.xlu0 %v1174_v50, %s20473_s16 }
 0x35a   :  { %v1198_v52 = vpop.permute.xlu0 %1197  ;;  %v1275_v53 = vpop.permute.xlu1 %1274 }
 0x35b   :  { %1730 = vrot.lane.b32.xlu1 %v1176_v51, %s20473_s16  ;;  %17907 = vmatpush3.xpose.msk.msra.mxu0 %vm1199_vm2, %v1198_v52 }
 0x35c   :  { %17911 = vmatprep.subr.mxu0 %v22918_v33 }
 0x35e   :  { %17909 = vmatmul.mubr.msk.f32.vlgmr.msra.gmra.mxu0 %vm1199_vm2, %v20923_v36 }
 0x35f   :  { %17912 = vmatpush3.xpose.msk.msra.mxu0 %vm1199_vm2, %v1275_v53  ;;  %17913 = vmatprep.mubr.msk.f32.mxu0 %vm20471_vm1, %v22918_v33 }
 0x360   :  { %17916 = vmatprep.subr.mxu0 %v22918_v33 }
 0x362   :  { %17914 = vmatmul.mubr.msk.f32.vlgmr.msra.gmra.mxu0 %vm1199_vm2, %v1073_v37 }
 0x363   :  { %17918 = vmatprep.mubr.msk.f32.mxu0 %vm20471_vm1, %v22918_v33 }
 0x3c1   :  { %v1351_v60 = vpop.permute.xlu0 %1350 }
 0x3c2   :  { %17917 = vmatpush3.xpose.msk.msra.mxu0 %vm1199_vm2, %v1351_v60 }
 0x3c3   :  { %17926 = vmatprep.subr.mxu0 %v22918_v33 }
 0x3c5   :  { %v1427_v62 = vpop.permute.xlu1 %1426  ;;  %17919 = vmatmul.mubr.msk.f32.vlgmr.msra.gmra.mxu0 %vm1199_vm2, %v1166_v47  ;;  %v1503_v63 = vpop.permute.xlu0 %1502 }
 0x3c6   :  { %17922 = vmatpush3.xpose.msk.msra.mxu1 %vm1199_vm2, %v1427_v62  ;;  %17927 = vmatpush3.xpose.msk.msra.mxu0 %vm1199_vm2, %v1503_v63 }
 0x3c7   :  { %17928 = vmatprep.mubr.msk.f32.mxu0 %vm20471_vm1, %v22918_v33  ;;  %17931 = vmatprep.subr.mxu1 %v22918_v33 }
 0x3c8   :  { %17936 = vmatprep.subr.mxu0 %v22918_v33 }
 0x3c9   :  { %17924 = vmatmul.mubr.msk.f32.vlgmr.msra.gmra.mxu1 %vm1199_vm2, %v1168_v49  ;;  %v1579_v2 = vpop.permute.xlu1 %1578  ;;  %17929 = vmatmul.mubr.msk.f32.vlgmr.msra.gmra.mxu0 %vm1199_vm2, %v1170_v46  ;;  %v1655_v3 = vpop.permute.xlu0 %1654 }
 0x3ca   :  { %17932 = vmatpush3.xpose.msk.msra.mxu1 %vm1199_vm2, %v1579_v2  ;;  %17937 = vmatpush3.xpose.msk.msra.mxu0 %vm1199_vm2, %v1655_v3 }
 0x3cb   :  { %17933 = vmatprep.mubr.msk.f32.mxu1 %vm20471_vm1, %v22918_v33  ;;  %17938 = vmatprep.mubr.msk.f32.mxu0 %vm20471_vm1, %v22918_v33 }
 0x3cc   :  { %17941 = vmatprep.subr.mxu1 %v22918_v33  ;;  %17946 = vmatprep.subr.mxu0 %v22918_v33 }
 0x3cd   :  { %17934 = vmatmul.mubr.msk.f32.vlgmr.msra.gmra.mxu1 %vm1199_vm2, %v1172_v48  ;;  %v1731_v6 = vpop.permute.xlu1 %1730  ;;  %17939 = vmatmul.mubr.msk.f32.vlgmr.msra.gmra.mxu0 %vm1199_vm2, %v1174_v50 }
 0x3ce   :  { %17942 = vmatpush3.xpose.msk.msra.mxu1 %vm1199_vm2, %v1731_v6  ;;  %17943 = vmatprep.mubr.msk.f32.mxu1 %vm20471_vm1, %v22918_v33 }
 0x3cf   :  { %17951 = vmatprep.subr.mxu1 %v22918_v33  ;;  %17947 = vmatpush3.msra.mxu0 %v21001_v4 }
 0x3d0   :  { %17948 = vmatprep.mubr.msk.f32.mxu0 %vm20471_vm1, %v22918_v33  ;;  %17956 = vmatprep.subr.mxu0 %v22918_v33 }
 0x3d1   :  { %17944 = vmatmul.mubr.msk.f32.vlgmr.msra.gmra.mxu1 %vm1199_vm2, %v1176_v51 }
 0x3d2   :  { %17952 = vmatpush3.msra.mxu1 %v21010_v7  ;;  %17953 = vmatprep.mubr.msk.f32.mxu1 %vm20471_vm1, %v22918_v33 }
 0x3d3   :  { %17961 = vmatprep.subr.mxu1 %v22918_v33 }
 0x41e   :  { %v1270_v8 = vpop.f32.mrf.mxu0 }
 0x41f   :  { %v1806_v9 = vmul.f32 0.35355338, %v1270_v8 }
 0x420   :  { %v17910_v10 = vpop.f32.mrf.mxu0 }
 0x421   :  { %v1814_v12 = vsel %vm1199_vm2, %v1806_v9, -inf }
 0x422   :  { %1815 = vmax.xlane.f32.xlu0 %v1814_v12  ;;  %v1346_v14 = vpop.f32.mrf.mxu0 }
 0x423   :  { %v1807_v15 = vmul.f32 0.35355338, %v1346_v14 }
 0x424   :  { %v17915_v18 = vpop.f32.mrf.mxu0 }
 0x425   :  { %v1817_v20 = vsel %vm1199_vm2, %v1807_v15, -inf }
 0x426   :  { %1818 = vmax.xlane.f32.xlu1 %v1817_v20 }
 0x485   :  { %v1422_v21 = vpop.f32.mrf.mxu0 }
 0x486   :  { %v1808_v24 = vmul.f32 0.35355338, %v1422_v21 }
 0x487   :  { %v17920_v25 = vpop.f32.mrf.mxu0 }
 0x488   :  { %v1820_v29 = vsel %vm1199_vm2, %v1808_v24, -inf }
 0x489   :  { %v1498_v32 = vpop.f32.mrf.mxu1  ;;  %1821 = vmax.xlane.f32.xlu0 %v1820_v29  ;;  %v1574_v34 = vpop.f32.mrf.mxu0 }
 0x48a   :  { %v1809_v35 = vmul.f32 0.35355338, %v1498_v32  ;;  %v1810_v36 = vmul.f32 0.35355338, %v1574_v34 }
 0x48b   :  { %v17925_v37 = vpop.f32.mrf.mxu1  ;;  %v17930_v38 = vpop.f32.mrf.mxu0 }
 0x48c   :  { %v1823_v39 = vsel %vm1199_vm2, %v1809_v35, -inf  ;;  %v1826_v40 = vsel %vm1199_vm2, %v1810_v36, -inf }
 0x48d   :  { %v1650_v41 = vpop.f32.mrf.mxu1  ;;  %1824 = vmax.xlane.f32.xlu0 %v1823_v39  ;;  %1827 = vmax.xlane.f32.xlu1 %v1826_v40  ;;  %v1726_v42 = vpop.f32.mrf.mxu0 }
 0x48e   :  { %v1811_v43 = vmul.f32 0.35355338, %v1650_v41  ;;  %v1812_v44 = vmul.f32 0.35355338, %v1726_v42 }
 0x48f   :  { %v17935_v45 = vpop.f32.mrf.mxu1  ;;  %v17940_v46 = vpop.f32.mrf.mxu0 }
 0x490   :  { %v1829_v47 = vsel %vm1199_vm2, %v1811_v43, -inf  ;;  %v1832_v48 = vsel %vm1199_vm2, %v1812_v44, -inf }
 0x491   :  { %v1802_v49 = vpop.f32.mrf.mxu1  ;;  %1830 = vmax.xlane.f32.xlu0 %v1829_v47  ;;  %1833 = vmax.xlane.f32.xlu1 %v1832_v48 }
 0x492   :  { %v1813_v50 = vmul.f32 0.35355338, %v1802_v49 }
 0x493   :  { %v17945_v51 = vpop.f32.mrf.mxu1 }
 0x494   :  { %v1835_v52 = vsel %vm1199_vm2, %v1813_v50, -inf }
 0x495   :  { %1836 = vmax.xlane.f32.xlu0 %v1835_v52 }
 0x4a2   :  { %1179 = vrot.lane.b32.xlu1 %v21001_v4, %s20470_s15 }
 0x4a6   :  { %1185 = vrot.lane.b32.xlu1 %v21001_v4, %s20469_s3 }
 0x4aa   :  { %1187 = vrot.lane.b32.xlu1 %v21010_v7, %s20469_s3 }
 0x4ab   :  { %1181 = vrot.lane.b32.xlu0 %v21010_v7, %s20470_s15  ;;  %v1816_v60 = vpop.xlane.xlu0 %1815 }
 0x4ac   :  { %v1838_v61 = vsub.f32 %v1806_v9, %v1816_v60 }
 0x4ae   :  { %v1846_v63 = vmul.f32 1.442695, %v1838_v61 }
 0x4af   :  { %v1819_v53 = vpop.xlane.xlu1 %1818 }
 0x4b0   :  { %v1839_v57 = vsub.f32 %v1807_v15, %v1819_v53 }
 0x4b2   :  { %v1848_v62 = vmul.f32 1.442695, %v1839_v57 }
 0x4b4   :  { %19196 = vpow2.f32 %v1848_v62 }
 0x4b5   :  { %19198 = vpow2.f32 %v1846_v63 }
 0x4c1   :  { %v19197_v0 = vpop.eup %19196 }
 0x4c2   :  { %v1865_v1 = vsel %vm1199_vm2, %v19197_v0, 0.0  ;;  %v19199_v2 = vpop.eup %19198 }
 0x4c3   :  { %v1862_v3 = vsel %vm1199_vm2, %v19199_v2, 0.0 }
 0x4ca   :  { %1866 = vadd.xlane.f32.xlu0 %v1865_v1 }
 0x4ce   :  { %1863 = vadd.xlane.f32.xlu1 %v1862_v3 }
 0x512   :  { %v1822_v6 = vpop.xlane.xlu0 %1821 }
 0x513   :  { %v1840_v8 = vsub.f32 %v1808_v24, %v1822_v6 }
 0x515   :  { %v1850_v10 = vmul.f32 1.442695, %v1840_v8 }
 0x516   :  { %v1828_v12 = vpop.xlane.xlu1 %1827  ;;  %v1825_v14 = vpop.xlane.xlu0 %1824 }
 0x517   :  { %19200 = vpow2.f32 %v1850_v10  ;;  %v1842_v15 = vsub.f32 %v1810_v36, %v1828_v12  ;;  %v1841_v9 = vsub.f32 %v1809_v35, %v1825_v14 }
 0x519   :  { %v1854_v18 = vmul.f32 1.442695, %v1842_v15  ;;  %v1852_v20 = vmul.f32 1.442695, %v1841_v9 }
 0x51a   :  { %v1834_v21 = vpop.xlane.xlu1 %1833  ;;  %v1831_v25 = vpop.xlane.xlu0 %1830 }
 0x51b   :  { %19202 = vpow2.f32 %v1854_v18  ;;  %v1844_v29 = vsub.f32 %v1812_v44, %v1834_v21  ;;  %v1843_v32 = vsub.f32 %v1811_v43, %v1831_v25 }
 0x51c   :  { %19204 = vpow2.f32 %v1852_v20 }
 0x51d   :  { %v1858_v34 = vmul.f32 1.442695, %v1844_v29  ;;  %v1856_v37 = vmul.f32 1.442695, %v1843_v32 }
 0x51e   :  { %v1837_v38 = vpop.xlane.xlu0 %1836 }
 0x51f   :  { %19206 = vpow2.f32 %v1858_v34  ;;  %v1845_v39 = vsub.f32 %v1813_v50, %v1837_v38  ;;  %v1180_v50 = vpop.permute.xlu1 %1179  ;;  %v665_v38 = vld [vmem:[%s22997_s18] sm:$0xff] }
 0x520   :  { %19208 = vpow2.f32 %v1856_v37 }
 0x521   :  { %v1860_v24 = vmul.f32 1.442695, %v1845_v39 }
 0x522   :  { %v1182_v52 = vpop.permute.xlu0 %1181 }
 0x523   :  { %19210 = vpow2.f32 %v1860_v24  ;;  %v1186_v51 = vpop.permute.xlu1 %1185 }
 0x524   :  { %v19201_v40 = vpop.eup %19200 }
 0x525   :  { %v1868_v36 = vsel %vm1199_vm2, %v19201_v40, 0.0 }
 0x526   :  { %1869 = vadd.xlane.f32.xlu1 %v1868_v36 }
 0x527   :  { %v1188_v53 = vpop.permute.xlu1 %1187 }
 0x528   :  { %v19203_v35 = vpop.eup %19202 }
 0x529   :  { %v19205_v41 = vpop.eup %19204  ;;  %v1874_v42 = vsel %vm1199_vm2, %v19203_v35, 0.0 }
 0x52a   :  { %1875 = vadd.xlane.f32.xlu1 %v1874_v42  ;;  %v1871_v43 = vsel %vm1199_vm2, %v19205_v41, 0.0 }
 0x52b   :  { %1872 = vadd.xlane.f32.xlu0 %v1871_v43 }
 0x52c   :  { %v21043_v44 = vpop.eup %19206 }
 0x52d   :  { %v21045_v45 = vpop.eup %19208  ;;  %v1880_v46 = vsel %vm1199_vm2, %v21043_v44, 0.0 }
 0x52e   :  { %1881 = vadd.xlane.f32.xlu1 %v1880_v46  ;;  %v1877_v47 = vsel %vm1199_vm2, %v21045_v45, 0.0  ;;  %v668_v46 = vld [vmem:[%s22997_s18 + $0x18] sm:$0xff] }
 0x52f   :  { %1878 = vadd.xlane.f32.xlu0 %v1877_v47 }
 0x530   :  { %v21051_v48 = vpop.eup %19210 }
 0x531   :  { %v1883_v49 = vsel %vm1199_vm2, %v21051_v48, 0.0 }
 0x533   :  { %1884 = vadd.xlane.f32.xlu0 %v1883_v49 }
 0x53f   :  { %1193 = vrot.lane.b32.xlu1 %v21010_v7, %s20472_s6 }
 0x549   :  { %1191 = vrot.lane.b32.xlu0 %v21001_v4, %s20472_s6 }
 0x553   :  { %v1867_v57 = vpop.xlane.xlu0 %1866 }
 0x554   :  { %19212 = vrcp.f32 %v1867_v57 }
 0x557   :  { %v1864_v60 = vpop.xlane.xlu1 %1863 }
 0x558   :  { %19214 = vrcp.f32 %v1864_v60 }
 0x561   :  { %v19213_v61 = vpop.eup %19212 }
 0x562   :  { %v1895_v62 = vmul.f32 %v19213_v61, %v19197_v0 }
 0x564   :  { %17954 = vmatmul.mubr.msk.f32.vlgmr.msra.gmra.mxu1 %vm1199_vm2, %v1895_v62 }
 0x565   :  { %v19215_v63 = vpop.eup %19214  ;;  %17962 = vmatpush3.msra.mxu1 %v1182_v52  ;;  %17963 = vmatprep.mubr.msk.f32.mxu1 %vm20471_vm1, %v22918_v33 }
 0x566   :  { %v1894_v7 = vmul.f32 %v19215_v63, %v19199_v2  ;;  %17971 = vmatprep.subr.mxu1 %v22918_v33 }
 0x568   :  { %17949 = vmatmul.mubr.msk.f32.vlgmr.msra.gmra.mxu0 %vm1199_vm2, %v1894_v7 }
 0x569   :  { %17957 = vmatpush3.msra.mxu0 %v1180_v50  ;;  %17958 = vmatprep.mubr.msk.f32.mxu0 %vm20471_vm1, %v22918_v33 }
 0x56a   :  { %17966 = vmatprep.subr.mxu0 %v22918_v33 }
 0x5af   :  { %v1870_v4 = vpop.xlane.xlu1 %1869 }
 0x5b0   :  { %19216 = vrcp.f32 %v1870_v4 }
 0x5b3   :  { %v1876_v0 = vpop.xlane.xlu1 %1875 }
 0x5b4   :  { %19218 = vrcp.f32 %v1876_v0  ;;  %v1873_v1 = vpop.xlane.xlu0 %1872  ;;  %v21102_v0 = vadd.f32 %v20911_v26, %v20915_v28 }
 0x5b5   :  { %19220 = vrcp.f32 %v1873_v1 }
 0x5b7   :  { %v1882_v3 = vpop.xlane.xlu1 %1881 }
 0x5b8   :  { %19222 = vrcp.f32 %v1882_v3  ;;  %v1879_v6 = vpop.xlane.xlu0 %1878 }
 0x5b9   :  { %19224 = vrcp.f32 %v1879_v6  ;;  %v21112_v6 = vadd.f32 %v20915_v28, %v20913_v27 }
 0x5bb   :  { %v1194_v39 = vpop.permute.xlu1 %1193 }
 0x5bc   :  { %v1885_v2 = vpop.xlane.xlu0 %1884 }
 0x5bd   :  { %v19217_v8 = vpop.eup %19216  ;;  %19226 = vrcp.f32 %v1885_v2 }
 0x5be   :  { %v1896_v10 = vmul.f32 %v19217_v8, %v19201_v40 }
 0x5c0   :  { %17959 = vmatmul.mubr.msk.f32.vlgmr.msra.gmra.mxu0 %vm1199_vm2, %v1896_v10  ;;  %v1192_v18 = vpop.permute.xlu0 %1191  ;;  %v2822_v20 = vadd.f32 %v1896_v10, %v1894_v7 }
 0x5c1   :  { %v19219_v12 = vpop.eup %19218  ;;  %17967 = vmatpush3.msra.mxu0 %v1186_v51  ;;  %17968 = vmatprep.mubr.msk.f32.mxu0 %vm20471_vm1, %v22918_v33 }
 0x5c2   :  { %v19221_v14 = vpop.eup %19220  ;;  %17976 = vmatprep.subr.mxu0 %v22918_v33  ;;  %v1898_v15 = vmul.f32 %v19219_v12, %v19203_v35 }
 0x5c3   :  { %v1897_v9 = vmul.f32 %v19221_v14, %v19205_v41 }
 0x5c4   :  { %17969 = vmatmul.mubr.msk.f32.vlgmr.msra.gmra.mxu0 %vm1199_vm2, %v1898_v15  ;;  %v2824_v29 = vadd.f32 %v2822_v20, %v1898_v15  ;;  %v16942_v20 = vld [vmem:[#allocation11] ss:$0 sm:$0xff] }
 0x5c5   :  { %v19223_v21 = vpop.eup %19222  ;;  %17964 = vmatmul.mubr.msk.f32.vlgmr.msra.gmra.mxu1 %vm1199_vm2, %v1897_v9  ;;  %17977 = vmatpush3.msra.mxu0 %v1192_v18  ;;  %v2823_v24 = vadd.f32 %v1897_v9, %v1895_v62 }
 0x5c6   :  { %v19225_v25 = vpop.eup %19224  ;;  %17972 = vmatpush3.msra.mxu1 %v1188_v53  ;;  %17973 = vmatprep.mubr.msk.f32.mxu1 %vm20471_vm1, %v22918_v33  ;;  %v1900_v32 = vmul.f32 %v19223_v21, %v21043_v44  ;;  %v666_v44 = vld [vmem:[%s22997_s18 + $0x8] sm:$0xff] }
 0x5c7   :  { %17978 = vmatprep.mubr.msk.f32.mxu0 %vm20471_vm1, %v22918_v33  ;;  %17981 = vmatprep.subr.mxu1 %v22918_v33  ;;  %v1899_v34 = vmul.f32 %v19225_v25, %v21045_v45  ;;  %v667_v45 = vld [vmem:[%s22997_s18 + $0x10] sm:$0xff] }
 0x5c8   :  { %17979 = vmatmul.mubr.msk.f32.vlgmr.msra.gmra.mxu0 %vm1199_vm2, %v1900_v32  ;;  %v2826_v37 = vadd.f32 %v2824_v29, %v1900_v32  ;;  %17986 = vmatprep.subr.mxu0 %v666_v44 }
 0x5c9   :  { %17974 = vmatmul.mubr.msk.f32.vlgmr.msra.gmra.mxu1 %vm1199_vm2, %v1899_v34  ;;  %v2825_v35 = vadd.f32 %v2823_v24, %v1899_v34  ;;  %17987 = vmatpush3.msra.mxu0 %v666_v44 }
 0x5ca   :  { %v19227_v40 = vpop.eup %19226  ;;  %v2828_v36 = vmul.f32 0.25, %v2826_v37  ;;  %17982 = vmatpush3.msra.mxu1 %v1194_v39  ;;  %17983 = vmatprep.mubr.msk.f32.mxu1 %vm20471_vm1, %v22918_v33 }
 0x5cb   :  { %v1901_v41 = vmul.f32 %v19227_v40, %v21051_v48  ;;  %17991 = vmatprep.subr.mxu1 %v665_v38  ;;  %17996 = vmatprep.subr.mxu0 %v667_v45 }
 0x5cc   :  { %4922 = vst.msk [vmem:[#allocation55] sm:$0xff] %vm1199_vm2, %v2828_v36  ;;  %v21127_v36 = vadd.f32 %v20915_v28, %v20920_v31 }
 0x5cd   :  { %17984 = vmatmul.mubr.msk.f32.vlgmr.msra.gmra.mxu1 %vm1199_vm2, %v1901_v41  ;;  %v2827_v42 = vadd.f32 %v2825_v35, %v1901_v41 }
 0x5ce   :  { %17992 = vmatpush3.msra.mxu1 %v665_v38 }
 0x5cf   :  { %v2829_v43 = vmul.f32 0.25, %v2827_v42  ;;  %18001 = vmatprep.subr.mxu1 %v668_v46 }
 0x5d1   :  { %4923 = vst.msk [vmem:[#allocation55 + $0x8] sm:$0xff] %vm1199_vm2, %v2829_v43 }
 0x624   :  { %v2044_v47 = vpop.f32.mrf.mxu1 }
 0x626   :  { %v17955_v49 = vpop.f32.mrf.mxu1 }
 0x627   :  { %v671_v49 = vld [vmem:[%s22998_s5 + $0x8] sm:$0xff] }
 0x628   :  { %v1971_v48 = vpop.f32.mrf.mxu0 }
 0x629   :  { %17993 = vmatprep.mubr.msk.f32.mxu1 %vm1199_vm2, %v1971_v48  ;;  %v670_v48 = vld [vmem:[%s22998_s5] sm:$0xff] }
 0x62a   :  { %v17950_v50 = vpop.f32.mrf.mxu0  ;;  %17994 = vmatmul.mubr.msk.f32.vlgmr.msra.gmra.mxu1 %vm1199_vm2, %v2044_v47  ;;  %v672_v47 = vld [vmem:[%s22998_s5 + $0x10] sm:$0xff] }
 0x62b   :  { %18002 = vmatpush3.msra.mxu1 %v668_v46  ;;  %v673_v46 = vld [vmem:[%s22998_s5 + $0x18] sm:$0xff] }
 0x62c   :  { %18017 = vmatprep.subr.mxu1 %v22918_v33 }
 0x680   :  { %v2117_v51 = vpop.f32.mrf.mxu0 }
 0x681   :  { %17988 = vmatprep.mubr.msk.f32.mxu0 %vm1199_vm2, %v2117_v51 }
 0x682   :  { %v17960_v52 = vpop.f32.mrf.mxu0 }
 0x684   :  { %v2263_v53 = vpop.f32.mrf.mxu0 }
 0x685   :  { %v2190_v57 = vpop.f32.mrf.mxu1 }
 0x686   :  { %17989 = vmatmul.mubr.msk.f32.vlgmr.msra.gmra.mxu0 %vm1199_vm2, %v2190_v57  ;;  %v17970_v60 = vpop.f32.mrf.mxu0 }
 0x687   :  { %v17965_v61 = vpop.f32.mrf.mxu1  ;;  %17998 = vmatprep.mubr.msk.f32.mxu0 %vm1199_vm2, %v2263_v53  ;;  %17997 = vmatpush3.msra.mxu0 %v667_v45 }
 0x688   :  { %v2409_v62 = vpop.f32.mrf.mxu0  ;;  %18006 = vmatprep.subr.mxu0 %v673_v46 }
 0x689   :  { %v2336_v63 = vpop.f32.mrf.mxu1  ;;  %18003 = vmatprep.mubr.msk.f32.mxu1 %vm1199_vm2, %v2409_v62  ;;  %v16943_v62 = vld [vmem:[#allocation25] ss:$0 sm:$0xff] }
 0x68a   :  { %17999 = vmatmul.mubr.msk.f32.vlgmr.msra.gmra.mxu0 %vm1199_vm2, %v2336_v63  ;;  %v17980_v7 = vpop.f32.mrf.mxu0 }
 0x68b   :  { %v17975_v4 = vpop.f32.mrf.mxu1  ;;  %18007 = vmatpush3.msra.mxu0 %v673_v46  ;;  %v16944_v7 = vld [vmem:[#allocation26] ss:$0 sm:$0xff] }
 0x68c   :  { %18008 = vmatprep.subr.mxu0 %v672_v47 }
 0x68d   :  { %v2482_v1 = vpop.f32.mrf.mxu1  ;;  %18009 = vmatpush3.msra.mxu0 %v672_v47 }
 0x68e   :  { %18004 = vmatmul.mubr.msk.f32.vlgmr.msra.gmra.mxu1 %vm1199_vm2, %v2482_v1  ;;  %18010 = vmatprep.subr.mxu0 %v671_v49 }
 0x68f   :  { %18018 = vmatpush3.xpose.msk.msra.mxu1 %vm1199_vm2, %v21102_v0  ;;  %v17985_v3 = vpop.f32.mrf.mxu1  ;;  %18021 = vmatprep.mubr.msk.f32.mxu1 %vm20471_vm1, %v22918_v33 }
 0x690   :  { %18019 = vmatprep.subr.mxu1 %v22918_v33  ;;  %18011 = vmatpush3.msra.mxu0 %v671_v49 }
 0x691   :  { %18012 = vmatprep.subr.mxu0 %v670_v48 }
 0x692   :  { %18013 = vmatpush3.msra.mxu0 %v670_v48 }
 0x693   :  { %18020 = vmatpush3.xpose.msk.msra.mxu1 %vm1199_vm2, %v21112_v6  ;;  %18024 = vmatprep.subr.mxu0 %v22918_v33 }
 0x694   :  { %18031 = vmatprep.subr.mxu1 %v22918_v33 }
 0x6ea   :  { %v17995_v2 = vpop.f32.mrf.mxu1 }
 0x6ec   :  { %v2639_v14 = vpop.f32.mrf.mxu1 }
 0x746   :  { %v17990_v26 = vpop.f32.mrf.mxu0 }
 0x747   :  { %v2645_v12 = vadd.f32 %v17995_v2, %v17990_v26 }
 0x748   :  { %v2558_v8 = vpop.f32.mrf.mxu0 }
 0x749   :  { %v2640_v9 = vadd.f32 %v2639_v14, %v2558_v8  ;;  %v16945_v14 = vld [vmem:[#allocation13] ss:$0 sm:$0xff] }
 0x74a   :  { %v18000_v10 = vpop.f32.mrf.mxu0 }
 0x74b   :  { %v2730_v18 = vadd.f32 %v18000_v10, %v2645_v12 }
 0x74c   :  { %v2720_v15 = vpop.f32.mrf.mxu0 }
 0x74d   :  { %v2729_v25 = vadd.f32 %v2720_v15, %v2640_v9 }
 0x74e   :  { %v18005_v21 = vpop.f32.mrf.mxu1 }
 0x74f   :  { %v2813_v29 = vadd.f32 %v18005_v21, %v2730_v18 }
 0x750   :  { %v2803_v27 = vpop.f32.mrf.mxu1 }
 0x751   :  { %v2821_v32 = vadd.f32 %v16942_v20, %v2813_v29  ;;  %v2812_v34 = vadd.f32 %v2803_v27, %v2729_v25 }
 0x753   :  { %v2820_v37 = vadd.f32 %v16942_v20, %v2812_v34  ;;  %v2831_v38 = vadd.f32 %v2821_v32, %v20900_v22 }
 0x755   :  { %v2835_v39 = vsel %vm718_vm0, %v2831_v38, 0.0  ;;  %v2830_v24 = vadd.f32 %v2820_v37, %v20885_v16 }
 0x756   :  { %2836 = vadd.xlane.f32.xlu1 %v2835_v39 }
 0x757   :  { %v2832_v40 = vsel %vm718_vm0, %v2830_v24, 0.0 }
 0x758   :  { %2833 = vadd.xlane.f32.xlu0 %v2832_v40 }
 0x767   :  { %925 = vrot.lane.b32.xlu1 %v21102_v0, %s20470_s15 }
 0x76b   :  { %923 = vrot.lane.b32.xlu1 %v21112_v6, %s20470_s15 }
 0x76f   :  { %927 = vrot.lane.b32.xlu1 %v21127_v36, %s20470_s15 }
 0x773   :  { %935 = vrot.lane.b32.xlu1 %v21127_v36, %s20469_s3 }
 0x7df   :  { %v2837_v16 = vpop.xlane.xlu1 %2836 }
 0x7e0   :  { %v2840_v22 = vmul.f32 0.03125, %v2837_v16 }
 0x7e1   :  { %v2834_v35 = vpop.xlane.xlu0 %2833 }
 0x7e2   :  { %v2839_v41 = vmul.f32 0.03125, %v2834_v35  ;;  %v2842_v42 = vsub.f32 %v2831_v38, %v2840_v22 }
 0x7e4   :  { %v2841_v43 = vsub.f32 %v2830_v24, %v2839_v41  ;;  %v2844_v28 = vmul.f32 %v2842_v42, %v2842_v42  ;;  %v21260_v41 = vadd.f32 %v20973_v54, %v20977_v56 }
 0x7e6   :  { %v2843_v44 = vmul.f32 %v2841_v43, %v2841_v43  ;;  %v2848_v31 = vsel %vm718_vm0, %v2844_v28, 0.0 }
 0x7e8   :  { %v2845_v45 = vsel %vm718_vm0, %v2843_v44, 0.0  ;;  %v21266_v44 = vadd.f32 %v20977_v56, %v20975_v55 }
 0x7e9   :  { %2846 = vadd.xlane.f32.xlu0 %v2845_v45 }
 0x7ed   :  { %2849 = vadd.xlane.f32.xlu0 %v2848_v31 }
 0x803   :  { %929 = vrot.lane.b32.xlu0 %v20918_v30, %s20470_s15 }
 0x807   :  { %933 = vrot.lane.b32.xlu0 %v21102_v0, %s20469_s3 }
 0x80b   :  { %937 = vrot.lane.b32.xlu0 %v20918_v30, %s20469_s3 }
 0x80f   :  { %931 = vrot.lane.b32.xlu0 %v21112_v6, %s20469_s3 }
 0x813   :  { %941 = vrot.lane.b32.xlu0 %v21102_v0, %s20472_s6 }
 0x817   :  { %945 = vrot.lane.b32.xlu0 %v20918_v30, %s20472_s6 }
 0x81b   :  { %939 = vrot.lane.b32.xlu0 %v21112_v6, %s20472_s6 }
 0x872   :  { %v2847_v50 = vpop.xlane.xlu0 %2846 }
 0x873   :  { %v2851_v51 = vmul.f32 0.03125, %v2847_v50 }
 0x875   :  { %v2853_v52 = vadd.f32 1e-05, %v2851_v51 }
 0x876   :  { %v2850_v53 = vpop.xlane.xlu0 %2849 }
 0x877   :  { %19228 = vrsqrt.f32 %v2853_v52  ;;  %v2852_v57 = vmul.f32 0.03125, %v2850_v53 }
 0x879   :  { %v2854_v60 = vadd.f32 1e-05, %v2852_v57 }
 0x87a   :  { %v21176_v20 = vpop.permute.xlu0 %929 }
 0x87b   :  { %19230 = vrsqrt.f32 %v2854_v60 }
 0x87e   :  { %v21206_v29 = vpop.permute.xlu0 %933 }
 0x882   :  { %v21208_v27 = vpop.permute.xlu0 %937 }
 0x884   :  { %v19229_v61 = vpop.eup %19228 }
 0x885   :  { %v2857_v63 = vmul.f32 %v19229_v61, %v2841_v43 }
 0x886   :  { %v21212_v34 = vpop.permute.xlu0 %931 }
 0x887   :  { %v2865_v4 = vmul.f32 %v16943_v62, %v2857_v63 }
 0x888   :  { %v19231_v1 = vpop.eup %19230 }
 0x889   :  { %v2858_v3 = vmul.f32 %v19231_v1, %v2842_v42  ;;  %v21154_v26 = vadd.f32 %v16944_v7, %v2865_v4 }
 0x88a   :  { %v21219_v38 = vpop.permute.xlu0 %941 }
 0x88b   :  { %v2875_v2 = vadd.f32 %v21154_v26, %v20887_v17  ;;  %v2866_v8 = vmul.f32 %v16943_v62, %v2858_v3  ;;  %v21172_v17 = vpop.permute.xlu1 %925 }
 0x88d   :  { %18014 = vmatprep.mubr.msk.f32.mxu0 %vm718_vm0, %v2875_v2  ;;  %v21159_v10 = vadd.f32 %v16944_v7, %v2866_v8 }
 0x88e   :  { %v21231_v40 = vpop.permute.xlu0 %945 }
 0x88f   :  { %v2876_v12 = vadd.f32 %v21159_v10, %v20902_v23  ;;  %v21174_v23 = vpop.permute.xlu1 %923 }
 0x891   :  { %18015 = vmatmul.mubr.msk.f32.vlgmr.msra.gmra.mxu0 %vm718_vm0, %v2876_v12 }
 0x892   :  { %18025 = vmatpush3.xpose.msk.msra.mxu0 %vm1199_vm2, %v20918_v30  ;;  %18028 = vmatprep.mubr.msk.f32.mxu0 %vm20471_vm1, %v22918_v33  ;;  %v21248_v22 = vpop.permute.xlu0 %939 }
 0x893   :  { %18026 = vmatprep.subr.mxu0 %v22918_v33  ;;  %v21189_v25 = vpop.permute.xlu1 %927 }
 0x896   :  { %18027 = vmatpush3.xpose.msk.msra.mxu0 %vm1199_vm2, %v21127_v36 }
 0x897   :  { %18038 = vmatprep.subr.mxu0 %v22918_v33  ;;  %v21210_v32 = vpop.permute.xlu1 %935 }
 0x951   :  { %v18016_v15 = vpop.f32.mrf.mxu0 }
 0x952   :  { %v2961_v9 = vadd.f32 %v18016_v15, %v16945_v14 }
 0x953   :  { %v2955_v18 = vpop.f32.mrf.mxu0 }
 0x954   :  { %v2956_v21 = vadd.f32 %v16945_v14, %v2955_v18  ;;  %18029 = vmatmul.mubr.msk.f32.vlgmr.msra.gmra.mxu0 %vm1199_vm2, %v2961_v9  ;;  %2968 = vrot.lane.b32.xlu1 %v2961_v9, %s20470_s15 }
 0x955   :  { %18039 = vmatpush3.xpose.msk.msra.mxu0 %vm1199_vm2, %v21176_v20  ;;  %18042 = vmatprep.mubr.msk.f32.mxu0 %vm20471_vm1, %v22918_v33 }
 0x956   :  { %2974 = vrot.lane.b32.xlu0 %v2956_v21, %s20472_s6  ;;  %18022 = vmatmul.mubr.msk.f32.vlgmr.msra.gmra.mxu1 %vm1199_vm2, %v2956_v21 }
 0x957   :  { %18032 = vmatpush3.xpose.msk.msra.mxu1 %vm1199_vm2, %v21172_v17  ;;  %18040 = vmatprep.subr.mxu0 %v22918_v33 }
 0x958   :  { %2966 = vrot.lane.b32.xlu1 %v2956_v21, %s20470_s15  ;;  %18033 = vmatprep.subr.mxu1 %v22918_v33 }
 0x959   :  { %18041 = vmatpush3.xpose.msk.msra.mxu0 %vm1199_vm2, %v21189_v25  ;;  %18035 = vmatprep.mubr.msk.f32.mxu1 %vm20471_vm1, %v22918_v33 }
 0x95a   :  { %18052 = vmatprep.subr.mxu0 %v22918_v33 }
 0x95b   :  { %18034 = vmatpush3.xpose.msk.msra.mxu1 %vm1199_vm2, %v21174_v23 }
 0x95c   :  { %2972 = vrot.lane.b32.xlu1 %v2961_v9, %s20469_s3  ;;  %18045 = vmatprep.subr.mxu1 %v22918_v33 }
 0x960   :  { %2970 = vrot.lane.b32.xlu1 %v2956_v21, %s20469_s3 }
 0x964   :  { %943 = vrot.lane.b32.xlu1 %v21127_v36, %s20472_s6 }
 0x968   :  { %2976 = vrot.lane.b32.xlu1 %v2961_v9, %s20472_s6 }
 0x9c6   :  { %v2969_v37 = vpop.permute.xlu1 %2968 }
 0x9c7   :  { %18043 = vmatmul.mubr.msk.f32.vlgmr.msra.gmra.mxu0 %vm1199_vm2, %v2969_v37 }
 0x9c8   :  { %18053 = vmatpush3.xpose.msk.msra.mxu0 %vm1199_vm2, %v21208_v27  ;;  %18056 = vmatprep.mubr.msk.f32.mxu0 %vm20471_vm1, %v22918_v33  ;;  %v2975_v42 = vpop.permute.xlu0 %2974 }
 0x9c9   :  { %18054 = vmatprep.subr.mxu0 %v22918_v33 }
 0x9ca   :  { %v2967_v39 = vpop.permute.xlu1 %2966 }
 0x9cb   :  { %18036 = vmatmul.mubr.msk.f32.vlgmr.msra.gmra.mxu1 %vm1199_vm2, %v2967_v39 }
 0x9cc   :  { %18046 = vmatpush3.xpose.msk.msra.mxu1 %vm1199_vm2, %v21206_v29  ;;  %18055 = vmatpush3.xpose.msk.msra.mxu0 %vm1199_vm2, %v21210_v32 }
 0x9cd   :  { %18066 = vmatprep.subr.mxu0 %v22918_v33  ;;  %18047 = vmatprep.subr.mxu1 %v22918_v33 }
 0x9ce   :  { %v2973_v24 = vpop.permute.xlu1 %2972  ;;  %18049 = vmatprep.mubr.msk.f32.mxu1 %vm20471_vm1, %v22918_v33 }
 0x9cf   :  { %18057 = vmatmul.mubr.msk.f32.vlgmr.msra.gmra.mxu0 %vm1199_vm2, %v2973_v24 }
 0x9d0   :  { %18048 = vmatpush3.xpose.msk.msra.mxu1 %vm1199_vm2, %v21212_v34  ;;  %18067 = vmatpush3.xpose.msk.msra.mxu0 %vm1199_vm2, %v21231_v40 }
 0x9d1   :  { %18059 = vmatprep.subr.mxu1 %v22918_v33  ;;  %18068 = vmatprep.subr.mxu0 %v22918_v33 }
 0x9d2   :  { %v2971_v16 = vpop.permute.xlu1 %2970  ;;  %18070 = vmatprep.mubr.msk.f32.mxu0 %vm20471_vm1, %v22918_v33 }
 0x9d3   :  { %18050 = vmatmul.mubr.msk.f32.vlgmr.msra.gmra.mxu1 %vm1199_vm2, %v2971_v16 }
 0x9d4   :  { %18060 = vmatpush3.xpose.msk.msra.mxu1 %vm1199_vm2, %v21219_v38  ;;  %18063 = vmatprep.mubr.msk.f32.mxu1 %vm20471_vm1, %v22918_v33 }
 0x9d5   :  { %18061 = vmatprep.subr.mxu1 %v22918_v33 }
 0x9d6   :  { %v21250_v35 = vpop.permute.xlu1 %943 }
 0x9d7   :  { %18069 = vmatpush3.xpose.msk.msra.mxu0 %vm1199_vm2, %v21250_v35 }
 0x9d8   :  { %18062 = vmatpush3.xpose.msk.msra.mxu1 %vm1199_vm2, %v21248_v22  ;;  %18087 = vmatprep.subr.mxu0 %v22918_v33 }
 0x9d9   :  { %18073 = vmatprep.subr.mxu1 %v22918_v33 }
 0x9da   :  { %v2977_v43 = vpop.permute.xlu1 %2976 }
 0x9db   :  { %18064 = vmatmul.mubr.msk.f32.vlgmr.msra.gmra.mxu1 %vm1199_vm2, %v2975_v42  ;;  %18071 = vmatmul.mubr.msk.f32.vlgmr.msra.gmra.mxu0 %vm1199_vm2, %v2977_v43 }
 0x9dc   :  { %18074 = vmatpush3.msra.mxu1 %v21260_v41  ;;  %18077 = vmatprep.mubr.msk.f32.mxu1 %vm20471_vm1, %v22918_v33 }
 0x9dd   :  { %18075 = vmatprep.subr.mxu1 %v22918_v33  ;;  %18091 = vmatprep.mubr.msk.f32.mxu0 %vm20471_vm1, %v22918_v33 }
 0x9de   :  { %18076 = vmatpush3.msra.mxu1 %v21266_v44 }
 0x9df   :  { %18080 = vmatprep.subr.mxu1 %v22918_v33 }
 0xa14   :  { %v3126_v54 = vpop.f32.mrf.mxu0 }
 0xa15   :  { %v3587_v45 = vmul.f32 0.35355338, %v3126_v54  ;;  %v21303_v54 = vadd.f32 %v20977_v56, %v20982_v59 }
 0xa16   :  { %v3050_v28 = vpop.f32.mrf.mxu1  ;;  %v18030_v55 = vpop.f32.mrf.mxu0 }
 0xa17   :  { %v3586_v31 = vmul.f32 0.35355338, %v3050_v28  ;;  %v3598_v46 = vsel %vm3594_vm3, %v3587_v45, -inf }
 0xa18   :  { %3599 = vmax.xlane.f32.xlu1 %v3598_v46  ;;  %v18023_v47 = vpop.f32.mrf.mxu1 }
 0xa19   :  { %v3595_v49 = vsel %vm3594_vm3, %v3586_v31, -inf }
 0xa1a   :  { %3596 = vmax.xlane.f32.xlu0 %v3595_v49 }
 0xa87   :  { %v3278_v48 = vpop.f32.mrf.mxu0 }
 0xa88   :  { %v3589_v57 = vmul.f32 0.35355338, %v3278_v48 }
 0xa89   :  { %v18044_v50 = vpop.f32.mrf.mxu0 }
 0xa8a   :  { %v3604_v7 = vsel %vm3594_vm3, %v3589_v57, -inf }
 0xa8b   :  { %v3202_v51 = vpop.f32.mrf.mxu1 }
 0xa8c   :  { %v3588_v52 = vmul.f32 0.35355338, %v3202_v51 }
 0xa8d   :  { %v18037_v53 = vpop.f32.mrf.mxu1 }
 0xa8e   :  { %v3601_v60 = vsel %vm3594_vm3, %v3588_v52, -inf }
 0xa8f   :  { %v3430_v61 = vpop.f32.mrf.mxu0  ;;  %3602 = vmax.xlane.f32.xlu0 %v3601_v60 }
 0xa90   :  { %v3591_v63 = vmul.f32 0.35355338, %v3430_v61 }
 0xa91   :  { %v18058_v62 = vpop.f32.mrf.mxu0 }
 0xa92   :  { %v3610_v2 = vsel %vm3594_vm3, %v3591_v63, -inf }
 0xa93   :  { %3605 = vmax.xlane.f32.xlu0 %v3604_v7  ;;  %v3354_v4 = vpop.f32.mrf.mxu1 }
 0xa94   :  { %v3590_v1 = vmul.f32 0.35355338, %v3354_v4 }
 0xa95   :  { %v18051_v3 = vpop.f32.mrf.mxu1 }
 0xa96   :  { %v3607_v8 = vsel %vm3594_vm3, %v3590_v1, -inf }
 0xa97   :  { %3611 = vmax.xlane.f32.xlu0 %v3610_v2  ;;  %3608 = vmax.xlane.f32.xlu1 %v3607_v8 }
 0xa9b   :  { %v3506_v12 = vpop.f32.mrf.mxu1  ;;  %v3582_v14 = vpop.f32.mrf.mxu0 }
 0xa9c   :  { %v3593_v15 = vmul.f32 0.35355338, %v3582_v14  ;;  %v21293_v39 = vmul.f32 0.35355338, %v3506_v12 }
 0xa9d   :  { %v18065_v9 = vpop.f32.mrf.mxu1  ;;  %v18072_v18 = vpop.f32.mrf.mxu0 }
 0xa9e   :  { %v3616_v21 = vsel %vm3594_vm3, %v3593_v15, -inf  ;;  %v3613_v42 = vsel %vm3594_vm3, %v21293_v39, -inf }
 0xa9f   :  { %3617 = vmax.xlane.f32.xlu0 %v3616_v21 }
 0xaa1   :  { %v3600_v37 = vpop.xlane.xlu1 %3599 }
 0xaa2   :  { %v3620_v24 = vsub.f32 %v3587_v45, %v3600_v37 }
 0xaa3   :  { %v3597_v45 = vpop.xlane.xlu0 %3596 }
 0xaa4   :  { %v3629_v16 = vmul.f32 1.442695, %v3620_v24  ;;  %v3619_v55 = vsub.f32 %v3586_v31, %v3597_v45 }
 0xaa6   :  { %19232 = vpow2.f32 %v3629_v16  ;;  %v3627_v56 = vmul.f32 1.442695, %v3619_v55 }
 0xaa8   :  { %953 = vrot.lane.b32.xlu1 %v21260_v41, %s20470_s15  ;;  %19234 = vpow2.f32 %v3627_v56 }
 0xab3   :  { %v21297_v43 = vpop.eup %19232 }
 0xab4   :  { %v3646_v28 = vsel %vm3594_vm3, %v21297_v43, 0.0 }
 0xab5   :  { %957 = vrot.lane.b32.xlu0 %v20980_v58, %s20470_s15  ;;  %v21315_v59 = vpop.eup %19234 }
 0xab6   :  { %v3643_v46 = vsel %vm3594_vm3, %v21315_v59, 0.0 }
 0xab9   :  { %965 = vrot.lane.b32.xlu0 %v21260_v41, %s20469_s3 }
 0xabd   :  { %963 = vrot.lane.b32.xlu0 %v21266_v44, %s20469_s3 }
 0xac1   :  { %977 = vrot.lane.b32.xlu0 %v21260_v41, %s20472_s6 }
 0xacc   :  { %3614 = vmax.xlane.f32.xlu1 %v3613_v42 }
 0xadd   :  { %951 = vrot.lane.b32.xlu1 %v21266_v44, %s20470_s15 }
 0xae0   :  { %3647 = vadd.xlane.f32.xlu0 %v3646_v28 }
 0xae1   :  { %955 = vrot.lane.b32.xlu1 %v21303_v54, %s20470_s15 }
 0xae5   :  { %969 = vrot.lane.b32.xlu1 %v20980_v58, %s20469_s3 }
 0xae9   :  { %967 = vrot.lane.b32.xlu1 %v21303_v54, %s20469_s3 }
 0xaed   :  { %981 = vrot.lane.b32.xlu1 %v20980_v58, %s20472_s6 }
 0xb11   :  { %3644 = vadd.xlane.f32.xlu1 %v3643_v46 }
 0xb18   :  { %v3603_v47 = vpop.xlane.xlu0 %3602 }
 0xb19   :  { %v3621_v49 = vsub.f32 %v3588_v52, %v3603_v47 }
 0xb1b   :  { %v3631_v48 = vmul.f32 1.442695, %v3621_v49 }
 0xb1c   :  { %v3606_v50 = vpop.xlane.xlu0 %3605 }
 0xb1d   :  { %19236 = vpow2.f32 %v3631_v48  ;;  %v3622_v51 = vsub.f32 %v3589_v57, %v3606_v50 }
 0xb1f   :  { %v3633_v53 = vmul.f32 1.442695, %v3622_v51 }
 0xb20   :  { %v3612_v60 = vpop.xlane.xlu0 %3611  ;;  %v3609_v61 = vpop.xlane.xlu1 %3608 }
 0xb21   :  { %19238 = vpow2.f32 %v3633_v53  ;;  %v3624_v62 = vsub.f32 %v3591_v63, %v3612_v60  ;;  %v3623_v31 = vsub.f32 %v3590_v1, %v3609_v61 }
 0xb23   :  { %v3637_v7 = vmul.f32 1.442695, %v3624_v62  ;;  %v3635_v4 = vmul.f32 1.442695, %v3623_v31 }
 0xb24   :  { %v21319_v3 = vpop.permute.xlu1 %953 }
 0xb25   :  { %19240 = vpow2.f32 %v3637_v7  ;;  %18088 = vmatpush3.msra.mxu0 %v21319_v3 }
 0xb26   :  { %19242 = vpow2.f32 %v3635_v4  ;;  %18089 = vmatprep.subr.mxu0 %v22918_v33 }
 0xb28   :  { %v3618_v52 = vpop.xlane.xlu0 %3617 }
 0xb29   :  { %v3626_v2 = vsub.f32 %v3593_v15, %v3618_v52 }
 0xb2a   :  { %v21323_v8 = vpop.eup %19236 }
 0xb2b   :  { %v3641_v57 = vmul.f32 1.442695, %v3626_v2  ;;  %v3649_v12 = vsel %vm3594_vm3, %v21323_v8, 0.0 }
 0xb2c   :  { %3650 = vadd.xlane.f32.xlu1 %v3649_v12  ;;  %v21356_v56 = vpop.permute.xlu0 %957 }
 0xb2d   :  { %19244 = vpow2.f32 %v3641_v57 }
 0xb2e   :  { %v21327_v63 = vpop.eup %19238 }
 0xb2f   :  { %v3652_v1 = vsel %vm3594_vm3, %v21327_v63, 0.0 }
 0xb30   :  { %3653 = vadd.xlane.f32.xlu0 %v3652_v1  ;;  %v21360_v46 = vpop.permute.xlu0 %965 }
 0xb32   :  { %v21331_v14 = vpop.eup %19240 }
 0xb33   :  { %v21333_v9 = vpop.eup %19242  ;;  %v3658_v15 = vsel %vm3594_vm3, %v21331_v14, 0.0 }
 0xb34   :  { %3659 = vadd.xlane.f32.xlu0 %v3658_v15  ;;  %v3655_v18 = vsel %vm3594_vm3, %v21333_v9, 0.0  ;;  %v21364_v49 = vpop.permute.xlu0 %963 }
 0xb35   :  { %3656 = vadd.xlane.f32.xlu1 %v3655_v18 }
 0xb38   :  { %v21368_v50 = vpop.permute.xlu0 %977 }
 0xb3a   :  { %v21339_v21 = vpop.eup %19244 }
 0xb3b   :  { %v3664_v37 = vsel %vm3594_vm3, %v21339_v21, 0.0 }
 0xb3c   :  { %3665 = vadd.xlane.f32.xlu0 %v3664_v37 }
 0xb52   :  { %975 = vrot.lane.b32.xlu0 %v21266_v44, %s20472_s6 }
 0xb55   :  { %v3615_v24 = vpop.xlane.xlu1 %3614 }
 0xb56   :  { %v3625_v16 = vsub.f32 %v21293_v39, %v3615_v24 }
 0xb58   :  { %v3639_v42 = vmul.f32 1.442695, %v3625_v16 }
 0xb59   :  { %v21346_v28 = vpop.permute.xlu1 %951 }
 0xb5a   :  { %19246 = vpow2.f32 %v3639_v42  ;;  %18090 = vmatpush3.msra.mxu0 %v21346_v28 }
 0xb5b   :  { %18101 = vmatprep.subr.mxu0 %v22918_v33 }
 0xb5d   :  { %v21358_v39 = vpop.permute.xlu1 %955 }
 0xb61   :  { %v21362_v47 = vpop.permute.xlu1 %969 }
 0xb65   :  { %v21366_v48 = vpop.permute.xlu1 %967 }
 0xb67   :  { %v21350_v45 = vpop.eup %19246 }
 0xb68   :  { %v3661_v55 = vsel %vm3594_vm3, %v21350_v45, 0.0 }
 0xb69   :  { %3662 = vadd.xlane.f32.xlu1 %v3661_v55  ;;  %v21370_v51 = vpop.permute.xlu1 %981  ;;  %v3648_v53 = vpop.xlane.xlu0 %3647 }
 0xb7a   :  { %979 = vrot.lane.b32.xlu1 %v21303_v54, %s20472_s6 }
 0xb9a   :  { %v3645_v60 = vpop.xlane.xlu1 %3644 }
 0xb9b   :  { %19248 = vrcp.f32 %v3645_v60 }
 0xb9c   :  { %19250 = vrcp.f32 %v3648_v53 }
 0xba8   :  { %v19249_v61 = vpop.eup %19248 }
 0xba9   :  { %v21373_v62 = vmul.f32 %v19249_v61, %v21315_v59  ;;  %v19251_v31 = vpop.eup %19250  ;;  %v685_v61 = vld [vmem:[#allocation20] sm:$0xff] }
 0xbaa   :  { %v3676_v7 = vmul.f32 %v19251_v31, %v21297_v43 }
 0xbab   :  { %18078 = vmatmul.mubr.msk.f32.vlgmr.msra.gmra.mxu1 %vm3594_vm3, %v21373_v62 }
 0xbac   :  { %18081 = vmatpush3.msra.mxu1 %v20980_v58  ;;  %18084 = vmatprep.mubr.msk.f32.mxu1 %vm20471_vm1, %v22918_v33 }
 0xbad   :  { %18082 = vmatprep.subr.mxu1 %v22918_v33 }
 0xbae   :  { %18083 = vmatpush3.msra.mxu1 %v21303_v54 }
 0xbaf   :  { %18094 = vmatprep.subr.mxu1 %v22918_v33  ;;  %18085 = vmatmul.mubr.msk.f32.vlgmr.msra.gmra.mxu1 %vm3594_vm3, %v3676_v7 }
 0xbb0   :  { %18095 = vmatpush3.msra.mxu1 %v21356_v56  ;;  %18098 = vmatprep.mubr.msk.f32.mxu1 %vm20471_vm1, %v22918_v33 }
 0xbb1   :  { %18096 = vmatprep.subr.mxu1 %v22918_v33 }
 0xbb2   :  { %18097 = vmatpush3.msra.mxu1 %v21358_v39 }
 0xbb3   :  { %18108 = vmatprep.subr.mxu1 %v22918_v33 }
 0xbb5   :  { %v3651_v59 = vpop.xlane.xlu1 %3650 }
 0xbb6   :  { %19252 = vrcp.f32 %v3651_v59 }
 0xbb9   :  { %v3654_v43 = vpop.xlane.xlu0 %3653 }
 0xbba   :  { %19254 = vrcp.f32 %v3654_v43 }
 0xbbd   :  { %v3660_v4 = vpop.xlane.xlu0 %3659 }
 0xbbe   :  { %19256 = vrcp.f32 %v3660_v4  ;;  %v3657_v52 = vpop.xlane.xlu1 %3656 }
 0xbbf   :  { %19258 = vrcp.f32 %v3657_v52 }
 0xbc3   :  { %v19253_v2 = vpop.eup %19252 }
 0xbc4   :  { %v3677_v57 = vmul.f32 %v19253_v2, %v21323_v8  ;;  %v686_v2 = vld [vmem:[#allocation20 + $0x8] sm:$0xff] }
 0xbc5   :  { %v3666_v12 = vpop.xlane.xlu0 %3665 }
 0xbc6   :  { %19260 = vrcp.f32 %v3666_v12  ;;  %18092 = vmatmul.mubr.msk.f32.vlgmr.msra.gmra.mxu0 %vm3594_vm3, %v3677_v57  ;;  %v687_v12 = vld [vmem:[#allocation20 + $0x10] sm:$0xff] }
 0xbc7   :  { %v19255_v1 = vpop.eup %19254  ;;  %18102 = vmatpush3.msra.mxu0 %v21360_v46  ;;  %18105 = vmatprep.mubr.msk.f32.mxu0 %vm20471_vm1, %v22918_v33 }
 0xbc8   :  { %18103 = vmatprep.subr.mxu0 %v22918_v33  ;;  %v3678_v15 = vmul.f32 %v19255_v1, %v21327_v63  ;;  %v688_v1 = vld [vmem:[#allocation20 + $0x18] sm:$0xff] }
 0xbc9   :  { %18104 = vmatpush3.msra.mxu0 %v21364_v49  ;;  %v21414_v24 = vpop.permute.xlu0 %975 }
 0xbca   :  { %18099 = vmatmul.mubr.msk.f32.vlgmr.msra.gmra.mxu1 %vm3594_vm3, %v3678_v15  ;;  %18115 = vmatprep.subr.mxu0 %v22918_v33 }
 0xbcb   :  { %v19257_v8 = vpop.eup %19256  ;;  %18109 = vmatpush3.msra.mxu1 %v21362_v47  ;;  %18112 = vmatprep.mubr.msk.f32.mxu1 %vm20471_vm1, %v22918_v33 }
 0xbcc   :  { %v19259_v18 = vpop.eup %19258  ;;  %18110 = vmatprep.subr.mxu1 %v22918_v33  ;;  %v3680_v37 = vmul.f32 %v19257_v8, %v21331_v14  ;;  %v4604_v14 = vadd.f32 %v3678_v15, %v3676_v7  ;;  %v4603_v7 = vadd.f32 %v3677_v57, %v21373_v62 }
 0xbcd   :  { %18111 = vmatpush3.msra.mxu1 %v21366_v48  ;;  %v3679_v63 = vmul.f32 %v19259_v18, %v21333_v9 }
 0xbce   :  { %18122 = vmatprep.subr.mxu1 %v22918_v33  ;;  %18113 = vmatmul.mubr.msk.f32.vlgmr.msra.gmra.mxu1 %vm3594_vm3, %v3680_v37  ;;  %v4606_v16 = vadd.f32 %v4604_v14, %v3680_v37 }
 0xbcf   :  { %18106 = vmatmul.mubr.msk.f32.vlgmr.msra.gmra.mxu0 %vm3594_vm3, %v3679_v63  ;;  %18123 = vmatpush3.msra.mxu1 %v21370_v51  ;;  %v4605_v43 = vadd.f32 %v4603_v7, %v3679_v63 }
 0xbd0   :  { %18116 = vmatpush3.msra.mxu0 %v21368_v50  ;;  %18124 = vmatprep.subr.mxu1 %v22918_v33 }
 0xbd1   :  { %18117 = vmatprep.subr.mxu0 %v22918_v33  ;;  %18126 = vmatprep.mubr.msk.f32.mxu1 %vm20471_vm1, %v22918_v33 }
 0xbd2   :  { %18118 = vmatpush3.msra.mxu0 %v21414_v24  ;;  %18119 = vmatprep.mubr.msk.f32.mxu0 %vm20471_vm1, %v22918_v33 }
 0xbd3   :  { %v19261_v9 = vpop.eup %19260  ;;  %18129 = vmatprep.subr.mxu0 %v686_v2 }
 0xbd4   :  { %v3682_v42 = vmul.f32 %v19261_v9, %v21339_v21 }
 0xbd6   :  { %v4608_v55 = vadd.f32 %v4606_v16, %v3682_v42 }
 0xbd8   :  { %v4610_v53 = vmul.f32 0.25, %v4608_v55 }
 0xbda   :  { %4921 = vst.msk [vmem:[#allocation53 + $0x8] sm:$0xff] %vm3594_vm3, %v4610_v53 }
 0xbf2   :  { %v3663_v60 = vpop.xlane.xlu1 %3662 }
 0xbf3   :  { %19262 = vrcp.f32 %v3663_v60 }
 0xbf6   :  { %v21424_v31 = vpop.permute.xlu1 %979 }
 0xbf7   :  { %18125 = vmatpush3.msra.mxu1 %v21424_v31 }
 0xbf8   :  { %18127 = vmatmul.mubr.msk.f32.vlgmr.msra.gmra.mxu1 %vm3594_vm3, %v3682_v42  ;;  %18134 = vmatprep.subr.mxu1 %v685_v61 }
 0xbf9   :  { %18135 = vmatpush3.msra.mxu1 %v685_v61 }
 0xbfa   :  { %18144 = vmatprep.subr.mxu1 %v688_v1 }
 0xc00   :  { %v19263_v59 = vpop.eup %19262 }
 0xc01   :  { %v3681_v21 = vmul.f32 %v19263_v59, %v21350_v45 }
 0xc03   :  { %18120 = vmatmul.mubr.msk.f32.vlgmr.msra.gmra.mxu0 %vm3594_vm3, %v3681_v21  ;;  %v4607_v4 = vadd.f32 %v4605_v43, %v3681_v21 }
 0xc04   :  { %18130 = vmatpush3.msra.mxu0 %v686_v2 }
 0xc05   :  { %v4609_v52 = vmul.f32 0.25, %v4607_v4  ;;  %18139 = vmatprep.subr.mxu0 %v687_v12 }
 0xc07   :  { %4920 = vst.msk [vmem:[#allocation53] sm:$0xff] %vm3594_vm3, %v4609_v52 }
 0xc6b   :  { %v3752_v15 = vpop.f32.mrf.mxu1 }
 0xc6c   :  { %18136 = vmatprep.mubr.msk.f32.mxu1 %vm1199_vm2, %v3752_v15  ;;  %v16988_v15 = vld [vmem:[#allocation22] ss:$0 sm:$0xff] }
 0xc6d   :  { %v18079_v62 = vpop.f32.mrf.mxu1 }
 0xc6f   :  { %v3825_v57 = vpop.f32.mrf.mxu1 }
 0xc70   :  { %18137 = vmatmul.mubr.msk.f32.vlgmr.msra.gmra.mxu1 %vm1199_vm2, %v3825_v57 }
 0xc71   :  { %v18086_v45 = vpop.f32.mrf.mxu1  ;;  %18145 = vmatpush3.msra.mxu1 %v688_v1 }
 0xc86   :  { %v3898_v8 = vpop.f32.mrf.mxu0 }
 0xc87   :  { %18131 = vmatprep.mubr.msk.f32.mxu0 %vm1199_vm2, %v3898_v8 }
 0xc88   :  { %v18093_v18 = vpop.f32.mrf.mxu0 }
 0xc8a   :  { %v3971_v37 = vpop.f32.mrf.mxu1 }
 0xc8b   :  { %18132 = vmatmul.mubr.msk.f32.vlgmr.msra.gmra.mxu0 %vm1199_vm2, %v3971_v37 }
 0xc8c   :  { %v18100_v63 = vpop.f32.mrf.mxu1  ;;  %18140 = vmatpush3.msra.mxu0 %v687_v12 }
 0xc8e   :  { %v4117_v14 = vpop.f32.mrf.mxu1 }
 0xc8f   :  { %v4044_v9 = vpop.f32.mrf.mxu0 }
 0xc90   :  { %18141 = vmatprep.mubr.msk.f32.mxu0 %vm1199_vm2, %v4044_v9  ;;  %v18114_v16 = vpop.f32.mrf.mxu1 }
 0xc91   :  { %v18107_v42 = vpop.f32.mrf.mxu0  ;;  %18142 = vmatmul.mubr.msk.f32.vlgmr.msra.gmra.mxu0 %vm1199_vm2, %v4117_v14 }
 0xcb8   :  { %v4263_v55 = vpop.f32.mrf.mxu1 }
 0xcba   :  { %v18128_v53 = vpop.f32.mrf.mxu1 }
 0xcc3   :  { %v4190_v60 = vpop.f32.mrf.mxu0 }
 0xcc4   :  { %18146 = vmatprep.mubr.msk.f32.mxu1 %vm1199_vm2, %v4190_v60 }
 0xcc5   :  { %v18121_v61 = vpop.f32.mrf.mxu0  ;;  %18147 = vmatmul.mubr.msk.f32.vlgmr.msra.gmra.mxu1 %vm1199_vm2, %v4263_v55 }
 0xd30   :  { %v18138_v43 = vpop.f32.mrf.mxu1 }
 0xd32   :  { %v4420_v52 = vpop.f32.mrf.mxu1 }
 0xd4b   :  { %v18133_v7 = vpop.f32.mrf.mxu0 }
 0xd4c   :  { %v4426_v4 = vadd.f32 %v18138_v43, %v18133_v7 }
 0xd4d   :  { %v4339_v59 = vpop.f32.mrf.mxu0 }
 0xd4e   :  { %v4421_v12 = vadd.f32 %v4420_v52, %v4339_v59  ;;  %v692_v52 = vld [vmem:[%s22999_s22 + $0x10] sm:$0xff] }
 0xd51   :  { %v18143_v21 = vpop.f32.mrf.mxu0 }
 0xd52   :  { %v4511_v1 = vadd.f32 %v18143_v21, %v4426_v4  ;;  %v693_v4 = vld [vmem:[%s22999_s22 + $0x18] sm:$0xff] }
 0xd53   :  { %v4501_v2 = vpop.f32.mrf.mxu0  ;;  %18149 = vmatprep.subr.mxu0 %v693_v4 }
 0xd54   :  { %v4510_v57 = vadd.f32 %v4501_v2, %v4421_v12  ;;  %18150 = vmatpush3.msra.mxu0 %v693_v4  ;;  %v691_v2 = vld [vmem:[%s22999_s22 + $0x8] sm:$0xff]  ;;  %v690_v12 = vld [vmem:[%s22999_s22] sm:$0xff]  ;;  %v19517_v4 = vld [vmem:[%s22992_s7 + $0x10] sm:$0xff] }
 0xd55   :  { %18151 = vmatprep.subr.mxu0 %v692_v52 }
 0xd56   :  { %18152 = vmatpush3.msra.mxu0 %v692_v52  ;;  %v19519_v52 = vld [vmem:[%s22992_s7] sm:$0xff] }
 0xd57   :  { %18153 = vmatprep.subr.mxu0 %v691_v2 }
 0xd58   :  { %18154 = vmatpush3.msra.mxu0 %v691_v2  ;;  %v698_v2 = vld [vmem:[%s23000_s24 + $0x18] sm:$0xff] }
 0xd59   :  { %18155 = vmatprep.subr.mxu0 %v690_v12 }
 0xd5a   :  { %18156 = vmatpush3.msra.mxu0 %v690_v12  ;;  %v697_v12 = vld [vmem:[%s23000_s24 + $0x10] sm:$0xff] }
 0xd85   :  { %v18148_v62 = vpop.f32.mrf.mxu1 }
 0xd86   :  { %v4594_v45 = vadd.f32 %v18148_v62, %v4511_v1  ;;  %v19516_v1 = vld [vmem:[%s22992_s7 + $0x18] sm:$0xff]  ;;  %v701_v62 = vld [vmem:[%s23000_s24 + $0x30] sm:$0xff] }
 0xd87   :  { %v4584_v8 = vpop.f32.mrf.mxu1  ;;  %18179 = vmatprep.subr.mxu0 %v19516_v1 }
 0xd88   :  { %v4602_v18 = vadd.f32 %v16988_v15, %v4594_v45  ;;  %v4593_v37 = vadd.f32 %v4584_v8, %v4510_v57  ;;  %v700_v57 = vld [vmem:[%s23000_s24 + $0x28] sm:$0xff]  ;;  %v699_v45 = vld [vmem:[%s23000_s24 + $0x20] sm:$0xff] }
 0xd8a   :  { %v4601_v63 = vadd.f32 %v16988_v15, %v4593_v37  ;;  %v4612_v14 = vadd.f32 %v4602_v18, %v21159_v10  ;;  %v702_v15 = vld [vmem:[%s23000_s24 + $0x38] sm:$0xff] }
 0xd8b   :  { %18160 = vmatprep.subr.mxu1 %v702_v15 }
 0xd8c   :  { %v4616_v9 = vsel %vm718_vm0, %v4612_v14, 0.0  ;;  %v4611_v16 = vadd.f32 %v4601_v63, %v21154_v26  ;;  %18161 = vmatpush3.msra.mxu1 %v702_v15  ;;  %v695_v15 = vld [vmem:[%s23000_s24] sm:$0xff] }
 0xd8d   :  { %4617 = vadd.xlane.f32.xlu1 %v4616_v9  ;;  %18162 = vmatprep.subr.mxu1 %v701_v62 }
 0xd8e   :  { %v4613_v42 = vsel %vm718_vm0, %v4611_v16, 0.0  ;;  %18163 = vmatpush3.msra.mxu1 %v701_v62  ;;  %v16991_v62 = vld [vmem:[%s23001_s23] ss:$0 sm:$0xff] }
 0xd8f   :  { %4614 = vadd.xlane.f32.xlu0 %v4613_v42  ;;  %18164 = vmatprep.subr.mxu1 %v700_v57  ;;  %v16989_v42 = vld [vmem:[#allocation28] ss:$0 sm:$0xff] }
 0xd90   :  { %18165 = vmatpush3.msra.mxu1 %v700_v57 }
 0xd91   :  { %18166 = vmatprep.subr.mxu1 %v699_v45 }
 0xd92   :  { %18167 = vmatpush3.msra.mxu1 %v699_v45 }
 0xd93   :  { %18168 = vmatprep.subr.mxu1 %v698_v2 }
 0xd94   :  { %18169 = vmatpush3.msra.mxu1 %v698_v2 }
 0xd95   :  { %18170 = vmatprep.subr.mxu1 %v697_v12 }
 0xd96   :  { %18171 = vmatpush3.msra.mxu1 %v697_v12 }
 0xe16   :  { %v4618_v55 = vpop.xlane.xlu1 %4617 }
 0xe17   :  { %v4620_v53 = vmul.f32 0.03125, %v4618_v55 }
 0xe18   :  { %v4615_v60 = vpop.xlane.xlu0 %4614 }
 0xe19   :  { %v4619_v61 = vmul.f32 0.03125, %v4615_v60  ;;  %v4622_v7 = vsub.f32 %v4612_v14, %v4620_v53  ;;  %v16990_v53 = vld [vmem:[#allocation29] ss:$0 sm:$0xff] }
 0xe1b   :  { %v4621_v59 = vsub.f32 %v4611_v16, %v4619_v61  ;;  %v4624_v21 = vmul.f32 %v4622_v7, %v4622_v7 }
 0xe1d   :  { %v4623_v43 = vmul.f32 %v4621_v59, %v4621_v59  ;;  %v4628_v26 = vsel %vm718_vm0, %v4624_v21, 0.0 }
 0xe1f   :  { %v4625_v10 = vsel %vm718_vm0, %v4623_v43, 0.0 }
 0xe20   :  { %4626 = vadd.xlane.f32.xlu0 %v4625_v10 }
 0xe24   :  { %4629 = vadd.xlane.f32.xlu0 %v4628_v26 }
 0xea9   :  { %v4627_v8 = vpop.xlane.xlu0 %4626 }
 0xeaa   :  { %v4631_v18 = vmul.f32 0.03125, %v4627_v8 }
 0xeac   :  { %v4633_v37 = vadd.f32 1e-05, %v4631_v18 }
 0xead   :  { %v4630_v63 = vpop.xlane.xlu0 %4629 }
 0xeae   :  { %19264 = vrsqrt.f32 %v4633_v37  ;;  %v4632_v14 = vmul.f32 0.03125, %v4630_v63 }
 0xeb0   :  { %v4634_v9 = vadd.f32 1e-05, %v4632_v14  ;;  %v16994_v14 = vld [vmem:[#allocation23] ss:$0 sm:$0xff] }
 0xeb2   :  { %19266 = vrsqrt.f32 %v4634_v9 }
 0xebb   :  { %v19265_v16 = vpop.eup %19264 }
 0xebc   :  { %v4637_v55 = vmul.f32 %v19265_v16, %v4621_v59  ;;  %v19518_v59 = vld [vmem:[%s22992_s7 + $0x8] sm:$0xff]  ;;  %s23032_s7 = sld [smem:[#allocation119_spill]] }
 0xebe   :  { %v4645_v60 = vmul.f32 %v16989_v42, %v4637_v55 }
 0xebf   :  { %v19267_v61 = vpop.eup %19266 }
 0xec0   :  { %v4653_v43 = vadd.f32 %v16990_v53, %v4645_v60  ;;  %v4638_v10 = vmul.f32 %v19267_v61, %v4622_v7  ;;  %v21461_v7 = vld [vmem:[%s22996_s19 + $0x18] sm:$0xff] }
 0xec2   :  { %18157 = vmatprep.mubr.msk.f32.mxu0 %vm718_vm0, %v4653_v43  ;;  %v4646_v21 = vmul.f32 %v16989_v42, %v4638_v10 }
 0xec4   :  { %v4654_v26 = vadd.f32 %v16990_v53, %v4646_v21 }
 0xec6   :  { %18158 = vmatmul.mubr.msk.f32.vlgmr.msra.gmra.mxu0 %vm718_vm0, %v4654_v26 }
 0xec7   :  { %18180 = vmatpush3.msra.mxu0 %v19516_v1  ;;  %v696_v1 = vld [vmem:[%s23000_s24 + $0x8] sm:$0xff] }
 0xec8   :  { %18181 = vmatprep.subr.mxu0 %v19517_v4  ;;  %18172 = vmatprep.subr.mxu1 %v696_v1 }
 0xec9   :  { %18182 = vmatpush3.msra.mxu0 %v19517_v4  ;;  %18173 = vmatpush3.msra.mxu1 %v696_v1 }
 0xeca   :  { %18183 = vmatprep.subr.mxu0 %v19518_v59  ;;  %18174 = vmatprep.subr.mxu1 %v695_v15 }
 0xecb   :  { %18184 = vmatpush3.msra.mxu0 %v19518_v59  ;;  %18175 = vmatpush3.msra.mxu1 %v695_v15 }
 0xecc   :  { %18185 = vmatprep.subr.mxu0 %v19519_v52  ;;  %18201 = vmatprep.subr.mxu1 %v22918_v33 }
 0xecd   :  { %18186 = vmatpush3.msra.mxu0 %v19519_v52 }
 0xece   :  { %18190 = vmatprep.subr.mxu0 %v21461_v7 }
 0xf86   :  { %v18159_v57 = vpop.f32.mrf.mxu0 }
 0xf87   :  { %v4739_v45 = vadd.f32 %v18159_v57, %v16991_v62 }
 0xf88   :  { %v4733_v8 = vpop.f32.mrf.mxu0 }
 0xf89   :  { %v4734_v18 = vadd.f32 %v16991_v62, %v4733_v8  ;;  %v4743_v63 = vmax.f32 %v4739_v45, 0.0 }
 0xf8b   :  { %v4742_v37 = vmax.f32 %v4734_v18, 0.0 }
 0xf8d   :  { %18176 = vmatprep.mubr.msk.f32.mxu1 %vm4750_vm4, %v4742_v37 }
 0xf8e   :  { %18177 = vmatmul.mubr.msk.f32.vlgmr.msra.gmra.mxu1 %vm4750_vm4, %v4743_v63 }
 0xf8f   :  { %18203 = vmatprep.mubr.msk.f32.mxu1 %vm20471_vm1, %v22918_v33 }
0x104e   :  { %v18178_v9 = vpop.f32.mrf.mxu1 }
0x104f   :  { %v4829_v16 = vadd.f32 %v18178_v9, %v16994_v14 }
0x1050   :  { %v4823_v42 = vpop.f32.mrf.mxu1 }
0x1051   :  { %v4824_v55 = vadd.f32 %v16994_v14, %v4823_v42  ;;  %v4833_v53 = vadd.f32 %v4829_v16, %v4654_v26  ;;  %v16997_v14 = vld [vmem:[#allocation31] ss:$0 sm:$0xff]  ;;  %v16998_v42 = vld [vmem:[#allocation32] ss:$0 sm:$0xff] }
0x1053   :  { %v4837_v60 = vsel %vm718_vm0, %v4833_v53, 0.0  ;;  %v4832_v61 = vadd.f32 %v4824_v55, %v4653_v43 }
0x1054   :  { %4838 = vadd.xlane.f32.xlu0 %v4837_v60 }
0x1055   :  { %v4834_v10 = vsel %vm718_vm0, %v4832_v61, 0.0 }
0x1056   :  { %4835 = vadd.xlane.f32.xlu1 %v4834_v10 }
0x10dd   :  { %v4839_v21 = vpop.xlane.xlu0 %4838 }
0x10de   :  { %v4841_v4 = vmul.f32 0.03125, %v4839_v21  ;;  %v21482_v21 = vld [vmem:[#allocation7] sm:$0xff] }
0x10df   :  { %v4836_v59 = vpop.xlane.xlu1 %4835 }
0x10e0   :  { %v4843_v52 = vsub.f32 %v4833_v53, %v4841_v4  ;;  %v4840_v2 = vmul.f32 0.03125, %v4836_v59  ;;  %v21486_v59 = vld [vmem:[#allocation7 + $0x8] sm:$0xff] }
0x10e2   :  { %v4842_v12 = vsub.f32 %v4832_v61, %v4840_v2  ;;  %v4845_v1 = vmul.f32 %v4843_v52, %v4843_v52  ;;  %v19523_v2 = vld [vmem:[%s22996_s19 + $0x10] sm:$0xff] }
0x10e4   :  { %v4849_v15 = vsel %vm718_vm0, %v4845_v1, 0.0  ;;  %v4844_v62 = vmul.f32 %v4842_v12, %v4842_v12  ;;  %v19525_v1 = vld [vmem:[%s22996_s19] sm:$0xff] }
0x10e5   :  { %4850 = vadd.xlane.f32.xlu0 %v4849_v15  ;;  %v19526_v15 = vld [vmem:[#allocation8] ss:$0 sm:$0xff] }
0x10e6   :  { %v4846_v26 = vsel %vm718_vm0, %v4844_v62, 0.0 }
0x10e7   :  { %4847 = vadd.xlane.f32.xlu1 %v4846_v26 }
0x116e   :  { %v4851_v57 = vpop.xlane.xlu0 %4850 }
0x116f   :  { %v4853_v43 = vmul.f32 0.03125, %v4851_v57 }
0x1170   :  { %v4848_v45 = vpop.xlane.xlu1 %4847 }
0x1171   :  { %v4855_v8 = vadd.f32 1e-05, %v4853_v43  ;;  %v4852_v18 = vmul.f32 0.03125, %v4848_v45 }
0x1173   :  { %19268 = vrsqrt.f32 %v4855_v8  ;;  %v4854_v37 = vadd.f32 1e-05, %v4852_v18 }
0x1175   :  { %19270 = vrsqrt.f32 %v4854_v37 }
0x1180   :  { %v19269_v63 = vpop.eup %19268 }
0x1181   :  { %v4859_v9 = vmul.f32 %v19269_v63, %v4843_v52 }
0x1182   :  { %v19271_v16 = vpop.eup %19270 }
0x1183   :  { %v4867_v55 = vmul.f32 %v16997_v14, %v4859_v9  ;;  %v4858_v53 = vmul.f32 %v19271_v16, %v4842_v12  ;;  %v19524_v12 = vld [vmem:[%s22996_s19 + $0x8] sm:$0xff] }
0x1185   :  { %v4866_v60 = vmul.f32 %v16997_v14, %v4858_v53  ;;  %v21478_v61 = vadd.f32 %v16998_v42, %v4867_v55 }
0x1187   :  { %23002 = vst [vmem:[#allocation124_spill] sm:$0xff] %v21478_v61  ;;  %v21480_v10 = vadd.f32 %v16998_v42, %v4866_v60  ;;  %v4925_v52 = vadd.f32 %v21486_v59, %v21478_v61 }
0x1189   :  { %23003 = vst [vmem:[#allocation125_spill] sm:$0xff] %v21480_v10  ;;  %v4924_v4 = vadd.f32 %v21482_v21, %v21480_v10 }
0x118b   :  { %18187 = vmatprep.mubr.msk.f32.mxu0 %vm718_vm0, %v4924_v4 }
0x118c   :  { %18188 = vmatmul.mubr.msk.f32.vlgmr.msra.gmra.mxu0 %vm718_vm0, %v4925_v52 }
0x118d   :  { %18191 = vmatpush3.msra.mxu0 %v21461_v7  ;;  %18198 = vmatprep.mubr.msk.f32.mxu0 %vm718_vm0, %v21480_v10 }
0x118e   :  { %18192 = vmatprep.subr.mxu0 %v19523_v2 }
0x118f   :  { %18193 = vmatpush3.msra.mxu0 %v19523_v2  ;;  %v19527_v2 = vld [vmem:[#allocation10] ss:$0 sm:$0xff] }
0x1190   :  { %18194 = vmatprep.subr.mxu0 %v19524_v12 }
0x1191   :  { %18195 = vmatpush3.msra.mxu0 %v19524_v12 }
0x1192   :  { %18196 = vmatprep.subr.mxu0 %v19525_v1 }
0x1193   :  { %18197 = vmatpush3.msra.mxu0 %v19525_v1 }
0x1194   :  { %18199 = vmatmul.mubr.msk.f32.vlgmr.msra.gmra.mxu0 %vm718_vm0, %v21478_v61  ;;  %18211 = vmatprep.subr.mxu0 %v22918_v33 }
0x1195   :  { %18213 = vmatprep.mubr.msk.f32.mxu0 %vm20471_vm1, %v22918_v33 }
0x124c   :  { %v18189_v7 = vpop.f32.mrf.mxu0 }
0x124d   :  { %v5004_v62 = vadd.f32 %v19526_v15, %v18189_v7 }
0x124e   :  { %v4998_v26 = vpop.f32.mrf.mxu0 }
0x124f   :  { %v4999_v57 = vadd.f32 %v19526_v15, %v4998_v26  ;;  %5092 = vrot.lane.b32.xlu0 %v5004_v62, %s20470_s15 }
0x1251   :  { %5090 = vrot.lane.b32.xlu1 %v4999_v57, %s20470_s15 }
0x1253   :  { %5098 = vrot.lane.b32.xlu0 %v4999_v57, %s20472_s6 }
0x1254   :  { %v18200_v55 = vpop.f32.mrf.mxu0 }
0x1255   :  { %5094 = vrot.lane.b32.xlu1 %v4999_v57, %s20469_s3  ;;  %v21555_v7 = vadd.f32 %v19527_v2, %v18200_v55 }
0x1256   :  { %v5079_v60 = vpop.f32.mrf.mxu0 }
0x1257   :  { %5122 = vrot.lane.b32.xlu0 %v4999_v57, %s20473_s16  ;;  %v21545_v12 = vadd.f32 %v19527_v2, %v5079_v60 }
0x1259   :  { %5096 = vrot.lane.b32.xlu1 %v5004_v62, %s20469_s3 }
0x125d   :  { %5100 = vrot.lane.b32.xlu1 %v5004_v62, %s20472_s6 }
0x1261   :  { %5198 = vrot.lane.b32.xlu1 %v5004_v62, %s20473_s16 }
0x12c1   :  { %v5093_v43 = vpop.permute.xlu0 %5092 }
0x12c2   :  { %5350 = vrot.lane.b32.xlu1 %v5093_v43, %s20473_s16 }
0x12c3   :  { %v5091_v45 = vpop.permute.xlu1 %5090 }
0x12c4   :  { %5274 = vrot.lane.b32.xlu0 %v5091_v45, %s20473_s16 }
0x12c5   :  { %v5099_v8 = vpop.permute.xlu0 %5098 }
0x12c7   :  { %v5095_v18 = vpop.permute.xlu1 %5094 }
0x12c8   :  { %5426 = vrot.lane.b32.xlu0 %v5095_v18, %s20473_s16 }
0x12c9   :  { %v5123_v37 = vpop.permute.xlu0 %5122 }
0x12ca   :  { %18202 = vmatpush3.xpose.msk.msra.mxu1 %vm1199_vm2, %v5123_v37 }
0x12cb   :  { %v5097_v63 = vpop.permute.xlu1 %5096  ;;  %18206 = vmatprep.subr.mxu1 %v22918_v33 }
0x12cc   :  { %5578 = vrot.lane.b32.xlu0 %v5099_v8, %s20473_s16  ;;  %5502 = vrot.lane.b32.xlu1 %v5097_v63, %s20473_s16 }
0x12cd   :  { %18204 = vmatmul.mubr.msk.f32.vlgmr.msra.gmra.mxu1 %vm1199_vm2, %v4999_v57 }
0x12ce   :  { %18208 = vmatprep.mubr.msk.f32.mxu1 %vm20471_vm1, %v22918_v33 }
0x12cf   :  { %v5101_v14 = vpop.permute.xlu1 %5100 }
0x12d0   :  { %5654 = vrot.lane.b32.xlu1 %v5101_v14, %s20473_s16 }
0x12d3   :  { %v5199_v9 = vpop.permute.xlu1 %5198 }
0x12d4   :  { %18207 = vmatpush3.xpose.msk.msra.mxu1 %vm1199_vm2, %v5199_v9 }
0x12d5   :  { %18216 = vmatprep.subr.mxu1 %v22918_v33 }
0x12d7   :  { %18209 = vmatmul.mubr.msk.f32.vlgmr.msra.gmra.mxu1 %vm1199_vm2, %v5004_v62 }
0x12d8   :  { %18218 = vmatprep.mubr.msk.f32.mxu1 %vm20471_vm1, %v22918_v33 }
0x1334   :  { %v5351_v16 = vpop.permute.xlu1 %5350 }
0x1335   :  { %18217 = vmatpush3.xpose.msk.msra.mxu1 %vm1199_vm2, %v5351_v16 }
0x1336   :  { %v5275_v42 = vpop.permute.xlu0 %5274  ;;  %18226 = vmatprep.subr.mxu1 %v22918_v33 }
0x1337   :  { %18212 = vmatpush3.xpose.msk.msra.mxu0 %vm1199_vm2, %v5275_v42 }
0x1338   :  { %18219 = vmatmul.mubr.msk.f32.vlgmr.msra.gmra.mxu1 %vm1199_vm2, %v5093_v43  ;;  %18221 = vmatprep.subr.mxu0 %v22918_v33 }
0x1339   :  { %18228 = vmatprep.mubr.msk.f32.mxu1 %vm20471_vm1, %v22918_v33 }
0x133a   :  { %18214 = vmatmul.mubr.msk.f32.vlgmr.msra.gmra.mxu0 %vm1199_vm2, %v5091_v45  ;;  %v5427_v53 = vpop.permute.xlu0 %5426 }
0x133b   :  { %18222 = vmatpush3.xpose.msk.msra.mxu0 %vm1199_vm2, %v5427_v53  ;;  %18223 = vmatprep.mubr.msk.f32.mxu0 %vm20471_vm1, %v22918_v33 }
0x133c   :  { %18231 = vmatprep.subr.mxu0 %v22918_v33 }
0x133e   :  { %18224 = vmatmul.mubr.msk.f32.vlgmr.msra.gmra.mxu0 %vm1199_vm2, %v5095_v18  ;;  %v5579_v4 = vpop.permute.xlu0 %5578  ;;  %v5503_v52 = vpop.permute.xlu1 %5502 }
0x133f   :  { %18227 = vmatpush3.xpose.msk.msra.mxu1 %vm1199_vm2, %v5503_v52  ;;  %18232 = vmatpush3.xpose.msk.msra.mxu0 %vm1199_vm2, %v5579_v4 }
0x1340   :  { %18233 = vmatprep.mubr.msk.f32.mxu0 %vm20471_vm1, %v22918_v33  ;;  %18236 = vmatprep.subr.mxu1 %v22918_v33 }
0x1341   :  { %18241 = vmatprep.subr.mxu0 %v22918_v33 }
0x1342   :  { %18229 = vmatmul.mubr.msk.f32.vlgmr.msra.gmra.mxu1 %vm1199_vm2, %v5097_v63  ;;  %18234 = vmatmul.mubr.msk.f32.vlgmr.msra.gmra.mxu0 %vm1199_vm2, %v5099_v8  ;;  %v5655_v1 = vpop.permute.xlu1 %5654 }
0x1343   :  { %18237 = vmatpush3.xpose.msk.msra.mxu1 %vm1199_vm2, %v5655_v1  ;;  %18242 = vmatpush3.msra.mxu0 %v21545_v12 }
0x1344   :  { %18238 = vmatprep.mubr.msk.f32.mxu1 %vm20471_vm1, %v22918_v33  ;;  %18246 = vmatprep.subr.mxu1 %v22918_v33 }
0x1345   :  { %18243 = vmatprep.mubr.msk.f32.mxu0 %vm20471_vm1, %v22918_v33  ;;  %18251 = vmatprep.subr.mxu0 %v22918_v33 }
0x1346   :  { %18239 = vmatmul.mubr.msk.f32.vlgmr.msra.gmra.mxu1 %vm1199_vm2, %v5101_v14 }
0x1347   :  { %18247 = vmatpush3.msra.mxu1 %v21555_v7  ;;  %18248 = vmatprep.mubr.msk.f32.mxu1 %vm20471_vm1, %v22918_v33 }
0x1348   :  { %18256 = vmatprep.subr.mxu1 %v22918_v33 }
0x138d   :  { %v5194_v15 = vpop.f32.mrf.mxu1 }
0x138e   :  { %v5730_v62 = vmul.f32 0.35355338, %v5194_v15 }
0x138f   :  { %v18205_v26 = vpop.f32.mrf.mxu1 }
0x1390   :  { %v5738_v57 = vsel %vm1199_vm2, %v5730_v62, -inf }
0x1391   :  { %5739 = vmax.xlane.f32.xlu0 %v5738_v57 }
0x1397   :  { %v5270_v43 = vpop.f32.mrf.mxu1 }
0x1398   :  { %v5731_v45 = vmul.f32 0.35355338, %v5270_v43 }
0x1399   :  { %v18210_v8 = vpop.f32.mrf.mxu1 }
0x139a   :  { %v5741_v18 = vsel %vm1199_vm2, %v5731_v45, -inf }
0x139b   :  { %5742 = vmax.xlane.f32.xlu1 %v5741_v18 }
0x13f8   :  { %v5422_v37 = vpop.f32.mrf.mxu1 }
0x13f9   :  { %v5733_v42 = vmul.f32 0.35355338, %v5422_v37 }
0x13fa   :  { %v5346_v63 = vpop.f32.mrf.mxu0  ;;  %v18220_v14 = vpop.f32.mrf.mxu1 }
0x13fb   :  { %v5732_v9 = vmul.f32 0.35355338, %v5346_v63  ;;  %v5747_v2 = vsel %vm1199_vm2, %v5733_v42, -inf }
0x13fc   :  { %v18215_v16 = vpop.f32.mrf.mxu0 }
0x13fd   :  { %v5744_v55 = vsel %vm1199_vm2, %v5732_v9, -inf }
0x13fe   :  { %5745 = vmax.xlane.f32.xlu0 %v5744_v55  ;;  %v5498_v53 = vpop.f32.mrf.mxu0 }
0x13ff   :  { %v5734_v60 = vmul.f32 0.35355338, %v5498_v53 }
0x1400   :  { %v18225_v4 = vpop.f32.mrf.mxu0 }
0x1401   :  { %v5750_v52 = vsel %vm1199_vm2, %v5734_v60, -inf }
0x1402   :  { %v5650_v1 = vpop.f32.mrf.mxu0  ;;  %5751 = vmax.xlane.f32.xlu1 %v5750_v52  ;;  %5748 = vmax.xlane.f32.xlu0 %v5747_v2  ;;  %v5574_v15 = vpop.f32.mrf.mxu1 }
0x1403   :  { %v5736_v26 = vmul.f32 0.35355338, %v5650_v1  ;;  %v5735_v57 = vmul.f32 0.35355338, %v5574_v15 }
0x1404   :  { %v18230_v43 = vpop.f32.mrf.mxu1  ;;  %v18235_v8 = vpop.f32.mrf.mxu0 }
0x1405   :  { %v5756_v18 = vsel %vm1199_vm2, %v5736_v26, -inf  ;;  %v5753_v37 = vsel %vm1199_vm2, %v5735_v57, -inf }
0x1406   :  { %5757 = vmax.xlane.f32.xlu1 %v5756_v18  ;;  %5754 = vmax.xlane.f32.xlu0 %v5753_v37  ;;  %v5726_v63 = vpop.f32.mrf.mxu1 }
0x1407   :  { %v5737_v14 = vmul.f32 0.35355338, %v5726_v63 }
0x1408   :  { %v18240_v16 = vpop.f32.mrf.mxu1 }
0x1409   :  { %v5759_v55 = vsel %vm1199_vm2, %v5737_v14, -inf }
0x140a   :  { %5760 = vmax.xlane.f32.xlu0 %v5759_v55 }
0x1417   :  { %5104 = vrot.lane.b32.xlu1 %v21545_v12, %s20470_s15 }
0x141a   :  { %v5740_v52 = vpop.xlane.xlu0 %5739 }
0x141b   :  { %5110 = vrot.lane.b32.xlu1 %v21545_v12, %s20469_s3  ;;  %v5762_v2 = vsub.f32 %v5730_v62, %v5740_v52 }
0x141d   :  { %v5770_v15 = vmul.f32 1.442695, %v5762_v2 }
0x141f   :  { %5112 = vrot.lane.b32.xlu1 %v21555_v7, %s20469_s3 }
0x1420   :  { %5106 = vrot.lane.b32.xlu0 %v21555_v7, %s20470_s15 }
0x1424   :  { %v5743_v53 = vpop.xlane.xlu1 %5742 }
0x1425   :  { %v5763_v4 = vsub.f32 %v5731_v45, %v5743_v53 }
0x1427   :  { %v5772_v1 = vmul.f32 1.442695, %v5763_v4 }
0x1429   :  { %19272 = vpow2.f32 %v5772_v1 }
0x142a   :  { %19274 = vpow2.f32 %v5770_v15 }
0x1436   :  { %v19273_v43 = vpop.eup %19272 }
0x1437   :  { %v5789_v8 = vsel %vm1199_vm2, %v19273_v43, 0.0  ;;  %v19275_v18 = vpop.eup %19274 }
0x1438   :  { %v5786_v37 = vsel %vm1199_vm2, %v19275_v18, 0.0 }
0x143f   :  { %5790 = vadd.xlane.f32.xlu0 %v5789_v8 }
0x1443   :  { %5787 = vadd.xlane.f32.xlu1 %v5786_v37 }
0x1487   :  { %v5746_v63 = vpop.xlane.xlu0 %5745 }
0x1488   :  { %v5764_v16 = vsub.f32 %v5732_v9, %v5746_v63 }
0x148a   :  { %v5774_v55 = vmul.f32 1.442695, %v5764_v16 }
0x148b   :  { %v5749_v33 = vpop.xlane.xlu0 %5748  ;;  %v5752_v19 = vpop.xlane.xlu1 %5751 }
0x148c   :  { %19276 = vpow2.f32 %v5774_v55  ;;  %v5765_v45 = vsub.f32 %v5733_v42, %v5749_v33  ;;  %v5766_v62 = vsub.f32 %v5734_v60, %v5752_v19 }
0x148e   :  { %v5776_v53 = vmul.f32 1.442695, %v5765_v45  ;;  %v5778_v4 = vmul.f32 1.442695, %v5766_v62 }
0x148f   :  { %v5755_v52 = vpop.xlane.xlu0 %5754  ;;  %v5758_v2 = vpop.xlane.xlu1 %5757 }
0x1490   :  { %19278 = vpow2.f32 %v5776_v53  ;;  %v5767_v1 = vsub.f32 %v5735_v57, %v5755_v52  ;;  %v5768_v15 = vsub.f32 %v5736_v26, %v5758_v2 }
0x1491   :  { %19280 = vpow2.f32 %v5778_v4 }
0x1492   :  { %v5780_v8 = vmul.f32 1.442695, %v5767_v1  ;;  %v5782_v13 = vmul.f32 1.442695, %v5768_v15 }
0x1493   :  { %v5761_v11 = vpop.xlane.xlu0 %5760  ;;  %v5105_v45 = vpop.permute.xlu1 %5104 }
0x1494   :  { %19282 = vpow2.f32 %v5780_v8  ;;  %v5769_v37 = vsub.f32 %v5737_v14, %v5761_v11 }
0x1495   :  { %19284 = vpow2.f32 %v5782_v13 }
0x1496   :  { %v5784_v9 = vmul.f32 1.442695, %v5769_v37  ;;  %v23004_v37 = vmov 0.0  }
0x1497   :  { %v5111_v62 = vpop.permute.xlu1 %5110  ;;  %v5107_v53 = vpop.permute.xlu0 %5106 }
0x1498   :  { %19286 = vpow2.f32 %v5784_v9 }
0x1499   :  { %v19277_v63 = vpop.eup %19276 }
0x149a   :  { %v5792_v33 = vsel %vm1199_vm2, %v19277_v63, 0.0 }
0x149b   :  { %5793 = vadd.xlane.f32.xlu1 %v5792_v33  ;;  %v5113_v4 = vpop.permute.xlu1 %5112 }
0x149d   :  { %v19279_v19 = vpop.eup %19278 }
0x149e   :  { %v19281_v42 = vpop.eup %19280  ;;  %v5795_v60 = vsel %vm1199_vm2, %v19279_v19, 0.0 }
0x149f   :  { %5796 = vadd.xlane.f32.xlu0 %v5795_v60  ;;  %v5798_v26 = vsel %vm1199_vm2, %v19281_v42, 0.0 }
0x14a0   :  { %5799 = vadd.xlane.f32.xlu1 %v5798_v26 }
0x14a1   :  { %v19283_v57 = vpop.eup %19282 }
0x14a2   :  { %v21586_v16 = vpop.eup %19284  ;;  %v5801_v11 = vsel %vm1199_vm2, %v19283_v57, 0.0 }
0x14a3   :  { %5802 = vadd.xlane.f32.xlu0 %v5801_v11  ;;  %v5804_v13 = vsel %vm1199_vm2, %v21586_v16, 0.0 }
0x14a4   :  { %5805 = vadd.xlane.f32.xlu1 %v5804_v13 }
0x14a5   :  { %v21591_v14 = vpop.eup %19286 }
0x14a6   :  { %v5807_v55 = vsel %vm1199_vm2, %v21591_v14, 0.0 }
0x14a7   :  { %5808 = vadd.xlane.f32.xlu0 %v5807_v55 }
0x14b5   :  { %5118 = vrot.lane.b32.xlu1 %v21555_v7, %s20472_s6 }
0x14bd   :  { %5116 = vrot.lane.b32.xlu0 %v21545_v12, %s20472_s6 }
0x14c8   :  { %v5791_v52 = vpop.xlane.xlu0 %5790 }
0x14c9   :  { %19288 = vrcp.f32 %v5791_v52 }
0x14cc   :  { %v5788_v2 = vpop.xlane.xlu1 %5787 }
0x14cd   :  { %19290 = vrcp.f32 %v5788_v2 }
0x14d6   :  { %v19289_v1 = vpop.eup %19288 }
0x14d7   :  { %v5819_v15 = vmul.f32 %v19289_v1, %v19273_v43 }
0x14d9   :  { %18249 = vmatmul.mubr.msk.f32.vlgmr.msra.gmra.mxu1 %vm1199_vm2, %v5819_v15 }
0x14da   :  { %v19291_v8 = vpop.eup %19290  ;;  %18257 = vmatpush3.msra.mxu1 %v5107_v53  ;;  %18258 = vmatprep.mubr.msk.f32.mxu1 %vm20471_vm1, %v23004_v37 }
0x14db   :  { %v5818_v7 = vmul.f32 %v19291_v8, %v19275_v18  ;;  %18266 = vmatprep.subr.mxu1 %v23004_v37 }
0x14dd   :  { %18244 = vmatmul.mubr.msk.f32.vlgmr.msra.gmra.mxu0 %vm1199_vm2, %v5818_v7 }
0x14de   :  { %18252 = vmatpush3.msra.mxu0 %v5105_v45  ;;  %18253 = vmatprep.mubr.msk.f32.mxu0 %vm20471_vm1, %v23004_v37 }
0x14df   :  { %18261 = vmatprep.subr.mxu0 %v23004_v37 }
0x1524   :  { %v5794_v12 = vpop.xlane.xlu1 %5793 }
0x1525   :  { %19292 = vrcp.f32 %v5794_v12 }
0x1528   :  { %v5797_v43 = vpop.xlane.xlu0 %5796 }
0x1529   :  { %19294 = vrcp.f32 %v5797_v43  ;;  %v5800_v9 = vpop.xlane.xlu1 %5799 }
0x152a   :  { %19296 = vrcp.f32 %v5800_v9 }
0x152c   :  { %v5803_v33 = vpop.xlane.xlu0 %5802 }
0x152d   :  { %19298 = vrcp.f32 %v5803_v33  ;;  %v5806_v60 = vpop.xlane.xlu1 %5805 }
0x152e   :  { %19300 = vrcp.f32 %v5806_v60  ;;  %v19530_v60 = vld [vmem:[%s22997_s18 + $0x10] sm:$0xff] }
0x1530   :  { %v5809_v18 = vpop.xlane.xlu0 %5808 }
0x1531   :  { %19302 = vrcp.f32 %v5809_v18 }
0x1532   :  { %v19293_v26 = vpop.eup %19292 }
0x1533   :  { %v5820_v11 = vmul.f32 %v19293_v26, %v19277_v63  ;;  %v19531_v26 = vld [vmem:[%s22997_s18 + $0x18] sm:$0xff] }
0x1534   :  { %v5117_v2 = vpop.permute.xlu0 %5116 }
0x1535   :  { %18254 = vmatmul.mubr.msk.f32.vlgmr.msra.gmra.mxu0 %vm1199_vm2, %v5820_v11  ;;  %v6740_v1 = vadd.f32 %v5820_v11, %v5818_v7 }
0x1536   :  { %v19295_v13 = vpop.eup %19294  ;;  %18262 = vmatpush3.msra.mxu0 %v5111_v62  ;;  %18263 = vmatprep.mubr.msk.f32.mxu0 %vm20471_vm1, %v23004_v37 }
0x1537   :  { %v19297_v55 = vpop.eup %19296  ;;  %18271 = vmatprep.subr.mxu0 %v23004_v37  ;;  %v5821_v45 = vmul.f32 %v19295_v13, %v19279_v19 }
0x1538   :  { %v5822_v53 = vmul.f32 %v19297_v55, %v19281_v42  ;;  %v5119_v42 = vpop.permute.xlu1 %5118 }
0x1539   :  { %18259 = vmatmul.mubr.msk.f32.vlgmr.msra.gmra.mxu1 %vm1199_vm2, %v5821_v45  ;;  %v6741_v7 = vadd.f32 %v5821_v45, %v5819_v15 }
0x153a   :  { %v19299_v52 = vpop.eup %19298  ;;  %18264 = vmatmul.mubr.msk.f32.vlgmr.msra.gmra.mxu0 %vm1199_vm2, %v5822_v53  ;;  %18267 = vmatpush3.msra.mxu1 %v5113_v4  ;;  %v6742_v8 = vadd.f32 %v6740_v1, %v5822_v53  ;;  %v19528_v4 = vld [vmem:[%s22997_s18 + $0x8] sm:$0xff] }
0x153b   :  { %v19301_v63 = vpop.eup %19300  ;;  %18272 = vmatpush3.msra.mxu0 %v5117_v2  ;;  %18268 = vmatprep.mubr.msk.f32.mxu1 %vm20471_vm1, %v23004_v37  ;;  %v5823_v62 = vmul.f32 %v19299_v52, %v19283_v57 }
0x153c   :  { %18273 = vmatprep.mubr.msk.f32.mxu0 %vm20471_vm1, %v23004_v37  ;;  %18276 = vmatprep.subr.mxu1 %v23004_v37  ;;  %v5824_v19 = vmul.f32 %v19301_v63, %v21586_v16  ;;  %v19529_v16 = vld [vmem:[%s22997_s18] sm:$0xff] }
0x153d   :  { %18269 = vmatmul.mubr.msk.f32.vlgmr.msra.gmra.mxu1 %vm1199_vm2, %v5823_v62  ;;  %18281 = vmatprep.subr.mxu0 %v19528_v4  ;;  %v6743_v43 = vadd.f32 %v6741_v7, %v5823_v62  ;;  %v19532_v62 = vld [vmem:[%s22998_s5 + $0x18] sm:$0xff] }
0x153e   :  { %v19303_v12 = vpop.eup %19302  ;;  %18274 = vmatmul.mubr.msk.f32.vlgmr.msra.gmra.mxu0 %vm1199_vm2, %v5824_v19  ;;  %v6744_v57 = vadd.f32 %v6742_v8, %v5824_v19  ;;  %18277 = vmatpush3.msra.mxu1 %v5119_v42 }
0x153f   :  { %18278 = vmatprep.mubr.msk.f32.mxu1 %vm20471_vm1, %v23004_v37  ;;  %v5825_v9 = vmul.f32 %v19303_v12, %v21591_v14  ;;  %18286 = vmatprep.subr.mxu1 %v19529_v16 }
0x1540   :  { %v6746_v15 = vmul.f32 0.25, %v6744_v57  ;;  %18282 = vmatpush3.msra.mxu0 %v19528_v4  ;;  %v19533_v4 = vld [vmem:[%s22998_s5 + $0x10] sm:$0xff]  ;;  %v19534_v57 = vld [vmem:[%s22998_s5 + $0x8] sm:$0xff] }
0x1541   :  { %18279 = vmatmul.mubr.msk.f32.vlgmr.msra.gmra.mxu1 %vm1199_vm2, %v5825_v9  ;;  %v6745_v33 = vadd.f32 %v6743_v43, %v5825_v9  ;;  %18291 = vmatprep.subr.mxu0 %v19530_v60  ;;  %v19535_v9 = vld [vmem:[%s22998_s5] sm:$0xff] }
0x1542   :  { %8736 = vst.msk [vmem:[#allocation55 + $0x10] sm:$0xff] %vm1199_vm2, %v6746_v15  ;;  %18287 = vmatpush3.msra.mxu1 %v19529_v16 }
0x1543   :  { %v6747_v18 = vmul.f32 0.25, %v6745_v33  ;;  %18296 = vmatprep.subr.mxu1 %v19531_v26 }
0x1545   :  { %8737 = vst.msk [vmem:[#allocation55 + $0x18] sm:$0xff] %vm1199_vm2, %v6747_v18 }
0x1599   :  { %v5968_v11 = vpop.f32.mrf.mxu1 }
0x159b   :  { %v18250_v13 = vpop.f32.mrf.mxu1 }
0x159d   :  { %v5895_v14 = vpop.f32.mrf.mxu0 }
0x159e   :  { %18288 = vmatprep.mubr.msk.f32.mxu1 %vm1199_vm2, %v5895_v14 }
0x159f   :  { %v18245_v55 = vpop.f32.mrf.mxu0  ;;  %18289 = vmatmul.mubr.msk.f32.vlgmr.msra.gmra.mxu1 %vm1199_vm2, %v5968_v11 }
0x15a0   :  { %18297 = vmatpush3.msra.mxu1 %v19531_v26 }
0x15a1   :  { %18312 = vmatprep.subr.mxu1 %v23004_v37 }
0x15f5   :  { %v6041_v45 = vpop.f32.mrf.mxu0 }
0x15f6   :  { %18283 = vmatprep.mubr.msk.f32.mxu0 %vm1199_vm2, %v6041_v45 }
0x15f7   :  { %v18255_v53 = vpop.f32.mrf.mxu0 }
0x15f9   :  { %v6114_v52 = vpop.f32.mrf.mxu1 }
0x15fa   :  { %v6187_v2 = vpop.f32.mrf.mxu0  ;;  %18284 = vmatmul.mubr.msk.f32.vlgmr.msra.gmra.mxu0 %vm1199_vm2, %v6114_v52  ;;  %v19536_v52 = vld [vmem:[#allocation11] ss:$0 sm:$0xff] }
0x15fb   :  { %v18260_v1 = vpop.f32.mrf.mxu1  ;;  %18293 = vmatprep.mubr.msk.f32.mxu0 %vm1199_vm2, %v6187_v2  ;;  %18292 = vmatpush3.msra.mxu0 %v19530_v60 }
0x15fc   :  { %v18265_v63 = vpop.f32.mrf.mxu0  ;;  %18301 = vmatprep.subr.mxu0 %v19532_v62 }
0x15fd   :  { %v6260_v8 = vpop.f32.mrf.mxu1 }
0x15fe   :  { %v6333_v19 = vpop.f32.mrf.mxu0  ;;  %18294 = vmatmul.mubr.msk.f32.vlgmr.msra.gmra.mxu0 %vm1199_vm2, %v6260_v8 }
0x15ff   :  { %18298 = vmatprep.mubr.msk.f32.mxu1 %vm1199_vm2, %v6333_v19  ;;  %v18270_v42 = vpop.f32.mrf.mxu1  ;;  %18302 = vmatpush3.msra.mxu0 %v19532_v62 }
0x1600   :  { %v18275_v7 = vpop.f32.mrf.mxu0  ;;  %18303 = vmatprep.subr.mxu0 %v19533_v4 }
0x1601   :  { %v6406_v12 = vpop.f32.mrf.mxu1  ;;  %18304 = vmatpush3.msra.mxu0 %v19533_v4 }
0x1602   :  { %18299 = vmatmul.mubr.msk.f32.vlgmr.msra.gmra.mxu1 %vm1199_vm2, %v6406_v12  ;;  %18305 = vmatprep.subr.mxu0 %v19534_v57 }
0x1603   :  { %18313 = vmatpush3.xpose.msk.msra.mxu1 %vm1199_vm2, %v21102_v0  ;;  %v18280_v43 = vpop.f32.mrf.mxu1  ;;  %18306 = vmatpush3.msra.mxu0 %v19534_v57 }
0x1604   :  { %18314 = vmatprep.subr.mxu1 %v23004_v37  ;;  %18307 = vmatprep.subr.mxu0 %v19535_v9 }
0x1605   :  { %18308 = vmatpush3.msra.mxu0 %v19535_v9  ;;  %18316 = vmatprep.mubr.msk.f32.mxu1 %vm20471_vm1, %v23004_v37 }
0x1606   :  { %18319 = vmatprep.subr.mxu0 %v23004_v37 }
0x1607   :  { %18315 = vmatpush3.xpose.msk.msra.mxu1 %vm1199_vm2, %v21112_v6 }
0x1608   :  { %18326 = vmatprep.subr.mxu1 %v23004_v37 }
0x165f   :  { %v18290_v15 = vpop.f32.mrf.mxu1 }
0x1661   :  { %v6563_v18 = vpop.f32.mrf.mxu1 }
0x16ba   :  { %v18285_v16 = vpop.f32.mrf.mxu0 }
0x16bb   :  { %v6569_v60 = vadd.f32 %v18290_v15, %v18285_v16 }
0x16bc   :  { %v6482_v0 = vpop.f32.mrf.mxu0 }
0x16bd   :  { %v6564_v11 = vadd.f32 %v6563_v18, %v6482_v0 }
0x16be   :  { %v18295_v33 = vpop.f32.mrf.mxu0 }
0x16bf   :  { %v6654_v13 = vadd.f32 %v18295_v33, %v6569_v60 }
0x16c0   :  { %v6644_v26 = vpop.f32.mrf.mxu0 }
0x16c1   :  { %v6653_v55 = vadd.f32 %v6644_v26, %v6564_v11 }
0x16c2   :  { %v18300_v14 = vpop.f32.mrf.mxu1 }
0x16c3   :  { %v6737_v45 = vadd.f32 %v18300_v14, %v6654_v13 }
0x16c4   :  { %v6727_v53 = vpop.f32.mrf.mxu1 }
0x16c5   :  { %v6739_v2 = vadd.f32 %v19536_v52, %v6737_v45  ;;  %v6736_v1 = vadd.f32 %v6727_v53, %v6653_v55  ;;  %v19537_v45 = vld [vmem:[#allocation25] ss:$0 sm:$0xff] }
0x16c7   :  { %v6738_v63 = vadd.f32 %v19536_v52, %v6736_v1  ;;  %v6749_v6 = vadd.f32 %v6739_v2, %v21478_v61  ;;  %v19538_v1 = vld [vmem:[#allocation26] ss:$0 sm:$0xff] }
0x16c9   :  { %v6753_v62 = vsel %vm718_vm0, %v6749_v6, 0.0  ;;  %v6748_v8 = vadd.f32 %v6738_v63, %v21480_v10 }
0x16ca   :  { %6754 = vadd.xlane.f32.xlu1 %v6753_v62 }
0x16cb   :  { %v6750_v19 = vsel %vm718_vm0, %v6748_v8, 0.0 }
0x16cc   :  { %6751 = vadd.xlane.f32.xlu0 %v6750_v19 }
0x1753   :  { %v6755_v42 = vpop.xlane.xlu1 %6754 }
0x1754   :  { %v6757_v7 = vmul.f32 0.03125, %v6755_v42  ;;  %v19539_v42 = vld [vmem:[#allocation13] ss:$0 sm:$0xff] }
0x1755   :  { %v6752_v4 = vpop.xlane.xlu0 %6751 }
0x1756   :  { %v6756_v12 = vmul.f32 0.03125, %v6752_v4  ;;  %v6759_v57 = vsub.f32 %v6749_v6, %v6757_v7 }
0x1758   :  { %v6758_v43 = vsub.f32 %v6748_v8, %v6756_v12  ;;  %v6761_v15 = vmul.f32 %v6759_v57, %v6759_v57 }
0x175a   :  { %v6760_v9 = vmul.f32 %v6758_v43, %v6758_v43  ;;  %v6765_v0 = vsel %vm718_vm0, %v6761_v15, 0.0 }
0x175c   :  { %v6762_v16 = vsel %vm718_vm0, %v6760_v9, 0.0 }
0x175d   :  { %6763 = vadd.xlane.f32.xlu0 %v6762_v16 }
0x1761   :  { %6766 = vadd.xlane.f32.xlu0 %v6765_v0 }
0x17e6   :  { %v6764_v33 = vpop.xlane.xlu0 %6763 }
0x17e7   :  { %v6768_v60 = vmul.f32 0.03125, %v6764_v33 }
0x17e9   :  { %v6770_v18 = vadd.f32 1e-05, %v6768_v60 }
0x17ea   :  { %v6767_v26 = vpop.xlane.xlu0 %6766 }
0x17eb   :  { %19304 = vrsqrt.f32 %v6770_v18  ;;  %v6769_v11 = vmul.f32 0.03125, %v6767_v26 }
0x17ed   :  { %v6771_v13 = vadd.f32 1e-05, %v6769_v11 }
0x17ef   :  { %19306 = vrsqrt.f32 %v6771_v13 }
0x17f8   :  { %v19305_v14 = vpop.eup %19304 }
0x17f9   :  { %v6774_v55 = vmul.f32 %v19305_v14, %v6758_v43 }
0x17fb   :  { %v6776_v53 = vmul.f32 %v19537_v45, %v6774_v55 }
0x17fc   :  { %v19307_v52 = vpop.eup %19306 }
0x17fd   :  { %v6775_v2 = vmul.f32 %v19307_v52, %v6759_v57  ;;  %v21659_v63 = vadd.f32 %v19538_v1, %v6776_v53 }
0x17ff   :  { %v6780_v6 = vadd.f32 %v21482_v21, %v21659_v63  ;;  %v6777_v62 = vmul.f32 %v19537_v45, %v6775_v2 }
0x1801   :  { %18309 = vmatprep.mubr.msk.f32.mxu0 %vm718_vm0, %v6780_v6  ;;  %v21664_v8 = vadd.f32 %v19538_v1, %v6777_v62 }
0x1803   :  { %v6781_v19 = vadd.f32 %v21486_v59, %v21664_v8 }
0x1805   :  { %18310 = vmatmul.mubr.msk.f32.vlgmr.msra.gmra.mxu0 %vm718_vm0, %v6781_v19 }
0x1806   :  { %18320 = vmatpush3.xpose.msk.msra.mxu0 %vm1199_vm2, %v20918_v30  ;;  %18323 = vmatprep.mubr.msk.f32.mxu0 %vm20471_vm1, %v23004_v37 }
0x1807   :  { %18321 = vmatprep.subr.mxu0 %v23004_v37 }
0x180a   :  { %18322 = vmatpush3.xpose.msk.msra.mxu0 %vm1199_vm2, %v21127_v36 }
0x180b   :  { %18333 = vmatprep.subr.mxu0 %v23004_v37 }
0x18c5   :  { %v18311_v21 = vpop.f32.mrf.mxu0 }
0x18c6   :  { %v6860_v7 = vadd.f32 %v19539_v42, %v18311_v21 }
0x18c7   :  { %v6854_v4 = vpop.f32.mrf.mxu0 }
0x18c8   :  { %v6855_v59 = vadd.f32 %v19539_v42, %v6854_v4  ;;  %6867 = vrot.lane.b32.xlu0 %v6860_v7, %s20470_s15  ;;  %18324 = vmatmul.mubr.msk.f32.vlgmr.msra.gmra.mxu0 %vm1199_vm2, %v6860_v7 }
0x18c9   :  { %18334 = vmatpush3.xpose.msk.msra.mxu0 %vm1199_vm2, %v21176_v20  ;;  %18337 = vmatprep.mubr.msk.f32.mxu0 %vm20471_vm1, %v23004_v37 }
0x18ca   :  { %6865 = vrot.lane.b32.xlu1 %v6855_v59, %s20470_s15  ;;  %18317 = vmatmul.mubr.msk.f32.vlgmr.msra.gmra.mxu1 %vm1199_vm2, %v6855_v59 }
0x18cb   :  { %18327 = vmatpush3.xpose.msk.msra.mxu1 %vm1199_vm2, %v21172_v17  ;;  %18335 = vmatprep.subr.mxu0 %v23004_v37 }
0x18cc   :  { %6873 = vrot.lane.b32.xlu0 %v6855_v59, %s20472_s6  ;;  %18328 = vmatprep.subr.mxu1 %v23004_v37 }
0x18cd   :  { %18336 = vmatpush3.xpose.msk.msra.mxu0 %vm1199_vm2, %v21189_v25  ;;  %18330 = vmatprep.mubr.msk.f32.mxu1 %vm20471_vm1, %v23004_v37 }
0x18ce   :  { %6869 = vrot.lane.b32.xlu1 %v6855_v59, %s20469_s3  ;;  %18347 = vmatprep.subr.mxu0 %v23004_v37 }
0x18cf   :  { %18329 = vmatpush3.xpose.msk.msra.mxu1 %vm1199_vm2, %v21174_v23 }
0x18d0   :  { %18340 = vmatprep.subr.mxu1 %v23004_v37 }
0x18d2   :  { %6871 = vrot.lane.b32.xlu1 %v6860_v7, %s20469_s3 }
0x18d6   :  { %6875 = vrot.lane.b32.xlu1 %v6860_v7, %s20472_s6 }
0x193a   :  { %v6868_v30 = vpop.permute.xlu0 %6867 }
0x193b   :  { %18338 = vmatmul.mubr.msk.f32.vlgmr.msra.gmra.mxu0 %vm1199_vm2, %v6868_v30 }
0x193c   :  { %18348 = vmatpush3.xpose.msk.msra.mxu0 %vm1199_vm2, %v21208_v27  ;;  %v6866_v36 = vpop.permute.xlu1 %6865  ;;  %18351 = vmatprep.mubr.msk.f32.mxu0 %vm20471_vm1, %v23004_v37 }
0x193d   :  { %18331 = vmatmul.mubr.msk.f32.vlgmr.msra.gmra.mxu1 %vm1199_vm2, %v6866_v36  ;;  %18349 = vmatprep.subr.mxu0 %v23004_v37 }
0x193e   :  { %18341 = vmatpush3.xpose.msk.msra.mxu1 %vm1199_vm2, %v21206_v29  ;;  %18344 = vmatprep.mubr.msk.f32.mxu1 %vm20471_vm1, %v23004_v37  ;;  %v6874_v20 = vpop.permute.xlu0 %6873 }
0x193f   :  { %18342 = vmatprep.subr.mxu1 %v23004_v37 }
0x1940   :  { %18350 = vmatpush3.xpose.msk.msra.mxu0 %vm1199_vm2, %v21210_v32  ;;  %v6870_v17 = vpop.permute.xlu1 %6869 }
0x1941   :  { %18361 = vmatprep.subr.mxu0 %v23004_v37 }
0x1942   :  { %18343 = vmatpush3.xpose.msk.msra.mxu1 %vm1199_vm2, %v21212_v34 }
0x1943   :  { %18354 = vmatprep.subr.mxu1 %v23004_v37 }
0x1944   :  { %v6872_v23 = vpop.permute.xlu1 %6871 }
0x1945   :  { %18345 = vmatmul.mubr.msk.f32.vlgmr.msra.gmra.mxu1 %vm1199_vm2, %v6870_v17  ;;  %18352 = vmatmul.mubr.msk.f32.vlgmr.msra.gmra.mxu0 %vm1199_vm2, %v6872_v23 }
0x1946   :  { %18355 = vmatpush3.xpose.msk.msra.mxu1 %vm1199_vm2, %v21219_v38  ;;  %18362 = vmatpush3.xpose.msk.msra.mxu0 %vm1199_vm2, %v21231_v40 }
0x1947   :  { %18363 = vmatprep.subr.mxu0 %v23004_v37  ;;  %18356 = vmatprep.subr.mxu1 %v23004_v37 }
0x1948   :  { %18358 = vmatprep.mubr.msk.f32.mxu1 %vm20471_vm1, %v23004_v37  ;;  %18365 = vmatprep.mubr.msk.f32.mxu0 %vm20471_vm1, %v23004_v37  ;;  %v6876_v25 = vpop.permute.xlu1 %6875 }
0x194a   :  { %18357 = vmatpush3.xpose.msk.msra.mxu1 %vm1199_vm2, %v21248_v22  ;;  %18364 = vmatpush3.xpose.msk.msra.mxu0 %vm1199_vm2, %v21250_v35 }
0x194b   :  { %18368 = vmatprep.subr.mxu1 %v23004_v37  ;;  %18382 = vmatprep.subr.mxu0 %v23004_v37 }
0x194d   :  { %18359 = vmatmul.mubr.msk.f32.vlgmr.msra.gmra.mxu1 %vm1199_vm2, %v6874_v20  ;;  %18366 = vmatmul.mubr.msk.f32.vlgmr.msra.gmra.mxu0 %vm1199_vm2, %v6876_v25 }
0x194e   :  { %18369 = vmatpush3.msra.mxu1 %v21260_v41  ;;  %18383 = vmatpush3.msra.mxu0 %v21319_v3 }
0x194f   :  { %18370 = vmatprep.subr.mxu1 %v23004_v37  ;;  %18384 = vmatprep.subr.mxu0 %v23004_v37 }
0x1950   :  { %18371 = vmatpush3.msra.mxu1 %v21266_v44  ;;  %18385 = vmatpush3.msra.mxu0 %v21346_v28 }
0x1951   :  { %18372 = vmatprep.mubr.msk.f32.mxu1 %vm20471_vm1, %v23004_v37  ;;  %18375 = vmatprep.subr.mxu1 %v23004_v37 }
0x1952   :  { %18386 = vmatprep.mubr.msk.f32.mxu0 %vm20471_vm1, %v23004_v37  ;;  %18396 = vmatprep.subr.mxu0 %v23004_v37 }
0x1988   :  { %v7017_v29 = vpop.f32.mrf.mxu0 }
0x1989   :  { %v7454_v27 = vmul.f32 0.35355338, %v7017_v29 }
0x198a   :  { %v6945_v32 = vpop.f32.mrf.mxu1  ;;  %v18325_v34 = vpop.f32.mrf.mxu0 }
0x198b   :  { %v7453_v38 = vmul.f32 0.35355338, %v6945_v32  ;;  %v7464_v40 = vsel %vm3594_vm3, %v7454_v27, -inf }
0x198c   :  { %7465 = vmax.xlane.f32.xlu1 %v7464_v40  ;;  %v18318_v22 = vpop.f32.mrf.mxu1 }
0x198d   :  { %v7461_v35 = vsel %vm3594_vm3, %v7453_v38, -inf }
0x198e   :  { %7462 = vmax.xlane.f32.xlu0 %v7461_v35 }
0x19fb   :  { %v7161_v41 = vpop.f32.mrf.mxu0 }
0x19fc   :  { %v7456_v57 = vmul.f32 0.35355338, %v7161_v41 }
0x19fd   :  { %v7089_v44 = vpop.f32.mrf.mxu1  ;;  %v18339_v3 = vpop.f32.mrf.mxu0 }
0x19fe   :  { %v7455_v28 = vmul.f32 0.35355338, %v7089_v44  ;;  %v7470_v9 = vsel %vm3594_vm3, %v7456_v57, -inf }
0x19ff   :  { %v18332_v12 = vpop.f32.mrf.mxu1 }
0x1a00   :  { %v7467_v43 = vsel %vm3594_vm3, %v7455_v28, -inf }
0x1a01   :  { %7468 = vmax.xlane.f32.xlu0 %v7467_v43 }
0x1a05   :  { %v7233_v16 = vpop.f32.mrf.mxu1  ;;  %v7305_v15 = vpop.f32.mrf.mxu0  ;;  %7471 = vmax.xlane.f32.xlu0 %v7470_v9 }
0x1a06   :  { %v7457_v0 = vmul.f32 0.35355338, %v7233_v16  ;;  %v7458_v33 = vmul.f32 0.35355338, %v7305_v15 }
0x1a07   :  { %v18346_v60 = vpop.f32.mrf.mxu1  ;;  %v18353_v18 = vpop.f32.mrf.mxu0 }
0x1a08   :  { %v7473_v26 = vsel %vm3594_vm3, %v7457_v0, -inf  ;;  %v7476_v11 = vsel %vm3594_vm3, %v7458_v33, -inf }
0x1a09   :  { %7474 = vmax.xlane.f32.xlu1 %v7473_v26  ;;  %7477 = vmax.xlane.f32.xlu0 %v7476_v11 }
0x1a0d   :  { %v7377_v13 = vpop.f32.mrf.mxu1  ;;  %v7449_v14 = vpop.f32.mrf.mxu0 }
0x1a0e   :  { %v7459_v55 = vmul.f32 0.35355338, %v7377_v13  ;;  %v7460_v45 = vmul.f32 0.35355338, %v7449_v14 }
0x1a0f   :  { %v18360_v53 = vpop.f32.mrf.mxu1  ;;  %v18367_v52 = vpop.f32.mrf.mxu0 }
0x1a10   :  { %v7482_v2 = vsel %vm3594_vm3, %v7460_v45, -inf  ;;  %v7479_v1 = vsel %vm3594_vm3, %v7459_v55, -inf }
0x1a11   :  { %7483 = vmax.xlane.f32.xlu0 %v7482_v2  ;;  %7480 = vmax.xlane.f32.xlu1 %v7479_v1 }
0x1a15   :  { %v7466_v6 = vpop.xlane.xlu1 %7465 }
0x1a16   :  { %v7486_v62 = vsub.f32 %v7454_v27, %v7466_v6 }
0x1a17   :  { %v7463_v19 = vpop.xlane.xlu0 %7462 }
0x1a18   :  { %v7495_v21 = vmul.f32 1.442695, %v7486_v62  ;;  %v7485_v42 = vsub.f32 %v7453_v38, %v7463_v19 }
0x1a1a   :  { %19308 = vpow2.f32 %v7495_v21  ;;  %v7493_v7 = vmul.f32 1.442695, %v7485_v42 }
0x1a1c   :  { %19310 = vpow2.f32 %v7493_v7 }
0x1a27   :  { %v19309_v4 = vpop.eup %19308 }
0x1a28   :  { %v7512_v59 = vsel %vm3594_vm3, %v19309_v4, 0.0 }
0x1a29   :  { %v19311_v30 = vpop.eup %19310  ;;  %7513 = vadd.xlane.f32.xlu0 %v7512_v59 }
0x1a2a   :  { %v7509_v36 = vsel %vm3594_vm3, %v19311_v30, 0.0 }
0x1a2b   :  { %7510 = vadd.xlane.f32.xlu1 %v7509_v36 }
0x1a8a   :  { %v7469_v17 = vpop.xlane.xlu0 %7468 }
0x1a8b   :  { %v7487_v23 = vsub.f32 %v7455_v28, %v7469_v17 }
0x1a8d   :  { %v7497_v20 = vmul.f32 1.442695, %v7487_v23 }
0x1a8e   :  { %v7472_v25 = vpop.xlane.xlu0 %7471 }
0x1a8f   :  { %19312 = vpow2.f32 %v7497_v20  ;;  %v7488_v29 = vsub.f32 %v7456_v57, %v7472_v25 }
0x1a91   :  { %v7499_v27 = vmul.f32 1.442695, %v7488_v29  ;;  %v19542_v29 = vld [vmem:[#allocation20 + $0x18] sm:$0xff] }
0x1a92   :  { %v7475_v32 = vpop.xlane.xlu1 %7474  ;;  %v7478_v34 = vpop.xlane.xlu0 %7477 }
0x1a93   :  { %19314 = vpow2.f32 %v7499_v27  ;;  %v7489_v38 = vsub.f32 %v7457_v0, %v7475_v32  ;;  %v7490_v40 = vsub.f32 %v7458_v33, %v7478_v34  ;;  %v19543_v32 = vld [vmem:[#allocation20 + $0x10] sm:$0xff] }
0x1a95   :  { %v7501_v22 = vmul.f32 1.442695, %v7489_v38  ;;  %v7503_v35 = vmul.f32 1.442695, %v7490_v40 }
0x1a97   :  { %19316 = vpow2.f32 %v7501_v22 }
0x1a98   :  { %19318 = vpow2.f32 %v7503_v35 }
0x1a9a   :  { %v7484_v41 = vpop.xlane.xlu0 %7483  ;;  %v7481_v44 = vpop.xlane.xlu1 %7480 }
0x1a9b   :  { %v7492_v3 = vsub.f32 %v7460_v45, %v7484_v41  ;;  %v7491_v12 = vsub.f32 %v7459_v55, %v7481_v44  ;;  %v19544_v41 = vld [vmem:[%s23000_s24 + $0x38] sm:$0xff] }
0x1a9c   :  { %v19313_v43 = vpop.eup %19312 }
0x1a9d   :  { %v7507_v28 = vmul.f32 1.442695, %v7492_v3  ;;  %v7505_v9 = vmul.f32 1.442695, %v7491_v12  ;;  %v7515_v16 = vsel %vm3594_vm3, %v19313_v43, 0.0 }
0x1a9e   :  { %7516 = vadd.xlane.f32.xlu1 %v7515_v16 }
0x1a9f   :  { %19320 = vpow2.f32 %v7507_v28  ;;  %v19545_v28 = vld [vmem:[%s22999_s22 + $0x18] sm:$0xff] }
0x1aa0   :  { %v19315_v57 = vpop.eup %19314  ;;  %19322 = vpow2.f32 %v7505_v9 }
0x1aa1   :  { %v7518_v15 = vsel %vm3594_vm3, %v19315_v57, 0.0 }
0x1aa2   :  { %7519 = vadd.xlane.f32.xlu0 %v7518_v15 }
0x1aa4   :  { %v19317_v0 = vpop.eup %19316 }
0x1aa5   :  { %v19319_v33 = vpop.eup %19318  ;;  %v7521_v60 = vsel %vm3594_vm3, %v19317_v0, 0.0 }
0x1aa6   :  { %7522 = vadd.xlane.f32.xlu1 %v7521_v60  ;;  %v7524_v18 = vsel %vm3594_vm3, %v19319_v33, 0.0 }
0x1aa7   :  { %7525 = vadd.xlane.f32.xlu0 %v7524_v18  ;;  %v19548_v18 = vld [vmem:[%s22999_s22] sm:$0xff] }
0x1aac   :  { %v21765_v26 = vpop.eup %19320 }
0x1aad   :  { %v21767_v11 = vpop.eup %19322  ;;  %v7530_v13 = vsel %vm3594_vm3, %v21765_v26, 0.0 }
0x1aae   :  { %7531 = vadd.xlane.f32.xlu0 %v7530_v13  ;;  %v7527_v14 = vsel %vm3594_vm3, %v21767_v11, 0.0 }
0x1aaf   :  { %7528 = vadd.xlane.f32.xlu1 %v7527_v14  ;;  %v19549_v14 = vld [vmem:[%s23000_s24 + $0x30] sm:$0xff] }
0x1ab2   :  { %v7514_v55 = vpop.xlane.xlu0 %7513 }
0x1ab4   :  { %v7511_v45 = vpop.xlane.xlu1 %7510 }
0x1ab5   :  { %19324 = vrcp.f32 %v7511_v45  ;;  %v19551_v45 = vld [vmem:[%s23000_s24 + $0x20] sm:$0xff] }
0x1ab6   :  { %19326 = vrcp.f32 %v7514_v55  ;;  %v19550_v55 = vld [vmem:[%s23000_s24 + $0x28] sm:$0xff] }
0x1ac2   :  { %v19325_v53 = vpop.eup %19324 }
0x1ac3   :  { %v7541_v52 = vmul.f32 %v19325_v53, %v19311_v30  ;;  %v19327_v2 = vpop.eup %19326  ;;  %v19552_v53 = vld [vmem:[%s23000_s24 + $0x18] sm:$0xff] }
0x1ac4   :  { %v7542_v1 = vmul.f32 %v19327_v2, %v19309_v4  ;;  %v19554_v2 = vld [vmem:[%s23000_s24 + $0x8] sm:$0xff] }
0x1ac5   :  { %18373 = vmatmul.mubr.msk.f32.vlgmr.msra.gmra.mxu1 %vm3594_vm3, %v7541_v52 }
0x1ac6   :  { %18376 = vmatpush3.msra.mxu1 %v20980_v58  ;;  %18379 = vmatprep.mubr.msk.f32.mxu1 %vm20471_vm1, %v23004_v37 }
0x1ac7   :  { %18377 = vmatprep.subr.mxu1 %v23004_v37 }
0x1ac8   :  { %18378 = vmatpush3.msra.mxu1 %v21303_v54 }
0x1ac9   :  { %18389 = vmatprep.subr.mxu1 %v23004_v37  ;;  %18380 = vmatmul.mubr.msk.f32.vlgmr.msra.gmra.mxu1 %vm3594_vm3, %v7542_v1 }
0x1aca   :  { %18390 = vmatpush3.msra.mxu1 %v21356_v56  ;;  %18393 = vmatprep.mubr.msk.f32.mxu1 %vm20471_vm1, %v23004_v37 }
0x1acb   :  { %18391 = vmatprep.subr.mxu1 %v23004_v37 }
0x1acc   :  { %18392 = vmatpush3.msra.mxu1 %v21358_v39 }
0x1acd   :  { %18403 = vmatprep.subr.mxu1 %v23004_v37 }
0x1b27   :  { %v7517_v58 = vpop.xlane.xlu1 %7516 }
0x1b28   :  { %19328 = vrcp.f32 %v7517_v58 }
0x1b2b   :  { %v7520_v6 = vpop.xlane.xlu0 %7519 }
0x1b2c   :  { %19330 = vrcp.f32 %v7520_v6 }
0x1b2f   :  { %v7523_v54 = vpop.xlane.xlu1 %7522 }
0x1b30   :  { %19332 = vrcp.f32 %v7523_v54  ;;  %v7526_v62 = vpop.xlane.xlu0 %7525 }
0x1b31   :  { %19334 = vrcp.f32 %v7526_v62 }
0x1b35   :  { %v19329_v19 = vpop.eup %19328 }
0x1b36   :  { %v7543_v21 = vmul.f32 %v19329_v19, %v19313_v43 }
0x1b37   :  { %v7532_v56 = vpop.xlane.xlu0 %7531 }
0x1b38   :  { %19336 = vrcp.f32 %v7532_v56  ;;  %v7529_v42 = vpop.xlane.xlu1 %7528  ;;  %18387 = vmatmul.mubr.msk.f32.vlgmr.msra.gmra.mxu0 %vm3594_vm3, %v7543_v21 }
0x1b39   :  { %v19331_v7 = vpop.eup %19330  ;;  %19338 = vrcp.f32 %v7529_v42  ;;  %18397 = vmatpush3.msra.mxu0 %v21360_v46  ;;  %18400 = vmatprep.mubr.msk.f32.mxu0 %vm20471_vm1, %v23004_v37 }
0x1b3a   :  { %18398 = vmatprep.subr.mxu0 %v23004_v37  ;;  %v7544_v39 = vmul.f32 %v19331_v7, %v19315_v57 }
0x1b3b   :  { %18399 = vmatpush3.msra.mxu0 %v21364_v49 }
0x1b3c   :  { %18394 = vmatmul.mubr.msk.f32.vlgmr.msra.gmra.mxu1 %vm3594_vm3, %v7544_v39  ;;  %18410 = vmatprep.subr.mxu0 %v23004_v37 }
0x1b3d   :  { %v19333_v4 = vpop.eup %19332  ;;  %18404 = vmatpush3.msra.mxu1 %v21362_v47  ;;  %18407 = vmatprep.mubr.msk.f32.mxu1 %vm20471_vm1, %v23004_v37  ;;  %v8464_v47 = vadd.f32 %v7544_v39, %v7542_v1  ;;  %v19555_v1 = vld [vmem:[%s23000_s24] sm:$0xff] }
0x1b3e   :  { %v19335_v59 = vpop.eup %19334  ;;  %18405 = vmatprep.subr.mxu1 %v23004_v37  ;;  %v7545_v46 = vmul.f32 %v19333_v4, %v19317_v0  ;;  %v19546_v0 = vld [vmem:[%s22999_s22 + $0x10] sm:$0xff] }
0x1b3f   :  { %18406 = vmatpush3.msra.mxu1 %v21366_v48  ;;  %v7546_v30 = vmul.f32 %v19335_v59, %v19319_v33  ;;  %v8463_v48 = vadd.f32 %v7543_v21, %v7541_v52  ;;  %v19547_v33 = vld [vmem:[%s22999_s22 + $0x8] sm:$0xff]  ;;  %v19553_v52 = vld [vmem:[%s23000_s24 + $0x10] sm:$0xff] }
0x1b40   :  { %18401 = vmatmul.mubr.msk.f32.vlgmr.msra.gmra.mxu0 %vm3594_vm3, %v7545_v46  ;;  %18417 = vmatprep.subr.mxu1 %v23004_v37 }
0x1b41   :  { %18411 = vmatpush3.msra.mxu0 %v21368_v50  ;;  %18408 = vmatmul.mubr.msk.f32.vlgmr.msra.gmra.mxu1 %vm3594_vm3, %v7546_v30  ;;  %v19540_v50 = vld [vmem:[#allocation20] sm:$0xff]  ;;  %v8466_v17 = vadd.f32 %v8464_v47, %v7546_v30  ;;  %v8465_v23 = vadd.f32 %v8463_v48, %v7545_v46 }
0x1b42   :  { %18412 = vmatprep.subr.mxu0 %v23004_v37  ;;  %18418 = vmatpush3.msra.mxu1 %v21370_v51  ;;  %v19556_v30 = vld [vmem:[#allocation22] ss:$0 sm:$0xff] }
0x1b43   :  { %18413 = vmatpush3.msra.mxu0 %v21414_v24  ;;  %18419 = vmatprep.subr.mxu1 %v23004_v37  ;;  %v19541_v24 = vld [vmem:[#allocation20 + $0x8] sm:$0xff] }
0x1b44   :  { %18420 = vmatpush3.msra.mxu1 %v21424_v31  ;;  %18414 = vmatprep.mubr.msk.f32.mxu0 %vm20471_vm1, %v23004_v37 }
0x1b45   :  { %v19337_v49 = vpop.eup %19336  ;;  %18421 = vmatprep.mubr.msk.f32.mxu1 %vm20471_vm1, %v23004_v37  ;;  %18429 = vmatprep.subr.mxu1 %v19540_v50 }
0x1b46   :  { %v19339_v36 = vpop.eup %19338  ;;  %v7548_v51 = vmul.f32 %v19337_v49, %v21765_v26  ;;  %18424 = vmatprep.subr.mxu0 %v19541_v24 }
0x1b47   :  { %v7547_v20 = vmul.f32 %v19339_v36, %v21767_v11 }
0x1b48   :  { %18422 = vmatmul.mubr.msk.f32.vlgmr.msra.gmra.mxu1 %vm3594_vm3, %v7548_v51  ;;  %v8468_v31 = vadd.f32 %v8466_v17, %v7548_v51 }
0x1b49   :  { %18415 = vmatmul.mubr.msk.f32.vlgmr.msra.gmra.mxu0 %vm3594_vm3, %v7547_v20  ;;  %18430 = vmatpush3.msra.mxu1 %v19540_v50  ;;  %v8467_v25 = vadd.f32 %v8465_v23, %v7547_v20 }
0x1b4a   :  { %18425 = vmatpush3.msra.mxu0 %v19541_v24  ;;  %18439 = vmatprep.subr.mxu1 %v19542_v29  ;;  %v8470_v27 = vmul.f32 0.25, %v8468_v31 }
0x1b4b   :  { %18434 = vmatprep.subr.mxu0 %v19543_v32  ;;  %v8469_v34 = vmul.f32 0.25, %v8467_v25 }
0x1b4c   :  { %8734 = vst.msk [vmem:[#allocation53 + $0x18] sm:$0xff] %vm3594_vm3, %v8470_v27 }
0x1b4d   :  { %8733 = vst.msk [vmem:[#allocation53 + $0x10] sm:$0xff] %vm3594_vm3, %v8469_v34 }
0x1b85   :  { %v7618_v38 = vpop.f32.mrf.mxu1 }
0x1b86   :  { %18431 = vmatprep.mubr.msk.f32.mxu1 %vm1199_vm2, %v7618_v38 }
0x1b87   :  { %v18374_v40 = vpop.f32.mrf.mxu1 }
0x1b89   :  { %v7691_v22 = vpop.f32.mrf.mxu1 }
0x1b8a   :  { %18432 = vmatmul.mubr.msk.f32.vlgmr.msra.gmra.mxu1 %vm1199_vm2, %v7691_v22 }
0x1b8b   :  { %v18381_v35 = vpop.f32.mrf.mxu1  ;;  %18440 = vmatpush3.msra.mxu1 %v19542_v29 }
0x1b8c   :  { %18455 = vmatprep.subr.mxu1 %v19544_v41 }
0x1bf8   :  { %v7764_v44 = vpop.f32.mrf.mxu0 }
0x1bf9   :  { %18426 = vmatprep.mubr.msk.f32.mxu0 %vm1199_vm2, %v7764_v44 }
0x1bfa   :  { %v18388_v3 = vpop.f32.mrf.mxu0 }
0x1bfc   :  { %v7837_v12 = vpop.f32.mrf.mxu1 }
0x1bfd   :  { %18427 = vmatmul.mubr.msk.f32.vlgmr.msra.gmra.mxu0 %vm1199_vm2, %v7837_v12 }
0x1bfe   :  { %v18395_v43 = vpop.f32.mrf.mxu1  ;;  %18435 = vmatpush3.msra.mxu0 %v19543_v32 }
0x1bff   :  { %18444 = vmatprep.subr.mxu0 %v19545_v28 }
0x1c00   :  { %v7910_v9 = vpop.f32.mrf.mxu0 }
0x1c01   :  { %v7983_v16 = vpop.f32.mrf.mxu1  ;;  %18436 = vmatprep.mubr.msk.f32.mxu0 %vm1199_vm2, %v7910_v9 }
0x1c02   :  { %v18402_v57 = vpop.f32.mrf.mxu0  ;;  %18437 = vmatmul.mubr.msk.f32.vlgmr.msra.gmra.mxu0 %vm1199_vm2, %v7983_v16 }
0x1c03   :  { %v18409_v15 = vpop.f32.mrf.mxu1  ;;  %18445 = vmatpush3.msra.mxu0 %v19545_v28  ;;  %v19557_v28 = vld [vmem:[#allocation28] ss:$0 sm:$0xff]  ;;  %v19558_v57 = vld [vmem:[#allocation29] ss:$0 sm:$0xff] }
0x1c04   :  { %18446 = vmatprep.subr.mxu0 %v19546_v0 }
0x1c05   :  { %18447 = vmatpush3.msra.mxu0 %v19546_v0 }
0x1c06   :  { %18448 = vmatprep.subr.mxu0 %v19547_v33 }
0x1c07   :  { %18449 = vmatpush3.msra.mxu0 %v19547_v33  ;;  %v8745_v33 = vld [vmem:[#allocation37 + $0x18] sm:$0xff] }
0x1c08   :  { %v8129_v60 = vpop.f32.mrf.mxu1  ;;  %18450 = vmatprep.subr.mxu0 %v19548_v18 }
0x1c09   :  { %v8056_v26 = vpop.f32.mrf.mxu0  ;;  %18451 = vmatpush3.msra.mxu0 %v19548_v18  ;;  %v19559_v18 = vld [vmem:[%s23001_s23] ss:$0 sm:$0xff] }
0x1c0a   :  { %18441 = vmatprep.mubr.msk.f32.mxu1 %vm1199_vm2, %v8056_v26  ;;  %v18423_v11 = vpop.f32.mrf.mxu1 }
0x1c0b   :  { %v18416_v13 = vpop.f32.mrf.mxu0  ;;  %18442 = vmatmul.mubr.msk.f32.vlgmr.msra.gmra.mxu1 %vm1199_vm2, %v8129_v60 }
0x1c0c   :  { %18456 = vmatpush3.msra.mxu1 %v19544_v41  ;;  %v21856_v13 = vld [vmem:[#allocation5] sm:$0xff] }
0x1c0d   :  { %18457 = vmatprep.subr.mxu1 %v19549_v14 }
0x1c0e   :  { %18458 = vmatpush3.msra.mxu1 %v19549_v14  ;;  %v21858_v14 = vld [vmem:[#allocation2] sm:$0xff] }
0x1c0f   :  { %18459 = vmatprep.subr.mxu1 %v19550_v55 }
0x1c10   :  { %18460 = vmatpush3.msra.mxu1 %v19550_v55 }
0x1c11   :  { %18461 = vmatprep.subr.mxu1 %v19551_v45 }
0x1c12   :  { %18462 = vmatpush3.msra.mxu1 %v19551_v45 }
0x1c13   :  { %18463 = vmatprep.subr.mxu1 %v19552_v53 }
0x1c14   :  { %18464 = vmatpush3.msra.mxu1 %v19552_v53  ;;  %v9049_v53 = vadd.f32 %v21858_v14, %v21856_v13 }
0x1c15   :  { %18465 = vmatprep.subr.mxu1 %v19553_v52 }
0x1c16   :  { %18466 = vmatpush3.msra.mxu1 %v19553_v52 }
0x1c17   :  { %18467 = vmatprep.subr.mxu1 %v19554_v2 }
0x1c18   :  { %18468 = vmatpush3.msra.mxu1 %v19554_v2  ;;  %v8744_v2 = vld [vmem:[#allocation37 + $0x10] sm:$0xff] }
0x1c19   :  { %18469 = vmatprep.subr.mxu1 %v19555_v1 }
0x1c1a   :  { %18470 = vmatpush3.msra.mxu1 %v19555_v1  ;;  %v21865_v1 = vld [vmem:[#allocation5 + $0x8] sm:$0xff] }
0x1c1b   :  { %18502 = vmatprep.subr.mxu1 %v8745_v33 }
0x1c4a   :  { %v18433_v54 = vpop.f32.mrf.mxu1 }
0x1c4c   :  { %v8286_v21 = vpop.f32.mrf.mxu1 }
0x1cbd   :  { %v18428_v58 = vpop.f32.mrf.mxu0 }
0x1cbe   :  { %v8292_v19 = vadd.f32 %v18433_v54, %v18428_v58  ;;  %v21867_v58 = vld [vmem:[#allocation2 + $0x8] sm:$0xff] }
0x1cbf   :  { %v8205_v6 = vpop.f32.mrf.mxu0  ;;  %v9050_v54 = vadd.f32 %v21867_v58, %v21865_v1 }
0x1cc0   :  { %v8287_v42 = vadd.f32 %v8286_v21, %v8205_v6  ;;  %v8742_v6 = vld [vmem:[#allocation37] sm:$0xff] }
0x1cc1   :  { %v17093_v21 = vld [vmem:[#allocation38] ss:$0 sm:$0xff] }
0x1cc2   :  { %v18438_v62 = vpop.f32.mrf.mxu0 }
0x1cc3   :  { %v8377_v7 = vadd.f32 %v18438_v62, %v8292_v19 }
0x1cc4   :  { %v8367_v56 = vpop.f32.mrf.mxu0 }
0x1cc5   :  { %v8376_v4 = vadd.f32 %v8367_v56, %v8287_v42 }
0x1ccb   :  { %v18443_v39 = vpop.f32.mrf.mxu1 }
0x1ccc   :  { %v8460_v59 = vadd.f32 %v18443_v39, %v8377_v7 }
0x1ccd   :  { %v8450_v46 = vpop.f32.mrf.mxu1 }
0x1cce   :  { %v8462_v47 = vadd.f32 %v19556_v30, %v8460_v59  ;;  %v8459_v49 = vadd.f32 %v8450_v46, %v8376_v4  ;;  %v8765_v4 = vld [vmem:[#allocation46 + $0x18] sm:$0xff]  ;;  %v8764_v59 = vld [vmem:[#allocation46 + $0x10] sm:$0xff]  ;;  %v8763_v46 = vld [vmem:[#allocation46 + $0x8] sm:$0xff] }
0x1ccf   :  { %18474 = vmatprep.subr.mxu0 %v8765_v4 }
0x1cd0   :  { %v8461_v48 = vadd.f32 %v19556_v30, %v8459_v49  ;;  %v8472_v50 = vadd.f32 %v8462_v47, %v21664_v8  ;;  %v8762_v30 = vld [vmem:[#allocation46] sm:$0xff]  ;;  %v8770_v47 = vld [vmem:[#allocation47 + $0x18] sm:$0xff]  ;;  %v8769_v49 = vld [vmem:[#allocation47 + $0x10] sm:$0xff] }
0x1cd2   :  { %v8476_v36 = vsel %vm718_vm0, %v8472_v50, 0.0  ;;  %v8471_v17 = vadd.f32 %v8461_v48, %v21659_v63  ;;  %v23009_v48 = vld [vmem:[#allocation121_spill] sm:$0xff] }
0x1cd3   :  { %8477 = vadd.xlane.f32.xlu0 %v8476_v36  ;;  %v23010_v36 = vld [vmem:[#allocation122_spill] sm:$0xff] }
0x1cd4   :  { %v8473_v51 = vsel %vm718_vm0, %v8471_v17, 0.0 }
0x1cd5   :  { %8474 = vadd.xlane.f32.xlu1 %v8473_v51  ;;  %v23011_v51 = vld [vmem:[#allocation123_spill] sm:$0xff] }
0x1d5c   :  { %v8478_v24 = vpop.xlane.xlu0 %8477 }
0x1d5d   :  { %v8480_v23 = vmul.f32 0.03125, %v8478_v24  ;;  %v19560_v24 = vld [vmem:[%s22990_s9] sm:$0xff] }
0x1d5e   :  { %v8475_v20 = vpop.xlane.xlu1 %8474 }
0x1d5f   :  { %v8482_v31 = vsub.f32 %v8472_v50, %v8480_v23  ;;  %v8479_v25 = vmul.f32 0.03125, %v8475_v20  ;;  %v8768_v50 = vld [vmem:[#allocation47 + $0x8] sm:$0xff]  ;;  %v8750_v23 = vld [vmem:[#allocation40 + $0x18] sm:$0xff] }
0x1d60   :  { %v8749_v20 = vld [vmem:[#allocation40 + $0x10] sm:$0xff] }
0x1d61   :  { %v8481_v29 = vsub.f32 %v8471_v17, %v8479_v25  ;;  %v8484_v27 = vmul.f32 %v8482_v31, %v8482_v31  ;;  %v8767_v17 = vld [vmem:[#allocation47] sm:$0xff] }
0x1d62   :  { %v19562_v25 = vld [vmem:[%s22990_s9 + $0x10] sm:$0xff] }
0x1d63   :  { %v8488_v32 = vsel %vm718_vm0, %v8484_v27, 0.0  ;;  %v8483_v34 = vmul.f32 %v8481_v29, %v8481_v29  ;;  %v8747_v27 = vld [vmem:[#allocation40] sm:$0xff] }
0x1d64   :  { %8489 = vadd.xlane.f32.xlu0 %v8488_v32  ;;  %v19563_v32 = vld [vmem:[%s22990_s9 + $0x18] sm:$0xff] }
0x1d65   :  { %v8485_v8 = vsel %vm718_vm0, %v8483_v34, 0.0 }
0x1d66   :  { %8486 = vadd.xlane.f32.xlu1 %v8485_v8 }
0x1ded   :  { %v8490_v38 = vpop.xlane.xlu0 %8489 }
0x1dee   :  { %v8492_v63 = vmul.f32 0.03125, %v8490_v38 }
0x1def   :  { %v8487_v40 = vpop.xlane.xlu1 %8486 }
0x1df0   :  { %v8494_v22 = vadd.f32 1e-05, %v8492_v63  ;;  %v8491_v35 = vmul.f32 0.03125, %v8487_v40 }
0x1df2   :  { %19340 = vrsqrt.f32 %v8494_v22  ;;  %v8493_v41 = vadd.f32 1e-05, %v8491_v35 }
0x1df4   :  { %19342 = vrsqrt.f32 %v8493_v41 }
0x1dff   :  { %v19341_v44 = vpop.eup %19340 }
0x1e00   :  { %v8498_v3 = vmul.f32 %v19341_v44, %v8482_v31  ;;  %v19561_v31 = vld [vmem:[%s22990_s9 + $0x8] sm:$0xff]  ;;  %s23024_s9 = sld [smem:[#allocation117_spill]] }
0x1e01   :  { %v19343_v12 = vpop.eup %19342 }
0x1e02   :  { %v8497_v43 = vmul.f32 %v19343_v12, %v8481_v29  ;;  %v8500_v9 = vmul.f32 %v19557_v28, %v8498_v3  ;;  %v8748_v29 = vld [vmem:[#allocation40 + $0x8] sm:$0xff] }
0x1e03   :  { %v21943_v12 = vld [vmem:[%s23012_s20] ss:$0 sm:$0xff] }
0x1e04   :  { %v8499_v16 = vmul.f32 %v19557_v28, %v8497_v43  ;;  %v21847_v0 = vadd.f32 %v19558_v57, %v8500_v9 }
0x1e06   :  { %v21845_v15 = vadd.f32 %v19558_v57, %v8499_v16  ;;  %23006 = vst [vmem:[#allocation127_spill] sm:$0xff] %v21847_v0 }
0x1e08   :  { %23005 = vst [vmem:[#allocation126_spill] sm:$0xff] %v21845_v15  ;;  %18452 = vmatprep.mubr.msk.f32.mxu0 %vm718_vm0, %v21845_v15 }
0x1e09   :  { %18453 = vmatmul.mubr.msk.f32.vlgmr.msra.gmra.mxu0 %vm718_vm0, %v21847_v0 }
0x1e0a   :  { %18482 = vmatprep.mubr.msk.f32.mxu0 %vm718_vm0, %v20861_v5  ;;  %v8743_v5 = vld [vmem:[#allocation37 + $0x8] sm:$0xff]  ;;  %18475 = vmatpush3.msra.mxu0 %v8765_v4 }
0x1e0b   :  { %18476 = vmatprep.subr.mxu0 %v8764_v59 }
0x1e0c   :  { %18477 = vmatpush3.msra.mxu0 %v8764_v59 }
0x1e0d   :  { %18478 = vmatprep.subr.mxu0 %v8763_v46 }
0x1e0e   :  { %18479 = vmatpush3.msra.mxu0 %v8763_v46 }
0x1e0f   :  { %18480 = vmatprep.subr.mxu0 %v8762_v30 }
0x1e10   :  { %18481 = vmatpush3.msra.mxu0 %v8762_v30 }
0x1e11   :  { %18483 = vmatmul.mubr.msk.f32.vlgmr.msra.gmra.mxu0 %vm718_vm0, %v23009_v48  ;;  %18488 = vmatprep.subr.mxu0 %v8770_v47 }
0x1e12   :  { %18489 = vmatpush3.msra.mxu0 %v8770_v47  ;;  %18485 = vmatprep.mubr.msk.f32.mxu0 %vm718_vm0, %v23010_v36 }
0x1e13   :  { %18490 = vmatprep.subr.mxu0 %v8769_v49 }
0x1e14   :  { %18491 = vmatpush3.msra.mxu0 %v8769_v49 }
0x1e15   :  { %18486 = vmatmul.mubr.msk.f32.gmra.mxu0 %vm718_vm0, %v23011_v51  ;;  %18492 = vmatprep.subr.mxu0 %v8768_v50 }
0x1e16   :  { %18493 = vmatpush3.msra.mxu0 %v8768_v50  ;;  %18496 = vmatprep.mubr.msk.f32.mxu0 %vm718_vm0, %v19560_v24 }
0x1e17   :  { %18494 = vmatprep.subr.mxu0 %v8767_v17 }
0x1e18   :  { %18495 = vmatpush3.msra.mxu0 %v8767_v17 }
0x1e19   :  { %18497 = vmatmul.mubr.msk.f32.vlgmr.msra.gmra.mxu0 %vm718_vm0, %v19561_v31  ;;  %18513 = vmatprep.subr.mxu0 %v8750_v23 }
0x1e1a   :  { %18514 = vmatpush3.msra.mxu0 %v8750_v23  ;;  %18499 = vmatprep.mubr.msk.f32.mxu0 %vm718_vm0, %v19562_v25 }
0x1e1b   :  { %18515 = vmatprep.subr.mxu0 %v8749_v20 }
0x1e1c   :  { %18516 = vmatpush3.msra.mxu0 %v8749_v20 }
0x1e1d   :  { %18500 = vmatmul.mubr.msk.f32.gmra.mxu0 %vm718_vm0, %v19563_v32  ;;  %18517 = vmatprep.subr.mxu0 %v8748_v29 }
0x1e1e   :  { %18518 = vmatpush3.msra.mxu0 %v8748_v29  ;;  %18521 = vmatprep.mubr.msk.f32.mxu0 %vm718_vm0, %v21856_v13 }
0x1e1f   :  { %18519 = vmatprep.subr.mxu0 %v8747_v27 }
0x1e20   :  { %18520 = vmatpush3.msra.mxu0 %v8747_v27 }
0x1e21   :  { %18522 = vmatmul.mubr.msk.f32.vlgmr.msra.gmra.mxu0 %vm718_vm0, %v21865_v1  ;;  %18534 = vmatprep.subr.mxu0 %v23004_v37 }
0x1e22   :  { %18536 = vmatprep.mubr.msk.f32.mxu0 %vm20471_vm1, %v23004_v37 }
0x1ec9   :  { %v18454_v60 = vpop.f32.mrf.mxu0 }
0x1eca   :  { %v8581_v26 = vadd.f32 %v19559_v18, %v18454_v60  ;;  %v21956_v60 = vld [vmem:[%s23013_s26] ss:$0 sm:$0xff] }
0x1ecb   :  { %v8575_v11 = vpop.f32.mrf.mxu0 }
0x1ecc   :  { %v8576_v55 = vadd.f32 %v19559_v18, %v8575_v11  ;;  %v8585_v52 = vmax.f32 %v8581_v26, 0.0 }
0x1ece   :  { %v8584_v45 = vmax.f32 %v8576_v55, 0.0 }
0x1ed0   :  { %18471 = vmatprep.mubr.msk.f32.mxu1 %vm4750_vm4, %v8584_v45 }
0x1ed1   :  { %18472 = vmatmul.mubr.msk.f32.vlgmr.msra.gmra.mxu1 %vm4750_vm4, %v8585_v52  ;;  %v21938_v44 = vpop.f32.mrf.mxu0 }
0x1ed2   :  { %18503 = vmatpush3.msra.mxu1 %v8745_v33  ;;  %18510 = vmatprep.mubr.msk.f32.mxu1 %vm718_vm0, %v9049_v53 }
0x1ed3   :  { %18504 = vmatprep.subr.mxu1 %v8744_v2  ;;  %v21940_v3 = vpop.f32.mrf.mxu0 }
0x1ed4   :  { %18505 = vmatpush3.msra.mxu1 %v8744_v2 }
0x1ed5   :  { %18506 = vmatprep.subr.mxu1 %v8743_v5  ;;  %v18487_v43 = vpop.f32.mrf.mxu0 }
0x1ed6   :  { %18507 = vmatpush3.msra.mxu1 %v8743_v5  ;;  %v21946_v28 = vadd.f32 %v18487_v43, %v21943_v12  ;;  %v17096_v5 = vld [vmem:[#allocation41] ss:$0 sm:$0xff] }
0x1ed7   :  { %18508 = vmatprep.subr.mxu1 %v8742_v6  ;;  %v8881_v9 = vpop.f32.mrf.mxu0 }
0x1ed8   :  { %18509 = vmatpush3.msra.mxu1 %v8742_v6  ;;  %v21949_v16 = vadd.f32 %v21943_v12, %v8881_v9 }
0x1ed9   :  { %18511 = vmatmul.mubr.msk.f32.vlgmr.msra.gmra.mxu1 %vm718_vm0, %v9050_v54  ;;  %18524 = vmatprep.subr.mxu1 %v23004_v37  ;;  %v21951_v57 = vpop.f32.mrf.mxu0 }
0x1eda   :  { %18526 = vmatprep.mubr.msk.f32.mxu1 %vm20471_vm1, %v23004_v37 }
0x1edb   :  { %v21953_v33 = vpop.f32.mrf.mxu0 }
0x1edd   :  { %v18501_v18 = vpop.f32.mrf.mxu0 }
0x1ede   :  { %v21959_v26 = vadd.f32 %v18501_v18, %v21956_v60 }
0x1edf   :  { %v8972_v11 = vpop.f32.mrf.mxu0 }
0x1ee0   :  { %v21962_v55 = vadd.f32 %v21956_v60, %v8972_v11 }
0x1ee1   :  { %v18523_v52 = vpop.f32.mrf.mxu0 }
0x1ee3   :  { %v9216_v6 = vpop.f32.mrf.mxu0 }
0x1f91   :  { %v21875_v62 = vpop.f32.mrf.mxu1 }
0x1f92   :  { %23007 = vst [vmem:[#allocation128_spill] sm:$0xff] %v21875_v62 }
0x1f93   :  { %v21877_v19 = vpop.f32.mrf.mxu1 }
0x1f94   :  { %23008 = vst [vmem:[#allocation129_spill] sm:$0xff] %v21877_v19 }
0x1f99   :  { %v18512_v56 = vpop.f32.mrf.mxu1 }
0x1f9a   :  { %v21879_v42 = vadd.f32 %v18512_v56, %v17093_v21  ;;  %v21982_v56 = vadd.f32 %v17096_v5, %v9216_v6 }
0x1f9b   :  { %v9129_v7 = vpop.f32.mrf.mxu1 }
0x1f9c   :  { %v21881_v39 = vadd.f32 %v17093_v21, %v9129_v7  ;;  %9229 = vrot.lane.b32.xlu0 %v21879_v42, %s20470_s15  ;;  %v21990_v7 = vadd.f32 %v18523_v52, %v17096_v5 }
0x1f9e   :  { %9227 = vrot.lane.b32.xlu1 %v21881_v39, %s20470_s15 }
0x1fa0   :  { %9235 = vrot.lane.b32.xlu0 %v21881_v39, %s20472_s6 }
0x1fa2   :  { %9231 = vrot.lane.b32.xlu1 %v21881_v39, %s20469_s3 }
0x1fa4   :  { %9259 = vrot.lane.b32.xlu0 %v21881_v39, %s20473_s16 }
0x1fa6   :  { %9233 = vrot.lane.b32.xlu1 %v21879_v42, %s20469_s3 }
0x1faa   :  { %9237 = vrot.lane.b32.xlu1 %v21879_v42, %s20472_s6 }
0x1fae   :  { %9335 = vrot.lane.b32.xlu1 %v21879_v42, %s20473_s16 }
0x200e   :  { %v9230_v34 = vpop.permute.xlu0 %9229 }
0x200f   :  { %9487 = vrot.lane.b32.xlu1 %v9230_v34, %s20473_s16 }
0x2010   :  { %v9228_v8 = vpop.permute.xlu1 %9227 }
0x2011   :  { %9411 = vrot.lane.b32.xlu0 %v9228_v8, %s20473_s16 }
0x2012   :  { %v9236_v38 = vpop.permute.xlu0 %9235 }
0x2014   :  { %v9232_v63 = vpop.permute.xlu1 %9231 }
0x2015   :  { %9563 = vrot.lane.b32.xlu0 %v9232_v63, %s20473_s16 }
0x2016   :  { %v9260_v40 = vpop.permute.xlu0 %9259 }
0x2017   :  { %18525 = vmatpush3.xpose.msk.msra.mxu1 %vm1199_vm2, %v9260_v40 }
0x2018   :  { %v9234_v22 = vpop.permute.xlu1 %9233  ;;  %18529 = vmatprep.subr.mxu1 %v23004_v37 }
0x2019   :  { %9715 = vrot.lane.b32.xlu0 %v9236_v38, %s20473_s16  ;;  %9639 = vrot.lane.b32.xlu1 %v9234_v22, %s20473_s16 }
0x201a   :  { %18527 = vmatmul.mubr.msk.f32.vlgmr.msra.gmra.mxu1 %vm1199_vm2, %v21881_v39 }
0x201b   :  { %18531 = vmatprep.mubr.msk.f32.mxu1 %vm20471_vm1, %v23004_v37 }
0x201c   :  { %v9238_v35 = vpop.permute.xlu1 %9237 }
0x201d   :  { %9791 = vrot.lane.b32.xlu1 %v9238_v35, %s20473_s16 }
0x2020   :  { %v9336_v41 = vpop.permute.xlu1 %9335 }
0x2021   :  { %18530 = vmatpush3.xpose.msk.msra.mxu1 %vm1199_vm2, %v9336_v41 }
0x2022   :  { %18539 = vmatprep.subr.mxu1 %v23004_v37 }
0x2024   :  { %18532 = vmatmul.mubr.msk.f32.vlgmr.msra.gmra.mxu1 %vm1199_vm2, %v21879_v42 }
0x2025   :  { %18541 = vmatprep.mubr.msk.f32.mxu1 %vm20471_vm1, %v23004_v37 }
0x2081   :  { %v9488_v45 = vpop.permute.xlu1 %9487 }
0x2082   :  { %18540 = vmatpush3.xpose.msk.msra.mxu1 %vm1199_vm2, %v9488_v45 }
0x2083   :  { %v9412_v53 = vpop.permute.xlu0 %9411  ;;  %18549 = vmatprep.subr.mxu1 %v23004_v37 }
0x2084   :  { %18535 = vmatpush3.xpose.msk.msra.mxu0 %vm1199_vm2, %v9412_v53 }
0x2085   :  { %18542 = vmatmul.mubr.msk.f32.vlgmr.msra.gmra.mxu1 %vm1199_vm2, %v9230_v34  ;;  %18544 = vmatprep.subr.mxu0 %v23004_v37 }
0x2086   :  { %18551 = vmatprep.mubr.msk.f32.mxu1 %vm20471_vm1, %v23004_v37 }
0x2087   :  { %18537 = vmatmul.mubr.msk.f32.vlgmr.msra.gmra.mxu0 %vm1199_vm2, %v9228_v8  ;;  %v9564_v2 = vpop.permute.xlu0 %9563 }
0x2088   :  { %18545 = vmatpush3.xpose.msk.msra.mxu0 %vm1199_vm2, %v9564_v2  ;;  %18546 = vmatprep.mubr.msk.f32.mxu0 %vm20471_vm1, %v23004_v37 }
0x2089   :  { %18554 = vmatprep.subr.mxu0 %v23004_v37 }
0x208b   :  { %18547 = vmatmul.mubr.msk.f32.vlgmr.msra.gmra.mxu0 %vm1199_vm2, %v9232_v63  ;;  %v9716_v54 = vpop.permute.xlu0 %9715  ;;  %v9640_v21 = vpop.permute.xlu1 %9639 }
0x208c   :  { %18550 = vmatpush3.xpose.msk.msra.mxu1 %vm1199_vm2, %v9640_v21  ;;  %18555 = vmatpush3.xpose.msk.msra.mxu0 %vm1199_vm2, %v9716_v54 }
0x208d   :  { %18556 = vmatprep.mubr.msk.f32.mxu0 %vm20471_vm1, %v23004_v37  ;;  %18559 = vmatprep.subr.mxu1 %v23004_v37 }
0x208e   :  { %18564 = vmatprep.subr.mxu0 %v23004_v37 }
0x208f   :  { %18552 = vmatmul.mubr.msk.f32.vlgmr.msra.gmra.mxu1 %vm1199_vm2, %v9234_v22  ;;  %18557 = vmatmul.mubr.msk.f32.vlgmr.msra.gmra.mxu0 %vm1199_vm2, %v9236_v38  ;;  %v9792_v42 = vpop.permute.xlu1 %9791 }
0x2090   :  { %18560 = vmatpush3.xpose.msk.msra.mxu1 %vm1199_vm2, %v9792_v42  ;;  %18561 = vmatprep.mubr.msk.f32.mxu1 %vm20471_vm1, %v23004_v37 }
0x2091   :  { %18569 = vmatprep.subr.mxu1 %v23004_v37  ;;  %18565 = vmatpush3.msra.mxu0 %v21982_v56 }
0x2092   :  { %18566 = vmatprep.mubr.msk.f32.mxu0 %vm20471_vm1, %v23004_v37  ;;  %18574 = vmatprep.subr.mxu0 %v23004_v37 }
0x2093   :  { %18562 = vmatmul.mubr.msk.f32.vlgmr.msra.gmra.mxu1 %vm1199_vm2, %v9238_v35 }
0x2094   :  { %18570 = vmatpush3.msra.mxu1 %v21990_v7  ;;  %18571 = vmatprep.mubr.msk.f32.mxu1 %vm20471_vm1, %v23004_v37 }
0x2095   :  { %18579 = vmatprep.subr.mxu1 %v23004_v37 }
0x20da   :  { %v9331_v39 = vpop.f32.mrf.mxu1 }
0x20db   :  { %v9867_v4 = vmul.f32 0.35355338, %v9331_v39 }
0x20dc   :  { %v18528_v59 = vpop.f32.mrf.mxu1 }
0x20dd   :  { %v9875_v46 = vsel %vm1199_vm2, %v9867_v4, -inf }
0x20de   :  { %9876 = vmax.xlane.f32.xlu0 %v9875_v46 }
0x20e4   :  { %v9407_v30 = vpop.f32.mrf.mxu1 }
0x20e5   :  { %v9868_v47 = vmul.f32 0.35355338, %v9407_v30 }
0x20e6   :  { %v18533_v49 = vpop.f32.mrf.mxu1 }
0x20e7   :  { %v9878_v48 = vsel %vm1199_vm2, %v9868_v47, -inf }
0x20e8   :  { %9879 = vmax.xlane.f32.xlu1 %v9878_v48 }
0x2145   :  { %v9559_v50 = vpop.f32.mrf.mxu1 }
0x2146   :  { %v9870_v23 = vmul.f32 0.35355338, %v9559_v50 }
0x2147   :  { %v9483_v36 = vpop.f32.mrf.mxu0  ;;  %v18543_v17 = vpop.f32.mrf.mxu1 }
0x2148   :  { %v9869_v51 = vmul.f32 0.35355338, %v9483_v36  ;;  %v9884_v32 = vsel %vm1199_vm2, %v9870_v23, -inf }
0x2149   :  { %v18538_v24 = vpop.f32.mrf.mxu0 }
0x214a   :  { %v9881_v20 = vsel %vm1199_vm2, %v9869_v51, -inf }
0x214b   :  { %9882 = vmax.xlane.f32.xlu0 %v9881_v20  ;;  %v9635_v31 = vpop.f32.mrf.mxu0 }
0x214c   :  { %v9871_v25 = vmul.f32 0.35355338, %v9635_v31 }
0x214d   :  { %v18548_v29 = vpop.f32.mrf.mxu0 }
0x214e   :  { %v9887_v27 = vsel %vm1199_vm2, %v9871_v25, -inf }
0x214f   :  { %v9787_v34 = vpop.f32.mrf.mxu0  ;;  %9888 = vmax.xlane.f32.xlu1 %v9887_v27  ;;  %9885 = vmax.xlane.f32.xlu0 %v9884_v32  ;;  %v9711_v8 = vpop.f32.mrf.mxu1 }
0x2150   :  { %v9873_v38 = vmul.f32 0.35355338, %v9787_v34  ;;  %v9872_v63 = vmul.f32 0.35355338, %v9711_v8 }
0x2151   :  { %v18553_v40 = vpop.f32.mrf.mxu1  ;;  %v18558_v22 = vpop.f32.mrf.mxu0 }
0x2152   :  { %v9893_v35 = vsel %vm1199_vm2, %v9873_v38, -inf  ;;  %v9890_v41 = vsel %vm1199_vm2, %v9872_v63, -inf }
0x2153   :  { %9894 = vmax.xlane.f32.xlu1 %v9893_v35  ;;  %9891 = vmax.xlane.f32.xlu0 %v9890_v41  ;;  %v9863_v43 = vpop.f32.mrf.mxu1 }
0x2154   :  { %v9874_v9 = vmul.f32 0.35355338, %v9863_v43 }
0x2155   :  { %v18563_v18 = vpop.f32.mrf.mxu1 }
0x2156   :  { %v9896_v11 = vsel %vm1199_vm2, %v9874_v9, -inf }
0x2157   :  { %9897 = vmax.xlane.f32.xlu0 %v9896_v11 }
0x2164   :  { %9241 = vrot.lane.b32.xlu1 %v21982_v56, %s20470_s15 }
0x2167   :  { %v9877_v52 = vpop.xlane.xlu0 %9876 }
0x2168   :  { %9247 = vrot.lane.b32.xlu1 %v21982_v56, %s20469_s3  ;;  %v9899_v2 = vsub.f32 %v9867_v4, %v9877_v52 }
0x216a   :  { %v9907_v6 = vmul.f32 1.442695, %v9899_v2 }
0x216c   :  { %9249 = vrot.lane.b32.xlu1 %v21990_v7, %s20469_s3 }
0x216d   :  { %9243 = vrot.lane.b32.xlu0 %v21990_v7, %s20470_s15 }
0x2171   :  { %v9880_v45 = vpop.xlane.xlu1 %9879 }
0x2172   :  { %v9900_v53 = vsub.f32 %v9868_v47, %v9880_v45 }
0x2174   :  { %v9909_v5 = vmul.f32 1.442695, %v9900_v53 }
0x2176   :  { %19344 = vpow2.f32 %v9909_v5 }
0x2177   :  { %19346 = vpow2.f32 %v9907_v6 }
0x2183   :  { %v19345_v54 = vpop.eup %19344 }
0x2184   :  { %v9926_v21 = vsel %vm1199_vm2, %v19345_v54, 0.0  ;;  %v19347_v42 = vpop.eup %19346 }
0x2185   :  { %v9923_v39 = vsel %vm1199_vm2, %v19347_v42, 0.0 }
0x218c   :  { %9927 = vadd.xlane.f32.xlu0 %v9926_v21 }
0x2190   :  { %9924 = vadd.xlane.f32.xlu1 %v9923_v39 }
0x21d4   :  { %v9883_v59 = vpop.xlane.xlu0 %9882 }
0x21d5   :  { %v9901_v46 = vsub.f32 %v9869_v51, %v9883_v59 }
0x21d7   :  { %v9911_v30 = vmul.f32 1.442695, %v9901_v46 }
0x21d8   :  { %v9886_v49 = vpop.xlane.xlu0 %9885  ;;  %v9889_v48 = vpop.xlane.xlu1 %9888 }
0x21d9   :  { %19348 = vpow2.f32 %v9911_v30  ;;  %v9902_v47 = vsub.f32 %v9870_v23, %v9886_v49  ;;  %v9903_v4 = vsub.f32 %v9871_v25, %v9889_v48 }
0x21db   :  { %v9913_v50 = vmul.f32 1.442695, %v9902_v47  ;;  %v9915_v36 = vmul.f32 1.442695, %v9903_v4 }
0x21dc   :  { %v9892_v17 = vpop.xlane.xlu0 %9891  ;;  %v9895_v24 = vpop.xlane.xlu1 %9894 }
0x21dd   :  { %19350 = vpow2.f32 %v9913_v50  ;;  %v9904_v20 = vsub.f32 %v9872_v63, %v9892_v17  ;;  %v9905_v31 = vsub.f32 %v9873_v38, %v9895_v24 }
0x21de   :  { %19352 = vpow2.f32 %v9915_v36 }
0x21df   :  { %v9917_v29 = vmul.f32 1.442695, %v9904_v20  ;;  %v9919_v27 = vmul.f32 1.442695, %v9905_v31 }
0x21e0   :  { %v9898_v32 = vpop.xlane.xlu0 %9897  ;;  %v9242_v11 = vpop.permute.xlu1 %9241 }
0x21e1   :  { %19354 = vpow2.f32 %v9917_v29  ;;  %v9906_v34 = vsub.f32 %v9874_v9, %v9898_v32 }
0x21e2   :  { %19356 = vpow2.f32 %v9919_v27  ;;  %v8752_v27 = vld [vmem:[#allocation43] sm:$0xff] }
0x21e3   :  { %v9921_v51 = vmul.f32 1.442695, %v9906_v34 }
0x21e4   :  { %v9248_v45 = vpop.permute.xlu1 %9247  ;;  %v9244_v53 = vpop.permute.xlu0 %9243 }
0x21e5   :  { %19358 = vpow2.f32 %v9921_v51 }
0x21e6   :  { %v19349_v8 = vpop.eup %19348 }
0x21e7   :  { %v9929_v23 = vsel %vm1199_vm2, %v19349_v8, 0.0 }
0x21e8   :  { %9930 = vadd.xlane.f32.xlu1 %v9929_v23  ;;  %v9250_v52 = vpop.permute.xlu1 %9249  ;;  %v8754_v23 = vld [vmem:[#allocation43 + $0x10] sm:$0xff] }
0x21ea   :  { %v19351_v25 = vpop.eup %19350 }
0x21eb   :  { %v19353_v40 = vpop.eup %19352  ;;  %v9932_v22 = vsel %vm1199_vm2, %v19351_v25, 0.0 }
0x21ec   :  { %9933 = vadd.xlane.f32.xlu0 %v9932_v22  ;;  %v9935_v38 = vsel %vm1199_vm2, %v19353_v40, 0.0 }
0x21ed   :  { %9936 = vadd.xlane.f32.xlu1 %v9935_v38 }
0x21ee   :  { %v19355_v63 = vpop.eup %19354 }
0x21ef   :  { %v19357_v35 = vpop.eup %19356  ;;  %v9938_v41 = vsel %vm1199_vm2, %v19355_v63, 0.0 }
0x21f0   :  { %9939 = vadd.xlane.f32.xlu0 %v9938_v41  ;;  %v9941_v43 = vsel %vm1199_vm2, %v19357_v35, 0.0 }
0x21f1   :  { %9942 = vadd.xlane.f32.xlu1 %v9941_v43 }
0x21f2   :  { %v22025_v9 = vpop.eup %19358 }
0x21f3   :  { %v9944_v18 = vsel %vm1199_vm2, %v22025_v9, 0.0 }
0x21f4   :  { %9945 = vadd.xlane.f32.xlu0 %v9944_v18 }
0x2202   :  { %9255 = vrot.lane.b32.xlu1 %v21990_v7, %s20472_s6 }
0x220a   :  { %9253 = vrot.lane.b32.xlu0 %v21982_v56, %s20472_s6 }
0x2215   :  { %v9928_v2 = vpop.xlane.xlu0 %9927 }
0x2216   :  { %19360 = vrcp.f32 %v9928_v2 }
0x2219   :  { %v9925_v5 = vpop.xlane.xlu1 %9924 }
0x221a   :  { %19362 = vrcp.f32 %v9925_v5  ;;  %v22068_v5 = vadd.f32 %v21938_v44, %v21943_v12 }
0x2223   :  { %v19361_v6 = vpop.eup %19360 }
0x2224   :  { %v9956_v21 = vmul.f32 %v19361_v6, %v19345_v54 }
0x2226   :  { %18572 = vmatmul.mubr.msk.f32.vlgmr.msra.gmra.mxu1 %vm1199_vm2, %v9956_v21 }
0x2227   :  { %v19363_v39 = vpop.eup %19362  ;;  %18580 = vmatpush3.msra.mxu1 %v9244_v53  ;;  %18581 = vmatprep.mubr.msk.f32.mxu1 %vm20471_vm1, %v23004_v37 }
0x2228   :  { %v9955_v7 = vmul.f32 %v19363_v39, %v19347_v42  ;;  %18589 = vmatprep.subr.mxu1 %v23004_v37  ;;  %v22078_v39 = vadd.f32 %v21943_v12, %v21940_v3 }
0x222a   :  { %18567 = vmatmul.mubr.msk.f32.vlgmr.msra.gmra.mxu0 %vm1199_vm2, %v9955_v7 }
0x222b   :  { %18575 = vmatpush3.msra.mxu0 %v9242_v11  ;;  %18576 = vmatprep.mubr.msk.f32.mxu0 %vm20471_vm1, %v23004_v37 }
0x222c   :  { %18584 = vmatprep.subr.mxu0 %v23004_v37 }
0x2271   :  { %v9931_v56 = vpop.xlane.xlu1 %9930 }
0x2272   :  { %19364 = vrcp.f32 %v9931_v56 }
0x2275   :  { %v9934_v54 = vpop.xlane.xlu0 %9933 }
0x2276   :  { %19366 = vrcp.f32 %v9934_v54  ;;  %v9937_v59 = vpop.xlane.xlu1 %9936 }
0x2277   :  { %19368 = vrcp.f32 %v9937_v59 }
0x2279   :  { %v9940_v46 = vpop.xlane.xlu0 %9939 }
0x227a   :  { %19370 = vrcp.f32 %v9940_v46  ;;  %v9943_v30 = vpop.xlane.xlu1 %9942 }
0x227b   :  { %19372 = vrcp.f32 %v9943_v30 }
0x227d   :  { %v9946_v42 = vpop.xlane.xlu0 %9945 }
0x227e   :  { %19374 = vrcp.f32 %v9946_v42  ;;  %v9256_v32 = vpop.permute.xlu1 %9255 }
0x227f   :  { %v19365_v49 = vpop.eup %19364 }
0x2280   :  { %v9957_v48 = vmul.f32 %v19365_v49, %v19349_v8  ;;  %v8753_v8 = vld [vmem:[#allocation43 + $0x8] sm:$0xff] }
0x2281   :  { %v9254_v24 = vpop.permute.xlu0 %9253 }
0x2282   :  { %18577 = vmatmul.mubr.msk.f32.vlgmr.msra.gmra.mxu0 %vm1199_vm2, %v9957_v48  ;;  %v17131_v48 = vld [vmem:[#allocation44] ss:$0 sm:$0xff] }
0x2283   :  { %v19367_v47 = vpop.eup %19366  ;;  %18585 = vmatpush3.msra.mxu0 %v9248_v45  ;;  %18586 = vmatprep.mubr.msk.f32.mxu0 %vm20471_vm1, %v23004_v37 }
0x2284   :  { %v19369_v4 = vpop.eup %19368  ;;  %18594 = vmatprep.subr.mxu0 %v23004_v37  ;;  %v9958_v50 = vmul.f32 %v19367_v47, %v19351_v25  ;;  %v8755_v25 = vld [vmem:[#allocation43 + $0x18] sm:$0xff] }
0x2285   :  { %v9959_v36 = vmul.f32 %v19369_v4, %v19353_v40 }
0x2286   :  { %18582 = vmatmul.mubr.msk.f32.vlgmr.msra.gmra.mxu1 %vm1199_vm2, %v9958_v50 }
0x2287   :  { %v19371_v17 = vpop.eup %19370  ;;  %18587 = vmatmul.mubr.msk.f32.vlgmr.msra.gmra.mxu0 %vm1199_vm2, %v9959_v36  ;;  %18590 = vmatpush3.msra.mxu1 %v9250_v52 }
0x2288   :  { %v19373_v20 = vpop.eup %19372  ;;  %18595 = vmatpush3.msra.mxu0 %v9254_v24  ;;  %18591 = vmatprep.mubr.msk.f32.mxu1 %vm20471_vm1, %v23004_v37  ;;  %v9960_v31 = vmul.f32 %v19371_v17, %v19355_v63 }
0x2289   :  { %v9961_v29 = vmul.f32 %v19373_v20, %v19357_v35  ;;  %18596 = vmatprep.mubr.msk.f32.mxu0 %vm20471_vm1, %v23004_v37  ;;  %18599 = vmatprep.subr.mxu1 %v23004_v37 }
0x228a   :  { %18592 = vmatmul.mubr.msk.f32.vlgmr.msra.gmra.mxu1 %vm1199_vm2, %v9960_v31  ;;  %18604 = vmatprep.subr.mxu0 %v8753_v8 }
0x228b   :  { %v19375_v34 = vpop.eup %19374  ;;  %18597 = vmatmul.mubr.msk.f32.vlgmr.msra.gmra.mxu0 %vm1199_vm2, %v9961_v29  ;;  %18600 = vmatpush3.msra.mxu1 %v9256_v32 }
0x228c   :  { %v9962_v51 = vmul.f32 %v19375_v34, %v22025_v9  ;;  %18601 = vmatprep.mubr.msk.f32.mxu1 %vm20471_vm1, %v23004_v37  ;;  %18609 = vmatprep.subr.mxu1 %v8752_v27 }
0x228d   :  { %18605 = vmatpush3.msra.mxu0 %v8753_v8 }
0x228e   :  { %18602 = vmatmul.mubr.msk.f32.vlgmr.msra.gmra.mxu1 %vm1199_vm2, %v9962_v51  ;;  %18614 = vmatprep.subr.mxu0 %v8754_v23 }
0x228f   :  { %18610 = vmatpush3.msra.mxu1 %v8752_v27 }
0x2290   :  { %18619 = vmatprep.subr.mxu1 %v8755_v25 }
0x22e6   :  { %v10105_v40 = vpop.f32.mrf.mxu1 }
0x22e8   :  { %v18573_v22 = vpop.f32.mrf.mxu1 }
0x22e9   :  { %v8760_v22 = vld [vmem:[%s23014_s0 + $0x18] sm:$0xff] }
0x22ea   :  { %v10032_v38 = vpop.f32.mrf.mxu0 }
0x22eb   :  { %18611 = vmatprep.mubr.msk.f32.mxu1 %vm1199_vm2, %v10032_v38  ;;  %v8759_v38 = vld [vmem:[%s23014_s0 + $0x10] sm:$0xff] }
0x22ec   :  { %v18568_v63 = vpop.f32.mrf.mxu0  ;;  %18612 = vmatmul.mubr.msk.f32.vlgmr.msra.gmra.mxu1 %vm1199_vm2, %v10105_v40 }
0x22ed   :  { %18620 = vmatpush3.msra.mxu1 %v8755_v25  ;;  %v8758_v63 = vld [vmem:[%s23014_s0 + $0x8] sm:$0xff] }
0x22ee   :  { %18635 = vmatprep.subr.mxu1 %v23004_v37 }
0x2342   :  { %v10178_v35 = vpop.f32.mrf.mxu0 }
0x2343   :  { %18606 = vmatprep.mubr.msk.f32.mxu0 %vm1199_vm2, %v10178_v35  ;;  %v8757_v35 = vld [vmem:[%s23014_s0] sm:$0xff] }
0x2344   :  { %v18578_v41 = vpop.f32.mrf.mxu0 }
0x2346   :  { %v10251_v43 = vpop.f32.mrf.mxu1 }
0x2347   :  { %v10324_v9 = vpop.f32.mrf.mxu0  ;;  %18607 = vmatmul.mubr.msk.f32.vlgmr.msra.gmra.mxu0 %vm1199_vm2, %v10251_v43 }
0x2348   :  { %v18583_v18 = vpop.f32.mrf.mxu1  ;;  %18616 = vmatprep.mubr.msk.f32.mxu0 %vm1199_vm2, %v10324_v9  ;;  %18615 = vmatpush3.msra.mxu0 %v8754_v23 }
0x2349   :  { %v18588_v11 = vpop.f32.mrf.mxu0  ;;  %18624 = vmatprep.subr.mxu0 %v8760_v22 }
0x234a   :  { %v10397_v45 = vpop.f32.mrf.mxu1 }
0x234b   :  { %v10470_v53 = vpop.f32.mrf.mxu0  ;;  %18617 = vmatmul.mubr.msk.f32.vlgmr.msra.gmra.mxu0 %vm1199_vm2, %v10397_v45 }
0x234c   :  { %18621 = vmatprep.mubr.msk.f32.mxu1 %vm1199_vm2, %v10470_v53  ;;  %v18593_v52 = vpop.f32.mrf.mxu1  ;;  %18625 = vmatpush3.msra.mxu0 %v8760_v22 }
0x234d   :  { %v18598_v2 = vpop.f32.mrf.mxu0  ;;  %18626 = vmatprep.subr.mxu0 %v8759_v38  ;;  %v17132_v52 = vld [vmem:[%s23015_s4] ss:$0 sm:$0xff] }
0x234e   :  { %v10543_v6 = vpop.f32.mrf.mxu1  ;;  %18627 = vmatpush3.msra.mxu0 %v8759_v38 }
0x234f   :  { %18622 = vmatmul.mubr.msk.f32.vlgmr.msra.gmra.mxu1 %vm1199_vm2, %v10543_v6  ;;  %18628 = vmatprep.subr.mxu0 %v8758_v63  ;;  %v17133_v6 = vld [vmem:[%s23016_s27] ss:$0 sm:$0xff] }
0x2350   :  { %18636 = vmatpush3.xpose.msk.msra.mxu1 %vm1199_vm2, %v22068_v5  ;;  %v18603_v21 = vpop.f32.mrf.mxu1  ;;  %18639 = vmatprep.mubr.msk.f32.mxu1 %vm20471_vm1, %v23004_v37 }
0x2351   :  { %18637 = vmatprep.subr.mxu1 %v23004_v37  ;;  %18629 = vmatpush3.msra.mxu0 %v8758_v63 }
0x2352   :  { %18630 = vmatprep.subr.mxu0 %v8757_v35 }
0x2353   :  { %18631 = vmatpush3.msra.mxu0 %v8757_v35 }
0x2354   :  { %18638 = vmatpush3.xpose.msk.msra.mxu1 %vm1199_vm2, %v22078_v39  ;;  %18642 = vmatprep.subr.mxu0 %v23004_v37 }
0x2355   :  { %18649 = vmatprep.subr.mxu1 %v23004_v37 }
0x23ac   :  { %v18613_v7 = vpop.f32.mrf.mxu1 }
0x23ae   :  { %v10700_v46 = vpop.f32.mrf.mxu1 }
0x2407   :  { %v18608_v44 = vpop.f32.mrf.mxu0 }
0x2408   :  { %v10706_v59 = vadd.f32 %v18613_v7, %v18608_v44 }
0x2409   :  { %v10619_v56 = vpop.f32.mrf.mxu0 }
0x240a   :  { %v10701_v42 = vadd.f32 %v10700_v46, %v10619_v56 }
0x240b   :  { %v18618_v54 = vpop.f32.mrf.mxu0 }
0x240c   :  { %v10791_v49 = vadd.f32 %v18618_v54, %v10706_v59 }
0x240d   :  { %v10781_v30 = vpop.f32.mrf.mxu0 }
0x240e   :  { %v10790_v4 = vadd.f32 %v10781_v30, %v10701_v42  ;;  %v17134_v42 = vld [vmem:[%s23017_s1] ss:$0 sm:$0xff] }
0x240f   :  { %v18623_v47 = vpop.f32.mrf.mxu1 }
0x2410   :  { %v10874_v50 = vadd.f32 %v18623_v47, %v10791_v49 }
0x2411   :  { %v10864_v3 = vpop.f32.mrf.mxu1 }
0x2412   :  { %v10882_v12 = vadd.f32 %v17131_v48, %v10874_v50  ;;  %v10873_v36 = vadd.f32 %v10864_v3, %v10790_v4 }
0x2414   :  { %v10881_v17 = vadd.f32 %v17131_v48, %v10873_v36  ;;  %v10884_v24 = vadd.f32 %v10882_v12, %v21865_v1 }
0x2416   :  { %v10888_v20 = vsel %vm718_vm0, %v10884_v24, 0.0  ;;  %v10883_v31 = vadd.f32 %v10881_v17, %v21856_v13 }
0x2417   :  { %10889 = vadd.xlane.f32.xlu1 %v10888_v20 }
0x2418   :  { %v10885_v29 = vsel %vm718_vm0, %v10883_v31, 0.0 }
0x2419   :  { %10886 = vadd.xlane.f32.xlu0 %v10885_v29 }
0x2428   :  { %8987 = vrot.lane.b32.xlu1 %v22068_v5, %s20470_s15 }
0x242c   :  { %8985 = vrot.lane.b32.xlu1 %v22078_v39, %s20470_s15 }
0x2430   :  { %8989 = vrot.lane.b32.xlu1 %v21949_v16, %s20470_s15 }
0x2434   :  { %8997 = vrot.lane.b32.xlu1 %v21949_v16, %s20469_s3 }
0x24a0   :  { %v10890_v1 = vpop.xlane.xlu1 %10889 }
0x24a1   :  { %v10892_v13 = vmul.f32 0.03125, %v10890_v1 }
0x24a2   :  { %v10887_v27 = vpop.xlane.xlu0 %10886 }
0x24a3   :  { %v10891_v32 = vmul.f32 0.03125, %v10887_v27  ;;  %v10894_v34 = vsub.f32 %v10884_v24, %v10892_v13 }
0x24a5   :  { %v10893_v51 = vsub.f32 %v10883_v31, %v10891_v32  ;;  %v10896_v25 = vmul.f32 %v10894_v34, %v10894_v34 }
0x24a7   :  { %v10895_v8 = vmul.f32 %v10893_v51, %v10893_v51  ;;  %v10900_v40 = vsel %vm718_vm0, %v10896_v25, 0.0  ;;  %v22231_v25 = vadd.f32 %v21956_v60, %v21953_v33 }
0x24a9   :  { %v10897_v23 = vsel %vm718_vm0, %v10895_v8, 0.0 }
0x24aa   :  { %10898 = vadd.xlane.f32.xlu0 %v10897_v23 }
0x24ae   :  { %10901 = vadd.xlane.f32.xlu0 %v10900_v40 }
0x24c4   :  { %8991 = vrot.lane.b32.xlu0 %v21946_v28, %s20470_s15 }
0x24c8   :  { %8995 = vrot.lane.b32.xlu0 %v22068_v5, %s20469_s3 }
0x24cc   :  { %8999 = vrot.lane.b32.xlu0 %v21946_v28, %s20469_s3 }
0x24d0   :  { %8993 = vrot.lane.b32.xlu0 %v22078_v39, %s20469_s3 }
0x24d4   :  { %9003 = vrot.lane.b32.xlu0 %v22068_v5, %s20472_s6 }
0x24d8   :  { %9007 = vrot.lane.b32.xlu0 %v21946_v28, %s20472_s6 }
0x24dc   :  { %9001 = vrot.lane.b32.xlu0 %v22078_v39, %s20472_s6 }
0x2533   :  { %v10899_v41 = vpop.xlane.xlu0 %10898 }
0x2534   :  { %v10903_v43 = vmul.f32 0.03125, %v10899_v41 }
0x2536   :  { %v10905_v9 = vadd.f32 1e-05, %v10903_v43 }
0x2537   :  { %v10902_v18 = vpop.xlane.xlu0 %10901 }
0x2538   :  { %19376 = vrsqrt.f32 %v10905_v9  ;;  %v10904_v11 = vmul.f32 0.03125, %v10902_v18 }
0x253a   :  { %v10906_v45 = vadd.f32 1e-05, %v10904_v11 }
0x253b   :  { %v22141_v4 = vpop.permute.xlu0 %8991 }
0x253c   :  { %19378 = vrsqrt.f32 %v10906_v45 }
0x253f   :  { %v22171_v12 = vpop.permute.xlu0 %8995 }
0x2543   :  { %v22173_v36 = vpop.permute.xlu0 %8999 }
0x2545   :  { %v19377_v53 = vpop.eup %19376 }
0x2546   :  { %v10909_v2 = vmul.f32 %v19377_v53, %v10893_v51  ;;  %v22225_v51 = vadd.f32 %v21951_v57, %v21956_v60 }
0x2547   :  { %v22177_v24 = vpop.permute.xlu0 %8993 }
0x2548   :  { %v10917_v21 = vmul.f32 %v17132_v52, %v10909_v2 }
0x2549   :  { %v19379_v44 = vpop.eup %19378 }
0x254a   :  { %v10910_v7 = vmul.f32 %v19379_v44, %v10894_v34  ;;  %v22118_v56 = vadd.f32 %v17133_v6, %v10917_v21 }
0x254b   :  { %v22184_v31 = vpop.permute.xlu0 %9003 }
0x254c   :  { %v10918_v54 = vmul.f32 %v17132_v52, %v10910_v7  ;;  %v10927_v59 = vadd.f32 %v22118_v56, %v21858_v14  ;;  %v22136_v14 = vpop.permute.xlu1 %8987 }
0x254e   :  { %v22122_v46 = vadd.f32 %v17133_v6, %v10918_v54  ;;  %18632 = vmatprep.mubr.msk.f32.mxu0 %vm718_vm0, %v10927_v59 }
0x254f   :  { %v22196_v13 = vpop.permute.xlu0 %9007 }
0x2550   :  { %v10928_v30 = vadd.f32 %v22122_v46, %v21867_v58  ;;  %v22139_v58 = vpop.permute.xlu1 %8985 }
0x2552   :  { %18633 = vmatmul.mubr.msk.f32.vlgmr.msra.gmra.mxu0 %vm718_vm0, %v10928_v30 }
0x2553   :  { %18643 = vmatpush3.xpose.msk.msra.mxu0 %vm1199_vm2, %v21946_v28  ;;  %18646 = vmatprep.mubr.msk.f32.mxu0 %vm20471_vm1, %v23004_v37  ;;  %v22213_v32 = vpop.permute.xlu0 %9001 }
0x2554   :  { %18644 = vmatprep.subr.mxu0 %v23004_v37  ;;  %v22154_v3 = vpop.permute.xlu1 %8989 }
0x2557   :  { %18645 = vmatpush3.xpose.msk.msra.mxu0 %vm1199_vm2, %v21949_v16 }
0x2558   :  { %18656 = vmatprep.subr.mxu0 %v23004_v37  ;;  %v22175_v17 = vpop.permute.xlu1 %8997 }
0x2612   :  { %v18634_v49 = vpop.f32.mrf.mxu0 }
0x2613   :  { %v11013_v48 = vadd.f32 %v18634_v49, %v17134_v42 }
0x2614   :  { %v11007_v47 = vpop.f32.mrf.mxu0 }
0x2615   :  { %v11008_v50 = vadd.f32 %v17134_v42, %v11007_v47  ;;  %11020 = vrot.lane.b32.xlu1 %v11013_v48, %s20470_s15  ;;  %18647 = vmatmul.mubr.msk.f32.vlgmr.msra.gmra.mxu0 %vm1199_vm2, %v11013_v48 }
0x2616   :  { %18657 = vmatpush3.xpose.msk.msra.mxu0 %vm1199_vm2, %v22141_v4  ;;  %18660 = vmatprep.mubr.msk.f32.mxu0 %vm20471_vm1, %v23004_v37 }
0x2617   :  { %11026 = vrot.lane.b32.xlu0 %v11008_v50, %s20472_s6  ;;  %18640 = vmatmul.mubr.msk.f32.vlgmr.msra.gmra.mxu1 %vm1199_vm2, %v11008_v50 }
0x2618   :  { %18650 = vmatpush3.xpose.msk.msra.mxu1 %vm1199_vm2, %v22136_v14  ;;  %18658 = vmatprep.subr.mxu0 %v23004_v37 }
0x2619   :  { %11018 = vrot.lane.b32.xlu1 %v11008_v50, %s20470_s15  ;;  %18651 = vmatprep.subr.mxu1 %v23004_v37 }
0x261a   :  { %18659 = vmatpush3.xpose.msk.msra.mxu0 %vm1199_vm2, %v22154_v3  ;;  %18653 = vmatprep.mubr.msk.f32.mxu1 %vm20471_vm1, %v23004_v37 }
0x261b   :  { %18670 = vmatprep.subr.mxu0 %v23004_v37 }
0x261c   :  { %18652 = vmatpush3.xpose.msk.msra.mxu1 %vm1199_vm2, %v22139_v58 }
0x261d   :  { %11024 = vrot.lane.b32.xlu1 %v11013_v48, %s20469_s3  ;;  %18663 = vmatprep.subr.mxu1 %v23004_v37 }
0x2621   :  { %11022 = vrot.lane.b32.xlu1 %v11008_v50, %s20469_s3 }
0x2625   :  { %9005 = vrot.lane.b32.xlu1 %v21949_v16, %s20472_s6 }
0x2629   :  { %11028 = vrot.lane.b32.xlu1 %v11013_v48, %s20472_s6 }
0x2687   :  { %v11021_v20 = vpop.permute.xlu1 %11020 }
0x2688   :  { %18661 = vmatmul.mubr.msk.f32.vlgmr.msra.gmra.mxu0 %vm1199_vm2, %v11021_v20 }
0x2689   :  { %18671 = vmatpush3.xpose.msk.msra.mxu0 %vm1199_vm2, %v22173_v36  ;;  %18674 = vmatprep.mubr.msk.f32.mxu0 %vm20471_vm1, %v23004_v37  ;;  %v11027_v8 = vpop.permute.xlu0 %11026 }
0x268a   :  { %18672 = vmatprep.subr.mxu0 %v23004_v37 }
0x268b   :  { %v11019_v29 = vpop.permute.xlu1 %11018 }
0x268c   :  { %18654 = vmatmul.mubr.msk.f32.vlgmr.msra.gmra.mxu1 %vm1199_vm2, %v11019_v29 }
0x268d   :  { %18664 = vmatpush3.xpose.msk.msra.mxu1 %vm1199_vm2, %v22171_v12  ;;  %18673 = vmatpush3.xpose.msk.msra.mxu0 %vm1199_vm2, %v22175_v17 }
0x268e   :  { %18665 = vmatprep.subr.mxu1 %v23004_v37  ;;  %18684 = vmatprep.subr.mxu0 %v23004_v37 }
0x268f   :  { %v11025_v1 = vpop.permute.xlu1 %11024  ;;  %18667 = vmatprep.mubr.msk.f32.mxu1 %vm20471_vm1, %v23004_v37 }
0x2690   :  { %18675 = vmatmul.mubr.msk.f32.vlgmr.msra.gmra.mxu0 %vm1199_vm2, %v11025_v1 }
0x2691   :  { %18666 = vmatpush3.xpose.msk.msra.mxu1 %vm1199_vm2, %v22177_v24  ;;  %18685 = vmatpush3.xpose.msk.msra.mxu0 %vm1199_vm2, %v22196_v13 }
0x2692   :  { %18677 = vmatprep.subr.mxu1 %v23004_v37  ;;  %18686 = vmatprep.subr.mxu0 %v23004_v37 }
0x2693   :  { %v11023_v27 = vpop.permute.xlu1 %11022  ;;  %18688 = vmatprep.mubr.msk.f32.mxu0 %vm20471_vm1, %v23004_v37 }
0x2694   :  { %18668 = vmatmul.mubr.msk.f32.vlgmr.msra.gmra.mxu1 %vm1199_vm2, %v11023_v27 }
0x2695   :  { %18678 = vmatpush3.xpose.msk.msra.mxu1 %vm1199_vm2, %v22184_v31  ;;  %18681 = vmatprep.mubr.msk.f32.mxu1 %vm20471_vm1, %v23004_v37 }
0x2696   :  { %18679 = vmatprep.subr.mxu1 %v23004_v37 }
0x2697   :  { %v22215_v34 = vpop.permute.xlu1 %9005 }
0x2698   :  { %18687 = vmatpush3.xpose.msk.msra.mxu0 %vm1199_vm2, %v22215_v34 }
0x2699   :  { %18680 = vmatpush3.xpose.msk.msra.mxu1 %vm1199_vm2, %v22213_v32  ;;  %18705 = vmatprep.subr.mxu0 %v23004_v37 }
0x269a   :  { %18691 = vmatprep.subr.mxu1 %v23004_v37 }
0x269b   :  { %v11029_v23 = vpop.permute.xlu1 %11028 }
0x269c   :  { %18682 = vmatmul.mubr.msk.f32.vlgmr.msra.gmra.mxu1 %vm1199_vm2, %v11027_v8  ;;  %18689 = vmatmul.mubr.msk.f32.vlgmr.msra.gmra.mxu0 %vm1199_vm2, %v11029_v23 }
0x269d   :  { %18692 = vmatpush3.msra.mxu1 %v22225_v51  ;;  %18695 = vmatprep.mubr.msk.f32.mxu1 %vm20471_vm1, %v23004_v37 }
0x269e   :  { %18693 = vmatprep.subr.mxu1 %v23004_v37  ;;  %18709 = vmatprep.mubr.msk.f32.mxu0 %vm20471_vm1, %v23004_v37 }
0x269f   :  { %18694 = vmatpush3.msra.mxu1 %v22231_v25 }
0x26a0   :  { %18698 = vmatprep.subr.mxu1 %v23004_v37 }
0x26d5   :  { %v11178_v57 = vpop.f32.mrf.mxu0 }
0x26d6   :  { %v11639_v40 = vmul.f32 0.35355338, %v11178_v57 }
0x26d7   :  { %v11102_v22 = vpop.f32.mrf.mxu1  ;;  %v18648_v38 = vpop.f32.mrf.mxu0 }
0x26d8   :  { %v11638_v33 = vmul.f32 0.35355338, %v11102_v22  ;;  %v11649_v60 = vsel %vm3594_vm3, %v11639_v40, -inf }
0x26d9   :  { %11650 = vmax.xlane.f32.xlu1 %v11649_v60  ;;  %v18641_v63 = vpop.f32.mrf.mxu1 }
0x26da   :  { %v11646_v35 = vsel %vm3594_vm3, %v11638_v33, -inf }
0x26db   :  { %11647 = vmax.xlane.f32.xlu0 %v11646_v35 }
0x2748   :  { %v11330_v41 = vpop.f32.mrf.mxu0 }
0x2749   :  { %v11641_v45 = vmul.f32 0.35355338, %v11330_v41 }
0x274a   :  { %v18662_v43 = vpop.f32.mrf.mxu0 }
0x274b   :  { %v11655_v21 = vsel %vm3594_vm3, %v11641_v45, -inf }
0x274c   :  { %v11254_v9 = vpop.f32.mrf.mxu1 }
0x274d   :  { %v11640_v18 = vmul.f32 0.35355338, %v11254_v9 }
0x274e   :  { %v18655_v11 = vpop.f32.mrf.mxu1 }
0x274f   :  { %v11652_v53 = vsel %vm3594_vm3, %v11640_v18, -inf }
0x2750   :  { %11653 = vmax.xlane.f32.xlu0 %v11652_v53  ;;  %v11482_v52 = vpop.f32.mrf.mxu0 }
0x2751   :  { %v11643_v6 = vmul.f32 0.35355338, %v11482_v52 }
0x2752   :  { %v18676_v2 = vpop.f32.mrf.mxu0 }
0x2753   :  { %v11661_v59 = vsel %vm3594_vm3, %v11643_v6, -inf }
0x2754   :  { %11656 = vmax.xlane.f32.xlu0 %v11655_v21  ;;  %v11406_v44 = vpop.f32.mrf.mxu1 }
0x2755   :  { %v11642_v7 = vmul.f32 0.35355338, %v11406_v44 }
0x2756   :  { %v18669_v54 = vpop.f32.mrf.mxu1 }
0x2757   :  { %v11658_v30 = vsel %vm3594_vm3, %v11642_v7, -inf }
0x2758   :  { %11662 = vmax.xlane.f32.xlu0 %v11661_v59  ;;  %11659 = vmax.xlane.f32.xlu1 %v11658_v30 }
0x275c   :  { %v11558_v42 = vpop.f32.mrf.mxu1  ;;  %v11634_v49 = vpop.f32.mrf.mxu0 }
0x275d   :  { %v11645_v48 = vmul.f32 0.35355338, %v11634_v49  ;;  %v11644_v1 = vmul.f32 0.35355338, %v11558_v42 }
0x275e   :  { %v18683_v47 = vpop.f32.mrf.mxu1  ;;  %v18690_v50 = vpop.f32.mrf.mxu0 }
0x275f   :  { %v11667_v20 = vsel %vm3594_vm3, %v11645_v48, -inf  ;;  %v11664_v23 = vsel %vm3594_vm3, %v11644_v1, -inf }
0x2760   :  { %11668 = vmax.xlane.f32.xlu0 %v11667_v20 }
0x2762   :  { %v11651_v29 = vpop.xlane.xlu1 %11650 }
0x2763   :  { %v11671_v27 = vsub.f32 %v11639_v40, %v11651_v29 }
0x2764   :  { %v11648_v40 = vpop.xlane.xlu0 %11647 }
0x2765   :  { %v11680_v8 = vmul.f32 1.442695, %v11671_v27  ;;  %v11670_v38 = vsub.f32 %v11638_v33, %v11648_v40 }
0x2767   :  { %19380 = vpow2.f32 %v11680_v8  ;;  %v11678_v60 = vmul.f32 1.442695, %v11670_v38 }
0x2769   :  { %9015 = vrot.lane.b32.xlu1 %v22225_v51, %s20470_s15  ;;  %19382 = vpow2.f32 %v11678_v60 }
0x2774   :  { %v22259_v57 = vpop.eup %19380 }
0x2775   :  { %v11697_v22 = vsel %vm3594_vm3, %v22259_v57, 0.0 }
0x2776   :  { %9019 = vrot.lane.b32.xlu0 %v21959_v26, %s20470_s15  ;;  %v22273_v63 = vpop.eup %19382 }
0x2777   :  { %v11694_v35 = vsel %vm3594_vm3, %v22273_v63, 0.0 }
0x277a   :  { %9027 = vrot.lane.b32.xlu0 %v22225_v51, %s20469_s3 }
0x277e   :  { %9025 = vrot.lane.b32.xlu0 %v22231_v25, %s20469_s3 }
0x2782   :  { %9039 = vrot.lane.b32.xlu0 %v22225_v51, %s20472_s6 }
0x278d   :  { %11665 = vmax.xlane.f32.xlu1 %v11664_v23 }
0x279e   :  { %9013 = vrot.lane.b32.xlu1 %v22231_v25, %s20470_s15 }
0x27a1   :  { %11698 = vadd.xlane.f32.xlu0 %v11697_v22 }
0x27a2   :  { %9017 = vrot.lane.b32.xlu1 %v21962_v55, %s20470_s15 }
0x27a6   :  { %9031 = vrot.lane.b32.xlu1 %v21959_v26, %s20469_s3 }
0x27aa   :  { %9029 = vrot.lane.b32.xlu1 %v21962_v55, %s20469_s3 }
0x27ae   :  { %9043 = vrot.lane.b32.xlu1 %v21959_v26, %s20472_s6 }
0x27d2   :  { %11695 = vadd.xlane.f32.xlu1 %v11694_v35 }
0x27d9   :  { %v11654_v41 = vpop.xlane.xlu0 %11653 }
0x27da   :  { %v11672_v43 = vsub.f32 %v11640_v18, %v11654_v41 }
0x27dc   :  { %v11682_v9 = vmul.f32 1.442695, %v11672_v43 }
0x27dd   :  { %v11657_v11 = vpop.xlane.xlu0 %11656 }
0x27de   :  { %19384 = vpow2.f32 %v11682_v9  ;;  %v11673_v53 = vsub.f32 %v11641_v45, %v11657_v11 }
0x27e0   :  { %v11684_v52 = vmul.f32 1.442695, %v11673_v53 }
0x27e1   :  { %v11660_v2 = vpop.xlane.xlu1 %11659  ;;  %v11663_v21 = vpop.xlane.xlu0 %11662 }
0x27e2   :  { %19386 = vpow2.f32 %v11684_v52  ;;  %v11674_v44 = vsub.f32 %v11642_v7, %v11660_v2  ;;  %v11675_v33 = vsub.f32 %v11643_v6, %v11663_v21 }
0x27e4   :  { %v11686_v54 = vmul.f32 1.442695, %v11674_v44  ;;  %v11688_v59 = vmul.f32 1.442695, %v11675_v33 }
0x27e5   :  { %v22277_v30 = vpop.permute.xlu1 %9015 }
0x27e6   :  { %19388 = vpow2.f32 %v11686_v54  ;;  %18706 = vmatpush3.msra.mxu0 %v22277_v30 }
0x27e7   :  { %19390 = vpow2.f32 %v11688_v59  ;;  %18707 = vmatprep.subr.mxu0 %v23004_v37 }
0x27e9   :  { %v11669_v18 = vpop.xlane.xlu0 %11668 }
0x27ea   :  { %v11677_v42 = vsub.f32 %v11645_v48, %v11669_v18 }
0x27eb   :  { %v22281_v49 = vpop.eup %19384 }
0x27ec   :  { %v11692_v45 = vmul.f32 1.442695, %v11677_v42  ;;  %v11700_v47 = vsel %vm3594_vm3, %v22281_v49, 0.0 }
0x27ed   :  { %11701 = vadd.xlane.f32.xlu1 %v11700_v47  ;;  %v22313_v41 = vpop.permute.xlu0 %9019 }
0x27ee   :  { %19392 = vpow2.f32 %v11692_v45 }
0x27ef   :  { %v22285_v6 = vpop.eup %19386 }
0x27f0   :  { %v11703_v7 = vsel %vm3594_vm3, %v22285_v6, 0.0 }
0x27f1   :  { %11704 = vadd.xlane.f32.xlu0 %v11703_v7  ;;  %v22317_v43 = vpop.permute.xlu0 %9027 }
0x27f3   :  { %v22289_v50 = vpop.eup %19388 }
0x27f4   :  { %v22291_v20 = vpop.eup %19390  ;;  %v11706_v48 = vsel %vm3594_vm3, %v22289_v50, 0.0 }
0x27f5   :  { %11707 = vadd.xlane.f32.xlu1 %v11706_v48  ;;  %v11709_v29 = vsel %vm3594_vm3, %v22291_v20, 0.0  ;;  %v22321_v11 = vpop.permute.xlu0 %9025 }
0x27f6   :  { %11710 = vadd.xlane.f32.xlu0 %v11709_v29 }
0x27f9   :  { %v22325_v52 = vpop.permute.xlu0 %9039 }
0x27fb   :  { %v22297_v27 = vpop.eup %19392 }
0x27fc   :  { %v11715_v8 = vsel %vm3594_vm3, %v22297_v27, 0.0 }
0x27fd   :  { %11716 = vadd.xlane.f32.xlu0 %v11715_v8 }
0x2813   :  { %9037 = vrot.lane.b32.xlu0 %v22231_v25, %s20472_s6 }
0x2816   :  { %v11666_v23 = vpop.xlane.xlu1 %11665 }
0x2817   :  { %v11676_v22 = vsub.f32 %v11644_v1, %v11666_v23 }
0x2819   :  { %v11690_v40 = vmul.f32 1.442695, %v11676_v22 }
0x281a   :  { %v22303_v38 = vpop.permute.xlu1 %9013 }
0x281b   :  { %19394 = vpow2.f32 %v11690_v40  ;;  %18708 = vmatpush3.msra.mxu0 %v22303_v38 }
0x281c   :  { %18719 = vmatprep.subr.mxu0 %v23004_v37 }
0x281e   :  { %v22315_v1 = vpop.permute.xlu1 %9017 }
0x2822   :  { %v22319_v9 = vpop.permute.xlu1 %9031 }
0x2826   :  { %v22323_v53 = vpop.permute.xlu1 %9029 }
0x2828   :  { %v22307_v60 = vpop.eup %19394 }
0x2829   :  { %v11712_v35 = vsel %vm3594_vm3, %v22307_v60, 0.0 }
0x282a   :  { %11713 = vadd.xlane.f32.xlu1 %v11712_v35  ;;  %v22327_v2 = vpop.permute.xlu1 %9043  ;;  %v11699_v21 = vpop.xlane.xlu0 %11698  ;;  %v8772_v35 = vld [vmem:[#allocation49] sm:$0xff] }
0x283b   :  { %9041 = vrot.lane.b32.xlu1 %v21962_v55, %s20472_s6 }
0x285b   :  { %v11696_v44 = vpop.xlane.xlu1 %11695 }
0x285c   :  { %19396 = vrcp.f32 %v11696_v44 }
0x285d   :  { %19398 = vrcp.f32 %v11699_v21 }
0x2869   :  { %v19397_v33 = vpop.eup %19396 }
0x286a   :  { %v11726_v54 = vmul.f32 %v19397_v33, %v22273_v63  ;;  %v19399_v59 = vpop.eup %19398 }
0x286b   :  { %v11727_v18 = vmul.f32 %v19399_v59, %v22259_v57  ;;  %v8773_v59 = vld [vmem:[#allocation49 + $0x8] sm:$0xff] }
0x286c   :  { %18696 = vmatmul.mubr.msk.f32.vlgmr.msra.gmra.mxu1 %vm3594_vm3, %v11726_v54 }
0x286d   :  { %18699 = vmatpush3.msra.mxu1 %v21959_v26  ;;  %18702 = vmatprep.mubr.msk.f32.mxu1 %vm20471_vm1, %v23004_v37 }
0x286e   :  { %18700 = vmatprep.subr.mxu1 %v23004_v37 }
0x286f   :  { %18701 = vmatpush3.msra.mxu1 %v21962_v55 }
0x2870   :  { %18712 = vmatprep.subr.mxu1 %v23004_v37  ;;  %18703 = vmatmul.mubr.msk.f32.vlgmr.msra.gmra.mxu1 %vm3594_vm3, %v11727_v18  ;;  %v8774_v18 = vld [vmem:[#allocation49 + $0x10] sm:$0xff] }
0x2871   :  { %18713 = vmatpush3.msra.mxu1 %v22313_v41  ;;  %18716 = vmatprep.mubr.msk.f32.mxu1 %vm20471_vm1, %v23004_v37 }
0x2872   :  { %18714 = vmatprep.subr.mxu1 %v23004_v37 }
0x2873   :  { %18715 = vmatpush3.msra.mxu1 %v22315_v1 }
0x2874   :  { %18726 = vmatprep.subr.mxu1 %v23004_v37 }
0x2876   :  { %v11702_v57 = vpop.xlane.xlu1 %11701 }
0x2877   :  { %19400 = vrcp.f32 %v11702_v57  ;;  %v8775_v57 = vld [vmem:[#allocation49 + $0x18] sm:$0xff] }
0x287a   :  { %v11705_v63 = vpop.xlane.xlu0 %11704 }
0x287b   :  { %19402 = vrcp.f32 %v11705_v63 }
0x287e   :  { %v11708_v42 = vpop.xlane.xlu1 %11707 }
0x287f   :  { %19404 = vrcp.f32 %v11708_v42  ;;  %v11711_v45 = vpop.xlane.xlu0 %11710 }
0x2880   :  { %19406 = vrcp.f32 %v11711_v45 }
0x2884   :  { %v19401_v47 = vpop.eup %19400 }
0x2885   :  { %v11728_v7 = vmul.f32 %v19401_v47, %v22281_v49 }
0x2886   :  { %v11717_v8 = vpop.xlane.xlu0 %11716 }
0x2887   :  { %18710 = vmatmul.mubr.msk.f32.vlgmr.msra.gmra.mxu0 %vm3594_vm3, %v11728_v7  ;;  %19408 = vrcp.f32 %v11717_v8 }
0x2888   :  { %v19403_v48 = vpop.eup %19402  ;;  %18720 = vmatpush3.msra.mxu0 %v22317_v43  ;;  %18723 = vmatprep.mubr.msk.f32.mxu0 %vm20471_vm1, %v23004_v37 }
0x2889   :  { %v11729_v29 = vmul.f32 %v19403_v48, %v22285_v6  ;;  %18721 = vmatprep.subr.mxu0 %v23004_v37 }
0x288a   :  { %18722 = vmatpush3.msra.mxu0 %v22321_v11  ;;  %v22366_v40 = vpop.permute.xlu0 %9037 }
0x288b   :  { %18717 = vmatmul.mubr.msk.f32.vlgmr.msra.gmra.mxu1 %vm3594_vm3, %v11729_v29  ;;  %18733 = vmatprep.subr.mxu0 %v23004_v37 }
0x288c   :  { %v19405_v49 = vpop.eup %19404  ;;  %18727 = vmatpush3.msra.mxu1 %v22319_v9  ;;  %18730 = vmatprep.mubr.msk.f32.mxu1 %vm20471_vm1, %v23004_v37 }
0x288d   :  { %v19407_v23 = vpop.eup %19406  ;;  %v11730_v22 = vmul.f32 %v19405_v49, %v22289_v50  ;;  %18728 = vmatprep.subr.mxu1 %v23004_v37 }
0x288e   :  { %v11731_v6 = vmul.f32 %v19407_v23, %v22291_v20  ;;  %18729 = vmatpush3.msra.mxu1 %v22323_v53 }
0x288f   :  { %18740 = vmatprep.subr.mxu1 %v23004_v37  ;;  %18724 = vmatmul.mubr.msk.f32.vlgmr.msra.gmra.mxu0 %vm3594_vm3, %v11730_v22 }
0x2890   :  { %18731 = vmatmul.mubr.msk.f32.vlgmr.msra.gmra.mxu1 %vm3594_vm3, %v11731_v6  ;;  %18734 = vmatpush3.msra.mxu0 %v22325_v52 }
0x2891   :  { %18741 = vmatpush3.msra.mxu1 %v22327_v2  ;;  %18735 = vmatprep.subr.mxu0 %v23004_v37 }
0x2892   :  { %18736 = vmatpush3.msra.mxu0 %v22366_v40  ;;  %18742 = vmatprep.subr.mxu1 %v23004_v37 }
0x2893   :  { %18744 = vmatprep.mubr.msk.f32.mxu1 %vm20471_vm1, %v23004_v37  ;;  %18737 = vmatprep.mubr.msk.f32.mxu0 %vm20471_vm1, %v23004_v37 }
0x2894   :  { %v19409_v20 = vpop.eup %19408  ;;  %18747 = vmatprep.subr.mxu0 %v8773_v59 }
0x2895   :  { %v11733_v21 = vmul.f32 %v19409_v20, %v22297_v27 }
0x28b3   :  { %v11714_v50 = vpop.xlane.xlu1 %11713 }
0x28b4   :  { %19410 = vrcp.f32 %v11714_v50 }
0x28b7   :  { %v22377_v44 = vpop.permute.xlu1 %9041 }
0x28b8   :  { %18743 = vmatpush3.msra.mxu1 %v22377_v44 }
0x28b9   :  { %18745 = vmatmul.mubr.msk.f32.vlgmr.msra.gmra.mxu1 %vm3594_vm3, %v11733_v21  ;;  %18752 = vmatprep.subr.mxu1 %v8772_v35 }
0x28ba   :  { %18753 = vmatpush3.msra.mxu1 %v8772_v35 }
0x28bb   :  { %18762 = vmatprep.subr.mxu1 %v8775_v57 }
0x28c1   :  { %v19411_v33 = vpop.eup %19410 }
0x28c2   :  { %v11732_v54 = vmul.f32 %v19411_v33, %v22307_v60 }
0x28c4   :  { %18738 = vmatmul.mubr.msk.f32.vlgmr.msra.gmra.mxu0 %vm3594_vm3, %v11732_v54 }
0x28c5   :  { %18748 = vmatpush3.msra.mxu0 %v8773_v59 }
0x28c6   :  { %18757 = vmatprep.subr.mxu0 %v8774_v18 }
0x292c   :  { %v11803_v27 = vpop.f32.mrf.mxu1 }
0x292d   :  { %18754 = vmatprep.mubr.msk.f32.mxu1 %vm1199_vm2, %v11803_v27 }
0x292e   :  { %v18697_v63 = vpop.f32.mrf.mxu1 }
0x2930   :  { %v11876_v42 = vpop.f32.mrf.mxu1 }
0x2931   :  { %18755 = vmatmul.mubr.msk.f32.vlgmr.msra.gmra.mxu1 %vm1199_vm2, %v11876_v42  ;;  %v17177_v42 = vld [vmem:[%s23018_s12] ss:$0 sm:$0xff] }
0x2932   :  { %v18704_v45 = vpop.f32.mrf.mxu1  ;;  %18763 = vmatpush3.msra.mxu1 %v8775_v57 }
0x2947   :  { %v11949_v47 = vpop.f32.mrf.mxu0 }
0x2948   :  { %18749 = vmatprep.mubr.msk.f32.mxu0 %vm1199_vm2, %v11949_v47 }
0x2949   :  { %v18711_v60 = vpop.f32.mrf.mxu0 }
0x294b   :  { %v12022_v7 = vpop.f32.mrf.mxu1 }
0x294c   :  { %18750 = vmatmul.mubr.msk.f32.vlgmr.msra.gmra.mxu0 %vm1199_vm2, %v12022_v7 }
0x294d   :  { %v18718_v48 = vpop.f32.mrf.mxu1  ;;  %18758 = vmatpush3.msra.mxu0 %v8774_v18 }
0x294f   :  { %v12095_v29 = vpop.f32.mrf.mxu0 }
0x2950   :  { %v12168_v8 = vpop.f32.mrf.mxu1  ;;  %18759 = vmatprep.mubr.msk.f32.mxu0 %vm1199_vm2, %v12095_v29 }
0x2951   :  { %v18725_v49 = vpop.f32.mrf.mxu0  ;;  %18760 = vmatmul.mubr.msk.f32.vlgmr.msra.gmra.mxu0 %vm1199_vm2, %v12168_v8 }
0x2952   :  { %v18732_v23 = vpop.f32.mrf.mxu1 }
0x2979   :  { %v12314_v22 = vpop.f32.mrf.mxu1 }
0x297b   :  { %v18746_v6 = vpop.f32.mrf.mxu1 }
0x2984   :  { %v12241_v50 = vpop.f32.mrf.mxu0 }
0x2985   :  { %18764 = vmatprep.mubr.msk.f32.mxu1 %vm1199_vm2, %v12241_v50 }
0x2986   :  { %v18739_v20 = vpop.f32.mrf.mxu0  ;;  %18765 = vmatmul.mubr.msk.f32.vlgmr.msra.gmra.mxu1 %vm1199_vm2, %v12314_v22 }
0x29f1   :  { %v18756_v33 = vpop.f32.mrf.mxu1 }
0x29f3   :  { %v12471_v18 = vpop.f32.mrf.mxu1 }
0x2a0c   :  { %v18751_v35 = vpop.f32.mrf.mxu0 }
0x2a0d   :  { %v12477_v59 = vadd.f32 %v18756_v33, %v18751_v35 }
0x2a0e   :  { %v12390_v21 = vpop.f32.mrf.mxu0 }
0x2a0f   :  { %v12472_v27 = vadd.f32 %v12471_v18, %v12390_v21 }
0x2a11   :  { %v18761_v54 = vpop.f32.mrf.mxu0 }
0x2a12   :  { %v12562_v63 = vadd.f32 %v18761_v54, %v12477_v59 }
0x2a13   :  { %v12552_v57 = vpop.f32.mrf.mxu0 }
0x2a14   :  { %v12561_v47 = vadd.f32 %v12552_v57, %v12472_v27  ;;  %v8779_v27 = vld [vmem:[#allocation50 + $0x10] sm:$0xff] }
0x2a46   :  { %v18766_v45 = vpop.f32.mrf.mxu1 }
0x2a47   :  { %v12645_v60 = vadd.f32 %v18766_v45, %v12562_v63  ;;  %v8778_v63 = vld [vmem:[#allocation50 + $0x8] sm:$0xff] }
0x2a48   :  { %v12635_v7 = vpop.f32.mrf.mxu1  ;;  %v8789_v45 = vld [vmem:[%s23019_s17 + $0x38] sm:$0xff] }
0x2a49   :  { %v12653_v48 = vadd.f32 %v17177_v42, %v12645_v60  ;;  %v12644_v29 = vadd.f32 %v12635_v7, %v12561_v47  ;;  %v8788_v47 = vld [vmem:[%s23019_s17 + $0x30] sm:$0xff]  ;;  %18778 = vmatprep.subr.mxu1 %v8789_v45  ;;  %v8787_v60 = vld [vmem:[%s23019_s17 + $0x28] sm:$0xff] }
0x2a4a   :  { %18779 = vmatpush3.msra.mxu1 %v8789_v45  ;;  %v19564_v7 = vld [vmem:[#allocation37 + $0x18] sm:$0xff]  ;;  %v8785_v45 = vld [vmem:[%s23019_s17 + $0x18] sm:$0xff] }
0x2a4b   :  { %v12652_v8 = vadd.f32 %v17177_v42, %v12644_v29  ;;  %v12655_v49 = vadd.f32 %v12653_v48, %v22122_v46  ;;  %v8777_v42 = vld [vmem:[#allocation50] sm:$0xff]  ;;  %18780 = vmatprep.subr.mxu1 %v8788_v47  ;;  %v8786_v48 = vld [vmem:[%s23019_s17 + $0x20] sm:$0xff] }
0x2a4c   :  { %18781 = vmatpush3.msra.mxu1 %v8788_v47  ;;  %v8784_v47 = vld [vmem:[%s23019_s17 + $0x10] sm:$0xff] }
0x2a4d   :  { %v12659_v23 = vsel %vm718_vm0, %v12655_v49, 0.0  ;;  %v12654_v22 = vadd.f32 %v12652_v8, %v22118_v56  ;;  %v8780_v56 = vld [vmem:[#allocation50 + $0x18] sm:$0xff]  ;;  %18782 = vmatprep.subr.mxu1 %v8787_v60 }
0x2a4e   :  { %12660 = vadd.xlane.f32.xlu1 %v12659_v23  ;;  %18767 = vmatprep.subr.mxu0 %v8780_v56 }
0x2a4f   :  { %v12656_v6 = vsel %vm718_vm0, %v12654_v22, 0.0  ;;  %18768 = vmatpush3.msra.mxu0 %v8780_v56  ;;  %18783 = vmatpush3.msra.mxu1 %v8787_v60  ;;  %v8783_v60 = vld [vmem:[%s23019_s17 + $0x8] sm:$0xff] }
0x2a50   :  { %12657 = vadd.xlane.f32.xlu0 %v12656_v6  ;;  %18769 = vmatprep.subr.mxu0 %v8779_v27 }
0x2a51   :  { %18770 = vmatpush3.msra.mxu0 %v8779_v27  ;;  %18784 = vmatprep.subr.mxu1 %v8786_v48 }
0x2a52   :  { %18771 = vmatprep.subr.mxu0 %v8778_v63  ;;  %18785 = vmatpush3.msra.mxu1 %v8786_v48  ;;  %v17180_v48 = vld [vmem:[%s23022_s2] ss:$0 sm:$0xff] }
0x2a53   :  { %18772 = vmatpush3.msra.mxu0 %v8778_v63  ;;  %v19565_v63 = vld [vmem:[#allocation37 + $0x10] sm:$0xff]  ;;  %18786 = vmatprep.subr.mxu1 %v8785_v45 }
0x2a54   :  { %18773 = vmatprep.subr.mxu0 %v8777_v42  ;;  %18787 = vmatpush3.msra.mxu1 %v8785_v45 }
0x2a55   :  { %18774 = vmatpush3.msra.mxu0 %v8777_v42  ;;  %v19567_v42 = vld [vmem:[#allocation37] sm:$0xff]  ;;  %18788 = vmatprep.subr.mxu1 %v8784_v47 }
0x2a56   :  { %18797 = vmatprep.subr.mxu0 %v19564_v7  ;;  %18789 = vmatpush3.msra.mxu1 %v8784_v47 }
0x2a57   :  { %18790 = vmatprep.subr.mxu1 %v8783_v60 }
0x2a58   :  { %18791 = vmatpush3.msra.mxu1 %v8783_v60 }
0x2ad7   :  { %v12661_v50 = vpop.xlane.xlu1 %12660 }
0x2ad8   :  { %v12663_v20 = vmul.f32 0.03125, %v12661_v50 }
0x2ad9   :  { %v12658_v35 = vpop.xlane.xlu0 %12657 }
0x2ada   :  { %v12662_v21 = vmul.f32 0.03125, %v12658_v35  ;;  %v12665_v33 = vsub.f32 %v12655_v49, %v12663_v20  ;;  %v17178_v20 = vld [vmem:[%s23020_s29] ss:$0 sm:$0xff] }
0x2adc   :  { %v12664_v54 = vsub.f32 %v12654_v22, %v12662_v21  ;;  %v12667_v57 = vmul.f32 %v12665_v33, %v12665_v33  ;;  %v17179_v21 = vld [vmem:[%s23021_s28] ss:$0 sm:$0xff] }
0x2ade   :  { %v12666_v59 = vmul.f32 %v12664_v54, %v12664_v54  ;;  %v12671_v46 = vsel %vm718_vm0, %v12667_v57, 0.0 }
0x2ae0   :  { %v12668_v18 = vsel %vm718_vm0, %v12666_v59, 0.0 }
0x2ae1   :  { %12669 = vadd.xlane.f32.xlu0 %v12668_v18 }
0x2ae5   :  { %12672 = vadd.xlane.f32.xlu0 %v12671_v46 }
0x2b6a   :  { %v12670_v29 = vpop.xlane.xlu0 %12669 }
0x2b6b   :  { %v12674_v8 = vmul.f32 0.03125, %v12670_v29 }
0x2b6d   :  { %v12676_v49 = vadd.f32 1e-05, %v12674_v8 }
0x2b6e   :  { %v12673_v23 = vpop.xlane.xlu0 %12672 }
0x2b6f   :  { %19412 = vrsqrt.f32 %v12676_v49  ;;  %v12675_v22 = vmul.f32 0.03125, %v12673_v23 }
0x2b71   :  { %v12677_v6 = vadd.f32 1e-05, %v12675_v22 }
0x2b73   :  { %19414 = vrsqrt.f32 %v12677_v6 }
0x2b7c   :  { %v19413_v50 = vpop.eup %19412 }
0x2b7d   :  { %v12680_v35 = vmul.f32 %v19413_v50, %v12664_v54  ;;  %v19566_v54 = vld [vmem:[#allocation37 + $0x8] sm:$0xff]  ;;  %v17183_v50 = vld [vmem:[%s23023_s30] ss:$0 sm:$0xff] }
0x2b7f   :  { %v12688_v59 = vmul.f32 %v17178_v20, %v12680_v35 }
0x2b80   :  { %v19415_v18 = vpop.eup %19414 }
0x2b81   :  { %v12681_v57 = vmul.f32 %v19415_v18, %v12665_v33  ;;  %v12696_v46 = vadd.f32 %v17179_v21, %v12688_v59  ;;  %v22406_v33 = vld [vmem:[#allocation40 + $0x18] sm:$0xff] }
0x2b83   :  { %v12689_v56 = vmul.f32 %v17178_v20, %v12681_v57  ;;  %18775 = vmatprep.mubr.msk.f32.mxu0 %vm718_vm0, %v12696_v46 }
0x2b85   :  { %v12697_v27 = vadd.f32 %v17179_v21, %v12689_v56 }
0x2b87   :  { %18776 = vmatmul.mubr.msk.f32.vlgmr.msra.gmra.mxu0 %vm718_vm0, %v12697_v27 }
0x2b88   :  { %18798 = vmatpush3.msra.mxu0 %v19564_v7  ;;  %v8782_v7 = vld [vmem:[%s23019_s17] sm:$0xff] }
0x2b89   :  { %18799 = vmatprep.subr.mxu0 %v19565_v63  ;;  %18792 = vmatprep.subr.mxu1 %v8782_v7 }
0x2b8a   :  { %18800 = vmatpush3.msra.mxu0 %v19565_v63  ;;  %18793 = vmatpush3.msra.mxu1 %v8782_v7 }
0x2b8b   :  { %18801 = vmatprep.subr.mxu0 %v19566_v54  ;;  %18819 = vmatprep.subr.mxu1 %v23004_v37 }
0x2b8c   :  { %18802 = vmatpush3.msra.mxu0 %v19566_v54 }
0x2b8d   :  { %18803 = vmatprep.subr.mxu0 %v19567_v42 }
0x2b8e   :  { %18804 = vmatpush3.msra.mxu0 %v19567_v42 }
0x2b8f   :  { %18808 = vmatprep.subr.mxu0 %v22406_v33 }
0x2c47   :  { %v18777_v29 = vpop.f32.mrf.mxu0 }
0x2c48   :  { %v12782_v8 = vadd.f32 %v18777_v29, %v17180_v48 }
0x2c49   :  { %v12776_v49 = vpop.f32.mrf.mxu0 }
0x2c4a   :  { %v12777_v23 = vadd.f32 %v17180_v48, %v12776_v49  ;;  %v12786_v6 = vmax.f32 %v12782_v8, 0.0 }
0x2c4c   :  { %v12785_v22 = vmax.f32 %v12777_v23, 0.0 }
0x2c4e   :  { %18794 = vmatprep.mubr.msk.f32.mxu1 %vm4750_vm4, %v12785_v22 }
0x2c4f   :  { %18795 = vmatmul.mubr.msk.f32.vlgmr.msra.gmra.mxu1 %vm4750_vm4, %v12786_v6 }
0x2c50   :  { %18821 = vmatprep.mubr.msk.f32.mxu1 %vm20471_vm1, %v23004_v37 }
0x2d0f   :  { %v18796_v20 = vpop.f32.mrf.mxu1 }
0x2d10   :  { %v12871_v35 = vadd.f32 %v18796_v20, %v17183_v50 }
0x2d11   :  { %v12865_v21 = vpop.f32.mrf.mxu1 }
0x2d12   :  { %v12875_v59 = vadd.f32 %v12871_v35, %v12697_v27  ;;  %v12866_v18 = vadd.f32 %v17183_v50, %v12865_v21  ;;  %v17186_v35 = vld [vmem:[%s23024_s9] ss:$0 sm:$0xff] }
0x2d14   :  { %v12874_v57 = vadd.f32 %v12866_v18, %v12696_v46  ;;  %v12879_v56 = vsel %vm718_vm0, %v12875_v59, 0.0  ;;  %v17187_v18 = vld [vmem:[%s23025_s8] ss:$0 sm:$0xff] }
0x2d15   :  { %12880 = vadd.xlane.f32.xlu0 %v12879_v56 }
0x2d16   :  { %v12876_v63 = vsel %vm718_vm0, %v12874_v57, 0.0 }
0x2d17   :  { %12877 = vadd.xlane.f32.xlu1 %v12876_v63 }
0x2d9e   :  { %v12881_v54 = vpop.xlane.xlu0 %12880 }
0x2d9f   :  { %v12883_v42 = vmul.f32 0.03125, %v12881_v54 }
0x2da0   :  { %v12878_v45 = vpop.xlane.xlu1 %12877 }
0x2da1   :  { %v12885_v47 = vsub.f32 %v12875_v59, %v12883_v42  ;;  %v12882_v60 = vmul.f32 0.03125, %v12878_v45  ;;  %v22430_v45 = vld [vmem:[#allocation2] sm:$0xff] }
0x2da3   :  { %v12884_v7 = vsub.f32 %v12874_v57, %v12882_v60  ;;  %v12887_v48 = vmul.f32 %v12885_v47, %v12885_v47 }
0x2da5   :  { %v12891_v29 = vsel %vm718_vm0, %v12887_v48, 0.0  ;;  %v12886_v8 = vmul.f32 %v12884_v7, %v12884_v7  ;;  %v22434_v48 = vld [vmem:[#allocation2 + $0x8] sm:$0xff] }
0x2da6   :  { %12892 = vadd.xlane.f32.xlu0 %v12891_v29 }
0x2da7   :  { %v12888_v46 = vsel %vm718_vm0, %v12886_v8, 0.0  ;;  %v19573_v8 = vld [vmem:[#allocation40] sm:$0xff] }
0x2da8   :  { %12889 = vadd.xlane.f32.xlu1 %v12888_v46  ;;  %v19574_v46 = vld [vmem:[#allocation38] ss:$0 sm:$0xff] }
0x2e2f   :  { %v12893_v27 = vpop.xlane.xlu0 %12892 }
0x2e30   :  { %v12895_v49 = vmul.f32 0.03125, %v12893_v27 }
0x2e31   :  { %v12890_v23 = vpop.xlane.xlu1 %12889 }
0x2e32   :  { %v12897_v22 = vadd.f32 1e-05, %v12895_v49  ;;  %v12894_v6 = vmul.f32 0.03125, %v12890_v23 }
0x2e34   :  { %19416 = vrsqrt.f32 %v12897_v22  ;;  %v12896_v50 = vadd.f32 1e-05, %v12894_v6 }
0x2e36   :  { %19418 = vrsqrt.f32 %v12896_v50 }
0x2e41   :  { %v19417_v20 = vpop.eup %19416 }
0x2e42   :  { %v12901_v21 = vmul.f32 %v19417_v20, %v12885_v47  ;;  %v19571_v47 = vld [vmem:[#allocation40 + $0x10] sm:$0xff] }
0x2e43   :  { %v19419_v59 = vpop.eup %19418 }
0x2e44   :  { %v12909_v57 = vmul.f32 %v17186_v35, %v12901_v21  ;;  %v12900_v56 = vmul.f32 %v19419_v59, %v12884_v7  ;;  %v19572_v7 = vld [vmem:[#allocation40 + $0x8] sm:$0xff] }
0x2e46   :  { %v12908_v63 = vmul.f32 %v17186_v35, %v12900_v56  ;;  %v22426_v54 = vadd.f32 %v17187_v18, %v12909_v57 }
0x2e48   :  { %v22428_v42 = vadd.f32 %v17187_v18, %v12908_v63  ;;  %v12963_v29 = vadd.f32 %v22434_v48, %v22426_v54 }
0x2e4a   :  { %v12962_v60 = vadd.f32 %v22430_v45, %v22428_v42 }
0x2e4c   :  { %18805 = vmatprep.mubr.msk.f32.mxu0 %vm718_vm0, %v12962_v60 }
0x2e4d   :  { %18806 = vmatmul.mubr.msk.f32.vlgmr.msra.gmra.mxu0 %vm718_vm0, %v12963_v29 }
0x2e4e   :  { %18809 = vmatpush3.msra.mxu0 %v22406_v33  ;;  %18816 = vmatprep.mubr.msk.f32.mxu0 %vm718_vm0, %v22428_v42 }
0x2e4f   :  { %18810 = vmatprep.subr.mxu0 %v19571_v47 }
0x2e50   :  { %18811 = vmatpush3.msra.mxu0 %v19571_v47 }
0x2e51   :  { %18812 = vmatprep.subr.mxu0 %v19572_v7 }
0x2e52   :  { %18813 = vmatpush3.msra.mxu0 %v19572_v7 }
0x2e53   :  { %18814 = vmatprep.subr.mxu0 %v19573_v8 }
0x2e54   :  { %18815 = vmatpush3.msra.mxu0 %v19573_v8  ;;  %v19575_v8 = vld [vmem:[#allocation41] ss:$0 sm:$0xff] }
0x2e55   :  { %18817 = vmatmul.mubr.msk.f32.vlgmr.msra.gmra.mxu0 %vm718_vm0, %v22426_v54  ;;  %18829 = vmatprep.subr.mxu0 %v23004_v37 }
0x2e56   :  { %18831 = vmatprep.mubr.msk.f32.mxu0 %vm20471_vm1, %v23004_v37 }
0x2f0d   :  { %v18807_v33 = vpop.f32.mrf.mxu0 }
0x2f0e   :  { %v13042_v27 = vadd.f32 %v19574_v46, %v18807_v33 }
0x2f0f   :  { %v13036_v49 = vpop.f32.mrf.mxu0 }
0x2f10   :  { %v13037_v23 = vadd.f32 %v19574_v46, %v13036_v49  ;;  %13130 = vrot.lane.b32.xlu0 %v13042_v27, %s20470_s15 }
0x2f12   :  { %13128 = vrot.lane.b32.xlu1 %v13037_v23, %s20470_s15 }
0x2f14   :  { %13136 = vrot.lane.b32.xlu0 %v13037_v23, %s20472_s6 }
0x2f15   :  { %v18818_v63 = vpop.f32.mrf.mxu0 }
0x2f16   :  { %13132 = vrot.lane.b32.xlu1 %v13037_v23, %s20469_s3 }
0x2f17   :  { %v13117_v29 = vpop.f32.mrf.mxu0 }
0x2f18   :  { %13160 = vrot.lane.b32.xlu0 %v13037_v23, %s20473_s16  ;;  %v22490_v33 = vadd.f32 %v19575_v8, %v13117_v29 }
0x2f1a   :  { %13134 = vrot.lane.b32.xlu1 %v13042_v27, %s20469_s3 }
0x2f1e   :  { %13138 = vrot.lane.b32.xlu1 %v13042_v27, %s20472_s6 }
0x2f22   :  { %13236 = vrot.lane.b32.xlu1 %v13042_v27, %s20473_s16 }
0x2f82   :  { %v13131_v22 = vpop.permute.xlu0 %13130 }
0x2f83   :  { %13388 = vrot.lane.b32.xlu1 %v13131_v22, %s20473_s16 }
0x2f84   :  { %v13129_v6 = vpop.permute.xlu1 %13128 }
0x2f85   :  { %13312 = vrot.lane.b32.xlu0 %v13129_v6, %s20473_s16 }
0x2f86   :  { %v13137_v50 = vpop.permute.xlu0 %13136 }
0x2f88   :  { %v13133_v20 = vpop.permute.xlu1 %13132 }
0x2f89   :  { %13464 = vrot.lane.b32.xlu0 %v13133_v20, %s20473_s16 }
0x2f8a   :  { %v13161_v35 = vpop.permute.xlu0 %13160 }
0x2f8b   :  { %18820 = vmatpush3.xpose.msk.msra.mxu1 %vm1199_vm2, %v13161_v35 }
0x2f8c   :  { %v13135_v21 = vpop.permute.xlu1 %13134  ;;  %18824 = vmatprep.subr.mxu1 %v23004_v37 }
0x2f8d   :  { %13616 = vrot.lane.b32.xlu0 %v13137_v50, %s20473_s16  ;;  %13540 = vrot.lane.b32.xlu1 %v13135_v21, %s20473_s16 }
0x2f8e   :  { %18822 = vmatmul.mubr.msk.f32.vlgmr.msra.gmra.mxu1 %vm1199_vm2, %v13037_v23 }
0x2f8f   :  { %18826 = vmatprep.mubr.msk.f32.mxu1 %vm20471_vm1, %v23004_v37 }
0x2f90   :  { %v13139_v59 = vpop.permute.xlu1 %13138 }
0x2f91   :  { %13692 = vrot.lane.b32.xlu1 %v13139_v59, %s20473_s16 }
0x2f94   :  { %v13237_v18 = vpop.permute.xlu1 %13236 }
0x2f95   :  { %18825 = vmatpush3.xpose.msk.msra.mxu1 %vm1199_vm2, %v13237_v18 }
0x2f96   :  { %18834 = vmatprep.subr.mxu1 %v23004_v37 }
0x2f98   :  { %18827 = vmatmul.mubr.msk.f32.vlgmr.msra.gmra.mxu1 %vm1199_vm2, %v13042_v27  ;;  %v22500_v27 = vadd.f32 %v19575_v8, %v18818_v63 }
0x2f99   :  { %18836 = vmatprep.mubr.msk.f32.mxu1 %vm20471_vm1, %v23004_v37 }
0x2ff5   :  { %v13389_v57 = vpop.permute.xlu1 %13388 }
0x2ff6   :  { %18835 = vmatpush3.xpose.msk.msra.mxu1 %vm1199_vm2, %v13389_v57 }
0x2ff7   :  { %v13313_v56 = vpop.permute.xlu0 %13312  ;;  %18844 = vmatprep.subr.mxu1 %v23004_v37 }
0x2ff8   :  { %18830 = vmatpush3.xpose.msk.msra.mxu0 %vm1199_vm2, %v13313_v56 }
0x2ff9   :  { %18837 = vmatmul.mubr.msk.f32.vlgmr.msra.gmra.mxu1 %vm1199_vm2, %v13131_v22  ;;  %18839 = vmatprep.subr.mxu0 %v23004_v37 }
0x2ffa   :  { %18846 = vmatprep.mubr.msk.f32.mxu1 %vm20471_vm1, %v23004_v37 }
0x2ffb   :  { %18832 = vmatmul.mubr.msk.f32.vlgmr.msra.gmra.mxu0 %vm1199_vm2, %v13129_v6  ;;  %v13465_v60 = vpop.permute.xlu0 %13464 }
0x2ffc   :  { %18840 = vmatpush3.xpose.msk.msra.mxu0 %vm1199_vm2, %v13465_v60  ;;  %18841 = vmatprep.mubr.msk.f32.mxu0 %vm20471_vm1, %v23004_v37 }
0x2ffd   :  { %18849 = vmatprep.subr.mxu0 %v23004_v37 }
0x2fff   :  { %18842 = vmatmul.mubr.msk.f32.vlgmr.msra.gmra.mxu0 %vm1199_vm2, %v13133_v20  ;;  %v13617_v47 = vpop.permute.xlu0 %13616  ;;  %v13541_v7 = vpop.permute.xlu1 %13540 }
0x3000   :  { %18845 = vmatpush3.xpose.msk.msra.mxu1 %vm1199_vm2, %v13541_v7  ;;  %18850 = vmatpush3.xpose.msk.msra.mxu0 %vm1199_vm2, %v13617_v47 }
0x3001   :  { %18851 = vmatprep.mubr.msk.f32.mxu0 %vm20471_vm1, %v23004_v37  ;;  %18854 = vmatprep.subr.mxu1 %v23004_v37 }
0x3002   :  { %18859 = vmatprep.subr.mxu0 %v23004_v37 }
0x3003   :  { %18847 = vmatmul.mubr.msk.f32.vlgmr.msra.gmra.mxu1 %vm1199_vm2, %v13135_v21  ;;  %18852 = vmatmul.mubr.msk.f32.vlgmr.msra.gmra.mxu0 %vm1199_vm2, %v13137_v50  ;;  %v13693_v46 = vpop.permute.xlu1 %13692 }
0x3004   :  { %18855 = vmatpush3.xpose.msk.msra.mxu1 %vm1199_vm2, %v13693_v46  ;;  %18860 = vmatpush3.msra.mxu0 %v22490_v33 }
0x3005   :  { %18856 = vmatprep.mubr.msk.f32.mxu1 %vm20471_vm1, %v23004_v37  ;;  %18864 = vmatprep.subr.mxu1 %v23004_v37 }
0x3006   :  { %18861 = vmatprep.mubr.msk.f32.mxu0 %vm20471_vm1, %v23004_v37  ;;  %18869 = vmatprep.subr.mxu0 %v23004_v37 }
0x3007   :  { %18857 = vmatmul.mubr.msk.f32.vlgmr.msra.gmra.mxu1 %vm1199_vm2, %v13139_v59 }
0x3008   :  { %18865 = vmatpush3.msra.mxu1 %v22500_v27  ;;  %18866 = vmatprep.mubr.msk.f32.mxu1 %vm20471_vm1, %v23004_v37 }
0x3009   :  { %18874 = vmatprep.subr.mxu1 %v23004_v37 }
0x304e   :  { %v13232_v49 = vpop.f32.mrf.mxu1 }
0x304f   :  { %v13768_v23 = vmul.f32 0.35355338, %v13232_v49 }
0x3050   :  { %v18823_v22 = vpop.f32.mrf.mxu1 }
0x3051   :  { %v13776_v6 = vsel %vm1199_vm2, %v13768_v23, -inf }
0x3052   :  { %13777 = vmax.xlane.f32.xlu0 %v13776_v6 }
0x3058   :  { %v13308_v50 = vpop.f32.mrf.mxu1 }
0x3059   :  { %v13769_v20 = vmul.f32 0.35355338, %v13308_v50 }
0x305a   :  { %v18828_v35 = vpop.f32.mrf.mxu1 }
0x305b   :  { %v13779_v21 = vsel %vm1199_vm2, %v13769_v20, -inf }
0x305c   :  { %13780 = vmax.xlane.f32.xlu1 %v13779_v21 }
0x30b9   :  { %v13460_v59 = vpop.f32.mrf.mxu1 }
0x30ba   :  { %v13771_v60 = vmul.f32 0.35355338, %v13460_v59 }
0x30bb   :  { %v13384_v18 = vpop.f32.mrf.mxu0  ;;  %v18838_v57 = vpop.f32.mrf.mxu1 }
0x30bc   :  { %v13770_v56 = vmul.f32 0.35355338, %v13384_v18  ;;  %v13785_v49 = vsel %vm1199_vm2, %v13771_v60, -inf }
0x30bd   :  { %v18833_v63 = vpop.f32.mrf.mxu0 }
0x30be   :  { %v13782_v29 = vsel %vm1199_vm2, %v13770_v56, -inf }
0x30bf   :  { %13783 = vmax.xlane.f32.xlu0 %v13782_v29  ;;  %v13536_v47 = vpop.f32.mrf.mxu0 }
0x30c0   :  { %v13772_v7 = vmul.f32 0.35355338, %v13536_v47 }
0x30c1   :  { %v18843_v8 = vpop.f32.mrf.mxu0 }
0x30c2   :  { %v13788_v46 = vsel %vm1199_vm2, %v13772_v7, -inf }
0x30c3   :  { %v13688_v22 = vpop.f32.mrf.mxu0  ;;  %13789 = vmax.xlane.f32.xlu1 %v13788_v46  ;;  %13786 = vmax.xlane.f32.xlu0 %v13785_v49  ;;  %v13612_v6 = vpop.f32.mrf.mxu1 }
0x30c4   :  { %v13774_v50 = vmul.f32 0.35355338, %v13688_v22  ;;  %v13773_v35 = vmul.f32 0.35355338, %v13612_v6 }
0x30c5   :  { %v18848_v21 = vpop.f32.mrf.mxu1  ;;  %v18853_v18 = vpop.f32.mrf.mxu0 }
0x30c6   :  { %v13794_v59 = vsel %vm1199_vm2, %v13774_v50, -inf  ;;  %v13791_v57 = vsel %vm1199_vm2, %v13773_v35, -inf }
0x30c7   :  { %13795 = vmax.xlane.f32.xlu1 %v13794_v59  ;;  %13792 = vmax.xlane.f32.xlu0 %v13791_v57  ;;  %v13764_v63 = vpop.f32.mrf.mxu1 }
0x30c8   :  { %v13775_v29 = vmul.f32 0.35355338, %v13764_v63 }
0x30c9   :  { %v18858_v47 = vpop.f32.mrf.mxu1 }
0x30ca   :  { %v13797_v8 = vsel %vm1199_vm2, %v13775_v29, -inf }
0x30cb   :  { %13798 = vmax.xlane.f32.xlu0 %v13797_v8 }
0x30d8   :  { %13142 = vrot.lane.b32.xlu1 %v22490_v33, %s20470_s15 }
0x30db   :  { %v13778_v22 = vpop.xlane.xlu0 %13777 }
0x30dc   :  { %13148 = vrot.lane.b32.xlu1 %v22490_v33, %s20469_s3  ;;  %v13800_v6 = vsub.f32 %v13768_v23, %v13778_v22 }
0x30de   :  { %v13808_v18 = vmul.f32 1.442695, %v13800_v6 }
0x30e0   :  { %13150 = vrot.lane.b32.xlu1 %v22500_v27, %s20469_s3 }
0x30e1   :  { %13144 = vrot.lane.b32.xlu0 %v22500_v27, %s20470_s15 }
0x30e5   :  { %v13781_v46 = vpop.xlane.xlu1 %13780 }
0x30e6   :  { %v13801_v49 = vsub.f32 %v13769_v20, %v13781_v46 }
0x30e8   :  { %v13810_v21 = vmul.f32 1.442695, %v13801_v49 }
0x30ea   :  { %19420 = vpow2.f32 %v13810_v21 }
0x30eb   :  { %19422 = vpow2.f32 %v13808_v18 }
0x30f7   :  { %v19421_v59 = vpop.eup %19420 }
0x30f8   :  { %v13827_v57 = vsel %vm1199_vm2, %v19421_v59, 0.0  ;;  %v19423_v63 = vpop.eup %19422 }
0x30f9   :  { %v13824_v47 = vsel %vm1199_vm2, %v19423_v63, 0.0 }
0x3100   :  { %13828 = vadd.xlane.f32.xlu0 %v13827_v57 }
0x3104   :  { %13825 = vadd.xlane.f32.xlu1 %v13824_v47 }
0x3148   :  { %v13784_v8 = vpop.xlane.xlu0 %13783 }
0x3149   :  { %v13802_v10 = vsub.f32 %v13770_v56, %v13784_v8 }
0x314b   :  { %v13812_v61 = vmul.f32 1.442695, %v13802_v10 }
0x314c   :  { %v13787_v15 = vpop.xlane.xlu0 %13786  ;;  %v13790_v0 = vpop.xlane.xlu1 %13789 }
0x314d   :  { %19424 = vpow2.f32 %v13812_v61  ;;  %v13803_v20 = vsub.f32 %v13771_v60, %v13787_v15  ;;  %v13804_v23 = vsub.f32 %v13772_v7, %v13790_v0 }
0x314f   :  { %v13814_v46 = vmul.f32 1.442695, %v13803_v20  ;;  %v13816_v49 = vmul.f32 1.442695, %v13804_v23 }
0x3150   :  { %v13793_v22 = vpop.xlane.xlu0 %13792  ;;  %v13796_v6 = vpop.xlane.xlu1 %13795 }
0x3151   :  { %19426 = vpow2.f32 %v13814_v46  ;;  %v13805_v21 = vsub.f32 %v13773_v35, %v13793_v22  ;;  %v13806_v18 = vsub.f32 %v13774_v50, %v13796_v6 }
0x3152   :  { %19428 = vpow2.f32 %v13816_v49 }
0x3153   :  { %v13818_v57 = vmul.f32 1.442695, %v13805_v21  ;;  %v13820_v19 = vmul.f32 1.442695, %v13806_v18 }
0x3154   :  { %v13799_v62 = vpop.xlane.xlu0 %13798  ;;  %v13143_v20 = vpop.permute.xlu1 %13142 }
0x3155   :  { %19430 = vpow2.f32 %v13818_v57  ;;  %v13807_v47 = vsub.f32 %v13775_v29, %v13799_v62 }
0x3156   :  { %19432 = vpow2.f32 %v13820_v19 }
0x3157   :  { %v13822_v10 = vmul.f32 1.442695, %v13807_v47 }
0x3158   :  { %v13149_v23 = vpop.permute.xlu1 %13148  ;;  %v13145_v46 = vpop.permute.xlu0 %13144 }
0x3159   :  { %19434 = vpow2.f32 %v13822_v10 }
0x315a   :  { %v19425_v56 = vpop.eup %19424 }
0x315b   :  { %v13830_v61 = vsel %vm1199_vm2, %v19425_v56, 0.0 }
0x315c   :  { %13831 = vadd.xlane.f32.xlu1 %v13830_v61  ;;  %v13151_v49 = vpop.permute.xlu1 %13150 }
0x315e   :  { %v19427_v15 = vpop.eup %19426 }
0x315f   :  { %v19429_v0 = vpop.eup %19428  ;;  %v13833_v60 = vsel %vm1199_vm2, %v19427_v15, 0.0 }
0x3160   :  { %13834 = vadd.xlane.f32.xlu0 %v13833_v60  ;;  %v13836_v7 = vsel %vm1199_vm2, %v19429_v0, 0.0 }
0x3161   :  { %13837 = vadd.xlane.f32.xlu1 %v13836_v7 }
0x3162   :  { %v19431_v50 = vpop.eup %19430 }
0x3163   :  { %v19433_v35 = vpop.eup %19432  ;;  %v13839_v8 = vsel %vm1199_vm2, %v19431_v50, 0.0 }
0x3164   :  { %13840 = vadd.xlane.f32.xlu0 %v13839_v8  ;;  %v13842_v62 = vsel %vm1199_vm2, %v19433_v35, 0.0 }
0x3165   :  { %13843 = vadd.xlane.f32.xlu1 %v13842_v62 }
0x3166   :  { %v22533_v19 = vpop.eup %19434 }
0x3167   :  { %v13845_v29 = vsel %vm1199_vm2, %v22533_v19, 0.0 }
0x3168   :  { %13846 = vadd.xlane.f32.xlu0 %v13845_v29 }
0x3176   :  { %13156 = vrot.lane.b32.xlu1 %v22500_v27, %s20472_s6 }
0x317e   :  { %13154 = vrot.lane.b32.xlu0 %v22490_v33, %s20472_s6 }
0x3189   :  { %v13829_v22 = vpop.xlane.xlu0 %13828 }
0x318a   :  { %19436 = vrcp.f32 %v13829_v22 }
0x318d   :  { %v13826_v6 = vpop.xlane.xlu1 %13825 }
0x318e   :  { %19438 = vrcp.f32 %v13826_v6 }
0x3197   :  { %v19437_v21 = vpop.eup %19436 }
0x3198   :  { %v13857_v18 = vmul.f32 %v19437_v21, %v19421_v59 }
0x319a   :  { %18867 = vmatmul.mubr.msk.f32.vlgmr.msra.gmra.mxu1 %vm1199_vm2, %v13857_v18  ;;  %v19579_v18 = vld [vmem:[#allocation43 + $0x18] sm:$0xff] }
0x319b   :  { %v19439_v57 = vpop.eup %19438  ;;  %18875 = vmatpush3.msra.mxu1 %v13145_v46  ;;  %18876 = vmatprep.mubr.msk.f32.mxu1 %vm20471_vm1, %v23004_v37 }
0x319c   :  { %v13856_v27 = vmul.f32 %v19439_v57, %v19423_v63  ;;  %18884 = vmatprep.subr.mxu1 %v23004_v37 }
0x319e   :  { %18862 = vmatmul.mubr.msk.f32.vlgmr.msra.gmra.mxu0 %vm1199_vm2, %v13856_v27 }
0x319f   :  { %18870 = vmatpush3.msra.mxu0 %v13143_v20  ;;  %18871 = vmatprep.mubr.msk.f32.mxu0 %vm20471_vm1, %v23004_v37 }
0x31a0   :  { %18879 = vmatprep.subr.mxu0 %v23004_v37 }
0x31e5   :  { %v13832_v33 = vpop.xlane.xlu1 %13831 }
0x31e6   :  { %19440 = vrcp.f32 %v13832_v33 }
0x31e9   :  { %v13835_v59 = vpop.xlane.xlu0 %13834 }
0x31ea   :  { %19442 = vrcp.f32 %v13835_v59  ;;  %v13838_v47 = vpop.xlane.xlu1 %13837 }
0x31eb   :  { %19444 = vrcp.f32 %v13838_v47 }
0x31ed   :  { %v13841_v10 = vpop.xlane.xlu0 %13840 }
0x31ee   :  { %19446 = vrcp.f32 %v13841_v10  ;;  %v13844_v61 = vpop.xlane.xlu1 %13843 }
0x31ef   :  { %19448 = vrcp.f32 %v13844_v61 }
0x31f1   :  { %v13847_v63 = vpop.xlane.xlu0 %13846 }
0x31f2   :  { %19450 = vrcp.f32 %v13847_v63 }
0x31f3   :  { %v19441_v60 = vpop.eup %19440 }
0x31f4   :  { %v13858_v7 = vmul.f32 %v19441_v60, %v19425_v56 }
0x31f5   :  { %v13155_v22 = vpop.permute.xlu0 %13154 }
0x31f6   :  { %18872 = vmatmul.mubr.msk.f32.vlgmr.msra.gmra.mxu0 %vm1199_vm2, %v13858_v7  ;;  %v19580_v7 = vld [vmem:[%s23014_s0 + $0x18] sm:$0xff] }
0x31f7   :  { %v19443_v8 = vpop.eup %19442  ;;  %18880 = vmatpush3.msra.mxu0 %v13149_v23  ;;  %18881 = vmatprep.mubr.msk.f32.mxu0 %vm20471_vm1, %v23004_v37 }
0x31f8   :  { %v19445_v62 = vpop.eup %19444  ;;  %v13859_v29 = vmul.f32 %v19443_v8, %v19427_v15  ;;  %18889 = vmatprep.subr.mxu0 %v23004_v37  ;;  %v13157_v15 = vpop.permute.xlu1 %13156 }
0x31f9   :  { %v13860_v20 = vmul.f32 %v19445_v62, %v19429_v0  ;;  %v19576_v0 = vld [vmem:[#allocation43 + $0x8] sm:$0xff] }
0x31fa   :  { %18877 = vmatmul.mubr.msk.f32.vlgmr.msra.gmra.mxu1 %vm1199_vm2, %v13859_v29 }
0x31fb   :  { %v19447_v46 = vpop.eup %19446  ;;  %18882 = vmatmul.mubr.msk.f32.vlgmr.msra.gmra.mxu0 %vm1199_vm2, %v13860_v20  ;;  %18885 = vmatpush3.msra.mxu1 %v13151_v49  ;;  %v19578_v49 = vld [vmem:[#allocation43 + $0x10] sm:$0xff] }
0x31fc   :  { %v19449_v56 = vpop.eup %19448  ;;  %v13861_v6 = vmul.f32 %v19447_v46, %v19431_v50  ;;  %18890 = vmatpush3.msra.mxu0 %v13155_v22  ;;  %18886 = vmatprep.mubr.msk.f32.mxu1 %vm20471_vm1, %v23004_v37  ;;  %v19581_v46 = vld [vmem:[%s23014_s0 + $0x10] sm:$0xff] }
0x31fd   :  { %v13862_v23 = vmul.f32 %v19449_v56, %v19433_v35  ;;  %18891 = vmatprep.mubr.msk.f32.mxu0 %vm20471_vm1, %v23004_v37  ;;  %18894 = vmatprep.subr.mxu1 %v23004_v37  ;;  %v19577_v35 = vld [vmem:[#allocation43] sm:$0xff]  ;;  %v19582_v56 = vld [vmem:[%s23014_s0 + $0x8] sm:$0xff] }
0x31fe   :  { %18887 = vmatmul.mubr.msk.f32.vlgmr.msra.gmra.mxu1 %vm1199_vm2, %v13861_v6  ;;  %18899 = vmatprep.subr.mxu0 %v19576_v0 }
0x31ff   :  { %v19451_v21 = vpop.eup %19450  ;;  %18892 = vmatmul.mubr.msk.f32.vlgmr.msra.gmra.mxu0 %vm1199_vm2, %v13862_v23  ;;  %18895 = vmatpush3.msra.mxu1 %v13157_v15  ;;  %v19583_v23 = vld [vmem:[%s23014_s0] sm:$0xff] }
0x3200   :  { %v13863_v50 = vmul.f32 %v19451_v21, %v22533_v19  ;;  %18896 = vmatprep.mubr.msk.f32.mxu1 %vm20471_vm1, %v23004_v37  ;;  %18904 = vmatprep.subr.mxu1 %v19577_v35 }
0x3201   :  { %18900 = vmatpush3.msra.mxu0 %v19576_v0 }
0x3202   :  { %18897 = vmatmul.mubr.msk.f32.vlgmr.msra.gmra.mxu1 %vm1199_vm2, %v13863_v50  ;;  %18909 = vmatprep.subr.mxu0 %v19578_v49 }
0x3203   :  { %18905 = vmatpush3.msra.mxu1 %v19577_v35 }
0x3204   :  { %18914 = vmatprep.subr.mxu1 %v19579_v18 }
0x325a   :  { %v14006_v57 = vpop.f32.mrf.mxu1 }
0x325c   :  { %v18868_v27 = vpop.f32.mrf.mxu1 }
0x325e   :  { %v13933_v33 = vpop.f32.mrf.mxu0 }
0x325f   :  { %18906 = vmatprep.mubr.msk.f32.mxu1 %vm1199_vm2, %v13933_v33 }
0x3260   :  { %v18863_v19 = vpop.f32.mrf.mxu0  ;;  %18907 = vmatmul.mubr.msk.f32.vlgmr.msra.gmra.mxu1 %vm1199_vm2, %v14006_v57 }
0x3261   :  { %18915 = vmatpush3.msra.mxu1 %v19579_v18 }
0x3262   :  { %18930 = vmatprep.subr.mxu1 %v23004_v37 }
0x32b6   :  { %v14079_v59 = vpop.f32.mrf.mxu0 }
0x32b7   :  { %18901 = vmatprep.mubr.msk.f32.mxu0 %vm1199_vm2, %v14079_v59 }
0x32b8   :  { %v18873_v47 = vpop.f32.mrf.mxu0 }
0x32b9   :  { %v19584_v47 = vld [vmem:[#allocation44] ss:$0 sm:$0xff] }
0x32ba   :  { %v14152_v10 = vpop.f32.mrf.mxu1 }
0x32bb   :  { %v14225_v61 = vpop.f32.mrf.mxu0  ;;  %18902 = vmatmul.mubr.msk.f32.vlgmr.msra.gmra.mxu0 %vm1199_vm2, %v14152_v10 }
0x32bc   :  { %v18878_v63 = vpop.f32.mrf.mxu1  ;;  %18911 = vmatprep.mubr.msk.f32.mxu0 %vm1199_vm2, %v14225_v61  ;;  %18910 = vmatpush3.msra.mxu0 %v19578_v49 }
0x32bd   :  { %v18883_v60 = vpop.f32.mrf.mxu0  ;;  %18919 = vmatprep.subr.mxu0 %v19580_v7 }
0x32be   :  { %v14298_v8 = vpop.f32.mrf.mxu1 }
0x32bf   :  { %v14371_v62 = vpop.f32.mrf.mxu0  ;;  %18912 = vmatmul.mubr.msk.f32.vlgmr.msra.gmra.mxu0 %vm1199_vm2, %v14298_v8 }
0x32c0   :  { %18916 = vmatprep.mubr.msk.f32.mxu1 %vm1199_vm2, %v14371_v62  ;;  %v18888_v29 = vpop.f32.mrf.mxu1  ;;  %18920 = vmatpush3.msra.mxu0 %v19580_v7 }
0x32c1   :  { %v18893_v20 = vpop.f32.mrf.mxu0  ;;  %18921 = vmatprep.subr.mxu0 %v19581_v46 }
0x32c2   :  { %v14444_v22 = vpop.f32.mrf.mxu1  ;;  %18922 = vmatpush3.msra.mxu0 %v19581_v46 }
0x32c3   :  { %18917 = vmatmul.mubr.msk.f32.vlgmr.msra.gmra.mxu1 %vm1199_vm2, %v14444_v22  ;;  %18923 = vmatprep.subr.mxu0 %v19582_v56 }
0x32c4   :  { %18931 = vmatpush3.xpose.msk.msra.mxu1 %vm1199_vm2, %v22068_v5  ;;  %v18898_v6 = vpop.f32.mrf.mxu1  ;;  %18924 = vmatpush3.msra.mxu0 %v19582_v56 }
0x32c5   :  { %18932 = vmatprep.subr.mxu1 %v23004_v37  ;;  %18925 = vmatprep.subr.mxu0 %v19583_v23 }
0x32c6   :  { %18926 = vmatpush3.msra.mxu0 %v19583_v23  ;;  %18934 = vmatprep.mubr.msk.f32.mxu1 %vm20471_vm1, %v23004_v37 }
0x32c7   :  { %18937 = vmatprep.subr.mxu0 %v23004_v37 }
0x32c8   :  { %18933 = vmatpush3.xpose.msk.msra.mxu1 %vm1199_vm2, %v22078_v39 }
0x32c9   :  { %18944 = vmatprep.subr.mxu1 %v23004_v37 }
0x3320   :  { %v18908_v0 = vpop.f32.mrf.mxu1 }
0x3322   :  { %v14601_v35 = vpop.f32.mrf.mxu1 }
0x337b   :  { %v18903_v15 = vpop.f32.mrf.mxu0 }
0x337c   :  { %v14607_v50 = vadd.f32 %v18908_v0, %v18903_v15 }
0x337d   :  { %v14520_v5 = vpop.f32.mrf.mxu0 }
0x337e   :  { %v14602_v18 = vadd.f32 %v14601_v35, %v14520_v5 }
0x337f   :  { %v18913_v21 = vpop.f32.mrf.mxu0 }
0x3380   :  { %v14692_v57 = vadd.f32 %v18913_v21, %v14607_v50 }
0x3381   :  { %v14682_v49 = vpop.f32.mrf.mxu0 }
0x3382   :  { %v14691_v33 = vadd.f32 %v14682_v49, %v14602_v18 }
0x3383   :  { %v18918_v27 = vpop.f32.mrf.mxu1 }
0x3384   :  { %v14775_v19 = vadd.f32 %v18918_v27, %v14692_v57 }
0x3385   :  { %v14765_v59 = vpop.f32.mrf.mxu1 }
0x3386   :  { %v14777_v10 = vadd.f32 %v19584_v47, %v14775_v19  ;;  %v14774_v61 = vadd.f32 %v14765_v59, %v14691_v33  ;;  %v19585_v33 = vld [vmem:[%s23015_s4] ss:$0 sm:$0xff] }
0x3388   :  { %v14776_v63 = vadd.f32 %v19584_v47, %v14774_v61  ;;  %v14779_v39 = vadd.f32 %v14777_v10, %v22426_v54  ;;  %v19586_v10 = vld [vmem:[%s23016_s27] ss:$0 sm:$0xff] }
0x338a   :  { %v14783_v60 = vsel %vm718_vm0, %v14779_v39, 0.0  ;;  %v14778_v7 = vadd.f32 %v14776_v63, %v22428_v42 }
0x338b   :  { %14784 = vadd.xlane.f32.xlu1 %v14783_v60 }
0x338c   :  { %v14780_v8 = vsel %vm718_vm0, %v14778_v7, 0.0 }
0x338d   :  { %14781 = vadd.xlane.f32.xlu0 %v14780_v8  ;;  %v19587_v8 = vld [vmem:[%s23017_s1] ss:$0 sm:$0xff] }
0x3414   :  { %v14785_v62 = vpop.xlane.xlu1 %14784 }
0x3415   :  { %v14787_v29 = vmul.f32 0.03125, %v14785_v62 }
0x3416   :  { %v14782_v20 = vpop.xlane.xlu0 %14781 }
0x3417   :  { %v14786_v46 = vmul.f32 0.03125, %v14782_v20  ;;  %v14789_v22 = vsub.f32 %v14779_v39, %v14787_v29 }
0x3419   :  { %v14788_v56 = vsub.f32 %v14778_v7, %v14786_v46  ;;  %v14791_v15 = vmul.f32 %v14789_v22, %v14789_v22 }
0x341b   :  { %v14790_v6 = vmul.f32 %v14788_v56, %v14788_v56  ;;  %v14795_v0 = vsel %vm718_vm0, %v14791_v15, 0.0 }
0x341d   :  { %v14792_v23 = vsel %vm718_vm0, %v14790_v6, 0.0 }
0x341e   :  { %14793 = vadd.xlane.f32.xlu0 %v14792_v23 }
0x3422   :  { %14796 = vadd.xlane.f32.xlu0 %v14795_v0 }
0x34a7   :  { %v14794_v5 = vpop.xlane.xlu0 %14793 }
0x34a8   :  { %v14798_v21 = vmul.f32 0.03125, %v14794_v5 }
0x34aa   :  { %v14800_v50 = vadd.f32 1e-05, %v14798_v21 }
0x34ab   :  { %v14797_v35 = vpop.xlane.xlu0 %14796 }
0x34ac   :  { %19452 = vrsqrt.f32 %v14800_v50  ;;  %v14799_v49 = vmul.f32 0.03125, %v14797_v35 }
0x34ae   :  { %v14801_v18 = vadd.f32 1e-05, %v14799_v49 }
0x34b0   :  { %19454 = vrsqrt.f32 %v14801_v18 }
0x34b9   :  { %v19453_v57 = vpop.eup %19452 }
0x34ba   :  { %v14804_v27 = vmul.f32 %v19453_v57, %v14788_v56 }
0x34bc   :  { %v14806_v19 = vmul.f32 %v19585_v33, %v14804_v27 }
0x34bd   :  { %v19455_v59 = vpop.eup %19454 }
0x34be   :  { %v14805_v47 = vmul.f32 %v19455_v59, %v14789_v22  ;;  %v22596_v61 = vadd.f32 %v19586_v10, %v14806_v19 }
0x34c0   :  { %v14807_v63 = vmul.f32 %v19585_v33, %v14805_v47  ;;  %v14810_v39 = vadd.f32 %v22430_v45, %v22596_v61 }
0x34c2   :  { %18927 = vmatprep.mubr.msk.f32.mxu0 %vm718_vm0, %v14810_v39  ;;  %v22601_v60 = vadd.f32 %v19586_v10, %v14807_v63 }
0x34c4   :  { %v14811_v7 = vadd.f32 %v22434_v48, %v22601_v60 }
0x34c6   :  { %18928 = vmatmul.mubr.msk.f32.vlgmr.msra.gmra.mxu0 %vm718_vm0, %v14811_v7 }
0x34c7   :  { %18938 = vmatpush3.xpose.msk.msra.mxu0 %vm1199_vm2, %v21946_v28  ;;  %18941 = vmatprep.mubr.msk.f32.mxu0 %vm20471_vm1, %v23004_v37 }
0x34c8   :  { %18939 = vmatprep.subr.mxu0 %v23004_v37 }
0x34cb   :  { %18940 = vmatpush3.xpose.msk.msra.mxu0 %vm1199_vm2, %v21949_v16 }
0x34cc   :  { %18951 = vmatprep.subr.mxu0 %v23004_v37 }
0x3586   :  { %v18929_v45 = vpop.f32.mrf.mxu0 }
0x3587   :  { %v14890_v62 = vadd.f32 %v19587_v8, %v18929_v45 }
0x3588   :  { %v14884_v29 = vpop.f32.mrf.mxu0 }
0x3589   :  { %v14885_v48 = vadd.f32 %v19587_v8, %v14884_v29  ;;  %14897 = vrot.lane.b32.xlu0 %v14890_v62, %s20470_s15  ;;  %18942 = vmatmul.mubr.msk.f32.vlgmr.msra.gmra.mxu0 %vm1199_vm2, %v14890_v62 }
0x358a   :  { %18952 = vmatpush3.xpose.msk.msra.mxu0 %vm1199_vm2, %v22141_v4  ;;  %18955 = vmatprep.mubr.msk.f32.mxu0 %vm20471_vm1, %v23004_v37 }
0x358b   :  { %14895 = vrot.lane.b32.xlu1 %v14885_v48, %s20470_s15  ;;  %18935 = vmatmul.mubr.msk.f32.vlgmr.msra.gmra.mxu1 %vm1199_vm2, %v14885_v48  ;;  %s20474_s15 = smov [#allocation53]  }
0x358c   :  { %18945 = vmatpush3.xpose.msk.msra.mxu1 %vm1199_vm2, %v22136_v14  ;;  %18953 = vmatprep.subr.mxu0 %v23004_v37  ;;  %s16771_s19 = sshll.u32 %s20474_s15, 4  ;;  %s16772_s19 = int_to_ptr.vmem [resolvable:$true] %s16771_s19 }
0x358d   :  { %14903 = vrot.lane.b32.xlu0 %v14885_v48, %s20472_s6  ;;  %18946 = vmatprep.subr.mxu1 %v23004_v37  ;;  %s20254_s18 = scalar_lea.vmem %s16772_s19, 512  ;;  %p20259_p7 = scmp.lt.s32.totalorder %s16772_s19, %s16772_s19 }
0x358e   :  { %18954 = vmatpush3.xpose.msk.msra.mxu0 %vm1199_vm2, %v22154_v3  ;;  %18948 = vmatprep.mubr.msk.f32.mxu1 %vm20471_vm1, %v23004_v37  ;;  %p20255_p6 = scmp.ne.s32.totalorder %s16772_s19, %s20254_s18  ;;  %p20260_p8 = scmp.lt.s32.totalorder %s20254_s18, %s20254_s18 }
0x358f   :  { %14899 = vrot.lane.b32.xlu1 %v14885_v48, %s20469_s3  ;;  %18965 = vmatprep.subr.mxu0 %v23004_v37 }
0x3590   :  { %18947 = vmatpush3.xpose.msk.msra.mxu1 %vm1199_vm2, %v22139_v58  ;;  %p20261_p9 = por %p20260_p8, %p20259_p7 }
0x3591   :  { %18958 = vmatprep.subr.mxu1 %v23004_v37 }
0x3592   :  { %p20262_p10 = pnand %p20261_p9, %p20255_p6 }
0x3593   :  { %14901 = vrot.lane.b32.xlu1 %v14890_v62, %s20469_s3  ;;  %s23033_s3 = sld [smem:[#allocation120_spill]] }
0x3597   :  { %14905 = vrot.lane.b32.xlu1 %v14890_v62, %s20472_s6  ;;  %s20475_s6 = smov [#allocation52]  }
0x3598   :  { %s16759_s16 = sshll.u32 %s20475_s6, 4  ;;  %s16760_s16 = int_to_ptr.vmem [resolvable:$true] %s16759_s16 }
0x35fb   :  { %v14898_v28 = vpop.permute.xlu0 %14897 }
0x35fc   :  { %18956 = vmatmul.mubr.msk.f32.vlgmr.msra.gmra.mxu0 %vm1199_vm2, %v14898_v28 }
0x35fd   :  { %18966 = vmatpush3.xpose.msk.msra.mxu0 %vm1199_vm2, %v22173_v36  ;;  %v14896_v16 = vpop.permute.xlu1 %14895  ;;  %18969 = vmatprep.mubr.msk.f32.mxu0 %vm20471_vm1, %v23004_v37 }
0x35fe   :  { %18949 = vmatmul.mubr.msk.f32.vlgmr.msra.gmra.mxu1 %vm1199_vm2, %v14896_v16  ;;  %18967 = vmatprep.subr.mxu0 %v23004_v37 }
0x35ff   :  { %18959 = vmatpush3.xpose.msk.msra.mxu1 %vm1199_vm2, %v22171_v12  ;;  %18962 = vmatprep.mubr.msk.f32.mxu1 %vm20471_vm1, %v23004_v37  ;;  %v14904_v4 = vpop.permute.xlu0 %14903 }
0x3600   :  { %18960 = vmatprep.subr.mxu1 %v23004_v37 }
0x3601   :  { %18968 = vmatpush3.xpose.msk.msra.mxu0 %vm1199_vm2, %v22175_v17  ;;  %v14900_v14 = vpop.permute.xlu1 %14899 }
0x3602   :  { %18979 = vmatprep.subr.mxu0 %v23004_v37 }
0x3603   :  { %18961 = vmatpush3.xpose.msk.msra.mxu1 %vm1199_vm2, %v22177_v24 }
0x3604   :  { %18972 = vmatprep.subr.mxu1 %v23004_v37 }
0x3605   :  { %v14902_v58 = vpop.permute.xlu1 %14901 }
0x3606   :  { %18963 = vmatmul.mubr.msk.f32.vlgmr.msra.gmra.mxu1 %vm1199_vm2, %v14900_v14  ;;  %18970 = vmatmul.mubr.msk.f32.vlgmr.msra.gmra.mxu0 %vm1199_vm2, %v14902_v58 }
0x3607   :  { %18973 = vmatpush3.xpose.msk.msra.mxu1 %vm1199_vm2, %v22184_v31  ;;  %18980 = vmatpush3.xpose.msk.msra.mxu0 %vm1199_vm2, %v22196_v13 }
0x3608   :  { %18981 = vmatprep.subr.mxu0 %v23004_v37  ;;  %18974 = vmatprep.subr.mxu1 %v23004_v37 }
0x3609   :  { %18976 = vmatprep.mubr.msk.f32.mxu1 %vm20471_vm1, %v23004_v37  ;;  %18983 = vmatprep.mubr.msk.f32.mxu0 %vm20471_vm1, %v23004_v37  ;;  %v14906_v3 = vpop.permute.xlu1 %14905 }
0x360b   :  { %18975 = vmatpush3.xpose.msk.msra.mxu1 %vm1199_vm2, %v22213_v32  ;;  %18982 = vmatpush3.xpose.msk.msra.mxu0 %vm1199_vm2, %v22215_v34 }
0x360c   :  { %18986 = vmatprep.subr.mxu1 %v23004_v37  ;;  %19000 = vmatprep.subr.mxu0 %v23004_v37 }
0x360e   :  { %18977 = vmatmul.mubr.msk.f32.vlgmr.msra.gmra.mxu1 %vm1199_vm2, %v14904_v4  ;;  %18984 = vmatmul.mubr.msk.f32.vlgmr.msra.gmra.mxu0 %vm1199_vm2, %v14906_v3 }
0x360f   :  { %18987 = vmatpush3.msra.mxu1 %v22225_v51  ;;  %19001 = vmatpush3.msra.mxu0 %v22277_v30 }
0x3610   :  { %18988 = vmatprep.subr.mxu1 %v23004_v37  ;;  %19002 = vmatprep.subr.mxu0 %v23004_v37 }
0x3611   :  { %18989 = vmatpush3.msra.mxu1 %v22231_v25  ;;  %19003 = vmatpush3.msra.mxu0 %v22303_v38 }
0x3612   :  { %18990 = vmatprep.mubr.msk.f32.mxu1 %vm20471_vm1, %v23004_v37  ;;  %18993 = vmatprep.subr.mxu1 %v23004_v37 }
0x3613   :  { %19004 = vmatprep.mubr.msk.f32.mxu0 %vm20471_vm1, %v23004_v37  ;;  %19014 = vmatprep.subr.mxu0 %v23004_v37 }
0x3649   :  { %v15047_v12 = vpop.f32.mrf.mxu0 }
0x364a   :  { %v15484_v36 = vmul.f32 0.35355338, %v15047_v12 }
0x364b   :  { %v14975_v17 = vpop.f32.mrf.mxu1  ;;  %v18943_v24 = vpop.f32.mrf.mxu0 }
0x364c   :  { %v15483_v31 = vmul.f32 0.35355338, %v14975_v17  ;;  %v15494_v13 = vsel %vm3594_vm3, %v15484_v36, -inf }
0x364d   :  { %15495 = vmax.xlane.f32.xlu1 %v15494_v13  ;;  %v18936_v32 = vpop.f32.mrf.mxu1 }
0x364e   :  { %v15491_v34 = vsel %vm3594_vm3, %v15483_v31, -inf }
0x364f   :  { %15492 = vmax.xlane.f32.xlu0 %v15491_v34 }
0x36bc   :  { %v15191_v51 = vpop.f32.mrf.mxu0 }
0x36bd   :  { %v15486_v46 = vmul.f32 0.35355338, %v15191_v51 }
0x36be   :  { %v15119_v25 = vpop.f32.mrf.mxu1  ;;  %v18957_v30 = vpop.f32.mrf.mxu0 }
0x36bf   :  { %v15485_v38 = vmul.f32 0.35355338, %v15119_v25  ;;  %v15500_v56 = vsel %vm3594_vm3, %v15486_v46, -inf }
0x36c0   :  { %v18950_v20 = vpop.f32.mrf.mxu1 }
0x36c1   :  { %v15497_v22 = vsel %vm3594_vm3, %v15485_v38, -inf }
0x36c2   :  { %15498 = vmax.xlane.f32.xlu0 %v15497_v22 }
0x36c6   :  { %v15263_v6 = vpop.f32.mrf.mxu1  ;;  %v15335_v23 = vpop.f32.mrf.mxu0  ;;  %15501 = vmax.xlane.f32.xlu0 %v15500_v56 }
0x36c7   :  { %v15487_v15 = vmul.f32 0.35355338, %v15263_v6  ;;  %v15488_v0 = vmul.f32 0.35355338, %v15335_v23 }
0x36c8   :  { %v18964_v5 = vpop.f32.mrf.mxu1  ;;  %v18971_v21 = vpop.f32.mrf.mxu0 }
0x36c9   :  { %v15503_v50 = vsel %vm3594_vm3, %v15487_v15, -inf  ;;  %v15506_v35 = vsel %vm3594_vm3, %v15488_v0, -inf }
0x36ca   :  { %15504 = vmax.xlane.f32.xlu1 %v15503_v50  ;;  %15507 = vmax.xlane.f32.xlu0 %v15506_v35 }
0x36ce   :  { %v15407_v49 = vpop.f32.mrf.mxu1  ;;  %v15479_v18 = vpop.f32.mrf.mxu0 }
0x36cf   :  { %v15489_v57 = vmul.f32 0.35355338, %v15407_v49  ;;  %v15490_v27 = vmul.f32 0.35355338, %v15479_v18 }
0x36d0   :  { %v18978_v33 = vpop.f32.mrf.mxu1  ;;  %v18985_v19 = vpop.f32.mrf.mxu0 }
0x36d1   :  { %v15512_v59 = vsel %vm3594_vm3, %v15490_v27, -inf  ;;  %v15509_v47 = vsel %vm3594_vm3, %v15489_v57, -inf }
0x36d2   :  { %15513 = vmax.xlane.f32.xlu0 %v15512_v59  ;;  %15510 = vmax.xlane.f32.xlu1 %v15509_v47 }
0x36d6   :  { %v15496_v10 = vpop.xlane.xlu1 %15495 }
0x36d7   :  { %v15516_v63 = vsub.f32 %v15484_v36, %v15496_v10 }
0x36d8   :  { %v15493_v39 = vpop.xlane.xlu0 %15492 }
0x36d9   :  { %v15525_v7 = vmul.f32 1.442695, %v15516_v63  ;;  %v15515_v45 = vsub.f32 %v15483_v31, %v15493_v39 }
0x36db   :  { %19456 = vpow2.f32 %v15525_v7  ;;  %v15523_v8 = vmul.f32 1.442695, %v15515_v45 }
0x36dd   :  { %19458 = vpow2.f32 %v15523_v8 }
0x36e8   :  { %v19457_v62 = vpop.eup %19456 }
0x36e9   :  { %v15542_v29 = vsel %vm3594_vm3, %v19457_v62, 0.0 }
0x36ea   :  { %v19459_v48 = vpop.eup %19458  ;;  %15543 = vadd.xlane.f32.xlu0 %v15542_v29 }
0x36eb   :  { %v15539_v28 = vsel %vm3594_vm3, %v19459_v48, 0.0 }
0x36ec   :  { %15540 = vadd.xlane.f32.xlu1 %v15539_v28 }
0x374b   :  { %v15499_v16 = vpop.xlane.xlu0 %15498 }
0x374c   :  { %v15517_v14 = vsub.f32 %v15485_v38, %v15499_v16 }
0x374e   :  { %v15527_v58 = vmul.f32 1.442695, %v15517_v14 }
0x374f   :  { %v15502_v4 = vpop.xlane.xlu0 %15501 }
0x3750   :  { %19460 = vpow2.f32 %v15527_v58  ;;  %v15518_v3 = vsub.f32 %v15486_v46, %v15502_v4  ;;  %v19592_v58 = vld [vmem:[%s23019_s17 + $0x38] sm:$0xff] }
0x3752   :  { %v15529_v12 = vmul.f32 1.442695, %v15518_v3 }
0x3753   :  { %v15505_v36 = vpop.xlane.xlu1 %15504  ;;  %v15508_v17 = vpop.xlane.xlu0 %15507 }
0x3754   :  { %19462 = vpow2.f32 %v15529_v12  ;;  %v15519_v24 = vsub.f32 %v15487_v15, %v15505_v36  ;;  %v15520_v31 = vsub.f32 %v15488_v0, %v15508_v17  ;;  %v19593_v17 = vld [vmem:[#allocation50 + $0x18] sm:$0xff] }
0x3756   :  { %v15531_v13 = vmul.f32 1.442695, %v15519_v24  ;;  %v15533_v32 = vmul.f32 1.442695, %v15520_v31 }
0x3758   :  { %19464 = vpow2.f32 %v15531_v13 }
0x3759   :  { %19466 = vpow2.f32 %v15533_v32 }
0x375b   :  { %v15514_v34 = vpop.xlane.xlu0 %15513  ;;  %v15511_v51 = vpop.xlane.xlu1 %15510 }
0x375c   :  { %v15522_v25 = vsub.f32 %v15490_v27, %v15514_v34  ;;  %v15521_v30 = vsub.f32 %v15489_v57, %v15511_v51  ;;  %v19594_v34 = vld [vmem:[#allocation50 + $0x10] sm:$0xff]  ;;  %v19595_v51 = vld [vmem:[#allocation50 + $0x8] sm:$0xff] }
0x375d   :  { %v19461_v20 = vpop.eup %19460 }
0x375e   :  { %v15537_v38 = vmul.f32 1.442695, %v15522_v25  ;;  %v15535_v22 = vmul.f32 1.442695, %v15521_v30  ;;  %v15545_v56 = vsel %vm3594_vm3, %v19461_v20, 0.0  ;;  %v19596_v30 = vld [vmem:[#allocation50] sm:$0xff] }
0x375f   :  { %15546 = vadd.xlane.f32.xlu1 %v15545_v56  ;;  %v19597_v56 = vld [vmem:[%s23019_s17 + $0x30] sm:$0xff] }
0x3760   :  { %19468 = vpow2.f32 %v15537_v38 }
0x3761   :  { %v19463_v46 = vpop.eup %19462  ;;  %19470 = vpow2.f32 %v15535_v22 }
0x3762   :  { %v15548_v6 = vsel %vm3594_vm3, %v19463_v46, 0.0 }
0x3763   :  { %15549 = vadd.xlane.f32.xlu0 %v15548_v6  ;;  %v19599_v6 = vld [vmem:[%s23019_s17 + $0x20] sm:$0xff] }
0x3765   :  { %v19465_v23 = vpop.eup %19464 }
0x3766   :  { %v19467_v15 = vpop.eup %19466  ;;  %v15551_v0 = vsel %vm3594_vm3, %v19465_v23, 0.0 }
0x3767   :  { %15552 = vadd.xlane.f32.xlu1 %v15551_v0  ;;  %v15554_v5 = vsel %vm3594_vm3, %v19467_v15, 0.0  ;;  %v19602_v0 = vld [vmem:[%s23019_s17 + $0x8] sm:$0xff] }
0x3768   :  { %15555 = vadd.xlane.f32.xlu0 %v15554_v5  ;;  %v19603_v5 = vld [vmem:[%s23019_s17] sm:$0xff] }
0x376d   :  { %v22703_v21 = vpop.eup %19468 }
0x376e   :  { %v22705_v50 = vpop.eup %19470  ;;  %v15560_v35 = vsel %vm3594_vm3, %v22703_v21, 0.0 }
0x376f   :  { %15561 = vadd.xlane.f32.xlu0 %v15560_v35  ;;  %v15557_v49 = vsel %vm3594_vm3, %v22705_v50, 0.0 }
0x3770   :  { %15558 = vadd.xlane.f32.xlu1 %v15557_v49 }
0x3773   :  { %v15544_v18 = vpop.xlane.xlu0 %15543 }
0x3775   :  { %v15541_v57 = vpop.xlane.xlu1 %15540 }
0x3776   :  { %19472 = vrcp.f32 %v15541_v57 }
0x3777   :  { %19474 = vrcp.f32 %v15544_v18 }
0x3783   :  { %v19473_v27 = vpop.eup %19472 }
0x3784   :  { %v15571_v33 = vmul.f32 %v19473_v27, %v19459_v48  ;;  %v19475_v19 = vpop.eup %19474  ;;  %v19589_v48 = vld [vmem:[#allocation49 + $0x8] sm:$0xff] }
0x3785   :  { %v15572_v59 = vmul.f32 %v19475_v19, %v19457_v62 }
0x3786   :  { %18991 = vmatmul.mubr.msk.f32.vlgmr.msra.gmra.mxu1 %vm3594_vm3, %v15571_v33 }
0x3787   :  { %18994 = vmatpush3.msra.mxu1 %v21959_v26  ;;  %18997 = vmatprep.mubr.msk.f32.mxu1 %vm20471_vm1, %v23004_v37 }
0x3788   :  { %18995 = vmatprep.subr.mxu1 %v23004_v37 }
0x3789   :  { %18996 = vmatpush3.msra.mxu1 %v21962_v55 }
0x378a   :  { %19007 = vmatprep.subr.mxu1 %v23004_v37  ;;  %18998 = vmatmul.mubr.msk.f32.vlgmr.msra.gmra.mxu1 %vm3594_vm3, %v15572_v59 }
0x378b   :  { %19008 = vmatpush3.msra.mxu1 %v22313_v41  ;;  %19011 = vmatprep.mubr.msk.f32.mxu1 %vm20471_vm1, %v23004_v37 }
0x378c   :  { %19009 = vmatprep.subr.mxu1 %v23004_v37 }
0x378d   :  { %19010 = vmatpush3.msra.mxu1 %v22315_v1 }
0x378e   :  { %19021 = vmatprep.subr.mxu1 %v23004_v37 }
0x37e8   :  { %v15547_v26 = vpop.xlane.xlu1 %15546 }
0x37e9   :  { %19476 = vrcp.f32 %v15547_v26 }
0x37ec   :  { %v15550_v47 = vpop.xlane.xlu0 %15549 }
0x37ed   :  { %19478 = vrcp.f32 %v15550_v47 }
0x37f0   :  { %v15553_v55 = vpop.xlane.xlu1 %15552 }
0x37f1   :  { %19480 = vrcp.f32 %v15553_v55  ;;  %v15556_v10 = vpop.xlane.xlu0 %15555 }
0x37f2   :  { %19482 = vrcp.f32 %v15556_v10  ;;  %v19604_v10 = vld [vmem:[%s23018_s12] ss:$0 sm:$0xff] }
0x37f6   :  { %v19477_v63 = vpop.eup %19476 }
0x37f7   :  { %v15573_v39 = vmul.f32 %v19477_v63, %v19461_v20 }
0x37f8   :  { %v15562_v41 = vpop.xlane.xlu0 %15561 }
0x37f9   :  { %19484 = vrcp.f32 %v15562_v41  ;;  %v15559_v7 = vpop.xlane.xlu1 %15558  ;;  %19005 = vmatmul.mubr.msk.f32.vlgmr.msra.gmra.mxu0 %vm3594_vm3, %v15573_v39 }
0x37fa   :  { %v19479_v45 = vpop.eup %19478  ;;  %19486 = vrcp.f32 %v15559_v7  ;;  %19015 = vmatpush3.msra.mxu0 %v22317_v43  ;;  %19018 = vmatprep.mubr.msk.f32.mxu0 %vm20471_vm1, %v23004_v37 }
0x37fb   :  { %v15574_v1 = vmul.f32 %v19479_v45, %v19463_v46  ;;  %19016 = vmatprep.subr.mxu0 %v23004_v37  ;;  %v19598_v46 = vld [vmem:[%s23019_s17 + $0x28] sm:$0xff] }
0x37fc   :  { %19017 = vmatpush3.msra.mxu0 %v22321_v11  ;;  %v19588_v11 = vld [vmem:[#allocation49] sm:$0xff] }
0x37fd   :  { %19012 = vmatmul.mubr.msk.f32.vlgmr.msra.gmra.mxu1 %vm3594_vm3, %v15574_v1  ;;  %19028 = vmatprep.subr.mxu0 %v23004_v37 }
0x37fe   :  { %v19481_v8 = vpop.eup %19480  ;;  %19022 = vmatpush3.msra.mxu1 %v22319_v9  ;;  %19025 = vmatprep.mubr.msk.f32.mxu1 %vm20471_vm1, %v23004_v37 }
0x37ff   :  { %v19483_v62 = vpop.eup %19482  ;;  %v15575_v43 = vmul.f32 %v19481_v8, %v19465_v23  ;;  %19023 = vmatprep.subr.mxu1 %v23004_v37  ;;  %v19600_v23 = vld [vmem:[%s23019_s17 + $0x18] sm:$0xff] }
0x3800   :  { %v15576_v29 = vmul.f32 %v19483_v62, %v19467_v15  ;;  %19024 = vmatpush3.msra.mxu1 %v22323_v53  ;;  %v19601_v15 = vld [vmem:[%s23019_s17 + $0x10] sm:$0xff] }
0x3801   :  { %19019 = vmatmul.mubr.msk.f32.vlgmr.msra.gmra.mxu0 %vm3594_vm3, %v15575_v43  ;;  %19035 = vmatprep.subr.mxu1 %v23004_v37 }
0x3802   :  { %19029 = vmatpush3.msra.mxu0 %v22325_v52  ;;  %19026 = vmatmul.mubr.msk.f32.vlgmr.msra.gmra.mxu1 %vm3594_vm3, %v15576_v29 }
0x3803   :  { %19030 = vmatprep.subr.mxu0 %v23004_v37  ;;  %19036 = vmatpush3.msra.mxu1 %v22327_v2 }
0x3804   :  { %19031 = vmatpush3.msra.mxu0 %v22366_v40  ;;  %19037 = vmatprep.subr.mxu1 %v23004_v37  ;;  %v19590_v40 = vld [vmem:[#allocation49 + $0x18] sm:$0xff] }
0x3805   :  { %19038 = vmatpush3.msra.mxu1 %v22377_v44  ;;  %19032 = vmatprep.mubr.msk.f32.mxu0 %vm20471_vm1, %v23004_v37  ;;  %v19591_v44 = vld [vmem:[#allocation49 + $0x10] sm:$0xff] }
0x3806   :  { %v19485_v9 = vpop.eup %19484  ;;  %19039 = vmatprep.mubr.msk.f32.mxu1 %vm20471_vm1, %v23004_v37  ;;  %19047 = vmatprep.subr.mxu1 %v19588_v11 }
0x3807   :  { %v19487_v53 = vpop.eup %19486  ;;  %v15578_v52 = vmul.f32 %v19485_v9, %v22703_v21  ;;  %19042 = vmatprep.subr.mxu0 %v19589_v48  ;;  %v19605_v9 = vld [vmem:[#allocation23] ss:$0 sm:$0xff] }
0x3808   :  { %v15577_v2 = vmul.f32 %v19487_v53, %v22705_v50 }
0x3809   :  { %19040 = vmatmul.mubr.msk.f32.vlgmr.msra.gmra.mxu1 %vm3594_vm3, %v15578_v52 }
0x380a   :  { %19033 = vmatmul.mubr.msk.f32.vlgmr.msra.gmra.mxu0 %vm3594_vm3, %v15577_v2  ;;  %19048 = vmatpush3.msra.mxu1 %v19588_v11  ;;  %v23026_v11 = vld [vmem:[#allocation128_spill] sm:$0xff]  ;;  %v23027_v2 = vld [vmem:[#allocation129_spill] sm:$0xff] }
0x380b   :  { %19043 = vmatpush3.msra.mxu0 %v19589_v48  ;;  %19057 = vmatprep.subr.mxu1 %v19590_v40  ;;  %v8664_v53 = vadd.f32 %v19605_v9, %v23026_v11 }
0x380c   :  { %19052 = vmatprep.subr.mxu0 %v19591_v44 }
0x3846   :  { %v15648_v37 = vpop.f32.mrf.mxu1 }
0x3847   :  { %19049 = vmatprep.mubr.msk.f32.mxu1 %vm1199_vm2, %v15648_v37  ;;  %v23028_v37 = vld [vmem:[#allocation127_spill] sm:$0xff] }
0x3848   :  { %v18992_v28 = vpop.f32.mrf.mxu1 }
0x3849   :  { %v8668_v28 = vadd.f32 %v8664_v53, %v23028_v37 }
0x384a   :  { %v15721_v16 = vpop.f32.mrf.mxu1 }
0x384b   :  { %19050 = vmatmul.mubr.msk.f32.vlgmr.msra.gmra.mxu1 %vm1199_vm2, %v15721_v16 }
0x384c   :  { %v18999_v14 = vpop.f32.mrf.mxu1  ;;  %19058 = vmatpush3.msra.mxu1 %v19590_v40  ;;  %v8659_v40 = vadd.f32 %v19605_v9, %v23027_v2 }
0x384d   :  { %19073 = vmatprep.subr.mxu1 %v19592_v58  ;;  %v23029_v14 = vld [vmem:[#allocation126_spill] sm:$0xff] }
0x38b9   :  { %v15794_v4 = vpop.f32.mrf.mxu0 }
0x38ba   :  { %19044 = vmatprep.mubr.msk.f32.mxu0 %vm1199_vm2, %v15794_v4 }
0x38bb   :  { %v19006_v3 = vpop.f32.mrf.mxu0 }
0x38bc   :  { %v8672_v3 = vsel %vm718_vm0, %v8668_v28, 0.0 }
0x38bd   :  { %v15867_v12 = vpop.f32.mrf.mxu1 }
0x38be   :  { %19045 = vmatmul.mubr.msk.f32.vlgmr.msra.gmra.mxu0 %vm1199_vm2, %v15867_v12 }
0x38bf   :  { %v19013_v36 = vpop.f32.mrf.mxu1  ;;  %19053 = vmatpush3.msra.mxu0 %v19591_v44 }
0x38c0   :  { %19062 = vmatprep.subr.mxu0 %v19593_v17 }
0x38c1   :  { %v15940_v24 = vpop.f32.mrf.mxu0 }
0x38c2   :  { %v16013_v31 = vpop.f32.mrf.mxu1  ;;  %19054 = vmatprep.mubr.msk.f32.mxu0 %vm1199_vm2, %v15940_v24 }
0x38c3   :  { %v19020_v13 = vpop.f32.mrf.mxu0  ;;  %19055 = vmatmul.mubr.msk.f32.vlgmr.msra.gmra.mxu0 %vm1199_vm2, %v16013_v31 }
0x38c4   :  { %v19027_v32 = vpop.f32.mrf.mxu1  ;;  %19063 = vmatpush3.msra.mxu0 %v19593_v17 }
0x38c5   :  { %19064 = vmatprep.subr.mxu0 %v19594_v34 }
0x38c6   :  { %19065 = vmatpush3.msra.mxu0 %v19594_v34 }
0x38c7   :  { %19066 = vmatprep.subr.mxu0 %v19595_v51 }
0x38c8   :  { %19067 = vmatpush3.msra.mxu0 %v19595_v51 }
0x38c9   :  { %v16159_v25 = vpop.f32.mrf.mxu1  ;;  %19068 = vmatprep.subr.mxu0 %v19596_v30 }
0x38ca   :  { %v16086_v20 = vpop.f32.mrf.mxu0  ;;  %19069 = vmatpush3.msra.mxu0 %v19596_v30 }
0x38cb   :  { %19059 = vmatprep.mubr.msk.f32.mxu1 %vm1199_vm2, %v16086_v20  ;;  %v19041_v38 = vpop.f32.mrf.mxu1  ;;  %v19606_v20 = vld [vmem:[%s23020_s29] ss:$0 sm:$0xff] }
0x38cc   :  { %v19034_v22 = vpop.f32.mrf.mxu0  ;;  %19060 = vmatmul.mubr.msk.f32.vlgmr.msra.gmra.mxu1 %vm1199_vm2, %v16159_v25 }
0x38cd   :  { %19074 = vmatpush3.msra.mxu1 %v19592_v58  ;;  %v8667_v58 = vadd.f32 %v8659_v40, %v23029_v14 }
0x38ce   :  { %19075 = vmatprep.subr.mxu1 %v19597_v56 }
0x38cf   :  { %19076 = vmatpush3.msra.mxu1 %v19597_v56  ;;  %v8669_v12 = vsel %vm718_vm0, %v8667_v58, 0.0  ;;  %v19607_v56 = vld [vmem:[%s23021_s28] ss:$0 sm:$0xff] }
0x38d0   :  { %19077 = vmatprep.subr.mxu1 %v19598_v46 }
0x38d1   :  { %19078 = vmatpush3.msra.mxu1 %v19598_v46 }
0x38d2   :  { %19079 = vmatprep.subr.mxu1 %v19599_v6 }
0x38d3   :  { %19080 = vmatpush3.msra.mxu1 %v19599_v6 }
0x38d4   :  { %19081 = vmatprep.subr.mxu1 %v19600_v23 }
0x38d5   :  { %19082 = vmatpush3.msra.mxu1 %v19600_v23 }
0x38d6   :  { %19083 = vmatprep.subr.mxu1 %v19601_v15 }
0x38d7   :  { %19084 = vmatpush3.msra.mxu1 %v19601_v15  ;;  %v19608_v15 = vld [vmem:[%s23022_s2] ss:$0 sm:$0xff] }
0x38d8   :  { %19085 = vmatprep.subr.mxu1 %v19602_v0 }
0x38d9   :  { %19086 = vmatpush3.msra.mxu1 %v19602_v0 }
0x38da   :  { %19087 = vmatprep.subr.mxu1 %v19603_v5 }
0x38db   :  { %19088 = vmatpush3.msra.mxu1 %v19603_v5 }
0x390b   :  { %v19051_v35 = vpop.f32.mrf.mxu1 }
0x390d   :  { %v16316_v57 = vpop.f32.mrf.mxu1 }
0x397e   :  { %v19046_v21 = vpop.f32.mrf.mxu0 }
0x397f   :  { %v16322_v18 = vadd.f32 %v19051_v35, %v19046_v21 }
0x3980   :  { %v16235_v50 = vpop.f32.mrf.mxu0 }
0x3981   :  { %v16317_v33 = vadd.f32 %v16316_v57, %v16235_v50 }
0x3983   :  { %v19056_v49 = vpop.f32.mrf.mxu0 }
0x3984   :  { %v16407_v19 = vadd.f32 %v19056_v49, %v16322_v18 }
0x3985   :  { %v16397_v27 = vpop.f32.mrf.mxu0 }
0x3986   :  { %v16406_v26 = vadd.f32 %v16397_v27, %v16317_v33 }
0x398c   :  { %v19061_v59 = vpop.f32.mrf.mxu1 }
0x398d   :  { %v16490_v47 = vadd.f32 %v19061_v59, %v16407_v19  ;;  %v19609_v59 = vld [vmem:[%s23023_s30] ss:$0 sm:$0xff] }
0x398e   :  { %v16480_v55 = vpop.f32.mrf.mxu1 }
0x398f   :  { %v16492_v63 = vadd.f32 %v19604_v10, %v16490_v47  ;;  %v16489_v39 = vadd.f32 %v16480_v55, %v16406_v26 }
0x3991   :  { %v16491_v41 = vadd.f32 %v19604_v10, %v16489_v39  ;;  %v16494_v7 = vadd.f32 %v16492_v63, %v22601_v60 }
0x3993   :  { %v16498_v45 = vsel %vm718_vm0, %v16494_v7, 0.0  ;;  %v16493_v1 = vadd.f32 %v16491_v41, %v22596_v61 }
0x3994   :  { %16499 = vadd.xlane.f32.xlu0 %v16498_v45 }
0x3995   :  { %v16495_v8 = vsel %vm718_vm0, %v16493_v1, 0.0 }
0x3996   :  { %16496 = vadd.xlane.f32.xlu1 %v16495_v8 }
0x3a1d   :  { %v16500_v62 = vpop.xlane.xlu0 %16499 }
0x3a1e   :  { %v16502_v43 = vmul.f32 0.03125, %v16500_v62 }
0x3a1f   :  { %v16497_v29 = vpop.xlane.xlu1 %16496 }
0x3a20   :  { %v16504_v52 = vsub.f32 %v16494_v7, %v16502_v43  ;;  %v16501_v48 = vmul.f32 0.03125, %v16497_v29 }
0x3a22   :  { %v16503_v44 = vsub.f32 %v16493_v1, %v16501_v48  ;;  %v16506_v60 = vmul.f32 %v16504_v52, %v16504_v52 }
0x3a24   :  { %v16510_v61 = vsel %vm718_vm0, %v16506_v60, 0.0  ;;  %v16505_v16 = vmul.f32 %v16503_v44, %v16503_v44 }
0x3a25   :  { %16511 = vadd.xlane.f32.xlu0 %v16510_v61 }
0x3a26   :  { %v16507_v4 = vsel %vm718_vm0, %v16505_v16, 0.0 }
0x3a27   :  { %16508 = vadd.xlane.f32.xlu1 %v16507_v4 }
0x3a29   :  { %8673 = vadd.xlane.f32.xlu0 %v8672_v3  ;;  %v23031_v3 = vld [vmem:[#allocation125_spill] sm:$0xff] }
0x3a2b   :  { %8670 = vadd.xlane.f32.xlu1 %v8669_v12  ;;  %v4876_v12 = vsel %vm718_vm0, %v23031_v3, 0.0 }
0x3aae   :  { %v16512_v36 = vpop.xlane.xlu0 %16511 }
0x3aaf   :  { %v16514_v17 = vmul.f32 0.03125, %v16512_v36 }
0x3ab0   :  { %v16509_v24 = vpop.xlane.xlu1 %16508 }
0x3ab1   :  { %v16516_v31 = vadd.f32 1e-05, %v16514_v17  ;;  %v16513_v13 = vmul.f32 0.03125, %v16509_v24 }
0x3ab2   :  { %v8674_v49 = vpop.xlane.xlu0 %8673 }
0x3ab3   :  { %19488 = vrsqrt.f32 %v16516_v31  ;;  %v16515_v32 = vadd.f32 1e-05, %v16513_v13  ;;  %v8676_v57 = vmul.f32 0.03125, %v8674_v49  ;;  %v19610_v31 = vld [vmem:[#allocation31] ss:$0 sm:$0xff] }
0x3ab4   :  { %v8671_v18 = vpop.xlane.xlu1 %8670 }
0x3ab5   :  { %19490 = vrsqrt.f32 %v16515_v32  ;;  %v8675_v27 = vmul.f32 0.03125, %v8671_v18  ;;  %v8678_v19 = vsub.f32 %v8668_v28, %v8676_v57 }
0x3ab7   :  { %v8677_v55 = vsub.f32 %v8667_v58, %v8675_v27  ;;  %v8680_v7 = vmul.f32 %v8678_v19, %v8678_v19  ;;  %v23030_v58 = vld [vmem:[#allocation124_spill] sm:$0xff] }
0x3ab8   :  { %v4879_v4 = vsel %vm718_vm0, %v23030_v58, 0.0 }
0x3ab9   :  { %v8679_v1 = vmul.f32 %v8677_v55, %v8677_v55  ;;  %v8684_v8 = vsel %vm718_vm0, %v8680_v7, 0.0 }
0x3abb   :  { %v8681_v62 = vsel %vm718_vm0, %v8679_v1, 0.0 }
0x3ac0   :  { %v19489_v34 = vpop.eup %19488 }
0x3ac1   :  { %v16520_v51 = vmul.f32 %v19489_v34, %v16504_v52  ;;  %v19611_v34 = vld [vmem:[#allocation32] ss:$0 sm:$0xff] }
0x3ac2   :  { %v19491_v25 = vpop.eup %19490 }
0x3ac3   :  { %v16519_v30 = vmul.f32 %v19491_v25, %v16503_v44  ;;  %v16522_v38 = vmul.f32 %v19606_v20, %v16520_v51 }
0x3ac5   :  { %v16521_v22 = vmul.f32 %v19606_v20, %v16519_v30  ;;  %v16524_v6 = vadd.f32 %v19607_v56, %v16522_v38 }
0x3ac7   :  { %v16523_v46 = vadd.f32 %v19607_v56, %v16521_v22  ;;  %v12921_v22 = vsel %vm718_vm0, %v22426_v54, 0.0  ;;  %v12918_v56 = vsel %vm718_vm0, %v22428_v42, 0.0 }
0x3ac9   :  { %19070 = vmatprep.mubr.msk.f32.mxu0 %vm718_vm0, %v16523_v46 }
0x3aca   :  { %19071 = vmatmul.mubr.msk.f32.vlgmr.msra.gmra.mxu0 %vm718_vm0, %v16524_v6 }
0x3b8a   :  { %v19072_v23 = vpop.f32.mrf.mxu0 }
0x3b8b   :  { %v16603_v0 = vadd.f32 %v19608_v15, %v19072_v23 }
0x3b8c   :  { %v16597_v5 = vpop.f32.mrf.mxu0 }
0x3b8d   :  { %v16598_v21 = vadd.f32 %v19608_v15, %v16597_v5  ;;  %v16607_v35 = vmax.f32 %v16603_v0, 0.0 }
0x3b8f   :  { %v16606_v50 = vmax.f32 %v16598_v21, 0.0 }
0x3b91   :  { %19089 = vmatprep.mubr.msk.f32.mxu1 %vm4750_vm4, %v16606_v50 }
0x3b92   :  { %19090 = vmatmul.mubr.msk.f32.vlgmr.msra.gmra.mxu1 %vm4750_vm4, %v16607_v35 }
0x3c52   :  { %v19091_v33 = vpop.f32.mrf.mxu1 }
0x3c53   :  { %v16686_v26 = vadd.f32 %v19609_v59, %v19091_v33 }
0x3c54   :  { %v16680_v47 = vpop.f32.mrf.mxu1 }
0x3c55   :  { %v16690_v10 = vadd.f32 %v16686_v26, %v16524_v6  ;;  %v16681_v63 = vadd.f32 %v19609_v59, %v16680_v47 }
0x3c57   :  { %v16689_v39 = vadd.f32 %v16681_v63, %v16523_v46  ;;  %v16694_v41 = vsel %vm718_vm0, %v16690_v10, 0.0  ;;  %v19613_v63 = vld [vmem:[%s23025_s8] ss:$0 sm:$0xff] }
0x3c58   :  { %16695 = vadd.xlane.f32.xlu0 %v16694_v41 }
0x3c59   :  { %v16691_v45 = vsel %vm718_vm0, %v16689_v39, 0.0 }
0x3c5a   :  { %16692 = vadd.xlane.f32.xlu1 %v16691_v45 }
0x3c5c   :  { %8685 = vadd.xlane.f32.xlu0 %v8684_v8 }
0x3c5e   :  { %8682 = vadd.xlane.f32.xlu1 %v8681_v62 }
0x3ce1   :  { %v16696_v43 = vpop.xlane.xlu0 %16695 }
0x3ce2   :  { %v16698_v29 = vmul.f32 0.03125, %v16696_v43 }
0x3ce3   :  { %v16693_v9 = vpop.xlane.xlu1 %16692 }
0x3ce4   :  { %v16700_v11 = vsub.f32 %v16690_v10, %v16698_v29  ;;  %v16697_v53 = vmul.f32 0.03125, %v16693_v9 }
0x3ce5   :  { %v8686_v52 = vpop.xlane.xlu0 %8685 }
0x3ce6   :  { %v16699_v48 = vsub.f32 %v16689_v39, %v16697_v53  ;;  %v8688_v2 = vmul.f32 0.03125, %v8686_v52  ;;  %v16702_v40 = vmul.f32 %v16700_v11, %v16700_v11 }
0x3ce7   :  { %v8683_v44 = vpop.xlane.xlu1 %8682 }
0x3ce8   :  { %v8690_v60 = vadd.f32 1e-05, %v8688_v2  ;;  %v8687_v37 = vmul.f32 0.03125, %v8683_v44  ;;  %v16706_v28 = vsel %vm718_vm0, %v16702_v40, 0.0  ;;  %v16701_v61 = vmul.f32 %v16699_v48, %v16699_v48 }
0x3ce9   :  { %16707 = vadd.xlane.f32.xlu0 %v16706_v28 }
0x3cea   :  { %19492 = vrsqrt.f32 %v8690_v60  ;;  %v8689_v16 = vadd.f32 1e-05, %v8687_v37  ;;  %v16703_v14 = vsel %vm718_vm0, %v16701_v61, 0.0 }
0x3ceb   :  { %16704 = vadd.xlane.f32.xlu1 %v16703_v14 }
0x3cec   :  { %19494 = vrsqrt.f32 %v8689_v16 }
0x3ced   :  { %4880 = vadd.xlane.f32.xlu0 %v4879_v4 }
0x3cef   :  { %4877 = vadd.xlane.f32.xlu1 %v4876_v12 }
0x3cf7   :  { %v19493_v36 = vpop.eup %19492 }
0x3cf8   :  { %v8694_v17 = vmul.f32 %v19493_v36, %v8678_v19  ;;  %v19612_v19 = vld [vmem:[%s23024_s9] ss:$0 sm:$0xff] }
0x3cf9   :  { %v19495_v24 = vpop.eup %19494 }
0x3cfa   :  { %v8696_v13 = vmul.f32 %v19610_v31, %v8694_v17  ;;  %v8693_v32 = vmul.f32 %v19495_v24, %v8677_v55 }
0x3cfc   :  { %v8698_v51 = vadd.f32 %v19611_v34, %v8696_v13  ;;  %v8695_v25 = vmul.f32 %v19610_v31, %v8693_v32 }
0x3cfe   :  { %v8702_v30 = vsel %vm718_vm0, %v8698_v51, 0.0  ;;  %v8697_v20 = vadd.f32 %v19611_v34, %v8695_v25 }
0x3cff   :  { %8703 = vadd.xlane.f32.xlu0 %v8702_v30 }
0x3d00   :  { %v8699_v38 = vsel %vm718_vm0, %v8697_v20, 0.0 }
0x3d01   :  { %8700 = vadd.xlane.f32.xlu1 %v8699_v38 }
0x3d03   :  { %12922 = vadd.xlane.f32.xlu0 %v12921_v22 }
0x3d05   :  { %12919 = vadd.xlane.f32.xlu1 %v12918_v56 }
0x3d72   :  { %v16708_v46 = vpop.xlane.xlu0 %16707 }
0x3d73   :  { %v16710_v6 = vmul.f32 0.03125, %v16708_v46 }
0x3d74   :  { %v16705_v23 = vpop.xlane.xlu1 %16704 }
0x3d75   :  { %v16712_v15 = vadd.f32 1e-05, %v16710_v6  ;;  %v16709_v0 = vmul.f32 0.03125, %v16705_v23 }
0x3d76   :  { %v4881_v21 = vpop.xlane.xlu0 %4880 }
0x3d77   :  { %19496 = vrsqrt.f32 %v16712_v15  ;;  %v16711_v5 = vadd.f32 1e-05, %v16709_v0  ;;  %v4883_v50 = vmul.f32 0.03125, %v4881_v21 }
0x3d78   :  { %v4878_v35 = vpop.xlane.xlu1 %4877 }
0x3d79   :  { %19498 = vrsqrt.f32 %v16711_v5  ;;  %v4882_v18 = vmul.f32 0.03125, %v4878_v35  ;;  %v22809_v33 = vsub.f32 %v23030_v58, %v4883_v50 }
0x3d7b   :  { %v22813_v55 = vsub.f32 %v23031_v3, %v4882_v18  ;;  %v4887_v45 = vmul.f32 %v22809_v33, %v22809_v33 }
0x3d7d   :  { %v4886_v52 = vmul.f32 %v22813_v55, %v22813_v55  ;;  %v4891_v44 = vsel %vm718_vm0, %v4887_v45, 0.0 }
0x3d7f   :  { %v4888_v28 = vsel %vm718_vm0, %v4886_v52, 0.0 }
0x3d84   :  { %v19497_v49 = vpop.eup %19496 }
0x3d85   :  { %v16716_v57 = vmul.f32 %v19497_v49, %v16700_v11 }
0x3d86   :  { %v19499_v27 = vpop.eup %19498 }
0x3d87   :  { %v16718_v59 = vmul.f32 %v19612_v19, %v16716_v57  ;;  %v16715_v26 = vmul.f32 %v19499_v27, %v16699_v48 }
0x3d88   :  { %v8704_v47 = vpop.xlane.xlu0 %8703 }
0x3d89   :  { %v8706_v10 = vmul.f32 0.03125, %v8704_v47  ;;  %v16720_v39 = vadd.f32 %v19613_v63, %v16718_v59  ;;  %v16717_v41 = vmul.f32 %v19612_v19, %v16715_v26  ;;  %v16999_v19 = vld [vmem:[#allocation34] ss:$0 sm:$0xff]  ;;  %v17000_v47 = vld [vmem:[#allocation35] ss:$0 sm:$0xff] }
0x3d8a   :  { %v8701_v7 = vpop.xlane.xlu1 %8700 }
0x3d8b   :  { %v22818_v1 = vsub.f32 %v8698_v51, %v8706_v10  ;;  %v8705_v8 = vmul.f32 0.03125, %v8701_v7  ;;  %v16724_v62 = vsel %vm718_vm0, %v16720_v39, 0.0  ;;  %v16719_v43 = vadd.f32 %v19613_v63, %v16717_v41 }
0x3d8c   :  { %16725 = vadd.xlane.f32.xlu0 %v16724_v62  ;;  %v12923_v29 = vpop.xlane.xlu0 %12922 }
0x3d8d   :  { %v22821_v9 = vsub.f32 %v8697_v20, %v8705_v8  ;;  %v12925_v11 = vmul.f32 0.03125, %v12923_v29  ;;  %v16721_v53 = vsel %vm718_vm0, %v16719_v43, 0.0  ;;  %v8710_v60 = vmul.f32 %v22818_v1, %v22818_v1 }
0x3d8e   :  { %16722 = vadd.xlane.f32.xlu1 %v16721_v53  ;;  %v12920_v48 = vpop.xlane.xlu1 %12919 }
0x3d8f   :  { %v22827_v2 = vsub.f32 %v22426_v54, %v12925_v11  ;;  %v12924_v40 = vmul.f32 0.03125, %v12920_v48  ;;  %v8709_v61 = vmul.f32 %v22821_v9, %v22821_v9  ;;  %v8714_v16 = vsel %vm718_vm0, %v8710_v60, 0.0 }
0x3d90   :  { %4892 = vadd.xlane.f32.xlu0 %v4891_v44 }
0x3d91   :  { %v22833_v37 = vsub.f32 %v22428_v42, %v12924_v40  ;;  %v12929_v54 = vmul.f32 %v22827_v2, %v22827_v2  ;;  %v8711_v14 = vsel %vm718_vm0, %v8709_v61, 0.0 }
0x3d92   :  { %4889 = vadd.xlane.f32.xlu1 %v4888_v28 }
0x3d93   :  { %v12928_v58 = vmul.f32 %v22833_v37, %v22833_v37  ;;  %v12933_v42 = vsel %vm718_vm0, %v12929_v54, 0.0 }
0x3d94   :  { %8715 = vadd.xlane.f32.xlu0 %v8714_v16 }
0x3d95   :  { %v12930_v4 = vsel %vm718_vm0, %v12928_v58, 0.0 }
0x3d96   :  { %8712 = vadd.xlane.f32.xlu1 %v8711_v14 }
0x3d98   :  { %12934 = vadd.xlane.f32.xlu0 %v12933_v42 }
0x3d9a   :  { %12931 = vadd.xlane.f32.xlu1 %v12930_v4 }
0x3e15   :  { %v16726_v3 = vpop.xlane.xlu0 %16725 }
0x3e16   :  { %v16728_v12 = vmul.f32 0.03125, %v16726_v3 }
0x3e17   :  { %v16723_v36 = vpop.xlane.xlu1 %16722 }
0x3e18   :  { %v22846_v17 = vsub.f32 %v16720_v39, %v16728_v12  ;;  %v16727_v24 = vmul.f32 0.03125, %v16723_v36 }
0x3e19   :  { %v4893_v31 = vpop.xlane.xlu0 %4892 }
0x3e1a   :  { %v22848_v13 = vsub.f32 %v16719_v43, %v16727_v24  ;;  %v4895_v32 = vmul.f32 0.03125, %v4893_v31  ;;  %v16732_v34 = vmul.f32 %v22846_v17, %v22846_v17 }
0x3e1b   :  { %v4890_v51 = vpop.xlane.xlu1 %4889 }
0x3e1c   :  { %v4897_v25 = vadd.f32 1e-05, %v4895_v32  ;;  %v4894_v30 = vmul.f32 0.03125, %v4890_v51  ;;  %v16736_v20 = vsel %vm718_vm0, %v16732_v34, 0.0  ;;  %v16731_v38 = vmul.f32 %v22848_v13, %v22848_v13 }
0x3e1d   :  { %16737 = vadd.xlane.f32.xlu0 %v16736_v20  ;;  %v8716_v22 = vpop.xlane.xlu0 %8715 }
0x3e1e   :  { %19500 = vrsqrt.f32 %v4897_v25  ;;  %v4896_v56 = vadd.f32 1e-05, %v4894_v30  ;;  %v8718_v46 = vmul.f32 0.03125, %v8716_v22  ;;  %v16733_v6 = vsel %vm718_vm0, %v16731_v38, 0.0 }
0x3e1f   :  { %16734 = vadd.xlane.f32.xlu1 %v16733_v6  ;;  %v8713_v23 = vpop.xlane.xlu1 %8712 }
0x3e20   :  { %19502 = vrsqrt.f32 %v4896_v56  ;;  %v8720_v15 = vadd.f32 1e-05, %v8718_v46  ;;  %v8717_v0 = vmul.f32 0.03125, %v8713_v23 }
0x3e21   :  { %v12935_v5 = vpop.xlane.xlu0 %12934 }
0x3e22   :  { %19504 = vrsqrt.f32 %v8720_v15  ;;  %v8719_v21 = vadd.f32 1e-05, %v8717_v0  ;;  %v12937_v50 = vmul.f32 0.03125, %v12935_v5 }
0x3e23   :  { %v12932_v35 = vpop.xlane.xlu1 %12931 }
0x3e24   :  { %19506 = vrsqrt.f32 %v8719_v21  ;;  %v12939_v49 = vadd.f32 1e-05, %v12937_v50  ;;  %v12936_v18 = vmul.f32 0.03125, %v12932_v35 }
0x3e26   :  { %19508 = vrsqrt.f32 %v12939_v49  ;;  %v12938_v57 = vadd.f32 1e-05, %v12936_v18 }
0x3e28   :  { %19510 = vrsqrt.f32 %v12938_v57 }
0x3e2b   :  { %v19501_v27 = vpop.eup %19500 }
0x3e2c   :  { %v4901_v59 = vmul.f32 %v19501_v27, %v22809_v33  ;;  %v22862_v33 = vld [vmem:[%s23032_s7] ss:$0 sm:$0xff] }
0x3e2d   :  { %v19503_v26 = vpop.eup %19502 }
0x3e2e   :  { %v4900_v10 = vmul.f32 %v19503_v26, %v22813_v55  ;;  %v4909_v63 = vmul.f32 %v16999_v19, %v4901_v59 }
0x3e2f   :  { %v19505_v39 = vpop.eup %19504 }
0x3e30   :  { %v8724_v41 = vmul.f32 %v19505_v39, %v22818_v1  ;;  %v4908_v7 = vmul.f32 %v16999_v19, %v4900_v10  ;;  %v4917_v45 = vadd.f32 %v17000_v47, %v4909_v63  ;;  %v17189_v1 = vld [vmem:[%s23033_s3] ss:$0 sm:$0xff] }
0x3e31   :  { %v19507_v8 = vpop.eup %19506 }
0x3e32   :  { %v8723_v62 = vmul.f32 %v19507_v8, %v22821_v9  ;;  %v4916_v43 = vadd.f32 %v17000_v47, %v4908_v7  ;;  %4919 = vst.msk [vmem:[#allocation52 + $0x8] sm:$0xff] %vm718_vm0, %v4917_v45  ;;  %v8726_v29 = vmul.f32 %v16999_v19, %v8724_v41 }
0x3e33   :  { %v19509_v11 = vpop.eup %19508 }
0x3e34   :  { %v12943_v53 = vmul.f32 %v19509_v11, %v22827_v2  ;;  %4918 = vst.msk [vmem:[#allocation52] sm:$0xff] %vm718_vm0, %v4916_v43  ;;  %v8725_v55 = vmul.f32 %v16999_v19, %v8723_v62  ;;  %v8728_v52 = vadd.f32 %v17000_v47, %v8726_v29 }
0x3e35   :  { %v19511_v48 = vpop.eup %19510 }
0x3e36   :  { %v12942_v40 = vmul.f32 %v19511_v48, %v22833_v37  ;;  %v8727_v44 = vadd.f32 %v17000_v47, %v8725_v55  ;;  %8731 = vst.msk [vmem:[#allocation52 + $0x18] sm:$0xff] %vm718_vm0, %v8728_v52  ;;  %v12951_v9 = vmul.f32 %v22862_v33, %v12943_v53 }
0x3e38   :  { %8730 = vst.msk [vmem:[#allocation52 + $0x10] sm:$0xff] %vm718_vm0, %v8727_v44  ;;  %v12950_v60 = vmul.f32 %v22862_v33, %v12942_v40  ;;  %v12959_v28 = vadd.f32 %v17189_v1, %v12951_v9 }
0x3e3a   :  { %v12958_v61 = vadd.f32 %v17189_v1, %v12950_v60  ;;  %12961 = vst.msk [vmem:[#allocation56 + $0x8] sm:$0xff] %vm718_vm0, %v12959_v28 }
0x3e3c   :  { %12960 = vst.msk [vmem:[#allocation56] sm:$0xff] %vm718_vm0, %v12958_v61 }
0x3e3d   :  { %20265 = shalt.err (!%p20262_p10)
}
0x3e3e   :  { %16777 = dma.vmem_to_hbm [thread:$0]  %s16772_s19, 512, %s20776_s21, [#allocation54], %s20436_s10, %s20436_s10, %s20437_s11  }
0x3e3f   :  { %s20274_s5 = scalar_lea.vmem %s16760_s16, 512  ;;  %p20279_p12 = scmp.lt.s32.totalorder %s16760_s16, %s16760_s16 }
0x3e40   :  { %p20275_p11 = scmp.ne.s32.totalorder %s16760_s16, %s20274_s5  ;;  %p20280_p13 = scmp.lt.s32.totalorder %s20274_s5, %s20274_s5 }
0x3e42   :  { %p20281_p0 = por %p20280_p13, %p20279_p12 }
0x3e44   :  { %p20282_p1 = pnand %p20281_p0, %p20275_p11 }
0x3e46   :  { %20285 = shalt.err (!%p20282_p1)
}
0x3e47   :  { %16765 = dma.vmem_to_hbm [thread:$0]  %s16760_s16, 512, %s20771_s25, [#allocation4], %s20436_s10, %s20436_s10, %s20437_s11  }
0x3e48   :  { %s20476_s22 = smov [#allocation55]  }
0x3e49   :  { %s16783_s24 = sshll.u32 %s20476_s22, 4  ;;  %s16784_s24 = int_to_ptr.vmem [resolvable:$true] %s16783_s24 }
0x3e4a   :  { %s20294_s23 = scalar_lea.vmem %s16784_s24, 512  ;;  %p20299_p3 = scmp.lt.s32.totalorder %s16784_s24, %s16784_s24 }
0x3e4b   :  { %p20295_p2 = scmp.ne.s32.totalorder %s16784_s24, %s20294_s23  ;;  %p20300_p4 = scmp.lt.s32.totalorder %s20294_s23, %s20294_s23 }
0x3e4d   :  { %p20301_p5 = por %p20300_p4, %p20299_p3 }
0x3e4f   :  { %p20302_p6 = pnand %p20301_p5, %p20295_p2 }
0x3e51   :  { %20305 = shalt.err (!%p20302_p6)
}
0x3e52   :  { %16789 = dma.vmem_to_hbm [thread:$0]  %s16784_s24, 512, %s20781_s14, [#allocation54], %s20436_s10, %s20436_s10, %s20437_s11  }
0x3e53   :  { %s20477_s21 = smov [#allocation56]  }
0x3e54   :  { %s16795_s25 = sshll.u32 %s20477_s21, 4  ;;  %s16796_s25 = int_to_ptr.vmem [resolvable:$true] %s16795_s25 }
0x3e55   :  { %s20314_s14 = scalar_lea.vmem %s16796_s25, 512  ;;  %p20319_p8 = scmp.lt.s32.totalorder %s16796_s25, %s16796_s25 }
0x3e56   :  { %p20315_p7 = scmp.ne.s32.totalorder %s16796_s25, %s20314_s14  ;;  %p20320_p9 = scmp.lt.s32.totalorder %s20314_s14, %s20314_s14 }
0x3e58   :  { %p20321_p10 = por %p20320_p9, %p20319_p8 }
0x3e5a   :  { %p20322_p11 = pnand %p20321_p10, %p20315_p7 }
0x3ea6   :  { %v16738_v2 = vpop.xlane.xlu0 %16737 }
0x3ea7   :  { %v16740_v37 = vmul.f32 0.03125, %v16738_v2 }
0x3ea8   :  { %v16735_v16 = vpop.xlane.xlu1 %16734 }
0x3ea9   :  { %v16742_v54 = vadd.f32 1e-05, %v16740_v37  ;;  %v16739_v14 = vmul.f32 0.03125, %v16735_v16 }
0x3eab   :  { %19512 = vrsqrt.f32 %v16742_v54  ;;  %v16741_v58 = vadd.f32 1e-05, %v16739_v14 }
0x3ead   :  { %19514 = vrsqrt.f32 %v16741_v58 }
0x3eb8   :  { %v19513_v42 = vpop.eup %19512 }
0x3eb9   :  { %v16746_v4 = vmul.f32 %v19513_v42, %v22846_v17 }
0x3eba   :  { %v19515_v3 = vpop.eup %19514 }
0x3ebb   :  { %v16745_v12 = vmul.f32 %v19515_v3, %v22848_v13  ;;  %v16748_v36 = vmul.f32 %v22862_v33, %v16746_v4 }
0x3ebd   :  { %v16747_v24 = vmul.f32 %v22862_v33, %v16745_v12  ;;  %v16750_v31 = vadd.f32 %v17189_v1, %v16748_v36 }
0x3ebf   :  { %v16749_v32 = vadd.f32 %v17189_v1, %v16747_v24  ;;  %16753 = vst.msk [vmem:[#allocation56 + $0x18] sm:$0xff] %vm718_vm0, %v16750_v31 }
0x3ec1   :  { %16752 = vst.msk [vmem:[#allocation56 + $0x10] sm:$0xff] %vm718_vm0, %v16749_v32 }
0x3ec2   :  { %20325 = shalt.err (!%p20322_p11)
}
0x3ec3   :  { %16801 = dma.vmem_to_hbm [thread:$0]  %s16796_s25, 512, %s20786_s13, [#allocation57], %s20436_s10, %s20436_s10, %s20437_s11  }
0x3ec4   :  { %20368 = dma.done.wait [#allocation4], 512  }
0x3ec5   :  { %20369 = vsyncadd [#allocation4], 4294966784 }
0x3ec6   :  { %20370 = dma.done.wait [#allocation54], 1024  }
0x3ec7   :  { %20371 = vsyncadd [#allocation54], 4294966272 }
0x3ec8   :  { %20372 = dma.done.wait [#allocation57], 512  }
0x3ec9   :  { %20373 = vsyncadd [#allocation57], 4294966784 }
0x3eca   :  { %16814 = vsyncpa [#allocation3], 1 }
0x3ecb   :  { %16815 = vsyncpa [#allocation6], 1 }
0x3ecc   :  { %16816 = vsyncpa [#allocation9], 1 }
0x3ecd   :  { %16817 = vsyncpa [#allocation12], 1 }
0x3ece   :  { %16818 = vsyncpa [#allocation15], 1 }
0x3ecf   :  { %16819 = vsyncpa [#allocation18], 1 }
0x3ed0   :  { %16820 = vsyncpa [#allocation21], 1 }
0x3ed1   :  { %16821 = vsyncpa [#allocation24], 1 }
0x3ed2   :  { %16822 = vsyncpa [#allocation27], 1 }
0x3ed3   :  { %16823 = vsyncpa [#allocation30], 1 }
0x3ed4   :  { %16824 = vsyncpa [#allocation33], 1 }
0x3ed5   :  { %16825 = vsyncpa [#allocation36], 1 }
0x3ed6   :  { %16826 = vsyncpa [#allocation39], 1 }
0x3ed7   :  { %16827 = vsyncpa [#allocation42], 1 }
0x3ed8   :  { %16828 = vsyncpa [#allocation45], 1 }
0x3ed9   :  { %16829 = vsyncpa [#allocation48], 1 }
0x3eda   :  { %16830 = vsyncpa [#allocation51], 1 }
0x3edb   :  { %16831 = vsyncpa [#allocation4], 1 }
0x3edc   :  { %16832 = vsyncpa [#allocation54], 1 }
0x3edd   :  { %16833 = vsyncpa [#allocation57], 1 }

</bundles_post_ra>
